<compile_context>
chip_gen: v5e
topology: v5e:2x2
jax: 0.10.0
libtpu: 0.0.40
codegen_flags: <defaults>
</compile_context>

<pallas_src>
import functools

import jax
import jax.numpy as jnp
import numpy as np
from jax import lax
from jax.experimental import pallas as pl
from jax.experimental.pallas import tpu as pltpu

_LANE = 128
_NEG = -1e30  # bias fill for padded vocab columns: never wins argmax


def _round_up(x, m=_LANE):
    return ((x + m - 1) // m) * m


def _decoder_kernel(enc_ref, att1_ref, emb0_ref, emb_tab_ref,
                    w_dec_att_ref, b_dec_att_ref, w_full_ref, b_full_ref,
                    w_init_ref, b_init_ref, w_gates_ref, b_gates_ref,
                    w_voc_ref, b_voc_ref,
                    out_ref, att_ref):
    N, P, _ = enc_ref.shape
    V_pad, E_pad = emb_tab_ref.shape
    T = out_ref.shape[1]

    enc = enc_ref[...]                  # (N, P, Dpad)   zero-padded encoder features
    att1 = att1_ref[...]                # (N, P, Apad)   hoisted, time-invariant
    emb_tab = emb_tab_ref[...]          # (Vpad, Epad)
    w_dec_att = w_dec_att_ref[...]
    b_dec_att = b_dec_att_ref[...]
    w_full_b = w_full_ref[...][None, :, :]   # (1, 1, Apad) view, hoisted out of the loop
    b_full = b_full_ref[...]            # (1, 1)
    w_gates = w_gates_ref[...]          # (Dpad + 2*Epad, 4*Epad), gate-aligned columns
    b_gates = b_gates_ref[...]
    w_voc = w_voc_ref[...]              # (Epad, Vpad)
    b_voc = b_voc_ref[...]              # (1, Vpad), pads = -1e30

    # Loop-invariant iota for the greedy one-hot argmax (hoisted: JAX doesn't CSE
    # broadcast/iota if left inside the unrolled loop).
    iota = lax.broadcasted_iota(jnp.int32, (N, V_pad), 1)

    # ---- init h / c from mean-pooled encoder: single fused (Dpad, 2*Epad) matmul ----
    enc_mean = jnp.mean(enc, axis=1)                                           # (N, Dpad)
    hc0 = (jnp.dot(enc_mean, w_init_ref[...], preferred_element_type=jnp.float32)
           + b_init_ref[...])                                                  # (N, 2*Epad)
    h = hc0[:, :E_pad]
    c = hc0[:, E_pad:]
    x = emb0_ref[...]                                                          # (N, Epad)

    att = None
    # Statically unrolled time loop: whole recurrence in one kernel invocation
    # (T is small; for large max_len switch to lax.fori_loop + dynamic stores).
    for t in range(T):
        # ---- attention (encoder projection precomputed outside the loop) ----
        att2 = jnp.dot(h, w_dec_att, preferred_element_type=jnp.float32) + b_dec_att
        score = jnp.maximum(att1 + att2[:, None, :], 0.0)                      # (N, P, Apad)
        logits_att = jnp.sum(score * w_full_b, axis=-1) + b_full               # (N, P)
        m = jnp.max(logits_att, axis=1, keepdims=True)
        e = jnp.exp(logits_att - m)
        # exact reciprocal: keeps greedy argmax feedback bit-close to the reference
        att = e * pl.reciprocal(jnp.sum(e, axis=1, keepdims=True))             # (N, P)
        context = jnp.sum(att[:, :, None] * enc, axis=1)                       # (N, Dpad)

        # ---- LSTM cell: ONE fused gate matmul over [context | x | h] ----
        cxh = jnp.concatenate([context, x, h], axis=1)        # 128-aligned lane blocks
        gates = jnp.dot(cxh, w_gates, preferred_element_type=jnp.float32) + b_gates
        i_g = jax.nn.sigmoid(gates[:, 0 * E_pad:1 * E_pad])   # gate slices lane-aligned
        f_g = jax.nn.sigmoid(gates[:, 1 * E_pad:2 * E_pad])
        g_g = jnp.tanh(gates[:, 2 * E_pad:3 * E_pad])
        o_g = jax.nn.sigmoid(gates[:, 3 * E_pad:4 * E_pad])
        c = f_g * c + i_g * g_g
        h = o_g * jnp.tanh(c)

        # Dropout(rate=0.0) is the identity.
        logits_v = jnp.dot(h, w_voc, preferred_element_type=jnp.float32) + b_voc   # (N, Vpad)
        out_ref[:, t:t + 1, :] = logits_v[:, None, :]          # native (N, T, V) layout

        # ---- greedy feedback: argmax -> one-hot -> embedding row via matmul ----
        # TODO(synk): at realistic vocab sizes replace with per-row dynamic gathers.
        mx = jnp.max(logits_v, axis=-1, keepdims=True)
        first_idx = jnp.min(jnp.where(logits_v == mx, iota, V_pad), axis=-1, keepdims=True)
        onehot = (iota == first_idx).astype(jnp.float32)
        x = jnp.dot(onehot, emb_tab, preferred_element_type=jnp.float32)

    att_ref[...] = att   # module returns only the final step's attention map


def _prepare_operands(enc_out, dec_in, params):
    """Pad / fuse parameters into lane-dense (multiple-of-128) MXU-friendly operands."""
    N, P, Denc = enc_out.shape
    V, E = params['embedding'].shape
    A = params['w_enc_att'].shape[1]
    D_pad, E_pad, A_pad, V_pad = (_round_up(d) for d in (Denc, E, A, V))
    f32 = jnp.float32

    def pad2(x, r, c, fill=0.0):
        x = x.astype(f32)
        return jnp.pad(x, ((0, r - x.shape[0]), (0, c - x.shape[1])), constant_values=fill)

    enc_pad = jnp.pad(enc_out.astype(f32), ((0, 0), (0, 0), (0, D_pad - Denc)))

    # Hoisted time-invariant encoder attention projection (once, high precision, via XLA).
    att1 = jnp.einsum('npd,da->npa', enc_out, params['w_enc_att'],
                      precision=lax.Precision.HIGHEST) + params['b_enc_att']
    att1_pad = jnp.pad(att1.astype(f32), ((0, 0), (0, 0), (0, A_pad - A)))

    emb_tab = pad2(params['embedding'], V_pad, E_pad)
    emb0 = jnp.take(params['embedding'], dec_in[:, 0], axis=0)
    emb0_pad = jnp.pad(emb0.astype(f32), ((0, 0), (0, E_pad - E)))

    w_dec_att = pad2(params['w_dec_att'], E_pad, A_pad)
    b_dec_att = pad2(params['b_dec_att'], 1, A_pad)
    w_full = pad2(params['w_full'], 1, A_pad)
    b_full = params['b_full'].astype(f32)

    # fused init_h / init_c -> one (Dpad, 2*Epad) matmul
    w_init = jnp.zeros((D_pad, 2 * E_pad), f32)
    w_init = w_init.at[:Denc, :E].set(params['w_init_h'])
    w_init = w_init.at[:Denc, E_pad:E_pad + E].set(params['w_init_c'])
    b_init = jnp.zeros((1, 2 * E_pad), f32)
    b_init = b_init.at[:, :E].set(params['b_init_h'])
    b_init = b_init.at[:, E_pad:E_pad + E].set(params['b_init_c'])

    # fused LSTM gate weights: rows = [context | x | h] blocks, each gate (i,f,g,o)
    # in its own 128-lane-aligned column block.
    w_gates = jnp.zeros((D_pad + 2 * E_pad, 4 * E_pad), f32)
    b_gates = jnp.zeros((1, 4 * E_pad), f32)
    for w, r0 in ((params['w_ih_ctx'], 0),
                  (params['w_ih_emb'], D_pad),
                  (params['w_hh'], D_pad + E_pad)):
        rows = w.shape[0]
        for k in range(4):
            w_gates = w_gates.at[r0:r0 + rows, k * E_pad:k * E_pad + E].set(
                w[:, k * E:(k + 1) * E])
    for k in range(4):
        b_gates = b_gates.at[:, k * E_pad:k * E_pad + E].set(
            params['b_lstm'][:, k * E:(k + 1) * E])

    w_voc = pad2(params['w_voc'], E_pad, V_pad)
    b_voc = pad2(params['b_voc'], 1, V_pad, fill=_NEG)

    inputs = [enc_pad, att1_pad, emb0_pad, emb_tab,
              w_dec_att, b_dec_att, w_full, b_full,
              w_init, b_init, w_gates, b_gates,
              w_voc, b_voc]
    return inputs, V_pad


def rnn_decoder_with_att(enc_out, dec_in, params, max_len):
    N, P, _ = enc_out.shape
    V = params['embedding'].shape[0]
    inputs, V_pad = _prepare_operands(enc_out, dec_in, params)

    def full_spec(shape):
        nd = len(shape)
        return pl.BlockSpec(shape, lambda i, _nd=nd: (0,) * _nd)

    in_specs = [full_spec(x.shape) for x in inputs]
    out_shape = (jax.ShapeDtypeStruct((N, max_len, V_pad), jnp.float32),
                 jax.ShapeDtypeStruct((N, P), jnp.float32))
    out_specs = (pl.BlockSpec((N, max_len, V_pad), lambda i: (0, 0, 0)),
                 pl.BlockSpec((N, P), lambda i: (0, 0)))

    out_pad, att_last = pl.pallas_call(
        _decoder_kernel,
        out_shape=out_shape,
        grid=(1,),                       # whole recurrence in a single kernel invocation
        in_specs=in_specs,
        out_specs=out_specs,
        compiler_params=pltpu.CompilerParams(dimension_semantics=("arbitrary",)),
    )(*inputs)

    return out_pad[:, :, :V], att_last   # strip vocab lane padding


def init_params(key, V, E, Denc, A):
    keys = jax.random.split(key, 17)
    rnd = lambda k, shape, s=0.1: jax.random.normal(k, shape, jnp.float32) * s
    return {
        'embedding': rnd(keys[0], (V, E), 0.5),
        'w_enc_att': rnd(keys[1], (Denc, A)), 'b_enc_att': rnd(keys[2], (1, A)),
        'w_dec_att': rnd(keys[3], (E, A)),    'b_dec_att': rnd(keys[4], (1, A)),
        'w_full':    rnd(keys[5], (1, A)),    'b_full':    rnd(keys[6], (1, 1)),
        'w_init_h':  rnd(keys[7], (Denc, E)), 'b_init_h':  rnd(keys[8], (1, E)),
        'w_init_c':  rnd(keys[9], (Denc, E)), 'b_init_c':  rnd(keys[10], (1, E)),
        'w_ih_ctx':  rnd(keys[11], (Denc, 4 * E)),
        'w_ih_emb':  rnd(keys[12], (E, 4 * E)),
        'w_hh':      rnd(keys[13], (E, 4 * E)),
        'b_lstm':    rnd(keys[14], (1, 4 * E)),
        'w_voc':     rnd(keys[15], (E, V)),   'b_voc':     rnd(keys[16], (1, V)),
    }


def reference(enc_out, dec_in, p, max_len):
    """Pure-JAX reference mirroring the PyTorch forward (use_teacher=False, rate=0)."""
    N, P, Denc = enc_out.shape
    V, E = p['embedding'].shape
    enc_mean = jnp.mean(enc_out, axis=1)
    h = enc_mean @ p['w_init_h'] + p['b_init_h']
    c = enc_mean @ p['w_init_c'] + p['b_init_c']
    x = p['embedding'][dec_in[:, 0]]
    outs, att = [], None
    for _ in range(max_len):
        att1 = jnp.einsum('npd,da->npa', enc_out, p['w_enc_att']) + p['b_enc_att']
        att2 = h @ p['w_dec_att'] + p['b_dec_att']
        score = jnp.maximum(att1 + att2[:, None, :], 0.0)
        logits_att = jnp.sum(score * p['w_full'][None], axis=-1) + p['b_full']
        att = jax.nn.softmax(logits_att, axis=1)
        context = jnp.sum(att[:, :, None] * enc_out, axis=1)
        gates = (context @ p['w_ih_ctx'] + x @ p['w_ih_emb'] + h @ p['w_hh'] + p['b_lstm'])
        i_g = jax.nn.sigmoid(gates[:, 0:E]); f_g = jax.nn.sigmoid(gates[:, E:2 * E])
        g_g = jnp.tanh(gates[:, 2 * E:3 * E]); o_g = jax.nn.sigmoid(gates[:, 3 * E:4 * E])
        c = f_g * c + i_g * g_g
        h = o_g * jnp.tanh(c)
        logits_v = h @ p['w_voc'] + p['b_voc']
        outs.append(logits_v)
        tok = jnp.argmax(logits_v, axis=-1)
        x = p['embedding'][tok]
    return jnp.stack(outs, axis=1), att


if __name__ == "__main__":
    N, P, Denc = 2, 16, 32          # batch, encoder "pixels", encoder_dim
    E = 32                          # embedding_dim (= decoder hidden = attention_dim)
    V = 64                          # voca_size
    T = 8                           # max_len

    key = jax.random.PRNGKey(0)
    k_p, k_enc, k_dec = jax.random.split(key, 3)
    params = init_params(k_p, V, E, Denc, E)
    enc_out = jax.random.normal(k_enc, (N, P, Denc), jnp.float32)
    dec_in = jax.random.randint(k_dec, (N, T), 0, V, jnp.int32)

    run = jax.jit(functools.partial(rnn_decoder_with_att, max_len=T))
    outputs, att_last = run(enc_out, dec_in, params)
    jax.block_until_ready((outputs, att_last))

    with jax.default_matmul_precision("highest"):
        ref_out, ref_att = reference(enc_out, dec_in, params, T)
    np.testing.assert_allclose(np.asarray(outputs), np.asarray(ref_out), atol=2e-3, rtol=2e-3)
    np.testing.assert_allclose(np.asarray(att_last), np.asarray(ref_att), atol=2e-3, rtol=2e-3)

    assert outputs.shape == (N, T, V) and att_last.shape == (N, P)
    print("KERNEL_OK")
</pallas_src>

<mosaic_0001>
module attributes {stable_mosaic.version = 11 : i64} {
  func.func @_decoder_kernel(%arg0: i32, %arg1: memref<2x16x128xf32, #tpu.memory_space<vmem>>, %arg2: memref<2x16x128xf32, #tpu.memory_space<vmem>>, %arg3: memref<2x128xf32, #tpu.memory_space<vmem>>, %arg4: memref<128x128xf32, #tpu.memory_space<vmem>>, %arg5: memref<128x128xf32, #tpu.memory_space<vmem>>, %arg6: memref<1x128xf32, #tpu.memory_space<vmem>>, %arg7: memref<1x128xf32, #tpu.memory_space<vmem>>, %arg8: memref<1x1xf32, #tpu.memory_space<vmem>>, %arg9: memref<128x256xf32, #tpu.memory_space<vmem>>, %arg10: memref<1x256xf32, #tpu.memory_space<vmem>>, %arg11: memref<384x512xf32, #tpu.memory_space<vmem>>, %arg12: memref<1x512xf32, #tpu.memory_space<vmem>>, %arg13: memref<128x128xf32, #tpu.memory_space<vmem>>, %arg14: memref<1x128xf32, #tpu.memory_space<vmem>>, %arg15: memref<2x8x128xf32, #tpu.memory_space<vmem>>, %arg16: memref<2x16xf32, #tpu.memory_space<vmem>>) attributes {dimension_semantics = [#tpu.dimension_semantics<arbitrary>], iteration_bounds = array<i64: 1>, scalar_prefetch = 0 : i64, scratch_operands = 0 : i64, tpu.core_type = #tpu.core_type<tc>, window_params = [{pipeline_mode = #tpu.pipeline_mode<synchronous>, transform_indices = @transform_0, window_bounds = array<i64: 2, 16, 128>}, {pipeline_mode = #tpu.pipeline_mode<synchronous>, transform_indices = @transform_1, window_bounds = array<i64: 2, 16, 128>}, {pipeline_mode = #tpu.pipeline_mode<synchronous>, transform_indices = @transform_2, window_bounds = array<i64: 2, 128>}, {pipeline_mode = #tpu.pipeline_mode<synchronous>, transform_indices = @transform_3, window_bounds = array<i64: 128, 128>}, {pipeline_mode = #tpu.pipeline_mode<synchronous>, transform_indices = @transform_4, window_bounds = array<i64: 128, 128>}, {pipeline_mode = #tpu.pipeline_mode<synchronous>, transform_indices = @transform_5, window_bounds = array<i64: 1, 128>}, {pipeline_mode = #tpu.pipeline_mode<synchronous>, transform_indices = @transform_6, window_bounds = array<i64: 1, 128>}, {pipeline_mode = #tpu.pipeline_mode<synchronous>, transform_indices = @transform_7, window_bounds = array<i64: 1, 1>}, {pipeline_mode = #tpu.pipeline_mode<synchronous>, transform_indices = @transform_8, window_bounds = array<i64: 128, 256>}, {pipeline_mode = #tpu.pipeline_mode<synchronous>, transform_indices = @transform_9, window_bounds = array<i64: 1, 256>}, {pipeline_mode = #tpu.pipeline_mode<synchronous>, transform_indices = @transform_10, window_bounds = array<i64: 384, 512>}, {pipeline_mode = #tpu.pipeline_mode<synchronous>, transform_indices = @transform_11, window_bounds = array<i64: 1, 512>}, {pipeline_mode = #tpu.pipeline_mode<synchronous>, transform_indices = @transform_12, window_bounds = array<i64: 128, 128>}, {pipeline_mode = #tpu.pipeline_mode<synchronous>, transform_indices = @transform_13, window_bounds = array<i64: 1, 128>}, {pipeline_mode = #tpu.pipeline_mode<synchronous>, transform_indices = @transform_14, window_bounds = array<i64: 2, 8, 128>}, {pipeline_mode = #tpu.pipeline_mode<synchronous>, transform_indices = @transform_15, window_bounds = array<i64: 2, 16>}]} {
    %c0 = arith.constant 0 : index
    %c0_0 = arith.constant 0 : index
    %c0_1 = arith.constant 0 : index
    %0 = vector.load %arg1[%c0, %c0_0, %c0_1] : memref<2x16x128xf32, #tpu.memory_space<vmem>>, vector<2x16x128xf32>
    %c0_2 = arith.constant 0 : index
    %c0_3 = arith.constant 0 : index
    %c0_4 = arith.constant 0 : index
    %1 = vector.load %arg2[%c0_2, %c0_3, %c0_4] : memref<2x16x128xf32, #tpu.memory_space<vmem>>, vector<2x16x128xf32>
    %c0_5 = arith.constant 0 : index
    %c0_6 = arith.constant 0 : index
    %2 = vector.load %arg4[%c0_5, %c0_6] : memref<128x128xf32, #tpu.memory_space<vmem>>, vector<128x128xf32>
    %c0_7 = arith.constant 0 : index
    %c0_8 = arith.constant 0 : index
    %3 = vector.load %arg5[%c0_7, %c0_8] : memref<128x128xf32, #tpu.memory_space<vmem>>, vector<128x128xf32>
    %c0_9 = arith.constant 0 : index
    %c0_10 = arith.constant 0 : index
    %4 = vector.load %arg6[%c0_9, %c0_10] : memref<1x128xf32, #tpu.memory_space<vmem>>, vector<1x128xf32>
    %c0_11 = arith.constant 0 : index
    %c0_12 = arith.constant 0 : index
    %5 = vector.load %arg7[%c0_11, %c0_12] : memref<1x128xf32, #tpu.memory_space<vmem>>, vector<1x128xf32>
    %6 = vector.shape_cast %5 : vector<1x128xf32> to vector<1x1x128xf32>
    %c0_13 = arith.constant 0 : index
    %c0_14 = arith.constant 0 : index
    %7 = vector.load %arg8[%c0_13, %c0_14] : memref<1x1xf32, #tpu.memory_space<vmem>>, vector<1x1xf32>
    %c0_15 = arith.constant 0 : index
    %c0_16 = arith.constant 0 : index
    %8 = vector.load %arg11[%c0_15, %c0_16] : memref<384x512xf32, #tpu.memory_space<vmem>>, vector<384x512xf32>
    %c0_17 = arith.constant 0 : index
    %c0_18 = arith.constant 0 : index
    %9 = vector.load %arg12[%c0_17, %c0_18] : memref<1x512xf32, #tpu.memory_space<vmem>>, vector<1x512xf32>
    %c0_19 = arith.constant 0 : index
    %c0_20 = arith.constant 0 : index
    %10 = vector.load %arg13[%c0_19, %c0_20] : memref<128x128xf32, #tpu.memory_space<vmem>>, vector<128x128xf32>
    %c0_21 = arith.constant 0 : index
    %c0_22 = arith.constant 0 : index
    %11 = vector.load %arg14[%c0_21, %c0_22] : memref<1x128xf32, #tpu.memory_space<vmem>>, vector<1x128xf32>
    %12 = tpu.iota {dimensions = array<i32: 1>} : vector<2x128xi32>
    %cst = arith.constant dense<0.000000e+00> : vector<2x128xf32>
    %13 = vector.multi_reduction <add>, %0, %cst [1] : vector<2x16x128xf32> to vector<2x128xf32>
    %cst_23 = arith.constant 1.600000e+01 : f32
    %14 = vector.broadcast %cst_23 : f32 to vector<2x128xf32>
    %15 = arith.divf %13, %14 : vector<2x128xf32>
    %c0_24 = arith.constant 0 : index
    %c0_25 = arith.constant 0 : index
    %16 = vector.load %arg9[%c0_24, %c0_25] : memref<128x256xf32, #tpu.memory_space<vmem>>, vector<128x256xf32>
    %cst_26 = arith.constant dense<0.000000e+00> : vector<2x256xf32>
    %17 = tpu.matmul %15, %16, %cst_26 {dimension_numbers = #tpu.dot_dimension_numbers<[1], [0], [0], [1], [0, 0, 1, 1], [], []>} : vector<2x128xf32>, vector<128x256xf32>, vector<2x256xf32> -> vector<2x256xf32>
    %c0_27 = arith.constant 0 : index
    %c0_28 = arith.constant 0 : index
    %18 = vector.load %arg10[%c0_27, %c0_28] : memref<1x256xf32, #tpu.memory_space<vmem>>, vector<1x256xf32>
    %19 = vector.broadcast %18 : vector<1x256xf32> to vector<2x256xf32>
    %20 = arith.addf %17, %19 : vector<2x256xf32>
    %21 = vector.extract_strided_slice %20 {offsets = [0, 0], sizes = [2, 128], strides = [1, 1]} : vector<2x256xf32> to vector<2x128xf32>
    %22 = vector.extract_strided_slice %20 {offsets = [0, 128], sizes = [2, 128], strides = [1, 1]} : vector<2x256xf32> to vector<2x128xf32>
    %c0_29 = arith.constant 0 : index
    %c0_30 = arith.constant 0 : index
    %23 = vector.load %arg3[%c0_29, %c0_30] : memref<2x128xf32, #tpu.memory_space<vmem>>, vector<2x128xf32>
    %cst_31 = arith.constant dense<0.000000e+00> : vector<2x128xf32>
    %24 = tpu.matmul %21, %3, %cst_31 {dimension_numbers = #tpu.dot_dimension_numbers<[1], [0], [0], [1], [0, 0, 1, 1], [], []>} : vector<2x128xf32>, vector<128x128xf32>, vector<2x128xf32> -> vector<2x128xf32>
    %25 = vector.broadcast %4 : vector<1x128xf32> to vector<2x128xf32>
    %26 = arith.addf %24, %25 : vector<2x128xf32>
    %27 = vector.shape_cast %26 : vector<2x128xf32> to vector<2x1x128xf32>
    %28 = vector.broadcast %27 : vector<2x1x128xf32> to vector<2x16x128xf32>
    %29 = arith.addf %1, %28 : vector<2x16x128xf32>
    %cst_32 = arith.constant 0.000000e+00 : f32
    %30 = vector.broadcast %cst_32 : f32 to vector<2x16x128xf32>
    %31 = arith.maximumf %29, %30 : vector<2x16x128xf32>
    %32 = vector.broadcast %6 : vector<1x1x128xf32> to vector<2x16x128xf32>
    %33 = arith.mulf %31, %32 : vector<2x16x128xf32>
    %cst_33 = arith.constant dense<0.000000e+00> : vector<2x16xf32>
    %34 = vector.multi_reduction <add>, %33, %cst_33 [2] : vector<2x16x128xf32> to vector<2x16xf32>
    %35 = vector.broadcast %7 : vector<1x1xf32> to vector<2x16xf32>
    %36 = arith.addf %34, %35 : vector<2x16xf32>
    %cst_34 = arith.constant dense<0xFF800000> : vector<2xf32>
    %37 = vector.multi_reduction <maximumf>, %36, %cst_34 [1] : vector<2x16xf32> to vector<2xf32>
    %38 = vector.shape_cast %37 : vector<2xf32> to vector<2x1xf32>
    %39 = vector.broadcast %38 : vector<2x1xf32> to vector<2x16xf32>
    %40 = arith.subf %36, %39 : vector<2x16xf32>
    %41 = math.exp %40 : vector<2x16xf32>
    %cst_35 = arith.constant dense<0.000000e+00> : vector<2xf32>
    %42 = vector.multi_reduction <add>, %41, %cst_35 [1] : vector<2x16xf32> to vector<2xf32>
    %43 = vector.shape_cast %42 : vector<2xf32> to vector<2x1xf32>
    %44 = tpu.reciprocal %43 : vector<2x1xf32> -> vector<2x1xf32>
    %45 = vector.broadcast %44 : vector<2x1xf32> to vector<2x16xf32>
    %46 = arith.mulf %41, %45 : vector<2x16xf32>
    %47 = vector.shape_cast %46 : vector<2x16xf32> to vector<2x16x1xf32>
    %48 = vector.broadcast %47 : vector<2x16x1xf32> to vector<2x16x128xf32>
    %49 = arith.mulf %48, %0 : vector<2x16x128xf32>
    %cst_36 = arith.constant dense<0.000000e+00> : vector<2x128xf32>
    %50 = vector.multi_reduction <add>, %49, %cst_36 [1] : vector<2x16x128xf32> to vector<2x128xf32>
    %51 = tpu.concatenate %50, %23, %21 in 1 : vector<2x128xf32>, vector<2x128xf32>, vector<2x128xf32> -> vector<2x384xf32>
    %cst_37 = arith.constant dense<0.000000e+00> : vector<2x512xf32>
    %52 = tpu.matmul %51, %8, %cst_37 {dimension_numbers = #tpu.dot_dimension_numbers<[1], [0], [0], [1], [0, 0, 1, 1], [], []>} : vector<2x384xf32>, vector<384x512xf32>, vector<2x512xf32> -> vector<2x512xf32>
    %53 = vector.broadcast %9 : vector<1x512xf32> to vector<2x512xf32>
    %54 = arith.addf %52, %53 : vector<2x512xf32>
    %55 = vector.extract_strided_slice %54 {offsets = [0, 0], sizes = [2, 128], strides = [1, 1]} : vector<2x512xf32> to vector<2x128xf32>
    %56 = arith.negf %55 : vector<2x128xf32>
    %57 = math.exp %56 : vector<2x128xf32>
    %cst_38 = arith.constant 1.000000e+00 : f32
    %58 = vector.broadcast %cst_38 : f32 to vector<2x128xf32>
    %59 = arith.addf %58, %57 : vector<2x128xf32>
    %60 = arith.divf %58, %59 : vector<2x128xf32>
    %61 = vector.extract_strided_slice %54 {offsets = [0, 128], sizes = [2, 128], strides = [1, 1]} : vector<2x512xf32> to vector<2x128xf32>
    %62 = arith.negf %61 : vector<2x128xf32>
    %63 = math.exp %62 : vector<2x128xf32>
    %cst_39 = arith.constant 1.000000e+00 : f32
    %64 = vector.broadcast %cst_39 : f32 to vector<2x128xf32>
    %65 = arith.addf %64, %63 : vector<2x128xf32>
    %66 = arith.divf %64, %65 : vector<2x128xf32>
    %67 = vector.extract_strided_slice %54 {offsets = [0, 256], sizes = [2, 128], strides = [1, 1]} : vector<2x512xf32> to vector<2x128xf32>
    %68 = math.tanh %67 : vector<2x128xf32>
    %69 = vector.extract_strided_slice %54 {offsets = [0, 384], sizes = [2, 128], strides = [1, 1]} : vector<2x512xf32> to vector<2x128xf32>
    %70 = arith.negf %69 : vector<2x128xf32>
    %71 = math.exp %70 : vector<2x128xf32>
    %cst_40 = arith.constant 1.000000e+00 : f32
    %72 = vector.broadcast %cst_40 : f32 to vector<2x128xf32>
    %73 = arith.addf %72, %71 : vector<2x128xf32>
    %74 = arith.divf %72, %73 : vector<2x128xf32>
    %75 = arith.mulf %66, %22 : vector<2x128xf32>
    %76 = arith.mulf %60, %68 : vector<2x128xf32>
    %77 = arith.addf %75, %76 : vector<2x128xf32>
    %78 = math.tanh %77 : vector<2x128xf32>
    %79 = arith.mulf %74, %78 : vector<2x128xf32>
    %cst_41 = arith.constant dense<0.000000e+00> : vector<2x128xf32>
    %80 = tpu.matmul %79, %10, %cst_41 {dimension_numbers = #tpu.dot_dimension_numbers<[1], [0], [0], [1], [0, 0, 1, 1], [], []>} : vector<2x128xf32>, vector<128x128xf32>, vector<2x128xf32> -> vector<2x128xf32>
    %81 = vector.broadcast %11 : vector<1x128xf32> to vector<2x128xf32>
    %82 = arith.addf %80, %81 : vector<2x128xf32>
    %83 = vector.shape_cast %82 : vector<2x128xf32> to vector<2x1x128xf32>
    %c0_42 = arith.constant 0 : index
    %c0_43 = arith.constant 0 : index
    %c0_44 = arith.constant 0 : index
    %84 = vector.load %arg15[%c0_42, %c0_43, %c0_44] : memref<2x8x128xf32, #tpu.memory_space<vmem>>, vector<2x1x128xf32>
    tpu.vector_store %arg15[%c0_42, %c0_43, %c0_44], %83 {strides = array<i32>} : memref<2x8x128xf32, #tpu.memory_space<vmem>>, vector<2x1x128xf32>,
    %cst_45 = arith.constant dense<0xFF800000> : vector<2xf32>
    %85 = vector.multi_reduction <maximumf>, %82, %cst_45 [1] : vector<2x128xf32> to vector<2xf32>
    %86 = vector.shape_cast %85 : vector<2xf32> to vector<2x1xf32>
    %87 = vector.broadcast %86 : vector<2x1xf32> to vector<2x128xf32>
    %88 = arith.cmpf oeq, %82, %87 : vector<2x128xf32>
    %c128_i32 = arith.constant 128 : i32
    %89 = vector.broadcast %c128_i32 : i32 to vector<2x128xi32>
    %90 = arith.select %88, %12, %89 : vector<2x128xi1>, vector<2x128xi32>
    %cst_46 = arith.constant dense<2147483647> : vector<2xi32>
    %91 = vector.multi_reduction <minsi>, %90, %cst_46 [1] : vector<2x128xi32> to vector<2xi32>
    %92 = vector.shape_cast %91 : vector<2xi32> to vector<2x1xi32>
    %93 = vector.broadcast %92 : vector<2x1xi32> to vector<2x128xi32>
    %94 = arith.cmpi eq, %12, %93 : vector<2x128xi32>
    %95 = arith.extui %94 : vector<2x128xi1> to vector<2x128xi32>
    %96 = arith.sitofp %95 : vector<2x128xi32> to vector<2x128xf32>
    %cst_47 = arith.constant dense<0.000000e+00> : vector<2x128xf32>
    %97 = tpu.matmul %96, %2, %cst_47 {dimension_numbers = #tpu.dot_dimension_numbers<[1], [0], [0], [1], [0, 0, 1, 1], [], []>} : vector<2x128xf32>, vector<128x128xf32>, vector<2x128xf32> -> vector<2x128xf32>
    %cst_48 = arith.constant dense<0.000000e+00> : vector<2x128xf32>
    %98 = tpu.matmul %79, %3, %cst_48 {dimension_numbers = #tpu.dot_dimension_numbers<[1], [0], [0], [1], [0, 0, 1, 1], [], []>} : vector<2x128xf32>, vector<128x128xf32>, vector<2x128xf32> -> vector<2x128xf32>
    %99 = vector.broadcast %4 : vector<1x128xf32> to vector<2x128xf32>
    %100 = arith.addf %98, %99 : vector<2x128xf32>
    %101 = vector.shape_cast %100 : vector<2x128xf32> to vector<2x1x128xf32>
    %102 = vector.broadcast %101 : vector<2x1x128xf32> to vector<2x16x128xf32>
    %103 = arith.addf %1, %102 : vector<2x16x128xf32>
    %cst_49 = arith.constant 0.000000e+00 : f32
    %104 = vector.broadcast %cst_49 : f32 to vector<2x16x128xf32>
    %105 = arith.maximumf %103, %104 : vector<2x16x128xf32>
    %106 = vector.broadcast %6 : vector<1x1x128xf32> to vector<2x16x128xf32>
    %107 = arith.mulf %105, %106 : vector<2x16x128xf32>
    %cst_50 = arith.constant dense<0.000000e+00> : vector<2x16xf32>
    %108 = vector.multi_reduction <add>, %107, %cst_50 [2] : vector<2x16x128xf32> to vector<2x16xf32>
    %109 = vector.broadcast %7 : vector<1x1xf32> to vector<2x16xf32>
    %110 = arith.addf %108, %109 : vector<2x16xf32>
    %cst_51 = arith.constant dense<0xFF800000> : vector<2xf32>
    %111 = vector.multi_reduction <maximumf>, %110, %cst_51 [1] : vector<2x16xf32> to vector<2xf32>
    %112 = vector.shape_cast %111 : vector<2xf32> to vector<2x1xf32>
    %113 = vector.broadcast %112 : vector<2x1xf32> to vector<2x16xf32>
    %114 = arith.subf %110, %113 : vector<2x16xf32>
    %115 = math.exp %114 : vector<2x16xf32>
    %cst_52 = arith.constant dense<0.000000e+00> : vector<2xf32>
    %116 = vector.multi_reduction <add>, %115, %cst_52 [1] : vector<2x16xf32> to vector<2xf32>
    %117 = vector.shape_cast %116 : vector<2xf32> to vector<2x1xf32>
    %118 = tpu.reciprocal %117 : vector<2x1xf32> -> vector<2x1xf32>
    %119 = vector.broadcast %118 : vector<2x1xf32> to vector<2x16xf32>
    %120 = arith.mulf %115, %119 : vector<2x16xf32>
    %121 = vector.shape_cast %120 : vector<2x16xf32> to vector<2x16x1xf32>
    %122 = vector.broadcast %121 : vector<2x16x1xf32> to vector<2x16x128xf32>
    %123 = arith.mulf %122, %0 : vector<2x16x128xf32>
    %cst_53 = arith.constant dense<0.000000e+00> : vector<2x128xf32>
    %124 = vector.multi_reduction <add>, %123, %cst_53 [1] : vector<2x16x128xf32> to vector<2x128xf32>
    %125 = tpu.concatenate %124, %97, %79 in 1 : vector<2x128xf32>, vector<2x128xf32>, vector<2x128xf32> -> vector<2x384xf32>
    %cst_54 = arith.constant dense<0.000000e+00> : vector<2x512xf32>
    %126 = tpu.matmul %125, %8, %cst_54 {dimension_numbers = #tpu.dot_dimension_numbers<[1], [0], [0], [1], [0, 0, 1, 1], [], []>} : vector<2x384xf32>, vector<384x512xf32>, vector<2x512xf32> -> vector<2x512xf32>
    %127 = vector.broadcast %9 : vector<1x512xf32> to vector<2x512xf32>
    %128 = arith.addf %126, %127 : vector<2x512xf32>
    %129 = vector.extract_strided_slice %128 {offsets = [0, 0], sizes = [2, 128], strides = [1, 1]} : vector<2x512xf32> to vector<2x128xf32>
    %130 = arith.negf %129 : vector<2x128xf32>
    %131 = math.exp %130 : vector<2x128xf32>
    %cst_55 = arith.constant 1.000000e+00 : f32
    %132 = vector.broadcast %cst_55 : f32 to vector<2x128xf32>
    %133 = arith.addf %132, %131 : vector<2x128xf32>
    %134 = arith.divf %132, %133 : vector<2x128xf32>
    %135 = vector.extract_strided_slice %128 {offsets = [0, 128], sizes = [2, 128], strides = [1, 1]} : vector<2x512xf32> to vector<2x128xf32>
    %136 = arith.negf %135 : vector<2x128xf32>
    %137 = math.exp %136 : vector<2x128xf32>
    %cst_56 = arith.constant 1.000000e+00 : f32
    %138 = vector.broadcast %cst_56 : f32 to vector<2x128xf32>
    %139 = arith.addf %138, %137 : vector<2x128xf32>
    %140 = arith.divf %138, %139 : vector<2x128xf32>
    %141 = vector.extract_strided_slice %128 {offsets = [0, 256], sizes = [2, 128], strides = [1, 1]} : vector<2x512xf32> to vector<2x128xf32>
    %142 = math.tanh %141 : vector<2x128xf32>
    %143 = vector.extract_strided_slice %128 {offsets = [0, 384], sizes = [2, 128], strides = [1, 1]} : vector<2x512xf32> to vector<2x128xf32>
    %144 = arith.negf %143 : vector<2x128xf32>
    %145 = math.exp %144 : vector<2x128xf32>
    %cst_57 = arith.constant 1.000000e+00 : f32
    %146 = vector.broadcast %cst_57 : f32 to vector<2x128xf32>
    %147 = arith.addf %146, %145 : vector<2x128xf32>
    %148 = arith.divf %146, %147 : vector<2x128xf32>
    %149 = arith.mulf %140, %77 : vector<2x128xf32>
    %150 = arith.mulf %134, %142 : vector<2x128xf32>
    %151 = arith.addf %149, %150 : vector<2x128xf32>
    %152 = math.tanh %151 : vector<2x128xf32>
    %153 = arith.mulf %148, %152 : vector<2x128xf32>
    %cst_58 = arith.constant dense<0.000000e+00> : vector<2x128xf32>
    %154 = tpu.matmul %153, %10, %cst_58 {dimension_numbers = #tpu.dot_dimension_numbers<[1], [0], [0], [1], [0, 0, 1, 1], [], []>} : vector<2x128xf32>, vector<128x128xf32>, vector<2x128xf32> -> vector<2x128xf32>
    %155 = vector.broadcast %11 : vector<1x128xf32> to vector<2x128xf32>
    %156 = arith.addf %154, %155 : vector<2x128xf32>
    %157 = vector.shape_cast %156 : vector<2x128xf32> to vector<2x1x128xf32>
    %c0_59 = arith.constant 0 : index
    %c1 = arith.constant 1 : index
    %c0_60 = arith.constant 0 : index
    %158 = vector.load %arg15[%c0_59, %c1, %c0_60] : memref<2x8x128xf32, #tpu.memory_space<vmem>>, vector<2x1x128xf32>
    tpu.vector_store %arg15[%c0_59, %c1, %c0_60], %157 {strides = array<i32>} : memref<2x8x128xf32, #tpu.memory_space<vmem>>, vector<2x1x128xf32>,
    %cst_61 = arith.constant dense<0xFF800000> : vector<2xf32>
    %159 = vector.multi_reduction <maximumf>, %156, %cst_61 [1] : vector<2x128xf32> to vector<2xf32>
    %160 = vector.shape_cast %159 : vector<2xf32> to vector<2x1xf32>
    %161 = vector.broadcast %160 : vector<2x1xf32> to vector<2x128xf32>
    %162 = arith.cmpf oeq, %156, %161 : vector<2x128xf32>
    %c128_i32_62 = arith.constant 128 : i32
    %163 = vector.broadcast %c128_i32_62 : i32 to vector<2x128xi32>
    %164 = arith.select %162, %12, %163 : vector<2x128xi1>, vector<2x128xi32>
    %cst_63 = arith.constant dense<2147483647> : vector<2xi32>
    %165 = vector.multi_reduction <minsi>, %164, %cst_63 [1] : vector<2x128xi32> to vector<2xi32>
    %166 = vector.shape_cast %165 : vector<2xi32> to vector<2x1xi32>
    %167 = vector.broadcast %166 : vector<2x1xi32> to vector<2x128xi32>
    %168 = arith.cmpi eq, %12, %167 : vector<2x128xi32>
    %169 = arith.extui %168 : vector<2x128xi1> to vector<2x128xi32>
    %170 = arith.sitofp %169 : vector<2x128xi32> to vector<2x128xf32>
    %cst_64 = arith.constant dense<0.000000e+00> : vector<2x128xf32>
    %171 = tpu.matmul %170, %2, %cst_64 {dimension_numbers = #tpu.dot_dimension_numbers<[1], [0], [0], [1], [0, 0, 1, 1], [], []>} : vector<2x128xf32>, vector<128x128xf32>, vector<2x128xf32> -> vector<2x128xf32>
    %cst_65 = arith.constant dense<0.000000e+00> : vector<2x128xf32>
    %172 = tpu.matmul %153, %3, %cst_65 {dimension_numbers = #tpu.dot_dimension_numbers<[1], [0], [0], [1], [0, 0, 1, 1], [], []>} : vector<2x128xf32>, vector<128x128xf32>, vector<2x128xf32> -> vector<2x128xf32>
    %173 = vector.broadcast %4 : vector<1x128xf32> to vector<2x128xf32>
    %174 = arith.addf %172, %173 : vector<2x128xf32>
    %175 = vector.shape_cast %174 : vector<2x128xf32> to vector<2x1x128xf32>
    %176 = vector.broadcast %175 : vector<2x1x128xf32> to vector<2x16x128xf32>
    %177 = arith.addf %1, %176 : vector<2x16x128xf32>
    %cst_66 = arith.constant 0.000000e+00 : f32
    %178 = vector.broadcast %cst_66 : f32 to vector<2x16x128xf32>
    %179 = arith.maximumf %177, %178 : vector<2x16x128xf32>
    %180 = vector.broadcast %6 : vector<1x1x128xf32> to vector<2x16x128xf32>
    %181 = arith.mulf %179, %180 : vector<2x16x128xf32>
    %cst_67 = arith.constant dense<0.000000e+00> : vector<2x16xf32>
    %182 = vector.multi_reduction <add>, %181, %cst_67 [2] : vector<2x16x128xf32> to vector<2x16xf32>
    %183 = vector.broadcast %7 : vector<1x1xf32> to vector<2x16xf32>
    %184 = arith.addf %182, %183 : vector<2x16xf32>
    %cst_68 = arith.constant dense<0xFF800000> : vector<2xf32>
    %185 = vector.multi_reduction <maximumf>, %184, %cst_68 [1] : vector<2x16xf32> to vector<2xf32>
    %186 = vector.shape_cast %185 : vector<2xf32> to vector<2x1xf32>
    %187 = vector.broadcast %186 : vector<2x1xf32> to vector<2x16xf32>
    %188 = arith.subf %184, %187 : vector<2x16xf32>
    %189 = math.exp %188 : vector<2x16xf32>
    %cst_69 = arith.constant dense<0.000000e+00> : vector<2xf32>
    %190 = vector.multi_reduction <add>, %189, %cst_69 [1] : vector<2x16xf32> to vector<2xf32>
    %191 = vector.shape_cast %190 : vector<2xf32> to vector<2x1xf32>
    %192 = tpu.reciprocal %191 : vector<2x1xf32> -> vector<2x1xf32>
    %193 = vector.broadcast %192 : vector<2x1xf32> to vector<2x16xf32>
    %194 = arith.mulf %189, %193 : vector<2x16xf32>
    %195 = vector.shape_cast %194 : vector<2x16xf32> to vector<2x16x1xf32>
    %196 = vector.broadcast %195 : vector<2x16x1xf32> to vector<2x16x128xf32>
    %197 = arith.mulf %196, %0 : vector<2x16x128xf32>
    %cst_70 = arith.constant dense<0.000000e+00> : vector<2x128xf32>
    %198 = vector.multi_reduction <add>, %197, %cst_70 [1] : vector<2x16x128xf32> to vector<2x128xf32>
    %199 = tpu.concatenate %198, %171, %153 in 1 : vector<2x128xf32>, vector<2x128xf32>, vector<2x128xf32> -> vector<2x384xf32>
    %cst_71 = arith.constant dense<0.000000e+00> : vector<2x512xf32>
    %200 = tpu.matmul %199, %8, %cst_71 {dimension_numbers = #tpu.dot_dimension_numbers<[1], [0], [0], [1], [0, 0, 1, 1], [], []>} : vector<2x384xf32>, vector<384x512xf32>, vector<2x512xf32> -> vector<2x512xf32>
    %201 = vector.broadcast %9 : vector<1x512xf32> to vector<2x512xf32>
    %202 = arith.addf %200, %201 : vector<2x512xf32>
    %203 = vector.extract_strided_slice %202 {offsets = [0, 0], sizes = [2, 128], strides = [1, 1]} : vector<2x512xf32> to vector<2x128xf32>
    %204 = arith.negf %203 : vector<2x128xf32>
    %205 = math.exp %204 : vector<2x128xf32>
    %cst_72 = arith.constant 1.000000e+00 : f32
    %206 = vector.broadcast %cst_72 : f32 to vector<2x128xf32>
    %207 = arith.addf %206, %205 : vector<2x128xf32>
    %208 = arith.divf %206, %207 : vector<2x128xf32>
    %209 = vector.extract_strided_slice %202 {offsets = [0, 128], sizes = [2, 128], strides = [1, 1]} : vector<2x512xf32> to vector<2x128xf32>
    %210 = arith.negf %209 : vector<2x128xf32>
    %211 = math.exp %210 : vector<2x128xf32>
    %cst_73 = arith.constant 1.000000e+00 : f32
    %212 = vector.broadcast %cst_73 : f32 to vector<2x128xf32>
    %213 = arith.addf %212, %211 : vector<2x128xf32>
    %214 = arith.divf %212, %213 : vector<2x128xf32>
    %215 = vector.extract_strided_slice %202 {offsets = [0, 256], sizes = [2, 128], strides = [1, 1]} : vector<2x512xf32> to vector<2x128xf32>
    %216 = math.tanh %215 : vector<2x128xf32>
    %217 = vector.extract_strided_slice %202 {offsets = [0, 384], sizes = [2, 128], strides = [1, 1]} : vector<2x512xf32> to vector<2x128xf32>
    %218 = arith.negf %217 : vector<2x128xf32>
    %219 = math.exp %218 : vector<2x128xf32>
    %cst_74 = arith.constant 1.000000e+00 : f32
    %220 = vector.broadcast %cst_74 : f32 to vector<2x128xf32>
    %221 = arith.addf %220, %219 : vector<2x128xf32>
    %222 = arith.divf %220, %221 : vector<2x128xf32>
    %223 = arith.mulf %214, %151 : vector<2x128xf32>
    %224 = arith.mulf %208, %216 : vector<2x128xf32>
    %225 = arith.addf %223, %224 : vector<2x128xf32>
    %226 = math.tanh %225 : vector<2x128xf32>
    %227 = arith.mulf %222, %226 : vector<2x128xf32>
    %cst_75 = arith.constant dense<0.000000e+00> : vector<2x128xf32>
    %228 = tpu.matmul %227, %10, %cst_75 {dimension_numbers = #tpu.dot_dimension_numbers<[1], [0], [0], [1], [0, 0, 1, 1], [], []>} : vector<2x128xf32>, vector<128x128xf32>, vector<2x128xf32> -> vector<2x128xf32>
    %229 = vector.broadcast %11 : vector<1x128xf32> to vector<2x128xf32>
    %230 = arith.addf %228, %229 : vector<2x128xf32>
    %231 = vector.shape_cast %230 : vector<2x128xf32> to vector<2x1x128xf32>
    %c0_76 = arith.constant 0 : index
    %c2 = arith.constant 2 : index
    %c0_77 = arith.constant 0 : index
    %232 = vector.load %arg15[%c0_76, %c2, %c0_77] : memref<2x8x128xf32, #tpu.memory_space<vmem>>, vector<2x1x128xf32>
    tpu.vector_store %arg15[%c0_76, %c2, %c0_77], %231 {strides = array<i32>} : memref<2x8x128xf32, #tpu.memory_space<vmem>>, vector<2x1x128xf32>,
    %cst_78 = arith.constant dense<0xFF800000> : vector<2xf32>
    %233 = vector.multi_reduction <maximumf>, %230, %cst_78 [1] : vector<2x128xf32> to vector<2xf32>
    %234 = vector.shape_cast %233 : vector<2xf32> to vector<2x1xf32>
    %235 = vector.broadcast %234 : vector<2x1xf32> to vector<2x128xf32>
    %236 = arith.cmpf oeq, %230, %235 : vector<2x128xf32>
    %c128_i32_79 = arith.constant 128 : i32
    %237 = vector.broadcast %c128_i32_79 : i32 to vector<2x128xi32>
    %238 = arith.select %236, %12, %237 : vector<2x128xi1>, vector<2x128xi32>
    %cst_80 = arith.constant dense<2147483647> : vector<2xi32>
    %239 = vector.multi_reduction <minsi>, %238, %cst_80 [1] : vector<2x128xi32> to vector<2xi32>
    %240 = vector.shape_cast %239 : vector<2xi32> to vector<2x1xi32>
    %241 = vector.broadcast %240 : vector<2x1xi32> to vector<2x128xi32>
    %242 = arith.cmpi eq, %12, %241 : vector<2x128xi32>
    %243 = arith.extui %242 : vector<2x128xi1> to vector<2x128xi32>
    %244 = arith.sitofp %243 : vector<2x128xi32> to vector<2x128xf32>
    %cst_81 = arith.constant dense<0.000000e+00> : vector<2x128xf32>
    %245 = tpu.matmul %244, %2, %cst_81 {dimension_numbers = #tpu.dot_dimension_numbers<[1], [0], [0], [1], [0, 0, 1, 1], [], []>} : vector<2x128xf32>, vector<128x128xf32>, vector<2x128xf32> -> vector<2x128xf32>
    %cst_82 = arith.constant dense<0.000000e+00> : vector<2x128xf32>
    %246 = tpu.matmul %227, %3, %cst_82 {dimension_numbers = #tpu.dot_dimension_numbers<[1], [0], [0], [1], [0, 0, 1, 1], [], []>} : vector<2x128xf32>, vector<128x128xf32>, vector<2x128xf32> -> vector<2x128xf32>
    %247 = vector.broadcast %4 : vector<1x128xf32> to vector<2x128xf32>
    %248 = arith.addf %246, %247 : vector<2x128xf32>
    %249 = vector.shape_cast %248 : vector<2x128xf32> to vector<2x1x128xf32>
    %250 = vector.broadcast %249 : vector<2x1x128xf32> to vector<2x16x128xf32>
    %251 = arith.addf %1, %250 : vector<2x16x128xf32>
    %cst_83 = arith.constant 0.000000e+00 : f32
    %252 = vector.broadcast %cst_83 : f32 to vector<2x16x128xf32>
    %253 = arith.maximumf %251, %252 : vector<2x16x128xf32>
    %254 = vector.broadcast %6 : vector<1x1x128xf32> to vector<2x16x128xf32>
    %255 = arith.mulf %253, %254 : vector<2x16x128xf32>
    %cst_84 = arith.constant dense<0.000000e+00> : vector<2x16xf32>
    %256 = vector.multi_reduction <add>, %255, %cst_84 [2] : vector<2x16x128xf32> to vector<2x16xf32>
    %257 = vector.broadcast %7 : vector<1x1xf32> to vector<2x16xf32>
    %258 = arith.addf %256, %257 : vector<2x16xf32>
    %cst_85 = arith.constant dense<0xFF800000> : vector<2xf32>
    %259 = vector.multi_reduction <maximumf>, %258, %cst_85 [1] : vector<2x16xf32> to vector<2xf32>
    %260 = vector.shape_cast %259 : vector<2xf32> to vector<2x1xf32>
    %261 = vector.broadcast %260 : vector<2x1xf32> to vector<2x16xf32>
    %262 = arith.subf %258, %261 : vector<2x16xf32>
    %263 = math.exp %262 : vector<2x16xf32>
    %cst_86 = arith.constant dense<0.000000e+00> : vector<2xf32>
    %264 = vector.multi_reduction <add>, %263, %cst_86 [1] : vector<2x16xf32> to vector<2xf32>
    %265 = vector.shape_cast %264 : vector<2xf32> to vector<2x1xf32>
    %266 = tpu.reciprocal %265 : vector<2x1xf32> -> vector<2x1xf32>
    %267 = vector.broadcast %266 : vector<2x1xf32> to vector<2x16xf32>
    %268 = arith.mulf %263, %267 : vector<2x16xf32>
    %269 = vector.shape_cast %268 : vector<2x16xf32> to vector<2x16x1xf32>
    %270 = vector.broadcast %269 : vector<2x16x1xf32> to vector<2x16x128xf32>
    %271 = arith.mulf %270, %0 : vector<2x16x128xf32>
    %cst_87 = arith.constant dense<0.000000e+00> : vector<2x128xf32>
    %272 = vector.multi_reduction <add>, %271, %cst_87 [1] : vector<2x16x128xf32> to vector<2x128xf32>
    %273 = tpu.concatenate %272, %245, %227 in 1 : vector<2x128xf32>, vector<2x128xf32>, vector<2x128xf32> -> vector<2x384xf32>
    %cst_88 = arith.constant dense<0.000000e+00> : vector<2x512xf32>
    %274 = tpu.matmul %273, %8, %cst_88 {dimension_numbers = #tpu.dot_dimension_numbers<[1], [0], [0], [1], [0, 0, 1, 1], [], []>} : vector<2x384xf32>, vector<384x512xf32>, vector<2x512xf32> -> vector<2x512xf32>
    %275 = vector.broadcast %9 : vector<1x512xf32> to vector<2x512xf32>
    %276 = arith.addf %274, %275 : vector<2x512xf32>
    %277 = vector.extract_strided_slice %276 {offsets = [0, 0], sizes = [2, 128], strides = [1, 1]} : vector<2x512xf32> to vector<2x128xf32>
    %278 = arith.negf %277 : vector<2x128xf32>
    %279 = math.exp %278 : vector<2x128xf32>
    %cst_89 = arith.constant 1.000000e+00 : f32
    %280 = vector.broadcast %cst_89 : f32 to vector<2x128xf32>
    %281 = arith.addf %280, %279 : vector<2x128xf32>
    %282 = arith.divf %280, %281 : vector<2x128xf32>
    %283 = vector.extract_strided_slice %276 {offsets = [0, 128], sizes = [2, 128], strides = [1, 1]} : vector<2x512xf32> to vector<2x128xf32>
    %284 = arith.negf %283 : vector<2x128xf32>
    %285 = math.exp %284 : vector<2x128xf32>
    %cst_90 = arith.constant 1.000000e+00 : f32
    %286 = vector.broadcast %cst_90 : f32 to vector<2x128xf32>
    %287 = arith.addf %286, %285 : vector<2x128xf32>
    %288 = arith.divf %286, %287 : vector<2x128xf32>
    %289 = vector.extract_strided_slice %276 {offsets = [0, 256], sizes = [2, 128], strides = [1, 1]} : vector<2x512xf32> to vector<2x128xf32>
    %290 = math.tanh %289 : vector<2x128xf32>
    %291 = vector.extract_strided_slice %276 {offsets = [0, 384], sizes = [2, 128], strides = [1, 1]} : vector<2x512xf32> to vector<2x128xf32>
    %292 = arith.negf %291 : vector<2x128xf32>
    %293 = math.exp %292 : vector<2x128xf32>
    %cst_91 = arith.constant 1.000000e+00 : f32
    %294 = vector.broadcast %cst_91 : f32 to vector<2x128xf32>
    %295 = arith.addf %294, %293 : vector<2x128xf32>
    %296 = arith.divf %294, %295 : vector<2x128xf32>
    %297 = arith.mulf %288, %225 : vector<2x128xf32>
    %298 = arith.mulf %282, %290 : vector<2x128xf32>
    %299 = arith.addf %297, %298 : vector<2x128xf32>
    %300 = math.tanh %299 : vector<2x128xf32>
    %301 = arith.mulf %296, %300 : vector<2x128xf32>
    %cst_92 = arith.constant dense<0.000000e+00> : vector<2x128xf32>
    %302 = tpu.matmul %301, %10, %cst_92 {dimension_numbers = #tpu.dot_dimension_numbers<[1], [0], [0], [1], [0, 0, 1, 1], [], []>} : vector<2x128xf32>, vector<128x128xf32>, vector<2x128xf32> -> vector<2x128xf32>
    %303 = vector.broadcast %11 : vector<1x128xf32> to vector<2x128xf32>
    %304 = arith.addf %302, %303 : vector<2x128xf32>
    %305 = vector.shape_cast %304 : vector<2x128xf32> to vector<2x1x128xf32>
    %c0_93 = arith.constant 0 : index
    %c3 = arith.constant 3 : index
    %c0_94 = arith.constant 0 : index
    %306 = vector.load %arg15[%c0_93, %c3, %c0_94] : memref<2x8x128xf32, #tpu.memory_space<vmem>>, vector<2x1x128xf32>
    tpu.vector_store %arg15[%c0_93, %c3, %c0_94], %305 {strides = array<i32>} : memref<2x8x128xf32, #tpu.memory_space<vmem>>, vector<2x1x128xf32>,
    %cst_95 = arith.constant dense<0xFF800000> : vector<2xf32>
    %307 = vector.multi_reduction <maximumf>, %304, %cst_95 [1] : vector<2x128xf32> to vector<2xf32>
    %308 = vector.shape_cast %307 : vector<2xf32> to vector<2x1xf32>
    %309 = vector.broadcast %308 : vector<2x1xf32> to vector<2x128xf32>
    %310 = arith.cmpf oeq, %304, %309 : vector<2x128xf32>
    %c128_i32_96 = arith.constant 128 : i32
    %311 = vector.broadcast %c128_i32_96 : i32 to vector<2x128xi32>
    %312 = arith.select %310, %12, %311 : vector<2x128xi1>, vector<2x128xi32>
    %cst_97 = arith.constant dense<2147483647> : vector<2xi32>
    %313 = vector.multi_reduction <minsi>, %312, %cst_97 [1] : vector<2x128xi32> to vector<2xi32>
    %314 = vector.shape_cast %313 : vector<2xi32> to vector<2x1xi32>
    %315 = vector.broadcast %314 : vector<2x1xi32> to vector<2x128xi32>
    %316 = arith.cmpi eq, %12, %315 : vector<2x128xi32>
    %317 = arith.extui %316 : vector<2x128xi1> to vector<2x128xi32>
    %318 = arith.sitofp %317 : vector<2x128xi32> to vector<2x128xf32>
    %cst_98 = arith.constant dense<0.000000e+00> : vector<2x128xf32>
    %319 = tpu.matmul %318, %2, %cst_98 {dimension_numbers = #tpu.dot_dimension_numbers<[1], [0], [0], [1], [0, 0, 1, 1], [], []>} : vector<2x128xf32>, vector<128x128xf32>, vector<2x128xf32> -> vector<2x128xf32>
    %cst_99 = arith.constant dense<0.000000e+00> : vector<2x128xf32>
    %320 = tpu.matmul %301, %3, %cst_99 {dimension_numbers = #tpu.dot_dimension_numbers<[1], [0], [0], [1], [0, 0, 1, 1], [], []>} : vector<2x128xf32>, vector<128x128xf32>, vector<2x128xf32> -> vector<2x128xf32>
    %321 = vector.broadcast %4 : vector<1x128xf32> to vector<2x128xf32>
    %322 = arith.addf %320, %321 : vector<2x128xf32>
    %323 = vector.shape_cast %322 : vector<2x128xf32> to vector<2x1x128xf32>
    %324 = vector.broadcast %323 : vector<2x1x128xf32> to vector<2x16x128xf32>
    %325 = arith.addf %1, %324 : vector<2x16x128xf32>
    %cst_100 = arith.constant 0.000000e+00 : f32
    %326 = vector.broadcast %cst_100 : f32 to vector<2x16x128xf32>
    %327 = arith.maximumf %325, %326 : vector<2x16x128xf32>
    %328 = vector.broadcast %6 : vector<1x1x128xf32> to vector<2x16x128xf32>
    %329 = arith.mulf %327, %328 : vector<2x16x128xf32>
    %cst_101 = arith.constant dense<0.000000e+00> : vector<2x16xf32>
    %330 = vector.multi_reduction <add>, %329, %cst_101 [2] : vector<2x16x128xf32> to vector<2x16xf32>
    %331 = vector.broadcast %7 : vector<1x1xf32> to vector<2x16xf32>
    %332 = arith.addf %330, %331 : vector<2x16xf32>
    %cst_102 = arith.constant dense<0xFF800000> : vector<2xf32>
    %333 = vector.multi_reduction <maximumf>, %332, %cst_102 [1] : vector<2x16xf32> to vector<2xf32>
    %334 = vector.shape_cast %333 : vector<2xf32> to vector<2x1xf32>
    %335 = vector.broadcast %334 : vector<2x1xf32> to vector<2x16xf32>
    %336 = arith.subf %332, %335 : vector<2x16xf32>
    %337 = math.exp %336 : vector<2x16xf32>
    %cst_103 = arith.constant dense<0.000000e+00> : vector<2xf32>
    %338 = vector.multi_reduction <add>, %337, %cst_103 [1] : vector<2x16xf32> to vector<2xf32>
    %339 = vector.shape_cast %338 : vector<2xf32> to vector<2x1xf32>
    %340 = tpu.reciprocal %339 : vector<2x1xf32> -> vector<2x1xf32>
    %341 = vector.broadcast %340 : vector<2x1xf32> to vector<2x16xf32>
    %342 = arith.mulf %337, %341 : vector<2x16xf32>
    %343 = vector.shape_cast %342 : vector<2x16xf32> to vector<2x16x1xf32>
    %344 = vector.broadcast %343 : vector<2x16x1xf32> to vector<2x16x128xf32>
    %345 = arith.mulf %344, %0 : vector<2x16x128xf32>
    %cst_104 = arith.constant dense<0.000000e+00> : vector<2x128xf32>
    %346 = vector.multi_reduction <add>, %345, %cst_104 [1] : vector<2x16x128xf32> to vector<2x128xf32>
    %347 = tpu.concatenate %346, %319, %301 in 1 : vector<2x128xf32>, vector<2x128xf32>, vector<2x128xf32> -> vector<2x384xf32>
    %cst_105 = arith.constant dense<0.000000e+00> : vector<2x512xf32>
    %348 = tpu.matmul %347, %8, %cst_105 {dimension_numbers = #tpu.dot_dimension_numbers<[1], [0], [0], [1], [0, 0, 1, 1], [], []>} : vector<2x384xf32>, vector<384x512xf32>, vector<2x512xf32> -> vector<2x512xf32>
    %349 = vector.broadcast %9 : vector<1x512xf32> to vector<2x512xf32>
    %350 = arith.addf %348, %349 : vector<2x512xf32>
    %351 = vector.extract_strided_slice %350 {offsets = [0, 0], sizes = [2, 128], strides = [1, 1]} : vector<2x512xf32> to vector<2x128xf32>
    %352 = arith.negf %351 : vector<2x128xf32>
    %353 = math.exp %352 : vector<2x128xf32>
    %cst_106 = arith.constant 1.000000e+00 : f32
    %354 = vector.broadcast %cst_106 : f32 to vector<2x128xf32>
    %355 = arith.addf %354, %353 : vector<2x128xf32>
    %356 = arith.divf %354, %355 : vector<2x128xf32>
    %357 = vector.extract_strided_slice %350 {offsets = [0, 128], sizes = [2, 128], strides = [1, 1]} : vector<2x512xf32> to vector<2x128xf32>
    %358 = arith.negf %357 : vector<2x128xf32>
    %359 = math.exp %358 : vector<2x128xf32>
    %cst_107 = arith.constant 1.000000e+00 : f32
    %360 = vector.broadcast %cst_107 : f32 to vector<2x128xf32>
    %361 = arith.addf %360, %359 : vector<2x128xf32>
    %362 = arith.divf %360, %361 : vector<2x128xf32>
    %363 = vector.extract_strided_slice %350 {offsets = [0, 256], sizes = [2, 128], strides = [1, 1]} : vector<2x512xf32> to vector<2x128xf32>
    %364 = math.tanh %363 : vector<2x128xf32>
    %365 = vector.extract_strided_slice %350 {offsets = [0, 384], sizes = [2, 128], strides = [1, 1]} : vector<2x512xf32> to vector<2x128xf32>
    %366 = arith.negf %365 : vector<2x128xf32>
    %367 = math.exp %366 : vector<2x128xf32>
    %cst_108 = arith.constant 1.000000e+00 : f32
    %368 = vector.broadcast %cst_108 : f32 to vector<2x128xf32>
    %369 = arith.addf %368, %367 : vector<2x128xf32>
    %370 = arith.divf %368, %369 : vector<2x128xf32>
    %371 = arith.mulf %362, %299 : vector<2x128xf32>
    %372 = arith.mulf %356, %364 : vector<2x128xf32>
    %373 = arith.addf %371, %372 : vector<2x128xf32>
    %374 = math.tanh %373 : vector<2x128xf32>
    %375 = arith.mulf %370, %374 : vector<2x128xf32>
    %cst_109 = arith.constant dense<0.000000e+00> : vector<2x128xf32>
    %376 = tpu.matmul %375, %10, %cst_109 {dimension_numbers = #tpu.dot_dimension_numbers<[1], [0], [0], [1], [0, 0, 1, 1], [], []>} : vector<2x128xf32>, vector<128x128xf32>, vector<2x128xf32> -> vector<2x128xf32>
    %377 = vector.broadcast %11 : vector<1x128xf32> to vector<2x128xf32>
    %378 = arith.addf %376, %377 : vector<2x128xf32>
    %379 = vector.shape_cast %378 : vector<2x128xf32> to vector<2x1x128xf32>
    %c0_110 = arith.constant 0 : index
    %c4 = arith.constant 4 : index
    %c0_111 = arith.constant 0 : index
    %380 = vector.load %arg15[%c0_110, %c4, %c0_111] : memref<2x8x128xf32, #tpu.memory_space<vmem>>, vector<2x1x128xf32>
    tpu.vector_store %arg15[%c0_110, %c4, %c0_111], %379 {strides = array<i32>} : memref<2x8x128xf32, #tpu.memory_space<vmem>>, vector<2x1x128xf32>,
    %cst_112 = arith.constant dense<0xFF800000> : vector<2xf32>
    %381 = vector.multi_reduction <maximumf>, %378, %cst_112 [1] : vector<2x128xf32> to vector<2xf32>
    %382 = vector.shape_cast %381 : vector<2xf32> to vector<2x1xf32>
    %383 = vector.broadcast %382 : vector<2x1xf32> to vector<2x128xf32>
    %384 = arith.cmpf oeq, %378, %383 : vector<2x128xf32>
    %c128_i32_113 = arith.constant 128 : i32
    %385 = vector.broadcast %c128_i32_113 : i32 to vector<2x128xi32>
    %386 = arith.select %384, %12, %385 : vector<2x128xi1>, vector<2x128xi32>
    %cst_114 = arith.constant dense<2147483647> : vector<2xi32>
    %387 = vector.multi_reduction <minsi>, %386, %cst_114 [1] : vector<2x128xi32> to vector<2xi32>
    %388 = vector.shape_cast %387 : vector<2xi32> to vector<2x1xi32>
    %389 = vector.broadcast %388 : vector<2x1xi32> to vector<2x128xi32>
    %390 = arith.cmpi eq, %12, %389 : vector<2x128xi32>
    %391 = arith.extui %390 : vector<2x128xi1> to vector<2x128xi32>
    %392 = arith.sitofp %391 : vector<2x128xi32> to vector<2x128xf32>
    %cst_115 = arith.constant dense<0.000000e+00> : vector<2x128xf32>
    %393 = tpu.matmul %392, %2, %cst_115 {dimension_numbers = #tpu.dot_dimension_numbers<[1], [0], [0], [1], [0, 0, 1, 1], [], []>} : vector<2x128xf32>, vector<128x128xf32>, vector<2x128xf32> -> vector<2x128xf32>
    %cst_116 = arith.constant dense<0.000000e+00> : vector<2x128xf32>
    %394 = tpu.matmul %375, %3, %cst_116 {dimension_numbers = #tpu.dot_dimension_numbers<[1], [0], [0], [1], [0, 0, 1, 1], [], []>} : vector<2x128xf32>, vector<128x128xf32>, vector<2x128xf32> -> vector<2x128xf32>
    %395 = vector.broadcast %4 : vector<1x128xf32> to vector<2x128xf32>
    %396 = arith.addf %394, %395 : vector<2x128xf32>
    %397 = vector.shape_cast %396 : vector<2x128xf32> to vector<2x1x128xf32>
    %398 = vector.broadcast %397 : vector<2x1x128xf32> to vector<2x16x128xf32>
    %399 = arith.addf %1, %398 : vector<2x16x128xf32>
    %cst_117 = arith.constant 0.000000e+00 : f32
    %400 = vector.broadcast %cst_117 : f32 to vector<2x16x128xf32>
    %401 = arith.maximumf %399, %400 : vector<2x16x128xf32>
    %402 = vector.broadcast %6 : vector<1x1x128xf32> to vector<2x16x128xf32>
    %403 = arith.mulf %401, %402 : vector<2x16x128xf32>
    %cst_118 = arith.constant dense<0.000000e+00> : vector<2x16xf32>
    %404 = vector.multi_reduction <add>, %403, %cst_118 [2] : vector<2x16x128xf32> to vector<2x16xf32>
    %405 = vector.broadcast %7 : vector<1x1xf32> to vector<2x16xf32>
    %406 = arith.addf %404, %405 : vector<2x16xf32>
    %cst_119 = arith.constant dense<0xFF800000> : vector<2xf32>
    %407 = vector.multi_reduction <maximumf>, %406, %cst_119 [1] : vector<2x16xf32> to vector<2xf32>
    %408 = vector.shape_cast %407 : vector<2xf32> to vector<2x1xf32>
    %409 = vector.broadcast %408 : vector<2x1xf32> to vector<2x16xf32>
    %410 = arith.subf %406, %409 : vector<2x16xf32>
    %411 = math.exp %410 : vector<2x16xf32>
    %cst_120 = arith.constant dense<0.000000e+00> : vector<2xf32>
    %412 = vector.multi_reduction <add>, %411, %cst_120 [1] : vector<2x16xf32> to vector<2xf32>
    %413 = vector.shape_cast %412 : vector<2xf32> to vector<2x1xf32>
    %414 = tpu.reciprocal %413 : vector<2x1xf32> -> vector<2x1xf32>
    %415 = vector.broadcast %414 : vector<2x1xf32> to vector<2x16xf32>
    %416 = arith.mulf %411, %415 : vector<2x16xf32>
    %417 = vector.shape_cast %416 : vector<2x16xf32> to vector<2x16x1xf32>
    %418 = vector.broadcast %417 : vector<2x16x1xf32> to vector<2x16x128xf32>
    %419 = arith.mulf %418, %0 : vector<2x16x128xf32>
    %cst_121 = arith.constant dense<0.000000e+00> : vector<2x128xf32>
    %420 = vector.multi_reduction <add>, %419, %cst_121 [1] : vector<2x16x128xf32> to vector<2x128xf32>
    %421 = tpu.concatenate %420, %393, %375 in 1 : vector<2x128xf32>, vector<2x128xf32>, vector<2x128xf32> -> vector<2x384xf32>
    %cst_122 = arith.constant dense<0.000000e+00> : vector<2x512xf32>
    %422 = tpu.matmul %421, %8, %cst_122 {dimension_numbers = #tpu.dot_dimension_numbers<[1], [0], [0], [1], [0, 0, 1, 1], [], []>} : vector<2x384xf32>, vector<384x512xf32>, vector<2x512xf32> -> vector<2x512xf32>
    %423 = vector.broadcast %9 : vector<1x512xf32> to vector<2x512xf32>
    %424 = arith.addf %422, %423 : vector<2x512xf32>
    %425 = vector.extract_strided_slice %424 {offsets = [0, 0], sizes = [2, 128], strides = [1, 1]} : vector<2x512xf32> to vector<2x128xf32>
    %426 = arith.negf %425 : vector<2x128xf32>
    %427 = math.exp %426 : vector<2x128xf32>
    %cst_123 = arith.constant 1.000000e+00 : f32
    %428 = vector.broadcast %cst_123 : f32 to vector<2x128xf32>
    %429 = arith.addf %428, %427 : vector<2x128xf32>
    %430 = arith.divf %428, %429 : vector<2x128xf32>
    %431 = vector.extract_strided_slice %424 {offsets = [0, 128], sizes = [2, 128], strides = [1, 1]} : vector<2x512xf32> to vector<2x128xf32>
    %432 = arith.negf %431 : vector<2x128xf32>
    %433 = math.exp %432 : vector<2x128xf32>
    %cst_124 = arith.constant 1.000000e+00 : f32
    %434 = vector.broadcast %cst_124 : f32 to vector<2x128xf32>
    %435 = arith.addf %434, %433 : vector<2x128xf32>
    %436 = arith.divf %434, %435 : vector<2x128xf32>
    %437 = vector.extract_strided_slice %424 {offsets = [0, 256], sizes = [2, 128], strides = [1, 1]} : vector<2x512xf32> to vector<2x128xf32>
    %438 = math.tanh %437 : vector<2x128xf32>
    %439 = vector.extract_strided_slice %424 {offsets = [0, 384], sizes = [2, 128], strides = [1, 1]} : vector<2x512xf32> to vector<2x128xf32>
    %440 = arith.negf %439 : vector<2x128xf32>
    %441 = math.exp %440 : vector<2x128xf32>
    %cst_125 = arith.constant 1.000000e+00 : f32
    %442 = vector.broadcast %cst_125 : f32 to vector<2x128xf32>
    %443 = arith.addf %442, %441 : vector<2x128xf32>
    %444 = arith.divf %442, %443 : vector<2x128xf32>
    %445 = arith.mulf %436, %373 : vector<2x128xf32>
    %446 = arith.mulf %430, %438 : vector<2x128xf32>
    %447 = arith.addf %445, %446 : vector<2x128xf32>
    %448 = math.tanh %447 : vector<2x128xf32>
    %449 = arith.mulf %444, %448 : vector<2x128xf32>
    %cst_126 = arith.constant dense<0.000000e+00> : vector<2x128xf32>
    %450 = tpu.matmul %449, %10, %cst_126 {dimension_numbers = #tpu.dot_dimension_numbers<[1], [0], [0], [1], [0, 0, 1, 1], [], []>} : vector<2x128xf32>, vector<128x128xf32>, vector<2x128xf32> -> vector<2x128xf32>
    %451 = vector.broadcast %11 : vector<1x128xf32> to vector<2x128xf32>
    %452 = arith.addf %450, %451 : vector<2x128xf32>
    %453 = vector.shape_cast %452 : vector<2x128xf32> to vector<2x1x128xf32>
    %c0_127 = arith.constant 0 : index
    %c5 = arith.constant 5 : index
    %c0_128 = arith.constant 0 : index
    %454 = vector.load %arg15[%c0_127, %c5, %c0_128] : memref<2x8x128xf32, #tpu.memory_space<vmem>>, vector<2x1x128xf32>
    tpu.vector_store %arg15[%c0_127, %c5, %c0_128], %453 {strides = array<i32>} : memref<2x8x128xf32, #tpu.memory_space<vmem>>, vector<2x1x128xf32>,
    %cst_129 = arith.constant dense<0xFF800000> : vector<2xf32>
    %455 = vector.multi_reduction <maximumf>, %452, %cst_129 [1] : vector<2x128xf32> to vector<2xf32>
    %456 = vector.shape_cast %455 : vector<2xf32> to vector<2x1xf32>
    %457 = vector.broadcast %456 : vector<2x1xf32> to vector<2x128xf32>
    %458 = arith.cmpf oeq, %452, %457 : vector<2x128xf32>
    %c128_i32_130 = arith.constant 128 : i32
    %459 = vector.broadcast %c128_i32_130 : i32 to vector<2x128xi32>
    %460 = arith.select %458, %12, %459 : vector<2x128xi1>, vector<2x128xi32>
    %cst_131 = arith.constant dense<2147483647> : vector<2xi32>
    %461 = vector.multi_reduction <minsi>, %460, %cst_131 [1] : vector<2x128xi32> to vector<2xi32>
    %462 = vector.shape_cast %461 : vector<2xi32> to vector<2x1xi32>
    %463 = vector.broadcast %462 : vector<2x1xi32> to vector<2x128xi32>
    %464 = arith.cmpi eq, %12, %463 : vector<2x128xi32>
    %465 = arith.extui %464 : vector<2x128xi1> to vector<2x128xi32>
    %466 = arith.sitofp %465 : vector<2x128xi32> to vector<2x128xf32>
    %cst_132 = arith.constant dense<0.000000e+00> : vector<2x128xf32>
    %467 = tpu.matmul %466, %2, %cst_132 {dimension_numbers = #tpu.dot_dimension_numbers<[1], [0], [0], [1], [0, 0, 1, 1], [], []>} : vector<2x128xf32>, vector<128x128xf32>, vector<2x128xf32> -> vector<2x128xf32>
    %cst_133 = arith.constant dense<0.000000e+00> : vector<2x128xf32>
    %468 = tpu.matmul %449, %3, %cst_133 {dimension_numbers = #tpu.dot_dimension_numbers<[1], [0], [0], [1], [0, 0, 1, 1], [], []>} : vector<2x128xf32>, vector<128x128xf32>, vector<2x128xf32> -> vector<2x128xf32>
    %469 = vector.broadcast %4 : vector<1x128xf32> to vector<2x128xf32>
    %470 = arith.addf %468, %469 : vector<2x128xf32>
    %471 = vector.shape_cast %470 : vector<2x128xf32> to vector<2x1x128xf32>
    %472 = vector.broadcast %471 : vector<2x1x128xf32> to vector<2x16x128xf32>
    %473 = arith.addf %1, %472 : vector<2x16x128xf32>
    %cst_134 = arith.constant 0.000000e+00 : f32
    %474 = vector.broadcast %cst_134 : f32 to vector<2x16x128xf32>
    %475 = arith.maximumf %473, %474 : vector<2x16x128xf32>
    %476 = vector.broadcast %6 : vector<1x1x128xf32> to vector<2x16x128xf32>
    %477 = arith.mulf %475, %476 : vector<2x16x128xf32>
    %cst_135 = arith.constant dense<0.000000e+00> : vector<2x16xf32>
    %478 = vector.multi_reduction <add>, %477, %cst_135 [2] : vector<2x16x128xf32> to vector<2x16xf32>
    %479 = vector.broadcast %7 : vector<1x1xf32> to vector<2x16xf32>
    %480 = arith.addf %478, %479 : vector<2x16xf32>
    %cst_136 = arith.constant dense<0xFF800000> : vector<2xf32>
    %481 = vector.multi_reduction <maximumf>, %480, %cst_136 [1] : vector<2x16xf32> to vector<2xf32>
    %482 = vector.shape_cast %481 : vector<2xf32> to vector<2x1xf32>
    %483 = vector.broadcast %482 : vector<2x1xf32> to vector<2x16xf32>
    %484 = arith.subf %480, %483 : vector<2x16xf32>
    %485 = math.exp %484 : vector<2x16xf32>
    %cst_137 = arith.constant dense<0.000000e+00> : vector<2xf32>
    %486 = vector.multi_reduction <add>, %485, %cst_137 [1] : vector<2x16xf32> to vector<2xf32>
    %487 = vector.shape_cast %486 : vector<2xf32> to vector<2x1xf32>
    %488 = tpu.reciprocal %487 : vector<2x1xf32> -> vector<2x1xf32>
    %489 = vector.broadcast %488 : vector<2x1xf32> to vector<2x16xf32>
    %490 = arith.mulf %485, %489 : vector<2x16xf32>
    %491 = vector.shape_cast %490 : vector<2x16xf32> to vector<2x16x1xf32>
    %492 = vector.broadcast %491 : vector<2x16x1xf32> to vector<2x16x128xf32>
    %493 = arith.mulf %492, %0 : vector<2x16x128xf32>
    %cst_138 = arith.constant dense<0.000000e+00> : vector<2x128xf32>
    %494 = vector.multi_reduction <add>, %493, %cst_138 [1] : vector<2x16x128xf32> to vector<2x128xf32>
    %495 = tpu.concatenate %494, %467, %449 in 1 : vector<2x128xf32>, vector<2x128xf32>, vector<2x128xf32> -> vector<2x384xf32>
    %cst_139 = arith.constant dense<0.000000e+00> : vector<2x512xf32>
    %496 = tpu.matmul %495, %8, %cst_139 {dimension_numbers = #tpu.dot_dimension_numbers<[1], [0], [0], [1], [0, 0, 1, 1], [], []>} : vector<2x384xf32>, vector<384x512xf32>, vector<2x512xf32> -> vector<2x512xf32>
    %497 = vector.broadcast %9 : vector<1x512xf32> to vector<2x512xf32>
    %498 = arith.addf %496, %497 : vector<2x512xf32>
    %499 = vector.extract_strided_slice %498 {offsets = [0, 0], sizes = [2, 128], strides = [1, 1]} : vector<2x512xf32> to vector<2x128xf32>
    %500 = arith.negf %499 : vector<2x128xf32>
    %501 = math.exp %500 : vector<2x128xf32>
    %cst_140 = arith.constant 1.000000e+00 : f32
    %502 = vector.broadcast %cst_140 : f32 to vector<2x128xf32>
    %503 = arith.addf %502, %501 : vector<2x128xf32>
    %504 = arith.divf %502, %503 : vector<2x128xf32>
    %505 = vector.extract_strided_slice %498 {offsets = [0, 128], sizes = [2, 128], strides = [1, 1]} : vector<2x512xf32> to vector<2x128xf32>
    %506 = arith.negf %505 : vector<2x128xf32>
    %507 = math.exp %506 : vector<2x128xf32>
    %cst_141 = arith.constant 1.000000e+00 : f32
    %508 = vector.broadcast %cst_141 : f32 to vector<2x128xf32>
    %509 = arith.addf %508, %507 : vector<2x128xf32>
    %510 = arith.divf %508, %509 : vector<2x128xf32>
    %511 = vector.extract_strided_slice %498 {offsets = [0, 256], sizes = [2, 128], strides = [1, 1]} : vector<2x512xf32> to vector<2x128xf32>
    %512 = math.tanh %511 : vector<2x128xf32>
    %513 = vector.extract_strided_slice %498 {offsets = [0, 384], sizes = [2, 128], strides = [1, 1]} : vector<2x512xf32> to vector<2x128xf32>
    %514 = arith.negf %513 : vector<2x128xf32>
    %515 = math.exp %514 : vector<2x128xf32>
    %cst_142 = arith.constant 1.000000e+00 : f32
    %516 = vector.broadcast %cst_142 : f32 to vector<2x128xf32>
    %517 = arith.addf %516, %515 : vector<2x128xf32>
    %518 = arith.divf %516, %517 : vector<2x128xf32>
    %519 = arith.mulf %510, %447 : vector<2x128xf32>
    %520 = arith.mulf %504, %512 : vector<2x128xf32>
    %521 = arith.addf %519, %520 : vector<2x128xf32>
    %522 = math.tanh %521 : vector<2x128xf32>
    %523 = arith.mulf %518, %522 : vector<2x128xf32>
    %cst_143 = arith.constant dense<0.000000e+00> : vector<2x128xf32>
    %524 = tpu.matmul %523, %10, %cst_143 {dimension_numbers = #tpu.dot_dimension_numbers<[1], [0], [0], [1], [0, 0, 1, 1], [], []>} : vector<2x128xf32>, vector<128x128xf32>, vector<2x128xf32> -> vector<2x128xf32>
    %525 = vector.broadcast %11 : vector<1x128xf32> to vector<2x128xf32>
    %526 = arith.addf %524, %525 : vector<2x128xf32>
    %527 = vector.shape_cast %526 : vector<2x128xf32> to vector<2x1x128xf32>
    %c0_144 = arith.constant 0 : index
    %c6 = arith.constant 6 : index
    %c0_145 = arith.constant 0 : index
    %528 = vector.load %arg15[%c0_144, %c6, %c0_145] : memref<2x8x128xf32, #tpu.memory_space<vmem>>, vector<2x1x128xf32>
    tpu.vector_store %arg15[%c0_144, %c6, %c0_145], %527 {strides = array<i32>} : memref<2x8x128xf32, #tpu.memory_space<vmem>>, vector<2x1x128xf32>,
    %cst_146 = arith.constant dense<0xFF800000> : vector<2xf32>
    %529 = vector.multi_reduction <maximumf>, %526, %cst_146 [1] : vector<2x128xf32> to vector<2xf32>
    %530 = vector.shape_cast %529 : vector<2xf32> to vector<2x1xf32>
    %531 = vector.broadcast %530 : vector<2x1xf32> to vector<2x128xf32>
    %532 = arith.cmpf oeq, %526, %531 : vector<2x128xf32>
    %c128_i32_147 = arith.constant 128 : i32
    %533 = vector.broadcast %c128_i32_147 : i32 to vector<2x128xi32>
    %534 = arith.select %532, %12, %533 : vector<2x128xi1>, vector<2x128xi32>
    %cst_148 = arith.constant dense<2147483647> : vector<2xi32>
    %535 = vector.multi_reduction <minsi>, %534, %cst_148 [1] : vector<2x128xi32> to vector<2xi32>
    %536 = vector.shape_cast %535 : vector<2xi32> to vector<2x1xi32>
    %537 = vector.broadcast %536 : vector<2x1xi32> to vector<2x128xi32>
    %538 = arith.cmpi eq, %12, %537 : vector<2x128xi32>
    %539 = arith.extui %538 : vector<2x128xi1> to vector<2x128xi32>
    %540 = arith.sitofp %539 : vector<2x128xi32> to vector<2x128xf32>
    %cst_149 = arith.constant dense<0.000000e+00> : vector<2x128xf32>
    %541 = tpu.matmul %540, %2, %cst_149 {dimension_numbers = #tpu.dot_dimension_numbers<[1], [0], [0], [1], [0, 0, 1, 1], [], []>} : vector<2x128xf32>, vector<128x128xf32>, vector<2x128xf32> -> vector<2x128xf32>
    %cst_150 = arith.constant dense<0.000000e+00> : vector<2x128xf32>
    %542 = tpu.matmul %523, %3, %cst_150 {dimension_numbers = #tpu.dot_dimension_numbers<[1], [0], [0], [1], [0, 0, 1, 1], [], []>} : vector<2x128xf32>, vector<128x128xf32>, vector<2x128xf32> -> vector<2x128xf32>
    %543 = vector.broadcast %4 : vector<1x128xf32> to vector<2x128xf32>
    %544 = arith.addf %542, %543 : vector<2x128xf32>
    %545 = vector.shape_cast %544 : vector<2x128xf32> to vector<2x1x128xf32>
    %546 = vector.broadcast %545 : vector<2x1x128xf32> to vector<2x16x128xf32>
    %547 = arith.addf %1, %546 : vector<2x16x128xf32>
    %cst_151 = arith.constant 0.000000e+00 : f32
    %548 = vector.broadcast %cst_151 : f32 to vector<2x16x128xf32>
    %549 = arith.maximumf %547, %548 : vector<2x16x128xf32>
    %550 = vector.broadcast %6 : vector<1x1x128xf32> to vector<2x16x128xf32>
    %551 = arith.mulf %549, %550 : vector<2x16x128xf32>
    %cst_152 = arith.constant dense<0.000000e+00> : vector<2x16xf32>
    %552 = vector.multi_reduction <add>, %551, %cst_152 [2] : vector<2x16x128xf32> to vector<2x16xf32>
    %553 = vector.broadcast %7 : vector<1x1xf32> to vector<2x16xf32>
    %554 = arith.addf %552, %553 : vector<2x16xf32>
    %cst_153 = arith.constant dense<0xFF800000> : vector<2xf32>
    %555 = vector.multi_reduction <maximumf>, %554, %cst_153 [1] : vector<2x16xf32> to vector<2xf32>
    %556 = vector.shape_cast %555 : vector<2xf32> to vector<2x1xf32>
    %557 = vector.broadcast %556 : vector<2x1xf32> to vector<2x16xf32>
    %558 = arith.subf %554, %557 : vector<2x16xf32>
    %559 = math.exp %558 : vector<2x16xf32>
    %cst_154 = arith.constant dense<0.000000e+00> : vector<2xf32>
    %560 = vector.multi_reduction <add>, %559, %cst_154 [1] : vector<2x16xf32> to vector<2xf32>
    %561 = vector.shape_cast %560 : vector<2xf32> to vector<2x1xf32>
    %562 = tpu.reciprocal %561 : vector<2x1xf32> -> vector<2x1xf32>
    %563 = vector.broadcast %562 : vector<2x1xf32> to vector<2x16xf32>
    %564 = arith.mulf %559, %563 : vector<2x16xf32>
    %565 = vector.shape_cast %564 : vector<2x16xf32> to vector<2x16x1xf32>
    %566 = vector.broadcast %565 : vector<2x16x1xf32> to vector<2x16x128xf32>
    %567 = arith.mulf %566, %0 : vector<2x16x128xf32>
    %cst_155 = arith.constant dense<0.000000e+00> : vector<2x128xf32>
    %568 = vector.multi_reduction <add>, %567, %cst_155 [1] : vector<2x16x128xf32> to vector<2x128xf32>
    %569 = tpu.concatenate %568, %541, %523 in 1 : vector<2x128xf32>, vector<2x128xf32>, vector<2x128xf32> -> vector<2x384xf32>
    %cst_156 = arith.constant dense<0.000000e+00> : vector<2x512xf32>
    %570 = tpu.matmul %569, %8, %cst_156 {dimension_numbers = #tpu.dot_dimension_numbers<[1], [0], [0], [1], [0, 0, 1, 1], [], []>} : vector<2x384xf32>, vector<384x512xf32>, vector<2x512xf32> -> vector<2x512xf32>
    %571 = vector.broadcast %9 : vector<1x512xf32> to vector<2x512xf32>
    %572 = arith.addf %570, %571 : vector<2x512xf32>
    %573 = vector.extract_strided_slice %572 {offsets = [0, 0], sizes = [2, 128], strides = [1, 1]} : vector<2x512xf32> to vector<2x128xf32>
    %574 = arith.negf %573 : vector<2x128xf32>
    %575 = math.exp %574 : vector<2x128xf32>
    %cst_157 = arith.constant 1.000000e+00 : f32
    %576 = vector.broadcast %cst_157 : f32 to vector<2x128xf32>
    %577 = arith.addf %576, %575 : vector<2x128xf32>
    %578 = arith.divf %576, %577 : vector<2x128xf32>
    %579 = vector.extract_strided_slice %572 {offsets = [0, 128], sizes = [2, 128], strides = [1, 1]} : vector<2x512xf32> to vector<2x128xf32>
    %580 = arith.negf %579 : vector<2x128xf32>
    %581 = math.exp %580 : vector<2x128xf32>
    %cst_158 = arith.constant 1.000000e+00 : f32
    %582 = vector.broadcast %cst_158 : f32 to vector<2x128xf32>
    %583 = arith.addf %582, %581 : vector<2x128xf32>
    %584 = arith.divf %582, %583 : vector<2x128xf32>
    %585 = vector.extract_strided_slice %572 {offsets = [0, 256], sizes = [2, 128], strides = [1, 1]} : vector<2x512xf32> to vector<2x128xf32>
    %586 = math.tanh %585 : vector<2x128xf32>
    %587 = vector.extract_strided_slice %572 {offsets = [0, 384], sizes = [2, 128], strides = [1, 1]} : vector<2x512xf32> to vector<2x128xf32>
    %588 = arith.negf %587 : vector<2x128xf32>
    %589 = math.exp %588 : vector<2x128xf32>
    %cst_159 = arith.constant 1.000000e+00 : f32
    %590 = vector.broadcast %cst_159 : f32 to vector<2x128xf32>
    %591 = arith.addf %590, %589 : vector<2x128xf32>
    %592 = arith.divf %590, %591 : vector<2x128xf32>
    %593 = arith.mulf %584, %521 : vector<2x128xf32>
    %594 = arith.mulf %578, %586 : vector<2x128xf32>
    %595 = arith.addf %593, %594 : vector<2x128xf32>
    %596 = math.tanh %595 : vector<2x128xf32>
    %597 = arith.mulf %592, %596 : vector<2x128xf32>
    %cst_160 = arith.constant dense<0.000000e+00> : vector<2x128xf32>
    %598 = tpu.matmul %597, %10, %cst_160 {dimension_numbers = #tpu.dot_dimension_numbers<[1], [0], [0], [1], [0, 0, 1, 1], [], []>} : vector<2x128xf32>, vector<128x128xf32>, vector<2x128xf32> -> vector<2x128xf32>
    %599 = vector.broadcast %11 : vector<1x128xf32> to vector<2x128xf32>
    %600 = arith.addf %598, %599 : vector<2x128xf32>
    %601 = vector.shape_cast %600 : vector<2x128xf32> to vector<2x1x128xf32>
    %c0_161 = arith.constant 0 : index
    %c7 = arith.constant 7 : index
    %c0_162 = arith.constant 0 : index
    %602 = vector.load %arg15[%c0_161, %c7, %c0_162] : memref<2x8x128xf32, #tpu.memory_space<vmem>>, vector<2x1x128xf32>
    tpu.vector_store %arg15[%c0_161, %c7, %c0_162], %601 {strides = array<i32>} : memref<2x8x128xf32, #tpu.memory_space<vmem>>, vector<2x1x128xf32>,
    %c0_163 = arith.constant 0 : index
    %c0_164 = arith.constant 0 : index
    %603 = vector.load %arg16[%c0_163, %c0_164] : memref<2x16xf32, #tpu.memory_space<vmem>>, vector<2x16xf32>
    tpu.vector_store %arg16[%c0_163, %c0_164], %564 {strides = array<i32>} : memref<2x16xf32, #tpu.memory_space<vmem>>, vector<2x16xf32>,
    return
  }
  func.func @transform_0(%arg0: i32) -> (i32, i32, i32) {
    %c0_i32 = arith.constant 0 : i32
    %c0_i32_0 = arith.constant 0 : i32
    %c0_i32_1 = arith.constant 0 : i32
    %c0_i32_2 = arith.constant 0 : i32
    return %c0_i32, %c0_i32_0, %c0_i32_1 : i32, i32, i32
  }
  func.func @transform_1(%arg0: i32) -> (i32, i32, i32) {
    %c0_i32 = arith.constant 0 : i32
    %c0_i32_0 = arith.constant 0 : i32
    %c0_i32_1 = arith.constant 0 : i32
    %c0_i32_2 = arith.constant 0 : i32
    return %c0_i32, %c0_i32_0, %c0_i32_1 : i32, i32, i32
  }
  func.func @transform_2(%arg0: i32) -> (i32, i32) {
    %c0_i32 = arith.constant 0 : i32
    %c0_i32_0 = arith.constant 0 : i32
    %c0_i32_1 = arith.constant 0 : i32
    return %c0_i32, %c0_i32_0 : i32, i32
  }
  func.func @transform_3(%arg0: i32) -> (i32, i32) {
    %c0_i32 = arith.constant 0 : i32
    %c0_i32_0 = arith.constant 0 : i32
    %c0_i32_1 = arith.constant 0 : i32
    return %c0_i32, %c0_i32_0 : i32, i32
  }
  func.func @transform_4(%arg0: i32) -> (i32, i32) {
    %c0_i32 = arith.constant 0 : i32
    %c0_i32_0 = arith.constant 0 : i32
    %c0_i32_1 = arith.constant 0 : i32
    return %c0_i32, %c0_i32_0 : i32, i32
  }
  func.func @transform_5(%arg0: i32) -> (i32, i32) {
    %c0_i32 = arith.constant 0 : i32
    %c0_i32_0 = arith.constant 0 : i32
    %c0_i32_1 = arith.constant 0 : i32
    return %c0_i32, %c0_i32_0 : i32, i32
  }
  func.func @transform_6(%arg0: i32) -> (i32, i32) {
    %c0_i32 = arith.constant 0 : i32
    %c0_i32_0 = arith.constant 0 : i32
    %c0_i32_1 = arith.constant 0 : i32
    return %c0_i32, %c0_i32_0 : i32, i32
  }
  func.func @transform_7(%arg0: i32) -> (i32, i32) {
    %c0_i32 = arith.constant 0 : i32
    %c0_i32_0 = arith.constant 0 : i32
    %c0_i32_1 = arith.constant 0 : i32
    return %c0_i32, %c0_i32_0 : i32, i32
  }
  func.func @transform_8(%arg0: i32) -> (i32, i32) {
    %c0_i32 = arith.constant 0 : i32
    %c0_i32_0 = arith.constant 0 : i32
    %c0_i32_1 = arith.constant 0 : i32
    return %c0_i32, %c0_i32_0 : i32, i32
  }
  func.func @transform_9(%arg0: i32) -> (i32, i32) {
    %c0_i32 = arith.constant 0 : i32
    %c0_i32_0 = arith.constant 0 : i32
    %c0_i32_1 = arith.constant 0 : i32
    return %c0_i32, %c0_i32_0 : i32, i32
  }
  func.func @transform_10(%arg0: i32) -> (i32, i32) {
    %c0_i32 = arith.constant 0 : i32
    %c0_i32_0 = arith.constant 0 : i32
    %c0_i32_1 = arith.constant 0 : i32
    return %c0_i32, %c0_i32_0 : i32, i32
  }
  func.func @transform_11(%arg0: i32) -> (i32, i32) {
    %c0_i32 = arith.constant 0 : i32
    %c0_i32_0 = arith.constant 0 : i32
    %c0_i32_1 = arith.constant 0 : i32
    return %c0_i32, %c0_i32_0 : i32, i32
  }
  func.func @transform_12(%arg0: i32) -> (i32, i32) {
    %c0_i32 = arith.constant 0 : i32
    %c0_i32_0 = arith.constant 0 : i32
    %c0_i32_1 = arith.constant 0 : i32
    return %c0_i32, %c0_i32_0 : i32, i32
  }
  func.func @transform_13(%arg0: i32) -> (i32, i32) {
    %c0_i32 = arith.constant 0 : i32
    %c0_i32_0 = arith.constant 0 : i32
    %c0_i32_1 = arith.constant 0 : i32
    return %c0_i32, %c0_i32_0 : i32, i32
  }
  func.func @transform_14(%arg0: i32) -> (i32, i32, i32) {
    %c0_i32 = arith.constant 0 : i32
    %c0_i32_0 = arith.constant 0 : i32
    %c0_i32_1 = arith.constant 0 : i32
    %c0_i32_2 = arith.constant 0 : i32
    return %c0_i32, %c0_i32_0, %c0_i32_1 : i32, i32, i32
  }
  func.func @transform_15(%arg0: i32) -> (i32, i32) {
    %c0_i32 = arith.constant 0 : i32
    %c0_i32_0 = arith.constant 0 : i32
    %c0_i32_1 = arith.constant 0 : i32
    return %c0_i32, %c0_i32_0 : i32, i32
  }
}

</mosaic_0001>

<bundles_post_ra>
// kernel: rnn_decoder_with_att.1
= control target key start
LH: loop header
LB: loop body
LE: loop exit
PB: predicated region body
PF: predicated region fallthrough
CT: control target
= control target key end

     0   :  { %s13651_s0 = inlined_call_operand.vmem [shape: f32[2,16,128], index: 0, kind: input, shape index: {}]   ;;  %s13652_s1 = inlined_call_operand.vmem [shape: f32[2,16,128], index: 1, kind: input, shape index: {}]   ;;  %s13653_s2 = inlined_call_operand.vmem [shape: f32[2,128], index: 2, kind: input, shape index: {}]   ;;  %s13654_s3 = inlined_call_operand.vmem [shape: f32[128,128], index: 3, kind: input, shape index: {}]   ;;  %s13655_s4 = inlined_call_operand.vmem [shape: f32[128,128], index: 4, kind: input, shape index: {}]   ;;  %s13656_s5 = inlined_call_operand.vmem [shape: f32[1,128], index: 5, kind: input, shape index: {}]   ;;  %s13657_s6 = inlined_call_operand.vmem [shape: f32[1,128], index: 6, kind: input, shape index: {}]   ;;  %s13658_s7 = inlined_call_operand.<no memory space> [shape: f32[1,1], index: 7, kind: input, shape index: {}]   ;;  %s13659_s8 = inlined_call_operand.vmem [shape: f32[128,256], index: 8, kind: input, shape index: {}]   ;;  %s13660_s9 = inlined_call_operand.vmem [shape: f32[1,256], index: 9, kind: input, shape index: {}]   ;;  %s13661_s10 = inlined_call_operand.vmem [shape: f32[384,512], index: 10, kind: input, shape index: {}]   ;;  %s13662_s11 = inlined_call_operand.vmem [shape: f32[1,512], index: 11, kind: input, shape index: {}]   ;;  %s13663_s12 = inlined_call_operand.vmem [shape: f32[128,128], index: 12, kind: input, shape index: {}]   ;;  %s13664_s13 = inlined_call_operand.vmem [shape: f32[1,128], index: 13, kind: input, shape index: {}]   ;;  %s13665_s14 = inlined_call_operand.hbm [shape: f32[2,8,128], index: 14, kind: output, shape index: {0}]   ;;  %s13666_s15 = inlined_call_operand.hbm [shape: f32[2,16], index: 15, kind: output, shape index: {1}]  }
   0x1   :  { %v21_v0 = vstv %s13658_s7 }
   0x2   :  { %22 = vst [vmem:[#allocation2] sm:$0x1] %v21_v0 }
   0x3   :  { %23 = vsyncpa [#allocation4], 0  ;;  %v361_v1 = vld [vmem:[%s13659_s8 + $0xf0] sm:$0xff]  ;;  %v359_v2 = vld [vmem:[%s13659_s8 + $0xe0] sm:$0xff]  ;;  %v6028_v3 = vmov 16.0  }
   0x4   :  { %374 = vmatpush.msra.mxu0 %v361_v1  ;;  %4855 = vrcp.f32 %v6028_v3  ;;  %v357_v4 = vld [vmem:[%s13659_s8 + $0xd0] sm:$0xff]  ;;  %v355_v5 = vld [vmem:[%s13659_s8 + $0xc0] sm:$0xff]  ;;  %v54_v8 = vld [vmem:[%s13651_s0 + $0x8] sm:$0xff] }
   0x5   :  { %v353_v6 = vld [vmem:[%s13659_s8 + $0xb0] sm:$0xff]  ;;  %v53_v7 = vld [vmem:[%s13651_s0] sm:$0xff]  ;;  %v56_v10 = vld [vmem:[%s13651_s0 + $0x18] sm:$0xff] }
   0x6   :  { %375 = vmatpush.msra.mxu0 %v359_v2  ;;  %v55_v9 = vld [vmem:[%s13651_s0 + $0x10] sm:$0xff]  ;;  %v308_v11 = vadd.f32 %v54_v8, %v53_v7  ;;  %v362_v12 = vld [vmem:[%s13659_s8 + $0xf8] sm:$0xff]  ;;  %v360_v15 = vld [vmem:[%s13659_s8 + $0xe8] sm:$0xff] }
   0x7   :  { %v315_v14 = vadd.f32 %v56_v10, %v55_v9  ;;  %394 = vmatpush.msra.mxu1 %v362_v12  ;;  %v351_v16 = vld [vmem:[%s13659_s8 + $0xa0] sm:$0xff]  ;;  %v358_v19 = vld [vmem:[%s13659_s8 + $0xd8] sm:$0xff]  ;;  %v349_v21 = vld [vmem:[%s13659_s8 + $0x90] sm:$0xff] }
   0x8   :  { %376 = vmatpush.msra.mxu0 %v357_v4  ;;  %v309_v17 = vrot.slane %v308_v11, 4  ;;  %v356_v24 = vld [vmem:[%s13659_s8 + $0xc8] sm:$0xff]  ;;  %v347_v25 = vld [vmem:[%s13659_s8 + $0x80] sm:$0xff]  ;;  %v354_v28 = vld [vmem:[%s13659_s8 + $0xb8] sm:$0xff] }
   0x9   :  { %v316_v20 = vrot.slane %v315_v14, 4  ;;  %395 = vmatpush.msra.mxu1 %v360_v15 }
   0xa   :  { %v4856_v13 = vpop.eup %4855  ;;  %377 = vmatpush.msra.mxu0 %v355_v5  ;;  %v310_v22 = vadd.f32 %v309_v17, %v308_v11 }
   0xb   :  { %v323_v18 = vmul.f32 16.0, %v4856_v13  ;;  %v317_v26 = vadd.f32 %v316_v20, %v315_v14  ;;  %396 = vmatpush.msra.mxu1 %v358_v19 }
   0xc   :  { %378 = vmatpush.msra.mxu0 %v353_v6  ;;  %v311_v27 = vrot.slane %v310_v22, 2 }
   0xd   :  { %v324_v23 = vsub.f32 1.0, %v323_v18  ;;  %v318_v29 = vrot.slane %v317_v26, 2  ;;  %397 = vmatpush.msra.mxu1 %v356_v24 }
   0xe   :  { %379 = vmatpush.msra.mxu0 %v351_v16 }
  0x10   :  { %380 = vmatpush.msra.mxu0 %v349_v21 }
  0x11   :  { %24 = vsyncpa [#allocation6], 0  ;;  %v345_v30 = vld [vmem:[%s13659_s8 + $0x70] sm:$0xff]  ;;  %v312_v31 = vadd.f32 %v311_v27, %v310_v22  ;;  %v325_v32 = vmul.f32 %v4856_v13, %v324_v23  ;;  %v352_v33 = vld [vmem:[%s13659_s8 + $0xa8] sm:$0xff]  ;;  %v319_v34 = vadd.f32 %v318_v29, %v317_v26  ;;  %398 = vmatpush.msra.mxu1 %v354_v28  ;;  %vm327_vm0 = vweird.f32 %v4856_v13  ;;  %s4789_s16 = sshll.u32 %s13666_s15, 4  ;;  %s6032_s17 = smov [#allocation3]   ;;  %s4790_s16 = int_to_ptr.hbm [resolvable:$true] %s4789_s16 }
  0x12   :  { %381 = vmatpush.msra.mxu0 %v347_v25  ;;  %v343_v35 = vld [vmem:[%s13659_s8 + $0x60] sm:$0xff]  ;;  %v350_v36 = vld [vmem:[%s13659_s8 + $0x98] sm:$0xff]  ;;  %v341_v39 = vld [vmem:[%s13659_s8 + $0x50] sm:$0xff]  ;;  %vm371_vm1 = vcmask 1041409   ;;  %vm484_vm2 = vcmask 130112   ;;  %vm491_vm3 = vcmask 123904  }
  0x13   :  { %v313_v37 = vrot.slane %v312_v31, 1  ;;  %v320_v38 = vrot.slane %v319_v34, 1  ;;  %399 = vmatpush.msra.mxu1 %v352_v33  ;;  %v326_v40 = vadd.f32 %v4856_v13, %v325_v32  ;;  %v348_v41 = vld [vmem:[%s13659_s8 + $0x88] sm:$0xff]  ;;  %v339_v42 = vld [vmem:[%s13659_s8 + $0x40] sm:$0xff]  ;;  %v346_v43 = vld [vmem:[%s13659_s8 + $0x78] sm:$0xff]  ;;  %s4773_s18 = sshll.u32 %s6032_s17, 4  ;;  %s4774_s18 = int_to_ptr.vmem [resolvable:$true] %s4773_s18 }
  0x14   :  { %382 = vmatpush.msra.mxu0 %v345_v30  ;;  %v337_v46 = vld [vmem:[%s13659_s8 + $0x30] sm:$0xff]  ;;  %v344_v48 = vld [vmem:[%s13659_s8 + $0x68] sm:$0xff]  ;;  %v335_v49 = vld [vmem:[%s13659_s8 + $0x20] sm:$0xff]  ;;  %s4775_s20 = sshll.u32 %s13665_s14, 4  ;;  %s6033_s15 = smov 128   ;;  %s4776_s20 = int_to_ptr.hbm [resolvable:$true] %s4775_s20 }
  0x15   :  { %400 = vmatpush.msra.mxu1 %v350_v36  ;;  %v314_v44 = vadd.f32 %v313_v37, %v312_v31  ;;  %v321_v45 = vadd.f32 %v320_v38, %v319_v34  ;;  %v328_v47 = vsel %vm327_vm0, %v4856_v13, %v326_v40  ;;  %v342_v50 = vld [vmem:[%s13659_s8 + $0x58] sm:$0xff]  ;;  %v333_v53 = vld [vmem:[%s13659_s8 + $0x10] sm:$0xff]  ;;  %v340_v54 = vld [vmem:[%s13659_s8 + $0x48] sm:$0xff]  ;;  %s6034_s22 = smov 8  }
  0x16   :  { %383 = vmatpush.msra.mxu0 %v343_v35  ;;  %v331_v55 = vld [vmem:[%s13659_s8] sm:$0xff]  ;;  %v338_v56 = vld [vmem:[%s13659_s8 + $0x38] sm:$0xff]  ;;  %v336_v59 = vld [vmem:[%s13659_s8 + $0x28] sm:$0xff] }
  0x17   :  { %401 = vmatpush.msra.mxu1 %v348_v41  ;;  %v329_v51 = vmul.f32 %v328_v47, %v314_v44  ;;  %v330_v52 = vmul.f32 %v328_v47, %v321_v45  ;;  %v220_v58 = vld [vmem:[%s13661_s10 + $0x3e0] sm:$0xff]  ;;  %v92_v60 = vld [vmem:[%s13655_s4 + $0x78] sm:$0xff]  ;;  %v91_v63 = vld [vmem:[%s13655_s4 + $0x70] sm:$0xff] }
  0x18   :  { %384 = vmatpush.msra.mxu0 %v341_v39  ;;  %v216_v61 = vld [vmem:[%s13661_s10 + $0x3c0] sm:$0xff]  ;;  %v334_v62 = vld [vmem:[%s13659_s8 + $0x18] sm:$0xff]  ;;  %418 = vmatpush.msra.mxu2 %v92_v60  ;;  %v332_v1 = vld [vmem:[%s13659_s8 + $0x8] sm:$0xff] }
  0x19   :  { %402 = vmatpush.msra.mxu1 %v346_v43  ;;  %v372_v57 = vsel %vm371_vm1, %v330_v52, %v329_v51  ;;  %v212_v0 = vld [vmem:[%s13661_s10 + $0x3a0] sm:$0xff]  ;;  %v90_v2 = vld [vmem:[%s13655_s4 + $0x68] sm:$0xff]  ;;  %v88_v8 = vld [vmem:[%s13655_s4 + $0x58] sm:$0xff] }
  0x1a   :  { %385 = vmatpush.msra.mxu0 %v339_v42  ;;  %419 = vmatpush.msra.mxu2 %v91_v63  ;;  %v284_v3 = vld [vmem:[%s13661_s10 + $0x5e0] sm:$0xff]  ;;  %v87_v11 = vld [vmem:[%s13655_s4 + $0x50] sm:$0xff]  ;;  %v86_v14 = vld [vmem:[%s13655_s4 + $0x48] sm:$0xff] }
  0x1b   :  { %403 = vmatpush.msra.mxu1 %v344_v48  ;;  %v208_v4 = vld [vmem:[%s13661_s10 + $0x380] sm:$0xff]  ;;  %v84_v20 = vld [vmem:[%s13655_s4 + $0x38] sm:$0xff]  ;;  %v83_v23 = vld [vmem:[%s13655_s4 + $0x30] sm:$0xff] }
  0x1c   :  { %386 = vmatpush.msra.mxu0 %v337_v46  ;;  %420 = vmatpush.msra.mxu2 %v90_v2  ;;  %v89_v5 = vld [vmem:[%s13655_s4 + $0x60] sm:$0xff]  ;;  %v82_v26 = vld [vmem:[%s13655_s4 + $0x28] sm:$0xff]  ;;  %v80_v32 = vld [vmem:[%s13655_s4 + $0x18] sm:$0xff] }
  0x1d   :  { %404 = vmatpush.msra.mxu1 %v342_v50  ;;  %v280_v6 = vld [vmem:[%s13661_s10 + $0x5c0] sm:$0xff]  ;;  %v79_v35 = vld [vmem:[%s13655_s4 + $0x10] sm:$0xff]  ;;  %v285_v40 = vld [vmem:[%s13661_s10 + $0x5e8] sm:$0xff] }
  0x1e   :  { %387 = vmatpush.msra.mxu0 %v335_v49  ;;  %v204_v7 = vld [vmem:[%s13661_s10 + $0x360] sm:$0xff]  ;;  %421 = vmatpush.msra.mxu2 %v89_v5  ;;  %v281_v43 = vld [vmem:[%s13661_s10 + $0x5c8] sm:$0xff] }
  0x1f   :  { %405 = vmatpush.msra.mxu1 %v340_v54  ;;  %v276_v9 = vld [vmem:[%s13661_s10 + $0x5a0] sm:$0xff]  ;;  %v277_v44 = vld [vmem:[%s13661_s10 + $0x5a8] sm:$0xff] }
  0x20   :  { %388 = vmatpush.msra.mxu0 %v333_v53  ;;  %v200_v10 = vld [vmem:[%s13661_s10 + $0x340] sm:$0xff]  ;;  %422 = vmatpush.msra.mxu2 %v88_v8  ;;  %v273_v45 = vld [vmem:[%s13661_s10 + $0x588] sm:$0xff] }
  0x21   :  { %406 = vmatpush.msra.mxu1 %v338_v56  ;;  %v272_v12 = vld [vmem:[%s13661_s10 + $0x580] sm:$0xff]  ;;  %v269_v46 = vld [vmem:[%s13661_s10 + $0x568] sm:$0xff] }
  0x22   :  { %389 = vmatpush.msra.mxu0 %v331_v55  ;;  %v196_v13 = vld [vmem:[%s13661_s10 + $0x320] sm:$0xff]  ;;  %423 = vmatpush.msra.mxu2 %v87_v11  ;;  %v265_v47 = vld [vmem:[%s13661_s10 + $0x548] sm:$0xff] }
  0x23   :  { %390 = vmatmul.f32.vlgmr.msra.gmra.mxu0 %v372_v57  ;;  %407 = vmatpush.msra.mxu1 %v336_v59  ;;  %v268_v15 = vld [vmem:[%s13661_s10 + $0x560] sm:$0xff]  ;;  %v261_v48 = vld [vmem:[%s13661_s10 + $0x528] sm:$0xff] }
  0x24   :  { %633 = vmatpush.msrb.mxu0 %v220_v58  ;;  %v192_v16 = vld [vmem:[%s13661_s10 + $0x300] sm:$0xff]  ;;  %424 = vmatpush.msra.mxu2 %v86_v14  ;;  %v257_v49 = vld [vmem:[%s13661_s10 + $0x508] sm:$0xff] }
  0x25   :  { %408 = vmatpush.msra.mxu1 %v334_v62  ;;  %v85_v17 = vld [vmem:[%s13655_s4 + $0x40] sm:$0xff]  ;;  %v253_v50 = vld [vmem:[%s13661_s10 + $0x4e8] sm:$0xff] }
  0x26   :  { %634 = vmatpush.msrb.mxu0 %v216_v61  ;;  %v264_v18 = vld [vmem:[%s13661_s10 + $0x540] sm:$0xff]  ;;  %425 = vmatpush.msra.mxu2 %v85_v17  ;;  %v249_v51 = vld [vmem:[%s13661_s10 + $0x4c8] sm:$0xff]  ;;  %v60_v17 = vld [vmem:[%s13652_s1 + $0x18] sm:$0xff] }
  0x27   :  { %409 = vmatpush.msra.mxu1 %v332_v1  ;;  %v188_v19 = vld [vmem:[%s13661_s10 + $0x2e0] sm:$0xff]  ;;  %v245_v52 = vld [vmem:[%s13661_s10 + $0x4a8] sm:$0xff] }
  0x28   :  { %635 = vmatpush.msrb.mxu0 %v212_v0  ;;  %410 = vmatmul.f32.vlgmr.msra.gmra.mxu1 %v372_v57  ;;  %v260_v21 = vld [vmem:[%s13661_s10 + $0x520] sm:$0xff]  ;;  %v241_v53 = vld [vmem:[%s13661_s10 + $0x488] sm:$0xff] }
  0x29   :  { %653 = vmatpush.msrb.mxu1 %v284_v3  ;;  %v184_v22 = vld [vmem:[%s13661_s10 + $0x2c0] sm:$0xff]  ;;  %426 = vmatpush.msra.mxu2 %v84_v20  ;;  %v237_v54 = vld [vmem:[%s13661_s10 + $0x468] sm:$0xff]  ;;  %v6029_v3 = vmov 0  }
  0x2a   :  { %636 = vmatpush.msrb.mxu0 %v208_v4  ;;  %v256_v24 = vld [vmem:[%s13661_s10 + $0x500] sm:$0xff]  ;;  %v233_v55 = vld [vmem:[%s13661_s10 + $0x448] sm:$0xff]  ;;  %4848 = vset.pattern.permute.xlu2 %v6029_v3 }
  0x2b   :  { %654 = vmatpush.msrb.mxu1 %v280_v6  ;;  %v180_v25 = vld [vmem:[%s13661_s10 + $0x2a0] sm:$0xff]  ;;  %427 = vmatpush.msra.mxu2 %v83_v23  ;;  %v6410_v56 = vld [vmem:[%s13655_s4 + $0x8] sm:$0xff] }
  0x2c   :  { %637 = vmatpush.msrb.mxu0 %v204_v7  ;;  %v252_v27 = vld [vmem:[%s13661_s10 + $0x4e0] sm:$0xff]  ;;  %v229_v58 = vld [vmem:[%s13661_s10 + $0x428] sm:$0xff]  ;;  %4850 = vset.pattern.permute.xlu1 %v6029_v3 }
  0x2d   :  { %655 = vmatpush.msrb.mxu1 %v276_v9  ;;  %v176_v28 = vld [vmem:[%s13661_s10 + $0x280] sm:$0xff]  ;;  %428 = vmatpush.msra.mxu2 %v82_v26  ;;  %v225_v61 = vld [vmem:[%s13661_s10 + $0x408] sm:$0xff] }
  0x2e   :  { %638 = vmatpush.msrb.mxu0 %v200_v10  ;;  %v81_v29 = vld [vmem:[%s13655_s4 + $0x20] sm:$0xff]  ;;  %4849 = vset.pattern.permute.xlu0 %v6029_v3  ;;  %v59_v10 = vld [vmem:[%s13652_s1 + $0x10] sm:$0xff]  ;;  %v58_v14 = vld [vmem:[%s13652_s1 + $0x8] sm:$0xff] }
  0x2f   :  { %656 = vmatpush.msrb.mxu1 %v272_v12  ;;  %v248_v30 = vld [vmem:[%s13661_s10 + $0x4c0] sm:$0xff]  ;;  %429 = vmatpush.msra.mxu2 %v81_v29 }
  0x30   :  { %639 = vmatpush.msrb.mxu0 %v196_v13  ;;  %v172_v31 = vld [vmem:[%s13661_s10 + $0x260] sm:$0xff] }
  0x31   :  { %657 = vmatpush.msrb.mxu1 %v268_v15  ;;  %v244_v33 = vld [vmem:[%s13661_s10 + $0x4a0] sm:$0xff]  ;;  %430 = vmatpush.msra.mxu2 %v80_v32 }
  0x32   :  { %640 = vmatpush.msrb.mxu0 %v192_v16  ;;  %v168_v34 = vld [vmem:[%s13661_s10 + $0x240] sm:$0xff] }
  0x33   :  { %658 = vmatpush.msrb.mxu1 %v264_v18  ;;  %v240_v36 = vld [vmem:[%s13661_s10 + $0x480] sm:$0xff]  ;;  %431 = vmatpush.msra.mxu2 %v79_v35 }
  0x34   :  { %641 = vmatpush.msrb.mxu0 %v188_v19  ;;  %v164_v37 = vld [vmem:[%s13661_s10 + $0x220] sm:$0xff] }
  0x35   :  { %659 = vmatpush.msrb.mxu1 %v260_v21  ;;  %v236_v38 = vld [vmem:[%s13661_s10 + $0x460] sm:$0xff]  ;;  %432 = vmatpush.msra.mxu2 %v6410_v56 }
  0x36   :  { %642 = vmatpush.msrb.mxu0 %v184_v22  ;;  %v160_v39 = vld [vmem:[%s13661_s10 + $0x200] sm:$0xff] }
  0x37   :  { %660 = vmatpush.msrb.mxu1 %v256_v24  ;;  %v232_v41 = vld [vmem:[%s13661_s10 + $0x440] sm:$0xff] }
  0x38   :  { %643 = vmatpush.msrb.mxu0 %v180_v25  ;;  %v6365_v42 = vld [vmem:[%s13653_s2] sm:$0x3] }
  0x39   :  { %661 = vmatpush.msrb.mxu1 %v252_v27  ;;  %v228_v57 = vld [vmem:[%s13661_s10 + $0x420] sm:$0xff] }
  0x3a   :  { %644 = vmatpush.msrb.mxu0 %v176_v28  ;;  %v6422_v59 = vld [vmem:[%s13655_s4] sm:$0xff]  ;;  %v306_v28 = vlaneseq }
  0x3b   :  { %662 = vmatpush.msrb.mxu1 %v248_v30  ;;  %v224_v60 = vld [vmem:[%s13661_s10 + $0x400] sm:$0xff]  ;;  %433 = vmatpush.msra.mxu2 %v6422_v59 }
  0x3c   :  { %645 = vmatpush.msrb.mxu0 %v172_v31  ;;  %v363_v62 = vld [vmem:[%s13660_s9] sm:$0x3]  ;;  %v6457_v30 = vand.u32 127, %v306_v28 }
  0x3d   :  { %663 = vmatpush.msrb.mxu1 %v244_v33  ;;  %v365_v63 = vperm.slane %v363_v62, 0  ;;  %v4853_v2 = vld [vmem:[#allocation2] ss:$0 sm:$0xff] }
  0x3e   :  { %646 = vmatpush.msrb.mxu0 %v168_v34  ;;  %470 = vperm.xlu2 %4848, %v4853_v2   ;;  %v4851_v4 = vld [vmem:[%s13656_s5] ss:$0 sm:$0xff]  ;;  %14254 = vst [vmem:[#allocation9_spill] sm:$0xff] %v6457_v30  ;;  %v6462_v32 = vadd.s32 4294967288, %v6457_v30 }
  0x3f   :  { %664 = vmatpush.msrb.mxu1 %v240_v36  ;;  %v57_v7 = vld [vmem:[%s13652_s1] sm:$0xff] }
  0x40   :  { %647 = vmatpush.msrb.mxu0 %v164_v37  ;;  %v4852_v13 = vld [vmem:[%s13657_s6] ss:$0 sm:$0xff]  ;;  %14256 = vst [vmem:[#allocation11_spill] sm:$0xff] %v6462_v32 }
  0x41   :  { %665 = vmatpush.msrb.mxu1 %v236_v38 }
  0x42   :  { %648 = vmatpush.msrb.mxu0 %v160_v39 }
  0x43   :  { %666 = vmatpush.msrb.mxu1 %v232_v41  ;;  %649 = vmatmul.f32.vlgmr.msrb.gmra.mxu0 %v6365_v42 }
  0x44   :  { %713 = vmatpush.msra.mxu0 %v285_v40 }
  0x45   :  { %667 = vmatpush.msrb.mxu1 %v228_v57 }
  0x46   :  { %714 = vmatpush.msra.mxu0 %v281_v43 }
  0x47   :  { %668 = vmatpush.msrb.mxu1 %v224_v60 }
  0x48   :  { %715 = vmatpush.msra.mxu0 %v277_v44 }
  0x4a   :  { %716 = vmatpush.msra.mxu0 %v273_v45 }
  0x4c   :  { %717 = vmatpush.msra.mxu0 %v269_v46 }
  0x4e   :  { %718 = vmatpush.msra.mxu0 %v265_v47 }
  0x50   :  { %719 = vmatpush.msra.mxu0 %v261_v48 }
  0x52   :  { %720 = vmatpush.msra.mxu0 %v257_v49 }
  0x54   :  { %721 = vmatpush.msra.mxu0 %v253_v50 }
  0x56   :  { %722 = vmatpush.msra.mxu0 %v249_v51 }
  0x58   :  { %723 = vmatpush.msra.mxu0 %v245_v52 }
  0x5a   :  { %724 = vmatpush.msra.mxu0 %v241_v53 }
  0x5c   :  { %725 = vmatpush.msra.mxu0 %v237_v54 }
  0x5e   :  { %726 = vmatpush.msra.mxu0 %v233_v55 }
  0x60   :  { %727 = vmatpush.msra.mxu0 %v229_v58 }
  0x62   :  { %728 = vmatpush.msra.mxu0 %v225_v61 }
  0x98   :  { %v6459_v31 = vpop.permute.xlu2 %470 }
  0x99   :  { %14255 = vst [vmem:[#allocation10_spill] sm:$0xff] %v6459_v31 }
  0xa0   :  { %v391_v0 = vpop.f32.mrf.mxu0 }
  0xa1   :  { %v6434_v1 = vadd.f32 %v391_v0, %v365_v63 }
  0xa3   :  { %434 = vmatmul.f32.vlgmr.msra.gmra.mxu2 %v6434_v1  ;;  %669 = vmatmul.f32.vlgmr.msrb.gmra.mxu1 %v6434_v1 }
  0xa4   :  { %729 = vmatmul.f32.vlgmr.msra.gmra.mxu0 %v6434_v1 }
 0x126   :  { %v435_v5 = vpop.f32.mrf.mxu2 }
 0x127   :  { %v436_v6 = vadd.f32 %v4851_v4, %v435_v5 }
 0x129   :  { %v439_v8 = vrot.slane %v436_v6, 1  ;;  %v440_v9 = vperm.slane %v436_v6, 0 }
 0x12b   :  { %v441_v11 = vperm.slane %v439_v8, 0  ;;  %v444_v12 = vadd.f32 %v440_v9, %v57_v7  ;;  %v445_v20 = vadd.f32 %v440_v9, %v58_v14  ;;  %v6499_v14 = vld [vmem:[%s13661_s10 + $0x1e0] sm:$0xff] }
 0x12c   :  { %613 = vmatpush.msra.mxu3 %v6499_v14 }
 0x12d   :  { %v448_v15 = vmax.f32 %v444_v12, 0.0  ;;  %v446_v16 = vadd.f32 %v441_v11, %v59_v10  ;;  %v447_v22 = vadd.f32 %v441_v11, %v60_v17  ;;  %v449_v23 = vmax.f32 %v445_v20, 0.0  ;;  %v6526_v20 = vld [vmem:[%s13661_s10 + $0x1a8] sm:$0xff] }
 0x12f   :  { %v455_v18 = vmul.f32 %v4852_v13, %v448_v15  ;;  %v450_v19 = vmax.f32 %v446_v16, 0.0  ;;  %v451_v24 = vmax.f32 %v447_v22, 0.0  ;;  %v456_v25 = vmul.f32 %v4852_v13, %v449_v23  ;;  %v6504_v15 = vld [vmem:[%s13661_s10 + $0x1e8] sm:$0xff]  ;;  %v6509_v16 = vld [vmem:[%s13661_s10 + $0x1c0] sm:$0xff] }
 0x130   :  { %673 = vmatpush.msrb.mxu2 %v6504_v15  ;;  %614 = vmatpush.msra.mxu3 %v6509_v16  ;;  %v6536_v22 = vld [vmem:[%s13661_s10 + $0x180] sm:$0xff]  ;;  %v6541_v23 = vld [vmem:[%s13661_s10 + $0x188] sm:$0xff] }
 0x131   :  { %459 = vadd.xlane.f32.xlu0 %v455_v18  ;;  %v457_v21 = vmul.f32 %v4852_v13, %v450_v19  ;;  %v458_v26 = vmul.f32 %v4852_v13, %v451_v24  ;;  %v6516_v18 = vld [vmem:[%s13661_s10 + $0x1c8] sm:$0xff]  ;;  %v6521_v19 = vld [vmem:[%s13661_s10 + $0x1a0] sm:$0xff]  ;;  %v154_v24 = vld [vmem:[%s13661_s10 + $0x1d0] sm:$0xff] }
 0x132   :  { %674 = vmatpush.msrb.mxu2 %v6516_v18  ;;  %615 = vmatpush.msra.mxu3 %v6521_v19 }
 0x133   :  { %463 = vadd.xlane.f32.xlu1 %v457_v21  ;;  %v158_v21 = vld [vmem:[%s13661_s10 + $0x1f0] sm:$0xff] }
 0x134   :  { %733 = vmatpush.msra.mxu1 %v158_v21  ;;  %675 = vmatpush.msrb.mxu2 %v6526_v20  ;;  %v6710_v21 = vld [vmem:[%s13661_s10 + $0x28] sm:$0xff] }
 0x135   :  { %616 = vmatpush.msra.mxu3 %v6536_v22 }
 0x136   :  { %734 = vmatpush.msra.mxu1 %v154_v24  ;;  %676 = vmatpush.msrb.mxu2 %v6541_v23  ;;  %v151_v24 = vld [vmem:[%s13661_s10 + $0x1b8] sm:$0xff] }
 0x139   :  { %461 = vadd.xlane.f32.xlu0 %v456_v25  ;;  %v150_v25 = vld [vmem:[%s13661_s10 + $0x1b0] sm:$0xff] }
 0x13a   :  { %735 = vmatpush.msra.mxu1 %v150_v25  ;;  %v118_v25 = vld [vmem:[%s13661_s10 + $0xb0] sm:$0xff] }
 0x13b   :  { %465 = vadd.xlane.f32.xlu1 %v458_v26  ;;  %v6554_v26 = vld [vmem:[%s13661_s10 + $0x160] sm:$0xff] }
 0x13c   :  { %617 = vmatpush.msra.mxu3 %v6554_v26 }
 0x1a4   :  { %v460_v27 = vpop.xlane.xlu0 %459 }
 0x1a5   :  { %v473_v34 = vadd.f32 %v6459_v31, %v460_v27  ;;  %v6559_v27 = vld [vmem:[%s13661_s10 + $0x168] sm:$0xff] }
 0x1a6   :  { %v464_v29 = vpop.xlane.xlu1 %463  ;;  %677 = vmatpush.msrb.mxu2 %v6559_v27 }
 0x1a7   :  { %v475_v35 = vadd.f32 %v6459_v31, %v464_v29  ;;  %v481_v40 = vperm.slane %v473_v34, %v6457_v30  ;;  %v6566_v29 = vld [vmem:[%s13661_s10 + $0x140] sm:$0xff] }
 0x1a8   :  { %618 = vmatpush.msra.mxu3 %v6566_v29 }
 0x1a9   :  { %v486_v41 = vperm.slane %v475_v35, %v6457_v30 }
 0x1ac   :  { %v462_v33 = vpop.xlane.xlu0 %461 }
 0x1ad   :  { %v474_v36 = vadd.f32 %v6459_v31, %v462_v33  ;;  %v6571_v33 = vld [vmem:[%s13661_s10 + $0x148] sm:$0xff] }
 0x1ae   :  { %v466_v37 = vpop.xlane.xlu1 %465  ;;  %678 = vmatpush.msrb.mxu2 %v6571_v33 }
 0x1af   :  { %v483_v38 = vperm.slane %v474_v36, %v6462_v32  ;;  %v476_v39 = vadd.f32 %v6459_v31, %v466_v37  ;;  %v115_v31 = vld [vmem:[%s13661_s10 + $0x98] sm:$0xff] }
 0x1b1   :  { %v487_v43 = vperm.slane %v476_v39, %v6462_v32  ;;  %v485_v44 = vsel %vm484_vm2, %v483_v38, %v481_v40 }
 0x1b3   :  { %v488_v45 = vsel %vm484_vm2, %v487_v43, %v486_v41 }
 0x1b4   :  { %v489_v46 = vsel %vm371_vm1, %v488_v45, %v485_v44 }
 0x1b5   :  { %v492_v47 = vsel %vm491_vm3, %v489_v46, -inf }
 0x1b6   :  { %493 = vmax.xlane.f32.xlu2 %v492_v47 }
 0x229   :  { %v494_v48 = vpop.xlane.xlu2 %493 }
 0x22a   :  { %v496_v49 = vperm.slane %v494_v48, 0  ;;  %v497_v52 = vperm.slane %v494_v48, 1 }
 0x22c   :  { %v500_v50 = vsub.f32 %v473_v34, %v496_v49  ;;  %v501_v51 = vsub.f32 %v474_v36, %v496_v49  ;;  %v502_v55 = vsub.f32 %v475_v35, %v497_v52  ;;  %v503_v61 = vsub.f32 %v476_v39, %v497_v52  ;;  %v6578_v35 = vld [vmem:[%s13661_s10 + $0x120] sm:$0xff]  ;;  %v6583_v36 = vld [vmem:[%s13661_s10 + $0x128] sm:$0xff] }
 0x22d   :  { %619 = vmatpush.msra.mxu3 %v6578_v35  ;;  %679 = vmatpush.msrb.mxu2 %v6583_v36  ;;  %v6596_v52 = vld [vmem:[%s13661_s10 + $0x100] sm:$0xff] }
 0x22e   :  { %v504_v53 = vmul.f32 1.442695, %v500_v50  ;;  %v506_v54 = vmul.f32 1.442695, %v501_v51  ;;  %v508_v57 = vmul.f32 1.442695, %v502_v55 }
 0x22f   :  { %v510_v62 = vmul.f32 1.442695, %v503_v61  ;;  %620 = vmatpush.msra.mxu3 %v6596_v52  ;;  %v6611_v55 = vld [vmem:[%s13661_s10 + $0xe0] sm:$0xff]  ;;  %v6629_v61 = vld [vmem:[%s13661_s10 + $0xc8] sm:$0xff] }
 0x230   :  { %4857 = vpow2.f32 %v504_v53  ;;  %v6601_v53 = vld [vmem:[%s13661_s10 + $0x108] sm:$0xff] }
 0x231   :  { %4859 = vpow2.f32 %v506_v54  ;;  %v146_v54 = vld [vmem:[%s13661_s10 + $0x190] sm:$0xff]  ;;  %680 = vmatpush.msrb.mxu2 %v6601_v53  ;;  %621 = vmatpush.msra.mxu3 %v6611_v55 }
 0x232   :  { %4861 = vpow2.f32 %v508_v57  ;;  %v6616_v57 = vld [vmem:[%s13661_s10 + $0xe8] sm:$0xff]  ;;  %736 = vmatpush.msra.mxu1 %v146_v54 }
 0x233   :  { %4863 = vpow2.f32 %v510_v62  ;;  %681 = vmatpush.msrb.mxu2 %v6616_v57  ;;  %v138_v62 = vld [vmem:[%s13661_s10 + $0x150] sm:$0xff]  ;;  %v6803_v54 = vld [vmem:[%s13661_s10 + $0x368] sm:$0xff] }
 0x235   :  { %682 = vmatpush.msrb.mxu2 %v6629_v61 }
 0x236   :  { %v6476_v58 = vpop.eup %4857 }
 0x237   :  { %v6478_v60 = vpop.eup %4859  ;;  %517 = vperm.xlu0 %4849, %v6476_v58  }
 0x238   :  { %520 = vperm.xlu1 %4850, %v6478_v60   ;;  %v6482_v63 = vpop.eup %4861 }
 0x239   :  { %v6485_v0 = vpop.eup %4863 }
 0x240   :  { %523 = vperm.xlu1 %4850, %v6482_v63  }
 0x248   :  { %526 = vperm.xlu1 %4850, %v6485_v0  }
 0x2a9   :  { %v518_v4 = vpop.permute.xlu0 %517 }
 0x2aa   :  { %v521_v2 = vpop.permute.xlu1 %520  ;;  %v528_v6 = vperm.slane %v518_v4, %v6457_v30  ;;  %v6659_v4 = vld [vmem:[%s13661_s10 + $0x88] sm:$0xff] }
 0x2ab   :  { %v529_v5 = vperm.slane %v521_v2, %v6462_v32  ;;  %v134_v2 = vld [vmem:[%s13661_s10 + $0x130] sm:$0xff] }
 0x2ad   :  { %v530_v10 = vsel %vm484_vm2, %v529_v5, %v528_v6  ;;  %v130_v5 = vld [vmem:[%s13661_s10 + $0x110] sm:$0xff]  ;;  %v6669_v6 = vld [vmem:[%s13661_s10 + $0x60] sm:$0xff] }
 0x2b2   :  { %v524_v3 = vpop.permute.xlu1 %523 }
 0x2b3   :  { %v531_v8 = vperm.slane %v524_v3, %v6457_v30  ;;  %v6654_v3 = vld [vmem:[%s13661_s10 + $0x80] sm:$0xff]  ;;  %v6952_v30 = vld [vmem:[%s13661_s10 + $0x270] sm:$0xff] }
 0x2b4   :  { %14272 = vst [vmem:[#allocation27_spill] sm:$0xff] %v6952_v30 }
 0x2ba   :  { %v527_v7 = vpop.permute.xlu1 %526 }
 0x2bb   :  { %v532_v9 = vperm.slane %v527_v7, %v6462_v32  ;;  %v6674_v7 = vld [vmem:[%s13661_s10 + $0x68] sm:$0xff]  ;;  %v6934_v32 = vld [vmem:[%s13661_s10 + $0x290] sm:$0xff] }
 0x2bc   :  { %14270 = vst [vmem:[#allocation25_spill] sm:$0xff] %v6934_v32 }
 0x2bd   :  { %v533_v11 = vsel %vm484_vm2, %v532_v9, %v531_v8  ;;  %v126_v8 = vld [vmem:[%s13661_s10 + $0xf0] sm:$0xff]  ;;  %v159_v9 = vld [vmem:[%s13661_s10 + $0x1f8] sm:$0xff] }
 0x2be   :  { %v534_v12 = vsel %vm371_vm1, %v533_v11, %v530_v10  ;;  %v6687_v10 = vld [vmem:[%s13661_s10 + $0x40] sm:$0xff]  ;;  %v6692_v11 = vld [vmem:[%s13661_s10 + $0x48] sm:$0xff]  ;;  %793 = vmatpush.msrb.mxu0 %v159_v9  ;;  %v139_v9 = vld [vmem:[%s13661_s10 + $0x158] sm:$0xff] }
 0x2bf   :  { %v536_v13 = vsel %vm491_vm3, %v534_v12, 0.0  ;;  %v122_v12 = vld [vmem:[%s13661_s10 + $0xd0] sm:$0xff] }
 0x2c0   :  { %537 = vadd.xlane.f32.xlu2 %v536_v13  ;;  %v155_v13 = vld [vmem:[%s13661_s10 + $0x1d8] sm:$0xff] }
 0x2c1   :  { %794 = vmatpush.msrb.mxu0 %v155_v13  ;;  %v6839_v13 = vld [vmem:[%s13661_s10 + $0x328] sm:$0xff] }
 0x2c3   :  { %795 = vmatpush.msrb.mxu0 %v151_v24  ;;  %v6844_v24 = vld [vmem:[%s13661_s10 + $0x330] sm:$0xff] }
 0x2c4   :  { %14263 = vst [vmem:[#allocation18_spill] sm:$0xff] %v6844_v24 }
 0x333   :  { %v538_v17 = vpop.xlane.xlu2 %537 }
 0x334   :  { %4865 = vrcp.f32 %v538_v17  ;;  %v550_v38 = vand.u32 2147483648, %v538_v17  ;;  %v548_v40 = vand.u32 2147483647, %v538_v17  ;;  %vm544_vm5 = vweird.f32 %v538_v17 }
 0x336   :  { %v551_v43 = vor.u32 1.1754944e-38, %v550_v38  ;;  %vm549_vm7 = vcmp.eq.f32.partialorder %v548_v40, 8.507059e+37  ;;  %v6738_v38 = vld [vmem:[%s13661_s10 + $0x3e8] sm:$0xff]  ;;  %v110_v40 = vld [vmem:[%s13661_s10 + $0x70] sm:$0xff] }
 0x33a   :  { %v4866_v28 = vpop.eup %4865 }
 0x33b   :  { %v540_v34 = vmul.f32 %v4866_v28, %v538_v17  ;;  %vm545_vm4 = vweird.f32 %v4866_v28  ;;  %v6705_v17 = vld [vmem:[%s13661_s10 + $0x20] sm:$0xff] }
 0x33c   :  { %vm546_vm6 = vmor %vm544_vm5, %vm545_vm4 }
 0x33d   :  { %v541_v37 = vsub.f32 1.0, %v540_v34  ;;  %v6728_v34 = vld [vmem:[%s13661_s10 + $0x8] sm:$0xff] }
 0x33f   :  { %v542_v39 = vmul.f32 %v4866_v28, %v541_v37  ;;  %v114_v37 = vld [vmem:[%s13661_s10 + $0x90] sm:$0xff] }
 0x341   :  { %v543_v41 = vadd.f32 %v4866_v28, %v542_v39  ;;  %v6743_v39 = vld [vmem:[%s13661_s10 + $0x3f0] sm:$0xff] }
 0x342   :  { %14257 = vst [vmem:[#allocation12_spill] sm:$0xff] %v6743_v39 }
 0x343   :  { %v547_v44 = vsel %vm546_vm6, %v4866_v28, %v543_v41  ;;  %v6723_v28 = vld [vmem:[%s13661_s10] sm:$0xff]  ;;  %v6753_v41 = vld [vmem:[%s13661_s10 + $0x3c8] sm:$0xff] }
 0x344   :  { %v552_v45 = vsel %vm549_vm7, %v551_v43, %v547_v44  ;;  %v6759_v43 = vld [vmem:[%s13661_s10 + $0x3d0] sm:$0xff]  ;;  %vm944_vm7 = vcmask 1041408  }
 0x345   :  { %v555_v46 = vperm.slane %v552_v45, 1  ;;  %v554_v47 = vperm.slane %v552_v45, 0  ;;  %14258 = vst [vmem:[#allocation13_spill] sm:$0xff] %v6759_v43  ;;  %v106_v44 = vld [vmem:[%s13661_s10 + $0x50] sm:$0xff]  ;;  %v6768_v45 = vld [vmem:[%s13661_s10 + $0x3a8] sm:$0xff] }
 0x347   :  { %v560_v48 = vmul.f32 %v6482_v63, %v555_v46  ;;  %v559_v49 = vmul.f32 %v6478_v60, %v554_v47  ;;  %v558_v50 = vmul.f32 %v6476_v58, %v554_v47  ;;  %v561_v51 = vmul.f32 %v6485_v0, %v555_v46  ;;  %v142_v58 = vld [vmem:[%s13661_s10 + $0x170] sm:$0xff]  ;;  %v6624_v60 = vld [vmem:[%s13661_s10 + $0xc0] sm:$0xff]  ;;  %v6644_v0 = vld [vmem:[%s13661_s10 + $0xa8] sm:$0xff] }
 0x348   :  { %737 = vmatpush.msra.mxu1 %v142_v58  ;;  %v6639_v63 = vld [vmem:[%s13661_s10 + $0xa0] sm:$0xff]  ;;  %622 = vmatpush.msra.mxu3 %v6624_v60  ;;  %v6774_v46 = vld [vmem:[%s13661_s10 + $0x3b0] sm:$0xff] }
 0x349   :  { %574 = vperm.xlu2 %4848, %v560_v48   ;;  %569 = vperm.xlu1 %4850, %v559_v49   ;;  %14259 = vst [vmem:[#allocation14_spill] sm:$0xff] %v6774_v46  ;;  %v102_v47 = vld [vmem:[%s13661_s10 + $0x30] sm:$0xff]  ;;  %v6785_v48 = vld [vmem:[%s13661_s10 + $0x388] sm:$0xff] }
 0x34a   :  { %564 = vperm.xlu0 %4849, %v558_v50   ;;  %738 = vmatpush.msra.mxu1 %v138_v62  ;;  %v6790_v49 = vld [vmem:[%s13661_s10 + $0x390] sm:$0xff]  ;;  %v147_v50 = vld [vmem:[%s13661_s10 + $0x198] sm:$0xff] }
 0x34b   :  { %623 = vmatpush.msra.mxu3 %v6639_v63  ;;  %683 = vmatpush.msrb.mxu2 %v6644_v0  ;;  %14260 = vst [vmem:[#allocation15_spill] sm:$0xff] %v6790_v49  ;;  %v6808_v58 = vld [vmem:[%s13661_s10 + $0x370] sm:$0xff]  ;;  %v143_v62 = vld [vmem:[%s13661_s10 + $0x178] sm:$0xff] }
 0x34c   :  { %739 = vmatpush.msra.mxu1 %v134_v2  ;;  %796 = vmatpush.msrb.mxu0 %v147_v50  ;;  %14261 = vst [vmem:[#allocation16_spill] sm:$0xff] %v6808_v58  ;;  %v223_v2 = vld [vmem:[%s13661_s10 + $0x3f8] sm:$0xff] }
 0x34d   :  { %624 = vmatpush.msra.mxu3 %v6654_v3  ;;  %684 = vmatpush.msrb.mxu2 %v6659_v4  ;;  %v211_v50 = vld [vmem:[%s13661_s10 + $0x398] sm:$0xff] }
 0x34e   :  { %740 = vmatpush.msra.mxu1 %v130_v5  ;;  %797 = vmatpush.msrb.mxu0 %v143_v62  ;;  %v6821_v5 = vld [vmem:[%s13661_s10 + $0x348] sm:$0xff]  ;;  %v6880_v62 = vld [vmem:[%s13661_s10 + $0x2f0] sm:$0xff] }
 0x34f   :  { %625 = vmatpush.msra.mxu3 %v6669_v6  ;;  %685 = vmatpush.msrb.mxu2 %v6674_v7  ;;  %14265 = vst [vmem:[#allocation20_spill] sm:$0xff] %v6880_v62 }
 0x350   :  { %741 = vmatpush.msra.mxu1 %v126_v8  ;;  %v6826_v8 = vld [vmem:[%s13661_s10 + $0x350] sm:$0xff]  ;;  %798 = vmatpush.msrb.mxu0 %v139_v9  ;;  %v207_v9 = vld [vmem:[%s13661_s10 + $0x378] sm:$0xff] }
 0x351   :  { %626 = vmatpush.msra.mxu3 %v6687_v10  ;;  %686 = vmatpush.msrb.mxu2 %v6692_v11  ;;  %14262 = vst [vmem:[#allocation17_spill] sm:$0xff] %v6826_v8 }
 0x352   :  { %579 = vperm.xlu0 %4849, %v561_v51   ;;  %742 = vmatpush.msra.mxu1 %v122_v12  ;;  %v98_v51 = vld [vmem:[%s13661_s10 + $0x10] sm:$0xff]  ;;  %v219_v12 = vld [vmem:[%s13661_s10 + $0x3d8] sm:$0xff] }
 0x353   :  { %627 = vmatpush.msra.mxu3 %v6705_v17  ;;  %687 = vmatpush.msrb.mxu2 %v6710_v21 }
 0x354   :  { %743 = vmatpush.msra.mxu1 %v118_v25  ;;  %v135_v25 = vld [vmem:[%s13661_s10 + $0x138] sm:$0xff] }
 0x355   :  { %628 = vmatpush.msra.mxu3 %v6723_v28  ;;  %688 = vmatpush.msrb.mxu2 %v6728_v34 }
 0x356   :  { %744 = vmatpush.msra.mxu1 %v114_v37  ;;  %v215_v37 = vld [vmem:[%s13661_s10 + $0x3b8] sm:$0xff]  ;;  %799 = vmatpush.msrb.mxu0 %v135_v25  ;;  %v6898_v25 = vld [vmem:[%s13661_s10 + $0x2d0] sm:$0xff] }
 0x357   :  { %693 = vmatpush.msrb.mxu3 %v6738_v38  ;;  %753 = vmatpush.msra.mxu2 %v6743_v39  ;;  %14266 = vst [vmem:[#allocation21_spill] sm:$0xff] %v6898_v25  ;;  %v5067_v39 = vld [vmem:[%s13651_s0 + $0x10] sm:$0xff] }
 0x358   :  { %745 = vmatpush.msra.mxu1 %v110_v40  ;;  %v6857_v40 = vld [vmem:[%s13661_s10 + $0x308] sm:$0xff] }
 0x359   :  { %694 = vmatpush.msrb.mxu3 %v6753_v41  ;;  %754 = vmatpush.msra.mxu2 %v6759_v43 }
 0x35a   :  { %746 = vmatpush.msra.mxu1 %v106_v44  ;;  %v6862_v44 = vld [vmem:[%s13661_s10 + $0x310] sm:$0xff] }
 0x35b   :  { %695 = vmatpush.msrb.mxu3 %v6768_v45  ;;  %755 = vmatpush.msra.mxu2 %v6774_v46  ;;  %14264 = vst [vmem:[#allocation19_spill] sm:$0xff] %v6862_v44 }
 0x35c   :  { %747 = vmatpush.msra.mxu1 %v102_v47  ;;  %v131_v47 = vld [vmem:[%s13661_s10 + $0x118] sm:$0xff] }
 0x35d   :  { %696 = vmatpush.msrb.mxu3 %v6785_v48  ;;  %756 = vmatpush.msra.mxu2 %v6790_v49 }
 0x35e   :  { %748 = vmatpush.msra.mxu1 %v98_v51  ;;  %800 = vmatpush.msrb.mxu0 %v131_v47  ;;  %v6875_v51 = vld [vmem:[%s13661_s10 + $0x2e8] sm:$0xff]  ;;  %v203_v47 = vld [vmem:[%s13661_s10 + $0x358] sm:$0xff] }
 0x35f   :  { %697 = vmatpush.msrb.mxu3 %v6803_v54  ;;  %757 = vmatpush.msra.mxu2 %v6808_v58 }
 0x360   :  { %813 = vmatpush.msrb.mxu1 %v223_v2  ;;  %v127_v2 = vld [vmem:[%s13661_s10 + $0xf8] sm:$0xff] }
 0x361   :  { %698 = vmatpush.msrb.mxu3 %v6821_v5  ;;  %758 = vmatpush.msra.mxu2 %v6826_v8  ;;  %v171_v8 = vld [vmem:[%s13661_s10 + $0x258] sm:$0xff] }
 0x362   :  { %814 = vmatpush.msrb.mxu1 %v219_v12  ;;  %801 = vmatpush.msrb.mxu0 %v127_v2  ;;  %v6893_v12 = vld [vmem:[%s13661_s10 + $0x2c8] sm:$0xff]  ;;  %v6916_v2 = vld [vmem:[%s13661_s10 + $0x2b0] sm:$0xff] }
 0x363   :  { %699 = vmatpush.msrb.mxu3 %v6839_v13  ;;  %759 = vmatpush.msra.mxu2 %v6844_v24  ;;  %14268 = vst [vmem:[#allocation23_spill] sm:$0xff] %v6916_v2  ;;  %v179_v24 = vld [vmem:[%s13661_s10 + $0x298] sm:$0xff] }
 0x364   :  { %815 = vmatpush.msrb.mxu1 %v215_v37  ;;  %v123_v37 = vld [vmem:[%s13661_s10 + $0xd8] sm:$0xff] }
 0x365   :  { %700 = vmatpush.msrb.mxu3 %v6857_v40  ;;  %760 = vmatpush.msra.mxu2 %v6862_v44  ;;  %v6999_v44 = vld [vmem:[%s13661_s10 + $0x208] sm:$0xff] }
 0x366   :  { %816 = vmatpush.msrb.mxu1 %v211_v50  ;;  %802 = vmatpush.msrb.mxu0 %v123_v37  ;;  %v6911_v50 = vld [vmem:[%s13661_s10 + $0x2a8] sm:$0xff]  ;;  %v199_v37 = vld [vmem:[%s13661_s10 + $0x338] sm:$0xff]  ;;  %14277 = vst [vmem:[#allocation32_spill] sm:$0xff] %v6999_v44 }
 0x367   :  { %701 = vmatpush.msrb.mxu3 %v6875_v51  ;;  %761 = vmatpush.msra.mxu2 %v6880_v62  ;;  %14267 = vst [vmem:[#allocation22_spill] sm:$0xff] %v6911_v50  ;;  %v183_v62 = vld [vmem:[%s13661_s10 + $0x2b8] sm:$0xff] }
 0x368   :  { %817 = vmatpush.msrb.mxu1 %v207_v9  ;;  %v119_v9 = vld [vmem:[%s13661_s10 + $0xb8] sm:$0xff] }
 0x369   :  { %702 = vmatpush.msrb.mxu3 %v6893_v12  ;;  %762 = vmatpush.msra.mxu2 %v6898_v25  ;;  %v6988_v25 = vld [vmem:[%s13661_s10 + $0x230] sm:$0xff] }
 0x36a   :  { %818 = vmatpush.msrb.mxu1 %v203_v47  ;;  %803 = vmatpush.msrb.mxu0 %v119_v9  ;;  %v6929_v47 = vld [vmem:[%s13661_s10 + $0x288] sm:$0xff]  ;;  %v195_v9 = vld [vmem:[%s13661_s10 + $0x318] sm:$0xff]  ;;  %14276 = vst [vmem:[#allocation31_spill] sm:$0xff] %v6988_v25 }
 0x36b   :  { %703 = vmatpush.msrb.mxu3 %v6911_v50  ;;  %763 = vmatpush.msra.mxu2 %v6916_v2  ;;  %14269 = vst [vmem:[#allocation24_spill] sm:$0xff] %v6929_v47  ;;  %v6970_v2 = vld [vmem:[%s13661_s10 + $0x250] sm:$0xff] }
 0x36c   :  { %819 = vmatpush.msrb.mxu1 %v199_v37  ;;  %804 = vmatpush.msrb.mxu0 %v115_v31  ;;  %v6947_v37 = vld [vmem:[%s13661_s10 + $0x268] sm:$0xff]  ;;  %v191_v31 = vld [vmem:[%s13661_s10 + $0x2f8] sm:$0xff]  ;;  %14274 = vst [vmem:[#allocation29_spill] sm:$0xff] %v6970_v2 }
 0x36d   :  { %704 = vmatpush.msrb.mxu3 %v6929_v47  ;;  %764 = vmatpush.msra.mxu2 %v6934_v32  ;;  %14271 = vst [vmem:[#allocation26_spill] sm:$0xff] %v6947_v37  ;;  %v111_v32 = vld [vmem:[%s13661_s10 + $0x78] sm:$0xff] }
 0x36e   :  { %820 = vmatpush.msrb.mxu1 %v195_v9  ;;  %805 = vmatpush.msrb.mxu0 %v111_v32  ;;  %v6965_v9 = vld [vmem:[%s13661_s10 + $0x248] sm:$0xff]  ;;  %v187_v32 = vld [vmem:[%s13661_s10 + $0x2d8] sm:$0xff] }
 0x36f   :  { %705 = vmatpush.msrb.mxu3 %v6947_v37  ;;  %765 = vmatpush.msra.mxu2 %v6952_v30  ;;  %14273 = vst [vmem:[#allocation28_spill] sm:$0xff] %v6965_v9  ;;  %v107_v30 = vld [vmem:[%s13661_s10 + $0x58] sm:$0xff] }
 0x370   :  { %821 = vmatpush.msrb.mxu1 %v191_v31  ;;  %v6983_v31 = vld [vmem:[%s13661_s10 + $0x228] sm:$0xff]  ;;  %806 = vmatpush.msrb.mxu0 %v107_v30  ;;  %v7006_v30 = vld [vmem:[%s13661_s10 + $0x210] sm:$0xff] }
 0x371   :  { %706 = vmatpush.msrb.mxu3 %v6965_v9  ;;  %766 = vmatpush.msra.mxu2 %v6970_v2  ;;  %14275 = vst [vmem:[#allocation30_spill] sm:$0xff] %v6983_v31  ;;  %v103_v2 = vld [vmem:[%s13661_s10 + $0x38] sm:$0xff] }
 0x372   :  { %822 = vmatpush.msrb.mxu1 %v187_v32  ;;  %14278 = vst [vmem:[#allocation33_spill] sm:$0xff] %v7006_v30  ;;  %v99_v32 = vld [vmem:[%s13661_s10 + $0x18] sm:$0xff]  ;;  %807 = vmatpush.msrb.mxu0 %v103_v2 }
 0x373   :  { %707 = vmatpush.msrb.mxu3 %v6983_v31  ;;  %767 = vmatpush.msra.mxu2 %v6988_v25  ;;  %v175_v25 = vld [vmem:[%s13661_s10 + $0x278] sm:$0xff] }
 0x374   :  { %823 = vmatpush.msrb.mxu1 %v183_v62  ;;  %808 = vmatpush.msrb.mxu0 %v99_v32  ;;  %v5065_v62 = vld [vmem:[%s13651_s0 + $0x8] sm:$0xff] }
 0x375   :  { %708 = vmatpush.msrb.mxu3 %v6999_v44  ;;  %768 = vmatpush.msra.mxu2 %v7006_v30 }
 0x376   :  { %824 = vmatpush.msrb.mxu1 %v179_v24  ;;  %v167_v24 = vld [vmem:[%s13661_s10 + $0x238] sm:$0xff] }
 0x378   :  { %825 = vmatpush.msrb.mxu1 %v175_v25  ;;  %v5066_v25 = vld [vmem:[%s13651_s0] sm:$0xff] }
 0x37a   :  { %826 = vmatpush.msrb.mxu1 %v171_v8  ;;  %v163_v8 = vld [vmem:[%s13661_s10 + $0x218] sm:$0xff] }
 0x37c   :  { %827 = vmatpush.msrb.mxu1 %v167_v24 }
 0x37e   :  { %828 = vmatpush.msrb.mxu1 %v163_v8 }
 0x3a3   :  { %v575_v43 = vpop.permute.xlu2 %574 }
 0x3a4   :  { %v584_v44 = vmul.f32 %v5067_v39, %v575_v43  ;;  %v286_v39 = vld [vmem:[%s13661_s10 + $0x5f0] sm:$0xff] }
 0x3bb   :  { %v570_v58 = vpop.permute.xlu1 %569 }
 0x3bc   :  { %v583_v2 = vmul.f32 %v5065_v62, %v570_v58  ;;  %v565_v49 = vpop.permute.xlu0 %564 }
 0x3bd   :  { %v582_v32 = vmul.f32 %v5066_v25, %v565_v49  ;;  %v5068_v49 = vld [vmem:[%s13651_s0 + $0x18] sm:$0xff] }
 0x3bf   :  { %v586_v30 = vadd.f32 %v583_v2, %v582_v32 }
 0x3c1   :  { %v587_v46 = vrot.slane %v586_v30, 4 }
 0x3c3   :  { %v588_v58 = vadd.f32 %v587_v46, %v586_v30 }
 0x3c4   :  { %v580_v62 = vpop.permute.xlu0 %579 }
 0x3c5   :  { %v585_v24 = vmul.f32 %v5068_v49, %v580_v62  ;;  %v589_v25 = vrot.slane %v588_v58, 2  ;;  %v287_v62 = vld [vmem:[%s13661_s10 + $0x5f8] sm:$0xff]  ;;  %v5070_v49 = vld [vmem:[%s13655_s4 + $0x70] sm:$0xff] }
 0x3c7   :  { %v593_v31 = vadd.f32 %v585_v24, %v584_v44  ;;  %v590_v37 = vadd.f32 %v589_v25, %v588_v58  ;;  %v282_v44 = vld [vmem:[%s13661_s10 + $0x5d0] sm:$0xff]  ;;  %v275_v58 = vld [vmem:[%s13661_s10 + $0x598] sm:$0xff] }
 0x3c8   :  { %v270_v24 = vld [vmem:[%s13661_s10 + $0x570] sm:$0xff]  ;;  %v271_v25 = vld [vmem:[%s13661_s10 + $0x578] sm:$0xff] }
 0x3c9   :  { %v594_v9 = vrot.slane %v593_v31, 4  ;;  %v591_v8 = vrot.slane %v590_v37, 1 }
 0x3cb   :  { %v595_v2 = vadd.f32 %v594_v9, %v593_v31  ;;  %v592_v30 = vadd.f32 %v591_v8, %v590_v37  ;;  %v279_v37 = vld [vmem:[%s13661_s10 + $0x5b8] sm:$0xff]  ;;  %v274_v31 = vld [vmem:[%s13661_s10 + $0x590] sm:$0xff] }
 0x3cc   :  { %v5069_v9 = vld [vmem:[%s13655_s4 + $0x78] sm:$0xff] }
 0x3cd   :  { %v596_v32 = vrot.slane %v595_v2, 2  ;;  %v267_v8 = vld [vmem:[%s13661_s10 + $0x558] sm:$0xff] }
 0x3cf   :  { %v597_v47 = vadd.f32 %v596_v32, %v595_v2  ;;  %v5071_v2 = vld [vmem:[%s13655_s4 + $0x68] sm:$0xff]  ;;  %v266_v32 = vld [vmem:[%s13661_s10 + $0x550] sm:$0xff] }
 0x3d1   :  { %v598_v46 = vrot.slane %v597_v47, 1 }
 0x3d3   :  { %v599_v50 = vadd.f32 %v598_v46, %v597_v47  ;;  %v283_v47 = vld [vmem:[%s13661_s10 + $0x5d8] sm:$0xff]  ;;  %v262_v46 = vld [vmem:[%s13661_s10 + $0x530] sm:$0xff] }
 0x3d5   :  { %v602_v43 = vsel %vm371_vm1, %v599_v50, %v592_v30  ;;  %v278_v50 = vld [vmem:[%s13661_s10 + $0x5b0] sm:$0xff]  ;;  %v263_v30 = vld [vmem:[%s13661_s10 + $0x538] sm:$0xff] }
 0x3d6   :  { %629 = vmatmul.f32.vlgmr.msra.gmra.mxu3 %v602_v43  ;;  %689 = vmatmul.f32.vlgmr.msrb.gmra.mxu2 %v602_v43 }
 0x3d7   :  { %749 = vmatmul.f32.vlgmr.msra.gmra.mxu1 %v602_v43  ;;  %773 = vmatpush.msra.mxu3 %v286_v39  ;;  %v5072_v39 = vld [vmem:[%s13655_s4 + $0x60] sm:$0xff] }
 0x3d8   :  { %809 = vmatmul.f32.vlgmr.msrb.gmra.mxu0 %v602_v43  ;;  %833 = vmatpush.msrb.mxu2 %v287_v62  ;;  %v259_v43 = vld [vmem:[%s13661_s10 + $0x518] sm:$0xff] }
 0x3d9   :  { %774 = vmatpush.msra.mxu3 %v282_v44  ;;  %988 = vmatpush.msra.mxu1 %v5069_v9  ;;  %v5073_v62 = vld [vmem:[%s13655_s4 + $0x58] sm:$0xff]  ;;  %v254_v44 = vld [vmem:[%s13661_s10 + $0x4f0] sm:$0xff] }
 0x3da   :  { %834 = vmatpush.msrb.mxu2 %v283_v47  ;;  %v255_v47 = vld [vmem:[%s13661_s10 + $0x4f8] sm:$0xff] }
 0x3db   :  { %775 = vmatpush.msra.mxu3 %v278_v50  ;;  %989 = vmatpush.msra.mxu1 %v5070_v49  ;;  %v5074_v50 = vld [vmem:[%s13655_s4 + $0x50] sm:$0xff]  ;;  %v251_v9 = vld [vmem:[%s13661_s10 + $0x4d8] sm:$0xff] }
 0x3dc   :  { %835 = vmatpush.msrb.mxu2 %v279_v37  ;;  %v250_v37 = vld [vmem:[%s13661_s10 + $0x4d0] sm:$0xff]  ;;  %v247_v49 = vld [vmem:[%s13661_s10 + $0x4b8] sm:$0xff] }
 0x3dd   :  { %776 = vmatpush.msra.mxu3 %v274_v31  ;;  %990 = vmatpush.msra.mxu1 %v5071_v2  ;;  %v5075_v31 = vld [vmem:[%s13655_s4 + $0x48] sm:$0xff]  ;;  %v243_v2 = vld [vmem:[%s13661_s10 + $0x498] sm:$0xff] }
 0x3de   :  { %836 = vmatpush.msrb.mxu2 %v275_v58  ;;  %709 = vmatmul.f32.vlgmr.msrb.gmra.mxu3 %v6365_v42  ;;  %v246_v58 = vld [vmem:[%s13661_s10 + $0x4b0] sm:$0xff] }
 0x3df   :  { %769 = vmatmul.f32.vlgmr.msra.gmra.mxu2 %v6365_v42  ;;  %777 = vmatpush.msra.mxu3 %v270_v24  ;;  %v5076_v24 = vld [vmem:[%s13655_s4 + $0x40] sm:$0xff] }
 0x3e0   :  { %829 = vmatmul.f32.vlgmr.msrb.gmra.mxu1 %v6365_v42  ;;  %837 = vmatpush.msrb.mxu2 %v271_v25  ;;  %v258_v42 = vld [vmem:[%s13661_s10 + $0x510] sm:$0xff] }
 0x3e1   :  { %778 = vmatpush.msra.mxu3 %v266_v32  ;;  %991 = vmatpush.msra.mxu1 %v5072_v39  ;;  %v242_v25 = vld [vmem:[%s13661_s10 + $0x490] sm:$0xff]  ;;  %v5077_v32 = vld [vmem:[%s13655_s4 + $0x38] sm:$0xff] }
 0x3e2   :  { %838 = vmatpush.msrb.mxu2 %v267_v8  ;;  %v238_v8 = vld [vmem:[%s13661_s10 + $0x470] sm:$0xff] }
 0x3e3   :  { %779 = vmatpush.msra.mxu3 %v262_v46  ;;  %992 = vmatpush.msra.mxu1 %v5073_v62  ;;  %v239_v46 = vld [vmem:[%s13661_s10 + $0x478] sm:$0xff]  ;;  %v234_v39 = vld [vmem:[%s13661_s10 + $0x450] sm:$0xff] }
 0x3e4   :  { %839 = vmatpush.msrb.mxu2 %v263_v30  ;;  %v5078_v30 = vld [vmem:[%s13655_s4 + $0x30] sm:$0xff] }
 0x3e5   :  { %780 = vmatpush.msra.mxu3 %v258_v42  ;;  %993 = vmatpush.msra.mxu1 %v5074_v50  ;;  %v235_v42 = vld [vmem:[%s13661_s10 + $0x458] sm:$0xff]  ;;  %v230_v62 = vld [vmem:[%s13661_s10 + $0x430] sm:$0xff] }
 0x3e6   :  { %840 = vmatpush.msrb.mxu2 %v259_v43  ;;  %v5079_v43 = vld [vmem:[%s13655_s4 + $0x28] sm:$0xff]  ;;  %v226_v50 = vld [vmem:[%s13661_s10 + $0x410] sm:$0xff] }
 0x3e7   :  { %781 = vmatpush.msra.mxu3 %v254_v44  ;;  %994 = vmatpush.msra.mxu1 %v5075_v31  ;;  %v231_v44 = vld [vmem:[%s13661_s10 + $0x438] sm:$0xff]  ;;  %v5082_v31 = vld [vmem:[%s13655_s4 + $0x10] sm:$0xff] }
 0x3e8   :  { %841 = vmatpush.msrb.mxu2 %v255_v47  ;;  %v5080_v47 = vld [vmem:[%s13655_s4 + $0x20] sm:$0xff] }
 0x3e9   :  { %782 = vmatpush.msra.mxu3 %v250_v37  ;;  %995 = vmatpush.msra.mxu1 %v5076_v24  ;;  %v227_v37 = vld [vmem:[%s13661_s10 + $0x418] sm:$0xff]  ;;  %v7338_v24 = vld [vmem:[%s13663_s12 + $0x10] sm:$0xff] }
 0x3ea   :  { %842 = vmatpush.msrb.mxu2 %v251_v9  ;;  %v5081_v9 = vld [vmem:[%s13655_s4 + $0x18] sm:$0xff] }
 0x3eb   :  { %783 = vmatpush.msra.mxu3 %v246_v58  ;;  %996 = vmatpush.msra.mxu1 %v5077_v32 }
 0x3ec   :  { %843 = vmatpush.msrb.mxu2 %v247_v49 }
 0x3ed   :  { %784 = vmatpush.msra.mxu3 %v242_v25  ;;  %997 = vmatpush.msra.mxu1 %v5078_v30  ;;  %v7352_v30 = vld [vmem:[%s13663_s12] sm:$0xff] }
 0x3ee   :  { %844 = vmatpush.msrb.mxu2 %v243_v2 }
 0x3ef   :  { %785 = vmatpush.msra.mxu3 %v238_v8  ;;  %998 = vmatpush.msra.mxu1 %v5079_v43 }
 0x3f0   :  { %845 = vmatpush.msrb.mxu2 %v239_v46  ;;  %v7347_v46 = vld [vmem:[%s13663_s12 + $0x8] sm:$0xff] }
 0x3f1   :  { %786 = vmatpush.msra.mxu3 %v234_v39  ;;  %999 = vmatpush.msra.mxu1 %v5080_v47 }
 0x3f2   :  { %846 = vmatpush.msrb.mxu2 %v235_v42 }
 0x3f3   :  { %787 = vmatpush.msra.mxu3 %v230_v62  ;;  %1000 = vmatpush.msra.mxu1 %v5081_v9 }
 0x3f4   :  { %847 = vmatpush.msrb.mxu2 %v231_v44 }
 0x3f5   :  { %788 = vmatpush.msra.mxu3 %v226_v50  ;;  %1001 = vmatpush.msra.mxu1 %v5082_v31  ;;  %v7361_v31 = vld [vmem:[%s13661_s10 + $0x3e0] sm:$0xff] }
 0x3f6   :  { %848 = vmatpush.msrb.mxu2 %v227_v37  ;;  %789 = vmatmul.f32.vlgmr.msra.gmra.mxu3 %v6434_v1  ;;  %14291 = vst [vmem:[#allocation34_spill] sm:$0xff] %v7361_v31 }
 0x3f7   :  { %849 = vmatmul.f32.vlgmr.msrb.gmra.mxu2 %v6434_v1  ;;  %1002 = vmatpush.msra.mxu1 %v6410_v56  ;;  %v14279_v56 = vld [vmem:[#allocation22_spill] sm:$0xff] }
 0x3f8   :  { %1162 = vmatpush.msra.mxu2 %v6499_v14  ;;  %v14281_v1 = vld [vmem:[#allocation26_spill] sm:$0xff]  ;;  %v14282_v14 = vld [vmem:[#allocation28_spill] sm:$0xff] }
 0x3f9   :  { %1003 = vmatpush.msra.mxu1 %v6422_v59  ;;  %v14280_v59 = vld [vmem:[#allocation24_spill] sm:$0xff] }
 0x3fa   :  { %1163 = vmatpush.msra.mxu2 %v6509_v16  ;;  %v14284_v16 = vld [vmem:[#allocation32_spill] sm:$0xff] }
 0x3fb   :  { %1222 = vmatpush.msrb.mxu1 %v6504_v15  ;;  %v14283_v15 = vld [vmem:[#allocation30_spill] sm:$0xff]  ;;  %14290 = vst [vmem:[#allocation32_spill] sm:$0xff] %v7352_v30 }
 0x3fc   :  { %1164 = vmatpush.msra.mxu2 %v6521_v19  ;;  %v288_v19 = vld [vmem:[%s13662_s11] sm:$0xf]  ;;  %14289 = vst [vmem:[#allocation30_spill] sm:$0xff] %v7347_v46 }
 0x3fd   :  { %1223 = vmatpush.msrb.mxu1 %v6516_v18  ;;  %v7234_v18 = vpop.f32.mrf.mxu1  ;;  %v7333_v49 = vperm.slane %v288_v19, 2 }
 0x3fe   :  { %1165 = vmatpush.msra.mxu2 %v6536_v22  ;;  %v650_v22 = vpop.f32.mrf.mxu0 }
 0x3ff   :  { %1224 = vmatpush.msrb.mxu1 %v6526_v20  ;;  %v7239_v20 = vperm.slane %v288_v19, 0  ;;  %14288 = vst [vmem:[#allocation28_spill] sm:$0xff] %v7333_v49 }
 0x400   :  { %1166 = vmatpush.msra.mxu2 %v6554_v26 }
 0x401   :  { %1225 = vmatpush.msrb.mxu1 %v6541_v23  ;;  %14285 = vst [vmem:[#allocation22_spill] sm:$0xff] %v7239_v20 }
 0x402   :  { %1167 = vmatpush.msra.mxu2 %v6566_v29 }
 0x403   :  { %1226 = vmatpush.msrb.mxu1 %v6559_v27  ;;  %v7245_v27 = vld [vmem:[%s13663_s12 + $0x78] sm:$0xff] }
 0x404   :  { %1168 = vmatpush.msra.mxu2 %v6578_v35  ;;  %919 = vmatpush.msrb.mxu3 %v7245_v27 }
 0x405   :  { %1227 = vmatpush.msrb.mxu1 %v6571_v33  ;;  %v7247_v33 = vperm.slane %v288_v19, 1  ;;  %v670_v35 = vpop.f32.mrf.mxu1 }
 0x406   :  { %1169 = vmatpush.msra.mxu2 %v6596_v52  ;;  %v7253_v52 = vld [vmem:[%s13663_s12 + $0x70] sm:$0xff] }
 0x407   :  { %1228 = vmatpush.msrb.mxu1 %v6583_v36  ;;  %14286 = vst [vmem:[#allocation24_spill] sm:$0xff] %v7247_v33  ;;  %920 = vmatpush.msrb.mxu3 %v7253_v52 }
 0x408   :  { %1170 = vmatpush.msra.mxu2 %v6611_v55  ;;  %v7259_v55 = vld [vmem:[%s13663_s12 + $0x68] sm:$0xff] }
 0x409   :  { %1229 = vmatpush.msrb.mxu1 %v6601_v53  ;;  %921 = vmatpush.msrb.mxu3 %v7259_v55 }
 0x40a   :  { %1171 = vmatpush.msra.mxu2 %v6624_v60 }
 0x40b   :  { %1230 = vmatpush.msrb.mxu1 %v6616_v57 }
 0x40c   :  { %1172 = vmatpush.msra.mxu2 %v6639_v63  ;;  %v7266_v63 = vld [vmem:[%s13663_s12 + $0x60] sm:$0xff] }
 0x40d   :  { %1231 = vmatpush.msrb.mxu1 %v6629_v61  ;;  %922 = vmatpush.msrb.mxu3 %v7266_v63 }
 0x40e   :  { %1173 = vmatpush.msra.mxu2 %v6654_v3  ;;  %v730_v3 = vpop.f32.mrf.mxu0 }
 0x40f   :  { %1232 = vmatpush.msrb.mxu1 %v6644_v0 }
 0x410   :  { %1174 = vmatpush.msra.mxu2 %v6669_v6 }
 0x411   :  { %1233 = vmatpush.msrb.mxu1 %v6659_v4  ;;  %v7272_v4 = vld [vmem:[%s13663_s12 + $0x58] sm:$0xff] }
 0x412   :  { %1175 = vmatpush.msra.mxu2 %v6687_v10  ;;  %923 = vmatpush.msrb.mxu3 %v7272_v4 }
 0x413   :  { %1234 = vmatpush.msrb.mxu1 %v6674_v7  ;;  %v7278_v7 = vld [vmem:[%s13663_s12 + $0x50] sm:$0xff] }
 0x414   :  { %1176 = vmatpush.msra.mxu2 %v6705_v17  ;;  %924 = vmatpush.msrb.mxu3 %v7278_v7 }
 0x415   :  { %1235 = vmatpush.msrb.mxu1 %v6692_v11  ;;  %v7284_v11 = vld [vmem:[%s13663_s12 + $0x48] sm:$0xff] }
 0x416   :  { %1177 = vmatpush.msra.mxu2 %v6723_v28  ;;  %925 = vmatpush.msrb.mxu3 %v7284_v11  ;;  %v7292_v28 = vld [vmem:[%s13663_s12 + $0x40] sm:$0xff] }
 0x417   :  { %1236 = vmatpush.msrb.mxu1 %v6710_v21 }
 0x418   :  { %1242 = vmatpush.msrb.mxu2 %v6738_v38  ;;  %926 = vmatpush.msrb.mxu3 %v7292_v28 }
 0x419   :  { %1237 = vmatpush.msrb.mxu1 %v6728_v34  ;;  %v7298_v34 = vld [vmem:[%s13663_s12 + $0x38] sm:$0xff] }
 0x41a   :  { %1243 = vmatpush.msrb.mxu2 %v6753_v41  ;;  %927 = vmatpush.msrb.mxu3 %v7298_v34  ;;  %v7305_v41 = vld [vmem:[%s13663_s12 + $0x30] sm:$0xff] }
 0x41c   :  { %1244 = vmatpush.msrb.mxu2 %v6768_v45  ;;  %928 = vmatpush.msrb.mxu3 %v7305_v41 }
 0x41e   :  { %1245 = vmatpush.msrb.mxu2 %v6785_v48 }
 0x420   :  { %1246 = vmatpush.msrb.mxu2 %v6803_v54  ;;  %v7313_v54 = vld [vmem:[%s13663_s12 + $0x28] sm:$0xff] }
 0x421   :  { %929 = vmatpush.msrb.mxu3 %v7313_v54 }
 0x422   :  { %1247 = vmatpush.msrb.mxu2 %v6821_v5  ;;  %v7320_v5 = vld [vmem:[%s13663_s12 + $0x20] sm:$0xff] }
 0x423   :  { %930 = vmatpush.msrb.mxu3 %v7320_v5 }
 0x424   :  { %1248 = vmatpush.msrb.mxu2 %v6839_v13 }
 0x426   :  { %1249 = vmatpush.msrb.mxu2 %v6857_v40 }
 0x428   :  { %1250 = vmatpush.msrb.mxu2 %v6875_v51  ;;  %v7325_v51 = vperm.slane %v288_v19, 3 }
 0x42a   :  { %1251 = vmatpush.msrb.mxu2 %v6893_v12  ;;  %14287 = vst [vmem:[#allocation26_spill] sm:$0xff] %v7325_v51  ;;  %v7330_v12 = vld [vmem:[%s13663_s12 + $0x18] sm:$0xff] }
 0x42b   :  { %931 = vmatpush.msrb.mxu3 %v7330_v12 }
 0x42c   :  { %1252 = vmatpush.msrb.mxu2 %v14279_v56 }
 0x42d   :  { %932 = vmatpush.msrb.mxu3 %v7338_v24 }
 0x42e   :  { %1253 = vmatpush.msrb.mxu2 %v14280_v59 }
 0x42f   :  { %933 = vmatpush.msrb.mxu3 %v7347_v46 }
 0x430   :  { %1254 = vmatpush.msrb.mxu2 %v14281_v1 }
 0x431   :  { %934 = vmatpush.msrb.mxu3 %v7352_v30 }
 0x432   :  { %1255 = vmatpush.msrb.mxu2 %v14282_v14  ;;  %v7367_v14 = vld [vmem:[%s13661_s10 + $0x3c0] sm:$0xff] }
 0x433   :  { %1182 = vmatpush.msra.mxu3 %v7361_v31  ;;  %14292 = vst [vmem:[#allocation35_spill] sm:$0xff] %v7367_v14  ;;  %v7863_v31 = vld [vmem:[%s13661_s10 + $0xb0] sm:$0xff] }
 0x434   :  { %1256 = vmatpush.msrb.mxu2 %v14283_v15 }
 0x435   :  { %1183 = vmatpush.msra.mxu3 %v7367_v14  ;;  %v7800_v14 = vld [vmem:[%s13661_s10 + $0x1f0] sm:$0xff] }
 0x436   :  { %1257 = vmatpush.msrb.mxu2 %v14284_v16  ;;  %v7374_v16 = vld [vmem:[%s13661_s10 + $0x3a0] sm:$0xff] }
 0x437   :  { %14293 = vst [vmem:[#allocation36_spill] sm:$0xff] %v7374_v16  ;;  %1184 = vmatpush.msra.mxu3 %v7374_v16  ;;  %v13720_v16 = vmov 1.0  }
 0x454   :  { %v750_v38 = vpop.f32.mrf.mxu1 }
 0x455   :  { %v810_v58 = vpop.f32.mrf.mxu0  ;;  %v751_v42 = vadd.f32 %v750_v38, %v7333_v49  ;;  %v7725_v49 = vld [vmem:[%s13661_s10 + $0x560] sm:$0xff] }
 0x456   :  { %v811_v8 = vadd.f32 %v810_v58, %v7325_v51  ;;  %v7422_v58 = vld [vmem:[%s13661_s10 + $0x320] sm:$0xff] }
 0x457   :  { %14301 = vst [vmem:[#allocation40_spill] sm:$0xff] %v7422_v58  ;;  %v7731_v51 = vld [vmem:[%s13661_s10 + $0x540] sm:$0xff] }
 0x459   :  { %v630_v23 = vpop.f32.mrf.mxu3  ;;  %v690_v36 = vpop.f32.mrf.mxu2 }
 0x45a   :  { %v631_v26 = vadd.f32 %v630_v23, %v7239_v20  ;;  %v691_v60 = vadd.f32 %v690_v36, %v7247_v33  ;;  %v7381_v23 = vld [vmem:[%s13661_s10 + $0x380] sm:$0xff] }
 0x45b   :  { %14294 = vst [vmem:[#allocation37_spill] sm:$0xff] %v7381_v23  ;;  %1185 = vmatpush.msra.mxu3 %v7381_v23  ;;  %v7737_v33 = vld [vmem:[%s13661_s10 + $0x520] sm:$0xff] }
 0x45c   :  { %v651_v29 = vadd.f32 %v650_v22, %v631_v26  ;;  %v7743_v20 = vld [vmem:[%s13661_s10 + $0x500] sm:$0xff] }
 0x45d   :  { %v830_v2 = vpop.f32.mrf.mxu1 }
 0x45e   :  { %v671_v53 = vadd.f32 %v670_v35, %v651_v29  ;;  %v831_v43 = vadd.f32 %v830_v2, %v811_v8 }
 0x460   :  { %v4803_v57 = vmul.f32 -1.442695, %v671_v53  ;;  %v7396_v53 = vld [vmem:[%s13661_s10 + $0x360] sm:$0xff] }
 0x461   :  { %v710_v61 = vpop.f32.mrf.mxu3  ;;  %14297 = vst [vmem:[#allocation38_spill] sm:$0xff] %v7396_v53  ;;  %1186 = vmatpush.msra.mxu3 %v7396_v53 }
 0x462   :  { %4867 = vpow2.f32 %v4803_v57  ;;  %v711_v0 = vadd.f32 %v710_v61, %v691_v60  ;;  %v770_v13 = vpop.f32.mrf.mxu2  ;;  %v5088_v57 = vld [vmem:[%s13660_s9] sm:$0x3] }
 0x463   :  { %v771_v37 = vadd.f32 %v770_v13, %v751_v42  ;;  %v366_v60 = vperm.slane %v5088_v57, 1  ;;  %v7482_v57 = vld [vmem:[%s13661_s10 + $0x200] sm:$0xff] }
 0x464   :  { %v731_v6 = vadd.f32 %v730_v3, %v711_v0  ;;  %14311 = vst [vmem:[#allocation50_spill] sm:$0xff] %v7482_v57 }
 0x466   :  { %v4804_v10 = vmul.f32 -1.442695, %v731_v6  ;;  %v5102_v6 = vld [vmem:[%s13661_s10 + $0x5a8] sm:$0xff] }
 0x468   :  { %v4868_v17 = vpop.eup %4867  ;;  %4869 = vpow2.f32 %v4804_v10 }
 0x469   :  { %v7287_v21 = vadd.f32 1.0, %v4868_v17  ;;  %v7413_v17 = vld [vmem:[%s13661_s10 + $0x340] sm:$0xff] }
 0x46a   :  { %14300 = vst [vmem:[#allocation39_spill] sm:$0xff] %v7413_v17  ;;  %1187 = vmatpush.msra.mxu3 %v7413_v17 }
 0x46b   :  { %4871 = vrcp.f32 %v7287_v21  ;;  %v868_v35 = vand.u32 2147483648, %v7287_v21  ;;  %vm862_vm12 = vweird.f32 %v7287_v21  ;;  %v866_v61 = vand.u32 2147483647, %v7287_v21 }
 0x46c   :  { %1188 = vmatpush.msra.mxu3 %v7422_v58 }
 0x46d   :  { %vm867_vm15 = vcmp.eq.f32.partialorder %v866_v61, 8.507059e+37  ;;  %v14312_v61 = vld [vmem:[#allocation12_spill] sm:$0xff] }
 0x46e   :  { %v4870_v45 = vpop.eup %4869  ;;  %14331 = vst [vmem:[#allocation12_spill] sm:$0xff] %v7800_v14 }
 0x46f   :  { %v7308_v48 = vadd.f32 1.0, %v4870_v45 }
 0x471   :  { %4873 = vrcp.f32 %v7308_v48  ;;  %v7323_v40 = vpop.eup %4871  ;;  %v887_v22 = vand.u32 2147483648, %v7308_v48  ;;  %vm881_vm9 = vweird.f32 %v7308_v48  ;;  %v885_v29 = vand.u32 2147483647, %v7308_v48 }
 0x472   :  { %v858_v25 = vmul.f32 %v7323_v40, %v7287_v21  ;;  %vm863_vm10 = vweird.f32 %v7323_v40 }
 0x473   :  { %vm7406_vm13 = vmor %vm862_vm12, %vm863_vm10  ;;  %v888_v10 = vor.u32 1.1754944e-38, %v887_v22  ;;  %vm886_vm14 = vcmp.eq.f32.partialorder %v885_v29, 8.507059e+37 }
 0x474   :  { %v859_v47 = vsub.f32 1.0, %v858_v25  ;;  %v412_v25 = vadd.f32 %v7234_v18, %v366_v60  ;;  %v7441_v18 = vld [vmem:[%s13661_s10 + $0x2c0] sm:$0xff]  ;;  %v5100_v60 = vld [vmem:[%s13661_s10 + $0x5e8] sm:$0xff] }
 0x475   :  { %14304 = vst [vmem:[#allocation43_spill] sm:$0xff] %v7441_v18 }
 0x476   :  { %v860_v15 = vmul.f32 %v7323_v40, %v859_v47 }
 0x477   :  { %v4874_v32 = vpop.eup %4873 }
 0x478   :  { %v877_v39 = vmul.f32 %v4874_v32, %v7308_v48  ;;  %vm882_vm8 = vweird.f32 %v4874_v32  ;;  %v861_v26 = vadd.f32 %v7323_v40, %v860_v15  ;;  %v869_v48 = vor.u32 1.1754944e-38, %v868_v35  ;;  %v7468_v15 = vld [vmem:[%s13661_s10 + $0x240] sm:$0xff] }
 0x479   :  { %v790_v44 = vpop.f32.mrf.mxu3  ;;  %vm7389_vm11 = vmor %vm881_vm9, %vm882_vm8  ;;  %14309 = vst [vmem:[#allocation48_spill] sm:$0xff] %v7468_v15 }
 0x47a   :  { %v878_v62 = vsub.f32 1.0, %v877_v39  ;;  %v850_v50 = vpop.f32.mrf.mxu2  ;;  %v791_v59 = vadd.f32 %v790_v44, %v771_v37  ;;  %v865_v21 = vsel %vm7406_vm13, %v7323_v40, %v861_v26  ;;  %v7429_v40 = vld [vmem:[%s13661_s10 + $0x300] sm:$0xff] }
 0x47b   :  { %v851_v9 = vadd.f32 %v850_v50, %v831_v43  ;;  %v870_v2 = vsel %vm867_vm15, %v869_v48, %v865_v21  ;;  %14302 = vst [vmem:[#allocation41_spill] sm:$0xff] %v7429_v40  ;;  %1189 = vmatpush.msra.mxu3 %v7429_v40  ;;  %v7435_v39 = vld [vmem:[%s13661_s10 + $0x2e0] sm:$0xff]  ;;  %v5103_v21 = vld [vmem:[%s13661_s10 + $0x588] sm:$0xff] }
 0x47c   :  { %v879_v56 = vmul.f32 %v4874_v32, %v878_v62  ;;  %14303 = vst [vmem:[#allocation42_spill] sm:$0xff] %v7435_v39  ;;  %v7449_v44 = vld [vmem:[%s13661_s10 + $0x2a0] sm:$0xff]  ;;  %v14316_v48 = vld [vmem:[#allocation16_spill] sm:$0xff] }
 0x47d   :  { %v4805_v1 = vmul.f32 -1.442695, %v851_v9  ;;  %1190 = vmatpush.msra.mxu3 %v7435_v39  ;;  %14306 = vst [vmem:[#allocation45_spill] sm:$0xff] %v7449_v44  ;;  %v7455_v50 = vld [vmem:[%s13661_s10 + $0x280] sm:$0xff] }
 0x47e   :  { %v880_v19 = vadd.f32 %v4874_v32, %v879_v56  ;;  %14307 = vst [vmem:[#allocation46_spill] sm:$0xff] %v7455_v50  ;;  %v7474_v26 = vld [vmem:[%s13661_s10 + $0x220] sm:$0xff] }
 0x47f   :  { %4875 = vpow2.f32 %v4805_v1  ;;  %1191 = vmatpush.msra.mxu3 %v7441_v18  ;;  %14310 = vst [vmem:[#allocation49_spill] sm:$0xff] %v7474_v26  ;;  %v7785_v18 = vld [vmem:[%s13661_s10 + $0x420] sm:$0xff] }
 0x480   :  { %4877 = vtanh.f32 %v791_v59  ;;  %v884_v0 = vsel %vm7389_vm11, %v4874_v32, %v880_v19  ;;  %v7462_v59 = vld [vmem:[%s13661_s10 + $0x260] sm:$0xff] }
 0x481   :  { %v889_v13 = vsel %vm886_vm14, %v888_v10, %v884_v0  ;;  %1192 = vmatpush.msra.mxu3 %v7449_v44  ;;  %14308 = vst [vmem:[#allocation47_spill] sm:$0xff] %v7462_v59  ;;  %v5101_v0 = vld [vmem:[%s13661_s10 + $0x5c8] sm:$0xff]  ;;  %v14314_v10 = vld [vmem:[#allocation14_spill] sm:$0xff] }
 0x482   :  { %v911_v32 = vmul.f32 %v889_v13, %v412_v25  ;;  %v5105_v13 = vld [vmem:[%s13661_s10 + $0x548] sm:$0xff]  ;;  %v14317_v25 = vld [vmem:[#allocation17_spill] sm:$0xff]  ;;  %v7779_v44 = vld [vmem:[%s13661_s10 + $0x440] sm:$0xff] }
 0x483   :  { %1193 = vmatpush.msra.mxu3 %v7455_v50  ;;  %v7773_v50 = vld [vmem:[%s13661_s10 + $0x460] sm:$0xff] }
 0x484   :  { %v7791_v39 = vld [vmem:[%s13661_s10 + $0x400] sm:$0xff] }
 0x485   :  { %v4876_v3 = vpop.eup %4875  ;;  %1194 = vmatpush.msra.mxu3 %v7462_v59  ;;  %v7767_v59 = vld [vmem:[%s13661_s10 + $0x480] sm:$0xff] }
 0x486   :  { %v895_v38 = vadd.f32 1.0, %v4876_v3  ;;  %v4878_v45 = vpop.eup %4877  ;;  %v14313_v3 = vld [vmem:[#allocation13_spill] sm:$0xff] }
 0x487   :  { %v912_v8 = vmul.f32 %v4878_v45, %v870_v2  ;;  %1195 = vmatpush.msra.mxu3 %v7468_v15  ;;  %v5104_v45 = vld [vmem:[%s13661_s10 + $0x568] sm:$0xff]  ;;  %v7761_v15 = vld [vmem:[%s13661_s10 + $0x4a0] sm:$0xff] }
 0x488   :  { %4879 = vrcp.f32 %v895_v38  ;;  %v907_v37 = vand.u32 2147483648, %v895_v38  ;;  %v905_v56 = vand.u32 2147483647, %v895_v38  ;;  %vm901_vm4 = vweird.f32 %v895_v38  ;;  %v5106_v2 = vld [vmem:[%s13661_s10 + $0x528] sm:$0xff] }
 0x489   :  { %v7444_v43 = vadd.f32 %v912_v8, %v911_v32  ;;  %1196 = vmatpush.msra.mxu3 %v7474_v26  ;;  %v14318_v32 = vld [vmem:[#allocation18_spill] sm:$0xff]  ;;  %v5107_v8 = vld [vmem:[%s13661_s10 + $0x508] sm:$0xff] }
 0x48a   :  { %v908_v19 = vor.u32 1.1754944e-38, %v907_v37  ;;  %vm906_vm6 = vcmp.eq.f32.partialorder %v905_v56, 8.507059e+37  ;;  %v5109_v37 = vld [vmem:[%s13661_s10 + $0x4c8] sm:$0xff]  ;;  %v7755_v26 = vld [vmem:[%s13661_s10 + $0x4c0] sm:$0xff] }
 0x48b   :  { %14305 = vst [vmem:[#allocation44_spill] sm:$0xff] %v7444_v43  ;;  %4881 = vtanh.f32 %v7444_v43  ;;  %1197 = vmatpush.msra.mxu3 %v7482_v57  ;;  %v5110_v56 = vld [vmem:[%s13661_s10 + $0x4a8] sm:$0xff]  ;;  %v7719_v43 = vld [vmem:[%s13661_s10 + $0x580] sm:$0xff] }
 0x48c   :  { %v7749_v57 = vld [vmem:[%s13661_s10 + $0x4e0] sm:$0xff] }
 0x48e   :  { %v4880_v42 = vpop.eup %4879 }
 0x48f   :  { %v897_v62 = vmul.f32 %v4880_v42, %v895_v38  ;;  %vm902_vm0 = vweird.f32 %v4880_v42  ;;  %v14315_v38 = vld [vmem:[#allocation15_spill] sm:$0xff] }
 0x490   :  { %vm903_vm5 = vmor %vm901_vm4, %vm902_vm0 }
 0x491   :  { %v898_v47 = vsub.f32 1.0, %v897_v62  ;;  %v4882_v29 = vpop.eup %4881  ;;  %v5108_v62 = vld [vmem:[%s13661_s10 + $0x4e8] sm:$0xff] }
 0x493   :  { %v899_v9 = vmul.f32 %v4880_v42, %v898_v47  ;;  %v14320_v47 = vld [vmem:[#allocation20_spill] sm:$0xff] }
 0x495   :  { %v900_v1 = vadd.f32 %v4880_v42, %v899_v9  ;;  %v14321_v9 = vld [vmem:[#allocation21_spill] sm:$0xff] }
 0x497   :  { %v904_v22 = vsel %vm903_vm5, %v4880_v42, %v900_v1  ;;  %v14319_v42 = vld [vmem:[#allocation19_spill] sm:$0xff] }
 0x498   :  { %v909_v35 = vsel %vm906_vm6, %v908_v19, %v904_v22  ;;  %v14322_v1 = vld [vmem:[#allocation23_spill] sm:$0xff]  ;;  %v14323_v22 = vld [vmem:[#allocation25_spill] sm:$0xff] }
 0x499   :  { %v7477_v36 = vmul.f32 %v4882_v29, %v909_v35  ;;  %v5111_v19 = vld [vmem:[%s13661_s10 + $0x488] sm:$0xff]  ;;  %14341 = vst [vmem:[#allocation23_spill] sm:$0xff] %v7863_v31 }
 0x49a   :  { %v5112_v29 = vld [vmem:[%s13661_s10 + $0x468] sm:$0xff] }
 0x49b   :  { %935 = vmatmul.f32.vlgmr.msrb.gmra.mxu3 %v7477_v36  ;;  %1004 = vmatmul.f32.vlgmr.msra.gmra.mxu1 %v7477_v36  ;;  %v14324_v35 = vld [vmem:[#allocation27_spill] sm:$0xff] }
 0x49c   :  { %1262 = vmatpush.msrb.mxu3 %v5100_v60  ;;  %1302 = vmatpush.msra.mxu1 %v14312_v61  ;;  %v5113_v60 = vld [vmem:[%s13661_s10 + $0x448] sm:$0xff]  ;;  %v14325_v61 = vld [vmem:[#allocation29_spill] sm:$0xff] }
 0x49e   :  { %1263 = vmatpush.msrb.mxu3 %v5101_v0  ;;  %1303 = vmatpush.msra.mxu1 %v14313_v3  ;;  %v5114_v0 = vld [vmem:[%s13661_s10 + $0x428] sm:$0xff] }
 0x49f   :  { %v14326_v3 = vld [vmem:[#allocation31_spill] sm:$0xff] }
 0x4a0   :  { %1264 = vmatpush.msrb.mxu3 %v5102_v6  ;;  %1304 = vmatpush.msra.mxu1 %v14314_v10  ;;  %v5115_v6 = vld [vmem:[%s13661_s10 + $0x408] sm:$0xff]  ;;  %v14327_v10 = vld [vmem:[#allocation33_spill] sm:$0xff] }
 0x4a2   :  { %1265 = vmatpush.msrb.mxu3 %v5103_v21  ;;  %1305 = vmatpush.msra.mxu1 %v14315_v38  ;;  %v5116_v38 = vld [vmem:[%s13656_s5] ss:$0 sm:$0xff] }
 0x4a4   :  { %1266 = vmatpush.msrb.mxu3 %v5104_v45  ;;  %1306 = vmatpush.msra.mxu1 %v14316_v48 }
 0x4a6   :  { %1267 = vmatpush.msrb.mxu3 %v5105_v13  ;;  %1307 = vmatpush.msra.mxu1 %v14317_v25  ;;  %v4854_v25 = vld [vmem:[%s13664_s13] ss:$0 sm:$0xff] }
 0x4a8   :  { %1268 = vmatpush.msrb.mxu3 %v5106_v2  ;;  %1308 = vmatpush.msra.mxu1 %v14318_v32  ;;  %v5117_v32 = vld [vmem:[%s13652_s1 + $0x8] sm:$0xff] }
 0x4aa   :  { %1269 = vmatpush.msrb.mxu3 %v5107_v8  ;;  %1309 = vmatpush.msra.mxu1 %v14319_v42  ;;  %v5118_v42 = vld [vmem:[%s13652_s1] sm:$0xff] }
 0x4ac   :  { %1270 = vmatpush.msrb.mxu3 %v5108_v62  ;;  %1310 = vmatpush.msra.mxu1 %v14320_v47 }
 0x4ae   :  { %1271 = vmatpush.msrb.mxu3 %v5109_v37  ;;  %1311 = vmatpush.msra.mxu1 %v14321_v9 }
 0x4b0   :  { %1272 = vmatpush.msrb.mxu3 %v5110_v56  ;;  %1312 = vmatpush.msra.mxu1 %v14322_v1  ;;  %v5119_v1 = vld [vmem:[%s13652_s1 + $0x10] sm:$0xff] }
 0x4b2   :  { %1273 = vmatpush.msrb.mxu3 %v5111_v19  ;;  %1313 = vmatpush.msra.mxu1 %v14323_v22  ;;  %v5120_v22 = vld [vmem:[%s13652_s1 + $0x18] sm:$0xff] }
 0x4b4   :  { %1274 = vmatpush.msrb.mxu3 %v5112_v29  ;;  %1314 = vmatpush.msra.mxu1 %v14324_v35 }
 0x4b6   :  { %1275 = vmatpush.msrb.mxu3 %v5113_v60  ;;  %1315 = vmatpush.msra.mxu1 %v14325_v61  ;;  %v5121_v61 = vld [vmem:[%s13657_s6] ss:$0 sm:$0xff] }
 0x4b8   :  { %1276 = vmatpush.msrb.mxu3 %v5114_v0  ;;  %1316 = vmatpush.msra.mxu1 %v14326_v3 }
 0x4ba   :  { %1277 = vmatpush.msrb.mxu3 %v5115_v6  ;;  %1317 = vmatpush.msra.mxu1 %v14327_v10 }
 0x518   :  { %v1005_v21 = vpop.f32.mrf.mxu1 }
 0x519   :  { %v1006_v45 = vadd.f32 %v5116_v38, %v1005_v21 }
 0x51b   :  { %v1009_v48 = vrot.slane %v1006_v45, 1  ;;  %v1010_v13 = vperm.slane %v1006_v45, 0 }
 0x51d   :  { %v1011_v2 = vperm.slane %v1009_v48, 0  ;;  %v1015_v8 = vadd.f32 %v5117_v32, %v1010_v13  ;;  %v1014_v62 = vadd.f32 %v5118_v42, %v1010_v13  ;;  %v14328_v13 = vld [vmem:[#allocation9_spill] sm:$0xff]  ;;  %v14329_v42 = vld [vmem:[#allocation10_spill] sm:$0xff] }
 0x51e   :  { %v936_v47 = vpop.f32.mrf.mxu3 }
 0x51f   :  { %v937_v37 = vadd.f32 %v4854_v25, %v936_v47  ;;  %v1019_v9 = vmax.f32 %v1015_v8, 0.0  ;;  %v1018_v56 = vmax.f32 %v1014_v62, 0.0  ;;  %v1016_v19 = vadd.f32 %v5119_v1, %v1011_v2 }
 0x520   :  { %v1017_v29 = vadd.f32 %v5120_v22, %v1011_v2  ;;  %v14330_v22 = vld [vmem:[#allocation11_spill] sm:$0xff] }
 0x521   :  { %v940_v35 = vrot.slane %v937_v37, 1  ;;  %942 = vst [vmem:[#allocation3] sm:$0x1] %v937_v37  ;;  %v945_v60 = vsel %vm944_vm7, %v937_v37, -inf  ;;  %v1023_v0 = vmul.f32 %v5121_v61, %v1019_v9  ;;  %v1022_v3 = vmul.f32 %v5121_v61, %v1018_v56 }
 0x522   :  { %946 = vmax.xlane.f32.xlu1 %v945_v60  ;;  %v1020_v6 = vmax.f32 %v1016_v19, 0.0  ;;  %v1021_v10 = vmax.f32 %v1017_v29, 0.0 }
 0x523   :  { %943 = vst [vmem:[#allocation3 + $0x8] sm:$0x1] %v940_v35  ;;  %1028 = vadd.xlane.f32.xlu2 %v1023_v0  ;;  %1026 = vadd.xlane.f32.xlu0 %v1022_v3 }
 0x524   :  { %v1024_v21 = vmul.f32 %v5121_v61, %v1020_v6  ;;  %v1025_v38 = vmul.f32 %v5121_v61, %v1021_v10 }
 0x52a   :  { %1030 = vadd.xlane.f32.xlu1 %v1024_v21 }
 0x52b   :  { %1032 = vadd.xlane.f32.xlu0 %v1025_v38  ;;  %v7590_v38 = vld [vmem:[%s13654_s3 + $0x78] sm:$0xff] }
 0x52c   :  { %968 = vmatpush.msra.mxu0 %v7590_v38 }
 0x595   :  { %v947_v45 = vpop.xlane.xlu1 %946 }
 0x596   :  { %vm948_vm8 = vcmp.eq.f32.partialorder %v937_v37, %v947_v45  ;;  %v1027_v48 = vpop.xlane.xlu0 %1026  ;;  %v1029_v32 = vpop.xlane.xlu2 %1028  ;;  %v7595_v45 = vld [vmem:[%s13654_s3 + $0x70] sm:$0xff] }
 0x597   :  { %v949_v25 = vsel %vm948_vm8, %v14328_v13, 128  ;;  %v1035_v62 = vadd.f32 %v1029_v32, %v14329_v42  ;;  %v1034_v47 = vadd.f32 %v1027_v48, %v14329_v42  ;;  %969 = vmatpush.msra.mxu0 %v7595_v45 }
 0x598   :  { %v950_v2 = vsel %vm944_vm7, %v949_v25, 2147483647 }
 0x599   :  { %v952_v8 = vshra.s32 %v950_v2, 16  ;;  %v1043_v29 = vperm.slane %v1035_v62, %v14330_v22  ;;  %v1042_v37 = vperm.slane %v1034_v47, %v14328_v13  ;;  %v951_v21 = vand.u32 65535, %v950_v2  ;;  %v7604_v2 = vld [vmem:[%s13654_s3 + $0x68] sm:$0xff] }
 0x59a   :  { %970 = vmatpush.msra.mxu0 %v7604_v2 }
 0x59b   :  { %v954_v9 = vcvt.s32.f32 %v952_v8  ;;  %v1044_v0 = vsel %vm484_vm2, %v1043_v29, %v1042_v37  ;;  %v953_v25 = vcvt.s32.f32 %v951_v21  ;;  %v7610_v8 = vld [vmem:[%s13654_s3 + $0x60] sm:$0xff]  ;;  %v7628_v29 = vld [vmem:[%s13654_s3 + $0x48] sm:$0xff] }
 0x59c   :  { %971 = vmatpush.msra.mxu0 %v7610_v8 }
 0x59d   :  { %955 = vmin.xlane.f32.xlu1 %v954_v9  ;;  %v1031_v56 = vpop.xlane.xlu1 %1030 }
 0x59e   :  { %v1036_v1 = vadd.f32 %v1031_v56, %v14329_v42  ;;  %v1033_v19 = vpop.xlane.xlu0 %1032  ;;  %v7622_v56 = vld [vmem:[%s13654_s3 + $0x50] sm:$0xff] }
 0x59f   :  { %v1037_v35 = vadd.f32 %v1033_v19, %v14329_v42  ;;  %v7713_v42 = vld [vmem:[%s13661_s10 + $0x5a0] sm:$0xff] }
 0x5a0   :  { %v1045_v60 = vperm.slane %v1036_v1, %v14328_v13 }
 0x5a1   :  { %v1046_v61 = vperm.slane %v1037_v35, %v14330_v22 }
 0x5a3   :  { %v1047_v3 = vsel %vm484_vm2, %v1046_v61, %v1045_v60  ;;  %v7634_v61 = vld [vmem:[%s13654_s3 + $0x40] sm:$0xff] }
 0x5a4   :  { %v1048_v6 = vsel %vm371_vm1, %v1047_v3, %v1044_v0 }
 0x5a5   :  { %v1050_v10 = vsel %vm491_vm3, %v1048_v6, -inf }
 0x5a6   :  { %1051 = vmax.xlane.f32.xlu0 %v1050_v10  ;;  %v7640_v10 = vld [vmem:[%s13654_s3 + $0x38] sm:$0xff] }
 0x610   :  { %v7597_v48 = vpop.xlane.xlu1 %955 }
 0x611   :  { %vm957_vm9 = vcmp.eq.f32.partialorder %v954_v9, %v7597_v48  ;;  %v7616_v9 = vld [vmem:[%s13654_s3 + $0x58] sm:$0xff]  ;;  %v962_v40 = vcvt.f32.s32 %v7597_v48  ;;  %v7806_v48 = vld [vmem:[%s13661_s10 + $0x1d0] sm:$0xff] }
 0x612   :  { %v958_v32 = vsel %vm957_vm9, %v953_v25, inf  ;;  %972 = vmatpush.msra.mxu0 %v7616_v9  ;;  %14332 = vst [vmem:[#allocation13_spill] sm:$0xff] %v7806_v48 }
 0x613   :  { %959 = vmin.xlane.f32.xlu2 %v958_v32  ;;  %v7646_v32 = vld [vmem:[%s13654_s3 + $0x30] sm:$0xff]  ;;  %v963_v17 = vshll.u32 %v962_v40, 16 }
 0x614   :  { %973 = vmatpush.msra.mxu0 %v7622_v56 }
 0x616   :  { %974 = vmatpush.msra.mxu0 %v7628_v29 }
 0x618   :  { %975 = vmatpush.msra.mxu0 %v7634_v61 }
 0x619   :  { %v1052_v19 = vpop.xlane.xlu0 %1051 }
 0x61a   :  { %v1054_v37 = vperm.slane %v1052_v19, 0  ;;  %v1055_v60 = vperm.slane %v1052_v19, 1  ;;  %976 = vmatpush.msra.mxu0 %v7640_v10 }
 0x61c   :  { %v1058_v0 = vsub.f32 %v1034_v47, %v1054_v37  ;;  %v1059_v3 = vsub.f32 %v1035_v62, %v1054_v37  ;;  %v1060_v6 = vsub.f32 %v1036_v1, %v1055_v60  ;;  %v1061_v19 = vsub.f32 %v1037_v35, %v1055_v60  ;;  %v7652_v47 = vld [vmem:[%s13654_s3 + $0x28] sm:$0xff]  ;;  %977 = vmatpush.msra.mxu0 %v7646_v32  ;;  %v7658_v1 = vld [vmem:[%s13654_s3 + $0x20] sm:$0xff]  ;;  %v7664_v35 = vld [vmem:[%s13654_s3 + $0x18] sm:$0xff] }
 0x61e   :  { %v1062_v21 = vmul.f32 1.442695, %v1058_v0  ;;  %v1064_v25 = vmul.f32 1.442695, %v1059_v3  ;;  %v1066_v62 = vmul.f32 1.442695, %v1060_v6  ;;  %978 = vmatpush.msra.mxu0 %v7652_v47 }
 0x61f   :  { %v1068_v37 = vmul.f32 1.442695, %v1061_v19  ;;  %v7675_v3 = vld [vmem:[%s13654_s3 + $0x10] sm:$0xff]  ;;  %v7682_v6 = vld [vmem:[%s13654_s3 + $0x8] sm:$0xff] }
 0x620   :  { %4883 = vpow2.f32 %v1062_v21  ;;  %979 = vmatpush.msra.mxu0 %v7658_v1 }
 0x621   :  { %4885 = vpow2.f32 %v1064_v25  ;;  %v7691_v25 = vld [vmem:[%s13654_s3] sm:$0xff] }
 0x622   :  { %4887 = vpow2.f32 %v1066_v62  ;;  %980 = vmatpush.msra.mxu0 %v7664_v35  ;;  %v7701_v62 = vld [vmem:[%s13661_s10 + $0x5e0] sm:$0xff] }
 0x623   :  { %4889 = vpow2.f32 %v1068_v37  ;;  %v7707_v37 = vld [vmem:[%s13661_s10 + $0x5c0] sm:$0xff] }
 0x624   :  { %981 = vmatpush.msra.mxu0 %v7675_v3 }
 0x626   :  { %v7666_v60 = vpop.eup %4883  ;;  %982 = vmatpush.msra.mxu0 %v7682_v6 }
 0x627   :  { %v7669_v0 = vpop.eup %4885  ;;  %1075 = vperm.xlu1 %4850, %v7666_v60  }
 0x628   :  { %1078 = vperm.xlu0 %4849, %v7669_v0   ;;  %v7684_v21 = vpop.eup %4887  ;;  %983 = vmatpush.msra.mxu0 %v7691_v25 }
 0x629   :  { %v7694_v19 = vpop.eup %4889 }
 0x62a   :  { %1202 = vmatpush.msrb.mxu0 %v7701_v62 }
 0x62b   :  { %1081 = vperm.xlu2 %4848, %v7684_v21  }
 0x62c   :  { %1203 = vmatpush.msrb.mxu0 %v7707_v37 }
 0x62e   :  { %1204 = vmatpush.msrb.mxu0 %v7713_v42 }
 0x62f   :  { %1084 = vperm.xlu1 %4850, %v7694_v19  }
 0x630   :  { %1205 = vmatpush.msrb.mxu0 %v7719_v43 }
 0x632   :  { %1206 = vmatpush.msrb.mxu0 %v7725_v49 }
 0x634   :  { %1207 = vmatpush.msrb.mxu0 %v7731_v51 }
 0x636   :  { %1208 = vmatpush.msrb.mxu0 %v7737_v33 }
 0x638   :  { %1209 = vmatpush.msrb.mxu0 %v7743_v20 }
 0x63a   :  { %1210 = vmatpush.msrb.mxu0 %v7749_v57 }
 0x63c   :  { %1211 = vmatpush.msrb.mxu0 %v7755_v26 }
 0x63e   :  { %1212 = vmatpush.msrb.mxu0 %v7761_v15 }
 0x640   :  { %1213 = vmatpush.msrb.mxu0 %v7767_v59 }
 0x642   :  { %1214 = vmatpush.msrb.mxu0 %v7773_v50 }
 0x644   :  { %1215 = vmatpush.msrb.mxu0 %v7779_v44 }
 0x646   :  { %1216 = vmatpush.msrb.mxu0 %v7785_v18 }
 0x648   :  { %1217 = vmatpush.msrb.mxu0 %v7791_v39 }
 0x686   :  { %v960_v58 = vpop.xlane.xlu2 %959 }
 0x687   :  { %v961_v53 = vcvt.f32.s32 %v960_v58  ;;  %v7831_v58 = vld [vmem:[%s13661_s10 + $0x150] sm:$0xff] }
 0x688   :  { %14336 = vst [vmem:[#allocation17_spill] sm:$0xff] %v7831_v58 }
 0x689   :  { %v964_v23 = vadd.s32 %v963_v17, %v961_v53  ;;  %v7818_v53 = vld [vmem:[%s13661_s10 + $0x190] sm:$0xff] }
 0x68a   :  { %14334 = vst [vmem:[#allocation15_spill] sm:$0xff] %v7818_v53  ;;  %v7825_v17 = vld [vmem:[%s13661_s10 + $0x170] sm:$0xff] }
 0x68b   :  { %vm965_vm10 = vcmp.eq.s32.totalorder %v14328_v13, %v964_v23  ;;  %v7812_v23 = vld [vmem:[%s13661_s10 + $0x1b0] sm:$0xff]  ;;  %14335 = vst [vmem:[#allocation16_spill] sm:$0xff] %v7825_v17 }
 0x68c   :  { %4807 = vmatmul.msk.f32.vlgmr.msra.gmra.mxu0 %vm965_vm10, %v13720_v16  ;;  %14333 = vst [vmem:[#allocation14_spill] sm:$0xff] %v7812_v23  ;;  %v7837_v16 = vld [vmem:[%s13661_s10 + $0x130] sm:$0xff] }
 0x68d   :  { %1282 = vmatpush.msra.mxu0 %v7800_v14  ;;  %14337 = vst [vmem:[#allocation18_spill] sm:$0xff] %v7837_v16 }
 0x68f   :  { %1283 = vmatpush.msra.mxu0 %v7806_v48 }
 0x691   :  { %1284 = vmatpush.msra.mxu0 %v7812_v23  ;;  %v1082_v23 = vpop.permute.xlu2 %1081 }
 0x693   :  { %1285 = vmatpush.msra.mxu0 %v7818_v53  ;;  %v7843_v53 = vld [vmem:[%s13661_s10 + $0x110] sm:$0xff] }
 0x694   :  { %1218 = vmatmul.f32.vlgmr.msrb.gmra.mxu0 %v7477_v36  ;;  %14338 = vst [vmem:[#allocation19_spill] sm:$0xff] %v7843_v53 }
 0x695   :  { %1286 = vmatpush.msra.mxu0 %v7825_v17 }
 0x697   :  { %1287 = vmatpush.msra.mxu0 %v7831_v58  ;;  %v7849_v58 = vld [vmem:[%s13661_s10 + $0xf0] sm:$0xff] }
 0x698   :  { %14339 = vst [vmem:[#allocation20_spill] sm:$0xff] %v7849_v58 }
 0x699   :  { %v1076_v40 = vpop.permute.xlu1 %1075  ;;  %1288 = vmatpush.msra.mxu0 %v7837_v16  ;;  %v7855_v16 = vld [vmem:[%s13661_s10 + $0xd0] sm:$0xff] }
 0x69a   :  { %v1079_v17 = vpop.permute.xlu0 %1078  ;;  %14340 = vst [vmem:[#allocation21_spill] sm:$0xff] %v7855_v16 }
 0x69b   :  { %1289 = vmatpush.msra.mxu0 %v7843_v53  ;;  %v1087_v48 = vperm.slane %v1079_v17, %v14330_v22  ;;  %v1086_v53 = vperm.slane %v1076_v40, %v14328_v13 }
 0x69d   :  { %1290 = vmatpush.msra.mxu0 %v7849_v58  ;;  %v1089_v58 = vperm.slane %v1082_v23, %v14328_v13  ;;  %v1088_v17 = vsel %vm484_vm2, %v1087_v48, %v1086_v53  ;;  %v7887_v23 = vld [vmem:[%s13661_s10 + $0x50] sm:$0xff]  ;;  %v7911_v53 = vld [vmem:[%s13661_s10 + $0x3d8] sm:$0xff] }
 0x69e   :  { %14344 = vst [vmem:[#allocation29_spill] sm:$0xff] %v7887_v23  ;;  %v7899_v48 = vld [vmem:[%s13661_s10 + $0x10] sm:$0xff] }
 0x69f   :  { %1291 = vmatpush.msra.mxu0 %v7855_v16  ;;  %v7871_v16 = vld [vmem:[%s13661_s10 + $0x90] sm:$0xff]  ;;  %14346 = vst [vmem:[#allocation33_spill] sm:$0xff] %v7899_v48 }
 0x6a0   :  { %14342 = vst [vmem:[#allocation25_spill] sm:$0xff] %v7871_v16 }
 0x6a1   :  { %v1085_v14 = vpop.permute.xlu1 %1084  ;;  %1292 = vmatpush.msra.mxu0 %v7863_v31  ;;  %v7880_v31 = vld [vmem:[%s13661_s10 + $0x70] sm:$0xff]  ;;  %14348 = vst [vmem:[#allocation52_spill] sm:$0xff] %v7911_v53 }
 0x6a2   :  { %v1090_v30 = vperm.slane %v1085_v14, %v14330_v22  ;;  %14343 = vst [vmem:[#allocation27_spill] sm:$0xff] %v7880_v31  ;;  %v8095_v22 = vld [vmem:[%s13661_s10 + $0x18] sm:$0xff] }
 0x6a3   :  { %1293 = vmatpush.msra.mxu0 %v7871_v16  ;;  %v8089_v16 = vld [vmem:[%s13661_s10 + $0x38] sm:$0xff] }
 0x6a4   :  { %v1091_v40 = vsel %vm484_vm2, %v1090_v30, %v1089_v58  ;;  %v7893_v30 = vld [vmem:[%s13661_s10 + $0x30] sm:$0xff]  ;;  %v7917_v58 = vld [vmem:[%s13661_s10 + $0x3b8] sm:$0xff] }
 0x6a5   :  { %v1092_v46 = vsel %vm371_vm1, %v1091_v40, %v1088_v17  ;;  %1294 = vmatpush.msra.mxu0 %v7880_v31  ;;  %14345 = vst [vmem:[#allocation31_spill] sm:$0xff] %v7893_v30  ;;  %v7923_v17 = vld [vmem:[%s13661_s10 + $0x398] sm:$0xff] }
 0x6a6   :  { %v1094_v14 = vsel %vm491_vm3, %v1092_v46, 0.0  ;;  %v7905_v46 = vld [vmem:[%s13661_s10 + $0x3f8] sm:$0xff]  ;;  %14349 = vst [vmem:[#allocation53_spill] sm:$0xff] %v7917_v58 }
 0x6a7   :  { %1095 = vadd.xlane.f32.xlu0 %v1094_v14  ;;  %1295 = vmatpush.msra.mxu0 %v7887_v23  ;;  %14347 = vst [vmem:[#allocation51_spill] sm:$0xff] %v7905_v46  ;;  %v7929_v40 = vld [vmem:[%s13661_s10 + $0x378] sm:$0xff] }
 0x6a8   :  { %14350 = vst [vmem:[#allocation54_spill] sm:$0xff] %v7923_v17  ;;  %v7935_v14 = vld [vmem:[%s13661_s10 + $0x358] sm:$0xff] }
 0x6a9   :  { %1296 = vmatpush.msra.mxu0 %v7893_v30  ;;  %14351 = vst [vmem:[#allocation55_spill] sm:$0xff] %v7929_v40 }
 0x6aa   :  { %14352 = vst [vmem:[#allocation56_spill] sm:$0xff] %v7935_v14 }
 0x6ab   :  { %1297 = vmatpush.msra.mxu0 %v7899_v48  ;;  %v8071_v48 = vld [vmem:[%s13661_s10 + $0x98] sm:$0xff] }
 0x6ac   :  { %14374 = vst [vmem:[#allocation78_spill] sm:$0xff] %v8071_v48 }
 0x6ad   :  { %1362 = vmatpush.msrb.mxu0 %v7905_v46 }
 0x6af   :  { %1363 = vmatpush.msrb.mxu0 %v7911_v53  ;;  %v8022_v53 = vld [vmem:[%s13661_s10 + $0x198] sm:$0xff] }
 0x6b0   :  { %14366 = vst [vmem:[#allocation70_spill] sm:$0xff] %v8022_v53 }
 0x6b1   :  { %1364 = vmatpush.msrb.mxu0 %v7917_v58  ;;  %v7941_v58 = vld [vmem:[%s13661_s10 + $0x338] sm:$0xff] }
 0x6b2   :  { %14353 = vst [vmem:[#allocation57_spill] sm:$0xff] %v7941_v58 }
 0x6b3   :  { %1365 = vmatpush.msrb.mxu0 %v7923_v17  ;;  %v7947_v17 = vld [vmem:[%s13661_s10 + $0x318] sm:$0xff] }
 0x6b4   :  { %14354 = vst [vmem:[#allocation58_spill] sm:$0xff] %v7947_v17 }
 0x6b5   :  { %1366 = vmatpush.msrb.mxu0 %v7929_v40  ;;  %v7953_v40 = vld [vmem:[%s13661_s10 + $0x2f8] sm:$0xff] }
 0x6b6   :  { %14355 = vst [vmem:[#allocation59_spill] sm:$0xff] %v7953_v40 }
 0x6b7   :  { %1367 = vmatpush.msrb.mxu0 %v7935_v14  ;;  %v7959_v14 = vld [vmem:[%s13661_s10 + $0x2d8] sm:$0xff] }
 0x6b8   :  { %14356 = vst [vmem:[#allocation60_spill] sm:$0xff] %v7959_v14 }
 0x6b9   :  { %1368 = vmatpush.msrb.mxu0 %v7941_v58  ;;  %v7965_v58 = vld [vmem:[%s13661_s10 + $0x2b8] sm:$0xff] }
 0x6ba   :  { %14357 = vst [vmem:[#allocation61_spill] sm:$0xff] %v7965_v58 }
 0x6bb   :  { %1369 = vmatpush.msrb.mxu0 %v7947_v17  ;;  %v7971_v17 = vld [vmem:[%s13661_s10 + $0x298] sm:$0xff] }
 0x6bc   :  { %14358 = vst [vmem:[#allocation62_spill] sm:$0xff] %v7971_v17 }
 0x6bd   :  { %1370 = vmatpush.msrb.mxu0 %v7953_v40  ;;  %v7977_v40 = vld [vmem:[%s13661_s10 + $0x278] sm:$0xff] }
 0x6be   :  { %14359 = vst [vmem:[#allocation63_spill] sm:$0xff] %v7977_v40 }
 0x6bf   :  { %1371 = vmatpush.msrb.mxu0 %v7959_v14  ;;  %v7983_v14 = vld [vmem:[%s13661_s10 + $0x258] sm:$0xff] }
 0x6c0   :  { %14360 = vst [vmem:[#allocation64_spill] sm:$0xff] %v7983_v14 }
 0x6c1   :  { %1372 = vmatpush.msrb.mxu0 %v7965_v58  ;;  %v7989_v58 = vld [vmem:[%s13661_s10 + $0x238] sm:$0xff] }
 0x6c2   :  { %14361 = vst [vmem:[#allocation65_spill] sm:$0xff] %v7989_v58 }
 0x6c3   :  { %1373 = vmatpush.msrb.mxu0 %v7971_v17  ;;  %v7995_v17 = vld [vmem:[%s13661_s10 + $0x218] sm:$0xff] }
 0x6c4   :  { %14362 = vst [vmem:[#allocation66_spill] sm:$0xff] %v7995_v17 }
 0x6c5   :  { %1374 = vmatpush.msrb.mxu0 %v7977_v40 }
 0x6c7   :  { %1375 = vmatpush.msrb.mxu0 %v7983_v14  ;;  %v8004_v14 = vld [vmem:[%s13661_s10 + $0x1f8] sm:$0xff] }
 0x6c8   :  { %14363 = vst [vmem:[#allocation67_spill] sm:$0xff] %v8004_v14 }
 0x6c9   :  { %1376 = vmatpush.msrb.mxu0 %v7989_v58  ;;  %v8010_v58 = vld [vmem:[%s13661_s10 + $0x1d8] sm:$0xff] }
 0x6ca   :  { %14364 = vst [vmem:[#allocation68_spill] sm:$0xff] %v8010_v58 }
 0x6cb   :  { %1377 = vmatpush.msrb.mxu0 %v7995_v17  ;;  %v8016_v17 = vld [vmem:[%s13661_s10 + $0x1b8] sm:$0xff] }
 0x6cc   :  { %14365 = vst [vmem:[#allocation69_spill] sm:$0xff] %v8016_v17 }
 0x709   :  { %v7998_v40 = vpop.f32.mrf.mxu0 }
 0x70a   :  { %1198 = vmatmul.f32.vlgmr.msra.gmra.mxu3 %v7998_v40 }
 0x70b   :  { %1342 = vmatpush.msra.mxu3 %v8004_v14  ;;  %v8047_v14 = vld [vmem:[%s13661_s10 + $0x118] sm:$0xff] }
 0x70c   :  { %14370 = vst [vmem:[#allocation74_spill] sm:$0xff] %v8047_v14 }
 0x70d   :  { %1343 = vmatpush.msra.mxu3 %v8010_v58  ;;  %v8029_v58 = vld [vmem:[%s13661_s10 + $0x178] sm:$0xff] }
 0x70e   :  { %14367 = vst [vmem:[#allocation71_spill] sm:$0xff] %v8029_v58 }
 0x70f   :  { %1344 = vmatpush.msra.mxu3 %v8016_v17  ;;  %v8035_v17 = vld [vmem:[%s13661_s10 + $0x158] sm:$0xff] }
 0x710   :  { %14368 = vst [vmem:[#allocation72_spill] sm:$0xff] %v8035_v17 }
 0x711   :  { %1345 = vmatpush.msra.mxu3 %v8022_v53  ;;  %v8041_v53 = vld [vmem:[%s13661_s10 + $0x138] sm:$0xff] }
 0x712   :  { %1278 = vmatmul.f32.vlgmr.msrb.gmra.mxu3 %v7477_v36  ;;  %14369 = vst [vmem:[#allocation73_spill] sm:$0xff] %v8041_v53 }
 0x713   :  { %1346 = vmatpush.msra.mxu3 %v8029_v58 }
 0x715   :  { %1347 = vmatpush.msra.mxu3 %v8035_v17  ;;  %v8053_v17 = vld [vmem:[%s13661_s10 + $0xf8] sm:$0xff] }
 0x716   :  { %14371 = vst [vmem:[#allocation75_spill] sm:$0xff] %v8053_v17 }
 0x717   :  { %1348 = vmatpush.msra.mxu3 %v8041_v53  ;;  %v8059_v53 = vld [vmem:[%s13661_s10 + $0xd8] sm:$0xff] }
 0x718   :  { %14372 = vst [vmem:[#allocation76_spill] sm:$0xff] %v8059_v53 }
 0x719   :  { %1349 = vmatpush.msra.mxu3 %v8047_v14  ;;  %v8065_v14 = vld [vmem:[%s13661_s10 + $0xb8] sm:$0xff] }
 0x71a   :  { %v1096_v58 = vpop.xlane.xlu0 %1095  ;;  %14373 = vst [vmem:[#allocation77_spill] sm:$0xff] %v8065_v14 }
 0x71b   :  { %4891 = vrcp.f32 %v1096_v58  ;;  %1350 = vmatpush.msra.mxu3 %v8053_v17  ;;  %v1108_v23 = vand.u32 2147483648, %v1096_v58  ;;  %vm1102_vm12 = vweird.f32 %v1096_v58 }
 0x71d   :  { %1351 = vmatpush.msra.mxu3 %v8059_v53  ;;  %v8077_v53 = vld [vmem:[%s13661_s10 + $0x78] sm:$0xff] }
 0x71e   :  { %14375 = vst [vmem:[#allocation79_spill] sm:$0xff] %v8077_v53 }
 0x71f   :  { %1352 = vmatpush.msra.mxu3 %v8065_v14  ;;  %v8083_v14 = vld [vmem:[%s13661_s10 + $0x58] sm:$0xff] }
 0x720   :  { %14376 = vst [vmem:[#allocation80_spill] sm:$0xff] %v8083_v14 }
 0x721   :  { %v4892_v46 = vpop.eup %4891  ;;  %1353 = vmatpush.msra.mxu3 %v8071_v48  ;;  %v1106_v48 = vand.u32 2147483647, %v1096_v58 }
 0x722   :  { %v1098_v17 = vmul.f32 %v4892_v46, %v1096_v58  ;;  %vm1103_vm11 = vweird.f32 %v4892_v46 }
 0x723   :  { %1354 = vmatpush.msra.mxu3 %v8077_v53  ;;  %vm1104_vm13 = vmor %vm1102_vm12, %vm1103_vm11  ;;  %vm1107_vm14 = vcmp.eq.f32.partialorder %v1106_v48, 8.507059e+37 }
 0x724   :  { %v1099_v30 = vsub.f32 1.0, %v1098_v17  ;;  %v1109_v17 = vor.u32 1.1754944e-38, %v1108_v23 }
 0x725   :  { %1355 = vmatpush.msra.mxu3 %v8083_v14 }
 0x726   :  { %v1100_v31 = vmul.f32 %v4892_v46, %v1099_v30 }
 0x727   :  { %1356 = vmatpush.msra.mxu3 %v8089_v16 }
 0x728   :  { %v1101_v53 = vadd.f32 %v4892_v46, %v1100_v31 }
 0x729   :  { %1357 = vmatpush.msra.mxu3 %v8095_v22 }
 0x72a   :  { %v1105_v30 = vsel %vm1104_vm13, %v4892_v46, %v1101_v53 }
 0x72b   :  { %1513 = vmatpush.msrb.mxu3 %v7590_v38  ;;  %v1110_v14 = vsel %vm1107_vm14, %v1109_v17, %v1105_v30 }
 0x72c   :  { %v1112_v13 = vperm.slane %v1110_v14, 0  ;;  %v1113_v23 = vperm.slane %v1110_v14, 1 }
 0x72d   :  { %1514 = vmatpush.msrb.mxu3 %v7595_v45 }
 0x72e   :  { %v1117_v31 = vmul.f32 %v7669_v0, %v1112_v13  ;;  %v1116_v58 = vmul.f32 %v7666_v60, %v1112_v13  ;;  %v1119_v38 = vmul.f32 %v7694_v19, %v1113_v23  ;;  %v1118_v48 = vmul.f32 %v7684_v21, %v1113_v23  ;;  %v8139_v60 = vld [vmem:[%s13651_s0 + $0x18] sm:$0xff]  ;;  %v8146_v23 = vld [vmem:[%s13661_s10 + $0x5f0] sm:$0xff] }
 0x72f   :  { %1515 = vmatpush.msrb.mxu3 %v7604_v2  ;;  %v8121_v2 = vld [vmem:[%s13651_s0] sm:$0xff] }
 0x730   :  { %1127 = vperm.xlu1 %4850, %v1117_v31   ;;  %1122 = vperm.xlu2 %4848, %v1116_v58  }
 0x731   :  { %1516 = vmatpush.msrb.mxu3 %v7610_v8 }
 0x733   :  { %1517 = vmatpush.msrb.mxu3 %v7616_v9  ;;  %v8127_v9 = vld [vmem:[%s13651_s0 + $0x8] sm:$0xff] }
 0x735   :  { %1518 = vmatpush.msrb.mxu3 %v7622_v56 }
 0x737   :  { %1519 = vmatpush.msrb.mxu3 %v7628_v29 }
 0x738   :  { %1137 = vperm.xlu1 %4850, %v1119_v38   ;;  %1132 = vperm.xlu2 %4848, %v1118_v48   ;;  %v8152_v38 = vld [vmem:[%s13661_s10 + $0x5f8] sm:$0xff]  ;;  %v8158_v48 = vld [vmem:[%s13661_s10 + $0x5d0] sm:$0xff] }
 0x739   :  { %1520 = vmatpush.msrb.mxu3 %v7634_v61 }
 0x73b   :  { %1521 = vmatpush.msrb.mxu3 %v7640_v10 }
 0x73d   :  { %1522 = vmatpush.msrb.mxu3 %v7646_v32 }
 0x73f   :  { %1523 = vmatpush.msrb.mxu3 %v7652_v47 }
 0x741   :  { %1524 = vmatpush.msrb.mxu3 %v7658_v1  ;;  %v8133_v1 = vld [vmem:[%s13651_s0 + $0x10] sm:$0xff] }
 0x743   :  { %1525 = vmatpush.msrb.mxu3 %v7664_v35 }
 0x745   :  { %1526 = vmatpush.msrb.mxu3 %v7675_v3 }
 0x747   :  { %1527 = vmatpush.msrb.mxu3 %v7682_v6 }
 0x749   :  { %1528 = vmatpush.msrb.mxu3 %v7691_v25 }
 0x78a   :  { %v1123_v13 = vpop.permute.xlu2 %1122 }
 0x78b   :  { %v1140_v8 = vmul.f32 %v8121_v2, %v1123_v13  ;;  %v8164_v13 = vld [vmem:[%s13655_s4 + $0x78] sm:$0xff] }
 0x792   :  { %v1133_v10 = vpop.permute.xlu2 %1132 }
 0x793   :  { %v1142_v35 = vmul.f32 %v8133_v1, %v1133_v10  ;;  %v8208_v10 = vld [vmem:[%s13661_s10 + $0x598] sm:$0xff] }
 0x7a2   :  { %v1128_v45 = vpop.permute.xlu1 %1127 }
 0x7a3   :  { %v1141_v56 = vmul.f32 %v8127_v9, %v1128_v45  ;;  %v8170_v45 = vld [vmem:[%s13661_s10 + $0x5d8] sm:$0xff] }
 0x7a5   :  { %v1144_v29 = vadd.f32 %v1141_v56, %v1140_v8  ;;  %v8177_v8 = vld [vmem:[%s13661_s10 + $0x5b0] sm:$0xff] }
 0x7a6   :  { %v8183_v56 = vld [vmem:[%s13655_s4 + $0x70] sm:$0xff] }
 0x7a7   :  { %v1145_v61 = vrot.slane %v1144_v29, 4 }
 0x7a9   :  { %v1146_v32 = vadd.f32 %v1145_v61, %v1144_v29  ;;  %v8189_v29 = vld [vmem:[%s13661_s10 + $0x5b8] sm:$0xff]  ;;  %v8202_v61 = vld [vmem:[%s13655_s4 + $0x68] sm:$0xff] }
 0x7aa   :  { %v1138_v47 = vpop.permute.xlu1 %1137 }
 0x7ab   :  { %v1143_v0 = vmul.f32 %v8139_v60, %v1138_v47  ;;  %v1147_v3 = vrot.slane %v1146_v32, 2  ;;  %v8229_v47 = vld [vmem:[%s13661_s10 + $0x550] sm:$0xff] }
 0x7ad   :  { %v1151_v6 = vadd.f32 %v1143_v0, %v1142_v35  ;;  %v1148_v25 = vadd.f32 %v1147_v3, %v1146_v32  ;;  %v8223_v32 = vld [vmem:[%s13661_s10 + $0x578] sm:$0xff]  ;;  %v8235_v35 = vld [vmem:[%s13655_s4 + $0x60] sm:$0xff]  ;;  %v8248_v0 = vld [vmem:[%s13661_s10 + $0x530] sm:$0xff] }
 0x7ae   :  { %v8254_v3 = vld [vmem:[%s13655_s4 + $0x58] sm:$0xff] }
 0x7af   :  { %v1152_v21 = vrot.slane %v1151_v6, 4  ;;  %v1149_v53 = vrot.slane %v1148_v25, 1 }
 0x7b1   :  { %v1153_v19 = vadd.f32 %v1152_v21, %v1151_v6  ;;  %v1150_v30 = vadd.f32 %v1149_v53, %v1148_v25  ;;  %v8260_v6 = vld [vmem:[%s13661_s10 + $0x538] sm:$0xff]  ;;  %v8273_v21 = vld [vmem:[%s13655_s4 + $0x50] sm:$0xff]  ;;  %v8311_v53 = vld [vmem:[%s13655_s4 + $0x40] sm:$0xff] }
 0x7b2   :  { %v8279_v25 = vld [vmem:[%s13661_s10 + $0x518] sm:$0xff] }
 0x7b3   :  { %v1154_v46 = vrot.slane %v1153_v19, 2 }
 0x7b5   :  { %v1155_v14 = vadd.f32 %v1154_v46, %v1153_v19  ;;  %v8292_v19 = vld [vmem:[%s13655_s4 + $0x48] sm:$0xff]  ;;  %v8298_v46 = vld [vmem:[%s13661_s10 + $0x4f8] sm:$0xff] }
 0x7b7   :  { %v1156_v17 = vrot.slane %v1155_v14, 1 }
 0x7b9   :  { %v1157_v31 = vadd.f32 %v1156_v17, %v1155_v14  ;;  %v8317_v14 = vld [vmem:[%s13661_s10 + $0x4d8] sm:$0xff] }
 0x7ba   :  { %v8330_v17 = vld [vmem:[%s13655_s4 + $0x38] sm:$0xff] }
 0x7bb   :  { %v1160_v58 = vsel %vm371_vm1, %v1157_v31, %v1150_v30  ;;  %v8336_v30 = vld [vmem:[%s13661_s10 + $0x4b8] sm:$0xff]  ;;  %v8349_v31 = vld [vmem:[%s13655_s4 + $0x30] sm:$0xff] }
 0x7bc   :  { %1178 = vmatmul.f32.vlgmr.msra.gmra.mxu2 %v1160_v58  ;;  %1238 = vmatmul.f32.vlgmr.msrb.gmra.mxu1 %v1160_v58  ;;  %14378 = vst [vmem:[#allocation82_spill] sm:$0xff] %v8349_v31 }
 0x7bd   :  { %1298 = vmatmul.f32.vlgmr.msra.gmra.mxu0 %v1160_v58  ;;  %1322 = vmatpush.msra.mxu2 %v8146_v23 }
 0x7be   :  { %1358 = vmatmul.f32.vlgmr.msra.gmra.mxu3 %v1160_v58  ;;  %1382 = vmatpush.msrb.mxu1 %v8152_v38  ;;  %v8355_v58 = vld [vmem:[%s13661_s10 + $0x498] sm:$0xff] }
 0x7bf   :  { %1323 = vmatpush.msra.mxu2 %v8158_v48  ;;  %1533 = vmatpush.msra.mxu0 %v8164_v13  ;;  %14379 = vst [vmem:[#allocation83_spill] sm:$0xff] %v8355_v58 }
 0x7c0   :  { %1383 = vmatpush.msrb.mxu1 %v8170_v45  ;;  %1747 = vmatpush.msra.mxu3 %v7701_v62  ;;  %v8196_v62 = vld [vmem:[%s13661_s10 + $0x590] sm:$0xff] }
 0x7c1   :  { %1324 = vmatpush.msra.mxu2 %v8177_v8  ;;  %1534 = vmatpush.msra.mxu0 %v8183_v56 }
 0x7c2   :  { %1384 = vmatpush.msrb.mxu1 %v8189_v29  ;;  %1748 = vmatpush.msra.mxu3 %v7707_v37  ;;  %v8216_v37 = vld [vmem:[%s13661_s10 + $0x570] sm:$0xff] }
 0x7c3   :  { %1325 = vmatpush.msra.mxu2 %v8196_v62  ;;  %1535 = vmatpush.msra.mxu0 %v8202_v61 }
 0x7c4   :  { %1385 = vmatpush.msrb.mxu1 %v8208_v10  ;;  %1258 = vmatmul.f32.vlgmr.msrb.gmra.mxu2 %v7998_v40 }
 0x7c5   :  { %1318 = vmatmul.f32.vlgmr.msra.gmra.mxu1 %v7998_v40  ;;  %1326 = vmatpush.msra.mxu2 %v8216_v37 }
 0x7c6   :  { %1378 = vmatmul.f32.vlgmr.msrb.gmra.mxu0 %v7998_v40  ;;  %1386 = vmatpush.msrb.mxu1 %v8223_v32  ;;  %v8241_v40 = vld [vmem:[%s13661_s10 + $0x558] sm:$0xff] }
 0x7c7   :  { %1327 = vmatpush.msra.mxu2 %v8229_v47  ;;  %1536 = vmatpush.msra.mxu0 %v8235_v35 }
 0x7c8   :  { %1387 = vmatpush.msrb.mxu1 %v8241_v40  ;;  %1749 = vmatpush.msra.mxu3 %v7713_v42  ;;  %v8267_v42 = vld [vmem:[%s13661_s10 + $0x510] sm:$0xff] }
 0x7c9   :  { %1328 = vmatpush.msra.mxu2 %v8248_v0  ;;  %1537 = vmatpush.msra.mxu0 %v8254_v3 }
 0x7ca   :  { %1388 = vmatpush.msrb.mxu1 %v8260_v6  ;;  %1750 = vmatpush.msra.mxu3 %v7719_v43  ;;  %v8286_v43 = vld [vmem:[%s13661_s10 + $0x4f0] sm:$0xff] }
 0x7cb   :  { %1329 = vmatpush.msra.mxu2 %v8267_v42  ;;  %1538 = vmatpush.msra.mxu0 %v8273_v21 }
 0x7cc   :  { %1389 = vmatpush.msrb.mxu1 %v8279_v25  ;;  %1751 = vmatpush.msra.mxu3 %v7725_v49  ;;  %v8305_v49 = vld [vmem:[%s13661_s10 + $0x4d0] sm:$0xff] }
 0x7cd   :  { %1330 = vmatpush.msra.mxu2 %v8286_v43  ;;  %1539 = vmatpush.msra.mxu0 %v8292_v19 }
 0x7ce   :  { %1390 = vmatpush.msrb.mxu1 %v8298_v46  ;;  %1752 = vmatpush.msra.mxu3 %v7731_v51  ;;  %v8324_v51 = vld [vmem:[%s13661_s10 + $0x4b0] sm:$0xff] }
 0x7cf   :  { %1331 = vmatpush.msra.mxu2 %v8305_v49  ;;  %1540 = vmatpush.msra.mxu0 %v8311_v53 }
 0x7d0   :  { %1391 = vmatpush.msrb.mxu1 %v8317_v14  ;;  %1753 = vmatpush.msra.mxu3 %v7737_v33  ;;  %v8343_v33 = vld [vmem:[%s13661_s10 + $0x490] sm:$0xff] }
 0x7d1   :  { %1332 = vmatpush.msra.mxu2 %v8324_v51  ;;  %1541 = vmatpush.msra.mxu0 %v8330_v17  ;;  %14377 = vst [vmem:[#allocation81_spill] sm:$0xff] %v8343_v33 }
 0x7d2   :  { %1392 = vmatpush.msrb.mxu1 %v8336_v30  ;;  %1754 = vmatpush.msra.mxu3 %v7743_v20  ;;  %v8362_v20 = vld [vmem:[%s13661_s10 + $0x470] sm:$0xff] }
 0x7d3   :  { %1333 = vmatpush.msra.mxu2 %v8343_v33  ;;  %1542 = vmatpush.msra.mxu0 %v8349_v31  ;;  %14380 = vst [vmem:[#allocation84_spill] sm:$0xff] %v8362_v20  ;;  %v8368_v31 = vld [vmem:[%s13655_s4 + $0x28] sm:$0xff] }
 0x7d4   :  { %1393 = vmatpush.msrb.mxu1 %v8355_v58  ;;  %1755 = vmatpush.msra.mxu3 %v7749_v57  ;;  %14381 = vst [vmem:[#allocation85_spill] sm:$0xff] %v8368_v31  ;;  %v8374_v58 = vld [vmem:[%s13661_s10 + $0x478] sm:$0xff]  ;;  %v8381_v57 = vld [vmem:[%s13661_s10 + $0x450] sm:$0xff] }
 0x7d5   :  { %1334 = vmatpush.msra.mxu2 %v8362_v20  ;;  %1543 = vmatpush.msra.mxu0 %v8368_v31  ;;  %14382 = vst [vmem:[#allocation86_spill] sm:$0xff] %v8374_v58  ;;  %v8387_v31 = vld [vmem:[%s13655_s4 + $0x20] sm:$0xff] }
 0x7d6   :  { %1394 = vmatpush.msrb.mxu1 %v8374_v58  ;;  %1756 = vmatpush.msra.mxu3 %v7755_v26  ;;  %14383 = vst [vmem:[#allocation87_spill] sm:$0xff] %v8381_v57  ;;  %v8393_v58 = vld [vmem:[%s13661_s10 + $0x458] sm:$0xff]  ;;  %v8400_v26 = vld [vmem:[%s13661_s10 + $0x430] sm:$0xff] }
 0x7d7   :  { %1335 = vmatpush.msra.mxu2 %v8381_v57  ;;  %14384 = vst [vmem:[#allocation88_spill] sm:$0xff] %v8387_v31  ;;  %1544 = vmatpush.msra.mxu0 %v8387_v31  ;;  %v8406_v31 = vld [vmem:[%s13655_s4 + $0x18] sm:$0xff] }
 0x7d8   :  { %14385 = vst [vmem:[#allocation89_spill] sm:$0xff] %v8393_v58  ;;  %1395 = vmatpush.msrb.mxu1 %v8393_v58  ;;  %1757 = vmatpush.msra.mxu3 %v7761_v15  ;;  %v8412_v58 = vld [vmem:[%s13661_s10 + $0x438] sm:$0xff]  ;;  %v8419_v15 = vld [vmem:[%s13661_s10 + $0x410] sm:$0xff] }
 0x7d9   :  { %14386 = vst [vmem:[#allocation90_spill] sm:$0xff] %v8400_v26  ;;  %1336 = vmatpush.msra.mxu2 %v8400_v26  ;;  %1545 = vmatpush.msra.mxu0 %v8406_v31 }
 0x7da   :  { %14387 = vst [vmem:[#allocation91_spill] sm:$0xff] %v8406_v31  ;;  %1396 = vmatpush.msrb.mxu1 %v8412_v58  ;;  %1758 = vmatpush.msra.mxu3 %v7767_v59  ;;  %v8425_v31 = vld [vmem:[%s13655_s4 + $0x10] sm:$0xff]  ;;  %v8440_v59 = vld [vmem:[%s13655_s4 + $0x8] sm:$0xff] }
 0x7db   :  { %14388 = vst [vmem:[#allocation92_spill] sm:$0xff] %v8412_v58  ;;  %1337 = vmatpush.msra.mxu2 %v8419_v15  ;;  %1546 = vmatpush.msra.mxu0 %v8425_v31  ;;  %v8431_v58 = vld [vmem:[%s13661_s10 + $0x418] sm:$0xff] }
 0x7dc   :  { %14389 = vst [vmem:[#allocation93_spill] sm:$0xff] %v8419_v15  ;;  %1397 = vmatpush.msrb.mxu1 %v8431_v58  ;;  %1338 = vmatmul.f32.vlgmr.msra.gmra.mxu2 %v7477_v36 }
 0x7dd   :  { %14390 = vst [vmem:[#allocation94_spill] sm:$0xff] %v8425_v31  ;;  %1398 = vmatmul.f32.vlgmr.msrb.gmra.mxu1 %v7477_v36  ;;  %1465 = vmatpush.msrb.mxu2 %v7245_v27  ;;  %v8454_v27 = vld [vmem:[%s13655_s4] sm:$0xff] }
 0x7de   :  { %14391 = vst [vmem:[#allocation95_spill] sm:$0xff] %v8431_v58  ;;  %1547 = vmatpush.msra.mxu0 %v8440_v59  ;;  %1759 = vmatpush.msra.mxu3 %v7773_v50  ;;  %v8448_v58 = vld [vmem:[%s13661_s10 + $0x1e0] sm:$0xff] }
 0x7df   :  { %14392 = vst [vmem:[#allocation96_spill] sm:$0xff] %v8440_v59  ;;  %1466 = vmatpush.msrb.mxu2 %v7253_v52  ;;  %1707 = vmatpush.msra.mxu1 %v8448_v58  ;;  %v8462_v52 = vld [vmem:[%s13661_s10 + $0x1e8] sm:$0xff]  ;;  %v8469_v50 = vld [vmem:[%s13661_s10 + $0x1c0] sm:$0xff] }
 0x7e0   :  { %14393 = vst [vmem:[#allocation97_spill] sm:$0xff] %v8448_v58  ;;  %1548 = vmatpush.msra.mxu0 %v8454_v27  ;;  %1760 = vmatpush.msra.mxu3 %v7779_v44  ;;  %v8509_v44 = vld [vmem:[%s13661_s10 + $0x160] sm:$0xff] }
 0x7e1   :  { %14394 = vst [vmem:[#allocation98_spill] sm:$0xff] %v8454_v27  ;;  %1467 = vmatpush.msrb.mxu2 %v7259_v55  ;;  %1708 = vmatpush.msra.mxu1 %v8469_v50  ;;  %v8476_v55 = vld [vmem:[%s13661_s10 + $0x1c8] sm:$0xff]  ;;  %v8522_v36 = vld [vmem:[%s13661_s10 + $0x140] sm:$0xff] }
 0x7e2   :  { %14395 = vst [vmem:[#allocation99_spill] sm:$0xff] %v8462_v52  ;;  %1767 = vmatpush.msrb.mxu0 %v8462_v52  ;;  %1761 = vmatpush.msra.mxu3 %v7785_v18  ;;  %v8483_v18 = vld [vmem:[%s13661_s10 + $0x1a0] sm:$0xff] }
 0x7e3   :  { %14396 = vst [vmem:[#allocation100_spill] sm:$0xff] %v8469_v50  ;;  %1468 = vmatpush.msrb.mxu2 %v7266_v63  ;;  %1709 = vmatpush.msra.mxu1 %v8483_v18  ;;  %v8490_v63 = vld [vmem:[%s13661_s10 + $0x1a8] sm:$0xff] }
 0x7e4   :  { %14397 = vst [vmem:[#allocation101_spill] sm:$0xff] %v8476_v55  ;;  %1768 = vmatpush.msrb.mxu0 %v8476_v55  ;;  %1762 = vmatpush.msra.mxu3 %v7791_v39  ;;  %v8496_v39 = vld [vmem:[%s13661_s10 + $0x180] sm:$0xff] }
 0x7e5   :  { %14398 = vst [vmem:[#allocation102_spill] sm:$0xff] %v8483_v18  ;;  %1469 = vmatpush.msrb.mxu2 %v7272_v4  ;;  %1710 = vmatpush.msra.mxu1 %v8496_v39  ;;  %v8503_v4 = vld [vmem:[%s13661_s10 + $0x188] sm:$0xff] }
 0x7e6   :  { %14399 = vst [vmem:[#allocation103_spill] sm:$0xff] %v8490_v63  ;;  %1769 = vmatpush.msrb.mxu0 %v8490_v63 }
 0x7e7   :  { %14400 = vst [vmem:[#allocation104_spill] sm:$0xff] %v8496_v39  ;;  %1470 = vmatpush.msrb.mxu2 %v7278_v7  ;;  %1711 = vmatpush.msra.mxu1 %v8509_v44  ;;  %v8516_v7 = vld [vmem:[%s13661_s10 + $0x168] sm:$0xff] }
 0x7e8   :  { %14401 = vst [vmem:[#allocation105_spill] sm:$0xff] %v8503_v4  ;;  %1770 = vmatpush.msrb.mxu0 %v8503_v4 }
 0x7e9   :  { %14402 = vst [vmem:[#allocation106_spill] sm:$0xff] %v8509_v44  ;;  %1471 = vmatpush.msrb.mxu2 %v7284_v11  ;;  %1712 = vmatpush.msra.mxu1 %v8522_v36  ;;  %v8529_v11 = vld [vmem:[%s13661_s10 + $0x148] sm:$0xff] }
 0x7ea   :  { %14403 = vst [vmem:[#allocation107_spill] sm:$0xff] %v8516_v7  ;;  %1771 = vmatpush.msrb.mxu0 %v8516_v7  ;;  %v8535_v7 = vld [vmem:[%s13661_s10 + $0x120] sm:$0xff]  ;;  %v14461_v44 = vld [vmem:[#allocation24_spill] sm:$0xff] }
 0x7eb   :  { %14404 = vst [vmem:[#allocation108_spill] sm:$0xff] %v8522_v36  ;;  %1472 = vmatpush.msrb.mxu2 %v7292_v28  ;;  %1713 = vmatpush.msra.mxu1 %v8535_v7  ;;  %v8542_v28 = vld [vmem:[%s13661_s10 + $0x128] sm:$0xff] }
 0x7ec   :  { %14405 = vst [vmem:[#allocation109_spill] sm:$0xff] %v8529_v11  ;;  %1772 = vmatpush.msrb.mxu0 %v8529_v11  ;;  %v8548_v11 = vld [vmem:[%s13661_s10 + $0x100] sm:$0xff] }
 0x7ed   :  { %14406 = vst [vmem:[#allocation110_spill] sm:$0xff] %v8535_v7  ;;  %1473 = vmatpush.msrb.mxu2 %v7298_v34  ;;  %1714 = vmatpush.msra.mxu1 %v8548_v11  ;;  %v8555_v34 = vld [vmem:[%s13661_s10 + $0x108] sm:$0xff] }
 0x7ee   :  { %14407 = vst [vmem:[#allocation111_spill] sm:$0xff] %v8542_v28  ;;  %1773 = vmatpush.msrb.mxu0 %v8542_v28  ;;  %v8561_v28 = vld [vmem:[%s13661_s10 + $0xe0] sm:$0xff] }
 0x7ef   :  { %14408 = vst [vmem:[#allocation112_spill] sm:$0xff] %v8548_v11  ;;  %1474 = vmatpush.msrb.mxu2 %v7305_v41  ;;  %1715 = vmatpush.msra.mxu1 %v8561_v28  ;;  %v8568_v41 = vld [vmem:[%s13661_s10 + $0xe8] sm:$0xff] }
 0x7f0   :  { %14409 = vst [vmem:[#allocation113_spill] sm:$0xff] %v8555_v34  ;;  %1774 = vmatpush.msrb.mxu0 %v8555_v34  ;;  %v8574_v34 = vld [vmem:[%s13661_s10 + $0xc0] sm:$0xff] }
 0x7f1   :  { %14410 = vst [vmem:[#allocation114_spill] sm:$0xff] %v8561_v28  ;;  %1475 = vmatpush.msrb.mxu2 %v7313_v54  ;;  %1716 = vmatpush.msra.mxu1 %v8574_v34  ;;  %v8581_v54 = vld [vmem:[%s13661_s10 + $0xc8] sm:$0xff]  ;;  %v14460_v28 = vld [vmem:[#allocation22_spill] sm:$0xff] }
 0x7f2   :  { %14411 = vst [vmem:[#allocation115_spill] sm:$0xff] %v8568_v41  ;;  %1775 = vmatpush.msrb.mxu0 %v8568_v41  ;;  %v8587_v41 = vld [vmem:[%s13661_s10 + $0xa0] sm:$0xff] }
 0x7f3   :  { %14412 = vst [vmem:[#allocation116_spill] sm:$0xff] %v8574_v34  ;;  %1476 = vmatpush.msrb.mxu2 %v7320_v5  ;;  %1717 = vmatpush.msra.mxu1 %v8587_v41  ;;  %v8594_v5 = vld [vmem:[%s13661_s10 + $0xa8] sm:$0xff]  ;;  %v14435_v34 = vld [vmem:[#allocation38_spill] sm:$0xff] }
 0x7f4   :  { %14413 = vst [vmem:[#allocation117_spill] sm:$0xff] %v8581_v54  ;;  %1776 = vmatpush.msrb.mxu0 %v8581_v54  ;;  %v8600_v54 = vld [vmem:[%s13661_s10 + $0x80] sm:$0xff] }
 0x7f5   :  { %14414 = vst [vmem:[#allocation118_spill] sm:$0xff] %v8587_v41  ;;  %1477 = vmatpush.msrb.mxu2 %v7330_v12  ;;  %1718 = vmatpush.msra.mxu1 %v8600_v54  ;;  %v8607_v12 = vld [vmem:[%s13661_s10 + $0x88] sm:$0xff]  ;;  %v14419_v41 = vld [vmem:[#allocation30_spill] sm:$0xff] }
 0x7f6   :  { %14415 = vst [vmem:[#allocation119_spill] sm:$0xff] %v8594_v5  ;;  %1777 = vmatpush.msrb.mxu0 %v8594_v5  ;;  %v8613_v5 = vld [vmem:[%s13661_s10 + $0x60] sm:$0xff] }
 0x7f7   :  { %14416 = vst [vmem:[#allocation120_spill] sm:$0xff] %v8600_v54  ;;  %1478 = vmatpush.msrb.mxu2 %v7338_v24  ;;  %1719 = vmatpush.msra.mxu1 %v8613_v5  ;;  %v8620_v24 = vld [vmem:[%s13661_s10 + $0x68] sm:$0xff] }
 0x7f8   :  { %14417 = vst [vmem:[#allocation121_spill] sm:$0xff] %v8607_v12  ;;  %1778 = vmatpush.msrb.mxu0 %v8607_v12  ;;  %v8626_v12 = vld [vmem:[%s13661_s10 + $0x40] sm:$0xff]  ;;  %v14422_v54 = vld [vmem:[#allocation32_spill] sm:$0xff] }
 0x7f9   :  { %14418 = vst [vmem:[#allocation122_spill] sm:$0xff] %v8613_v5  ;;  %1479 = vmatpush.msrb.mxu2 %v14419_v41  ;;  %1720 = vmatpush.msra.mxu1 %v8626_v12  ;;  %v8633_v41 = vld [vmem:[%s13661_s10 + $0x48] sm:$0xff]  ;;  %v14424_v5 = vld [vmem:[#allocation34_spill] sm:$0xff] }
 0x7fa   :  { %14420 = vst [vmem:[#allocation30_spill] sm:$0xff] %v8620_v24  ;;  %1779 = vmatpush.msrb.mxu0 %v8620_v24  ;;  %v8640_v24 = vld [vmem:[%s13661_s10 + $0x20] sm:$0xff] }
 0x7fb   :  { %14421 = vst [vmem:[#allocation123_spill] sm:$0xff] %v8626_v12  ;;  %1480 = vmatpush.msrb.mxu2 %v14422_v54  ;;  %1721 = vmatpush.msra.mxu1 %v8640_v24  ;;  %v8646_v54 = vld [vmem:[%s13661_s10 + $0x28] sm:$0xff] }
 0x7fc   :  { %14423 = vst [vmem:[#allocation32_spill] sm:$0xff] %v8633_v41  ;;  %1780 = vmatpush.msrb.mxu0 %v8633_v41  ;;  %v14427_v12 = vld [vmem:[#allocation35_spill] sm:$0xff]  ;;  %v14433_v41 = vld [vmem:[#allocation37_spill] sm:$0xff] }
 0x7fd   :  { %1727 = vmatpush.msra.mxu2 %v14424_v5  ;;  %14425 = vst [vmem:[#allocation34_spill] sm:$0xff] %v8640_v24  ;;  %v8653_v5 = vld [vmem:[%s13661_s10] sm:$0xff]  ;;  %v8659_v24 = vld [vmem:[%s13661_s10 + $0x8] sm:$0xff] }
 0x7fe   :  { %14426 = vst [vmem:[#allocation124_spill] sm:$0xff] %v8646_v54  ;;  %1781 = vmatpush.msrb.mxu0 %v8646_v54  ;;  %1722 = vmatpush.msra.mxu1 %v8653_v5  ;;  %v8665_v54 = vld [vmem:[%s13661_s10 + $0x3e8] sm:$0xff] }
 0x7ff   :  { %1728 = vmatpush.msra.mxu2 %v14427_v12  ;;  %14428 = vst [vmem:[#allocation35_spill] sm:$0xff] %v8653_v5  ;;  %v14431_v12 = vld [vmem:[#allocation36_spill] sm:$0xff] }
 0x800   :  { %14429 = vst [vmem:[#allocation125_spill] sm:$0xff] %v8659_v24  ;;  %1782 = vmatpush.msrb.mxu0 %v8659_v24  ;;  %1787 = vmatpush.msrb.mxu1 %v8665_v54  ;;  %v8672_v5 = vld [vmem:[%s13661_s10 + $0x3c8] sm:$0xff] }
 0x801   :  { %14430 = vst [vmem:[#allocation126_spill] sm:$0xff] %v8665_v54  ;;  %1729 = vmatpush.msra.mxu2 %v14431_v12  ;;  %v8679_v24 = vld [vmem:[%s13661_s10 + $0x3a8] sm:$0xff] }
 0x802   :  { %14432 = vst [vmem:[#allocation36_spill] sm:$0xff] %v8672_v5  ;;  %1788 = vmatpush.msrb.mxu1 %v8672_v5  ;;  %v8686_v12 = vld [vmem:[%s13661_s10 + $0x388] sm:$0xff] }
 0x803   :  { %1730 = vmatpush.msra.mxu2 %v14433_v41  ;;  %14434 = vst [vmem:[#allocation37_spill] sm:$0xff] %v8679_v24  ;;  %v14437_v54 = vld [vmem:[#allocation39_spill] sm:$0xff]  ;;  %v14439_v5 = vld [vmem:[#allocation40_spill] sm:$0xff] }
 0x804   :  { %1789 = vmatpush.msrb.mxu1 %v8679_v24  ;;  %14436 = vst [vmem:[#allocation38_spill] sm:$0xff] %v8686_v12  ;;  %v8693_v41 = vld [vmem:[%s13661_s10 + $0x368] sm:$0xff]  ;;  %v14441_v24 = vld [vmem:[#allocation41_spill] sm:$0xff] }
 0x805   :  { %1731 = vmatpush.msra.mxu2 %v14435_v34  ;;  %14438 = vst [vmem:[#allocation39_spill] sm:$0xff] %v8693_v41  ;;  %v8700_v34 = vld [vmem:[%s13661_s10 + $0x348] sm:$0xff] }
 0x806   :  { %1790 = vmatpush.msrb.mxu1 %v8686_v12  ;;  %14440 = vst [vmem:[#allocation40_spill] sm:$0xff] %v8700_v34  ;;  %v14443_v12 = vld [vmem:[#allocation42_spill] sm:$0xff] }
 0x807   :  { %1732 = vmatpush.msra.mxu2 %v14437_v54  ;;  %v8707_v54 = vld [vmem:[%s13661_s10 + $0x328] sm:$0xff] }
 0x808   :  { %1791 = vmatpush.msrb.mxu1 %v8693_v41  ;;  %14442 = vst [vmem:[#allocation41_spill] sm:$0xff] %v8707_v54  ;;  %v14445_v41 = vld [vmem:[#allocation43_spill] sm:$0xff] }
 0x809   :  { %1733 = vmatpush.msra.mxu2 %v14439_v5  ;;  %v8714_v5 = vld [vmem:[%s13661_s10 + $0x308] sm:$0xff] }
 0x80a   :  { %1792 = vmatpush.msrb.mxu1 %v8700_v34  ;;  %14444 = vst [vmem:[#allocation42_spill] sm:$0xff] %v8714_v5  ;;  %v14447_v34 = vld [vmem:[#allocation45_spill] sm:$0xff] }
 0x80b   :  { %1734 = vmatpush.msra.mxu2 %v14441_v24  ;;  %v8721_v24 = vld [vmem:[%s13661_s10 + $0x2e8] sm:$0xff] }
 0x80c   :  { %1793 = vmatpush.msrb.mxu1 %v8707_v54  ;;  %14446 = vst [vmem:[#allocation43_spill] sm:$0xff] %v8721_v24  ;;  %v14449_v54 = vld [vmem:[#allocation46_spill] sm:$0xff] }
 0x80d   :  { %1735 = vmatpush.msra.mxu2 %v14443_v12  ;;  %v8728_v12 = vld [vmem:[%s13661_s10 + $0x2c8] sm:$0xff] }
 0x80e   :  { %1794 = vmatpush.msrb.mxu1 %v8714_v5  ;;  %14448 = vst [vmem:[#allocation45_spill] sm:$0xff] %v8728_v12  ;;  %v14451_v5 = vld [vmem:[#allocation47_spill] sm:$0xff] }
 0x80f   :  { %1736 = vmatpush.msra.mxu2 %v14445_v41  ;;  %v8735_v41 = vld [vmem:[%s13661_s10 + $0x2a8] sm:$0xff] }
 0x810   :  { %1795 = vmatpush.msrb.mxu1 %v8721_v24  ;;  %14450 = vst [vmem:[#allocation46_spill] sm:$0xff] %v8735_v41  ;;  %v14453_v24 = vld [vmem:[#allocation48_spill] sm:$0xff] }
 0x811   :  { %1737 = vmatpush.msra.mxu2 %v14447_v34  ;;  %v8742_v34 = vld [vmem:[%s13661_s10 + $0x288] sm:$0xff] }
 0x812   :  { %1796 = vmatpush.msrb.mxu1 %v8728_v12  ;;  %14452 = vst [vmem:[#allocation47_spill] sm:$0xff] %v8742_v34  ;;  %v14455_v12 = vld [vmem:[#allocation49_spill] sm:$0xff] }
 0x813   :  { %1738 = vmatpush.msra.mxu2 %v14449_v54  ;;  %v8749_v54 = vld [vmem:[%s13661_s10 + $0x268] sm:$0xff] }
 0x814   :  { %1797 = vmatpush.msrb.mxu1 %v8735_v41  ;;  %14454 = vst [vmem:[#allocation48_spill] sm:$0xff] %v8749_v54  ;;  %v14457_v41 = vld [vmem:[#allocation50_spill] sm:$0xff] }
 0x815   :  { %1739 = vmatpush.msra.mxu2 %v14451_v5  ;;  %v8756_v5 = vld [vmem:[%s13661_s10 + $0x248] sm:$0xff] }
 0x816   :  { %1798 = vmatpush.msrb.mxu1 %v8742_v34  ;;  %14456 = vst [vmem:[#allocation49_spill] sm:$0xff] %v8756_v5 }
 0x817   :  { %1740 = vmatpush.msra.mxu2 %v14453_v24  ;;  %v8763_v24 = vld [vmem:[%s13661_s10 + $0x228] sm:$0xff] }
 0x818   :  { %1799 = vmatpush.msrb.mxu1 %v8749_v54  ;;  %14458 = vst [vmem:[#allocation50_spill] sm:$0xff] %v8763_v24  ;;  %v1199_v54 = vpop.f32.mrf.mxu3 }
 0x819   :  { %1741 = vmatpush.msra.mxu2 %v14455_v12  ;;  %v8769_v12 = vld [vmem:[%s13661_s10 + $0x208] sm:$0xff] }
 0x81a   :  { %1800 = vmatpush.msrb.mxu1 %v8756_v5  ;;  %14459 = vst [vmem:[#allocation127_spill] sm:$0xff] %v8769_v12 }
 0x81b   :  { %1742 = vmatpush.msra.mxu2 %v14457_v41  ;;  %v1219_v41 = vpop.f32.mrf.mxu0 }
 0x81c   :  { %1801 = vmatpush.msrb.mxu1 %v8763_v24 }
 0x81e   :  { %1802 = vmatpush.msrb.mxu1 %v8769_v12 }
 0x820   :  { %v1279_v18 = vpop.f32.mrf.mxu3 }
 0x839   :  { %v1239_v7 = vpop.f32.mrf.mxu1 }
 0x83a   :  { %v1240_v4 = vadd.f32 %v1239_v7, %v14461_v44  ;;  %v1299_v50 = vpop.f32.mrf.mxu0 }
 0x83f   :  { %v1179_v34 = vpop.f32.mrf.mxu2 }
 0x840   :  { %v1180_v5 = vadd.f32 %v1179_v34, %v14460_v28 }
 0x841   :  { %v1359_v58 = vpop.f32.mrf.mxu3 }
 0x842   :  { %v1200_v11 = vadd.f32 %v1199_v54, %v1180_v5  ;;  %v1319_v34 = vpop.f32.mrf.mxu1  ;;  %v14462_v5 = vld [vmem:[#allocation26_spill] sm:$0xff] }
 0x843   :  { %v1360_v28 = vadd.f32 %v1359_v58, %v14462_v5 }
 0x844   :  { %v1220_v36 = vadd.f32 %v1219_v41, %v1200_v11  ;;  %v1379_v41 = vpop.f32.mrf.mxu0 }
 0x846   :  { %v4808_v39 = vmul.f32 -1.442695, %v1220_v36 }
 0x847   :  { %v1259_v63 = vpop.f32.mrf.mxu2 }
 0x848   :  { %4893 = vpow2.f32 %v4808_v39  ;;  %v1260_v24 = vadd.f32 %v1259_v63, %v1240_v4  ;;  %v1380_v39 = vadd.f32 %v1379_v41, %v1360_v28 }
 0x84a   :  { %v1280_v55 = vadd.f32 %v1279_v18, %v1260_v24  ;;  %v14463_v24 = vld [vmem:[#allocation28_spill] sm:$0xff] }
 0x84c   :  { %v4809_v52 = vmul.f32 -1.442695, %v1280_v55  ;;  %v1300_v55 = vadd.f32 %v1299_v50, %v14463_v24 }
 0x84e   :  { %v4894_v27 = vpop.eup %4893  ;;  %4895 = vpow2.f32 %v4809_v52 }
 0x84f   :  { %v1405_v12 = vadd.f32 1.0, %v4894_v27  ;;  %v1320_v27 = vadd.f32 %v1319_v34, %v1300_v55  ;;  %v14466_v55 = vld [vmem:[#allocation44_spill] sm:$0xff] }
 0x851   :  { %4897 = vrcp.f32 %v1405_v12  ;;  %vm1411_vm4 = vweird.f32 %v1405_v12  ;;  %v1417_v28 = vand.u32 2147483648, %v1405_v12  ;;  %v1415_v34 = vand.u32 2147483647, %v1405_v12 }
 0x853   :  { %vm1416_vm10 = vcmp.eq.f32.partialorder %v1415_v34, 8.507059e+37 }
 0x854   :  { %v4896_v54 = vpop.eup %4895 }
 0x855   :  { %v1424_v11 = vadd.f32 1.0, %v4896_v54 }
 0x857   :  { %v4898_v7 = vpop.eup %4897  ;;  %4899 = vrcp.f32 %v1424_v11  ;;  %v1434_v54 = vand.u32 2147483647, %v1424_v11  ;;  %v1436_v5 = vand.u32 2147483648, %v1424_v11  ;;  %vm1430_vm6 = vweird.f32 %v1424_v11 }
 0x858   :  { %v1407_v36 = vmul.f32 %v4898_v7, %v1405_v12  ;;  %vm1412_vm15 = vweird.f32 %v4898_v7 }
 0x859   :  { %vm8776_vm5 = vmor %vm1411_vm4, %vm1412_vm15  ;;  %vm1435_vm9 = vcmp.eq.f32.partialorder %v1434_v54, 8.507059e+37 }
 0x85a   :  { %v1399_v63 = vpop.f32.mrf.mxu1  ;;  %v1408_v4 = vsub.f32 1.0, %v1407_v36 }
 0x85b   :  { %v1400_v18 = vadd.f32 %v1399_v63, %v1380_v39 }
 0x85c   :  { %v1409_v31 = vmul.f32 %v4898_v7, %v1408_v4 }
 0x85d   :  { %v4900_v44 = vpop.eup %4899  ;;  %v4810_v52 = vmul.f32 -1.442695, %v1400_v18 }
 0x85e   :  { %v1426_v59 = vmul.f32 %v4900_v44, %v1424_v11  ;;  %v1410_v20 = vadd.f32 %v4898_v7, %v1409_v31  ;;  %vm1431_vm0 = vweird.f32 %v4900_v44  ;;  %v1418_v31 = vor.u32 1.1754944e-38, %v1417_v28 }
 0x85f   :  { %4901 = vpow2.f32 %v4810_v52  ;;  %v1339_v15 = vpop.f32.mrf.mxu2  ;;  %vm1432_vm8 = vmor %vm1430_vm6, %vm1431_vm0 }
 0x860   :  { %v1427_v26 = vsub.f32 1.0, %v1426_v59  ;;  %v1340_v58 = vadd.f32 %v1339_v15, %v1320_v27  ;;  %v1437_v59 = vor.u32 1.1754944e-38, %v1436_v5  ;;  %v1414_v39 = vsel %vm8776_vm5, %v4898_v7, %v1410_v20 }
 0x861   :  { %v1419_v18 = vsel %vm1416_vm10, %v1418_v31, %v1414_v39  ;;  %v8811_v39 = vld [vmem:[%s13661_s10 + $0x3d0] sm:$0xff] }
 0x862   :  { %v1428_v57 = vmul.f32 %v4900_v44, %v1427_v26  ;;  %4903 = vtanh.f32 %v1340_v58  ;;  %14471 = vst [vmem:[#allocation131_spill] sm:$0xff] %v8811_v39  ;;  %v8823_v31 = vld [vmem:[%s13661_s10 + $0x3b0] sm:$0xff] }
 0x863   :  { %14473 = vst [vmem:[#allocation133_spill] sm:$0xff] %v8823_v31 }
 0x864   :  { %v1429_v41 = vadd.f32 %v4900_v44, %v1428_v57 }
 0x865   :  { %v4902_v36 = vpop.eup %4901 }
 0x866   :  { %v1444_v15 = vadd.f32 1.0, %v4902_v36  ;;  %v1433_v26 = vsel %vm1432_vm8, %v4900_v44, %v1429_v41  ;;  %v8793_v36 = vld [vmem:[%s13661_s10 + $0x5e8] sm:$0xff] }
 0x867   :  { %v1438_v63 = vsel %vm1435_vm9, %v1437_v59, %v1433_v26  ;;  %14468 = vst [vmem:[#allocation128_spill] sm:$0xff] %v8793_v36  ;;  %v8799_v59 = vld [vmem:[%s13661_s10 + $0x3f0] sm:$0xff]  ;;  %v8817_v26 = vld [vmem:[%s13661_s10 + $0x5a8] sm:$0xff] }
 0x868   :  { %v4904_v4 = vpop.eup %4903  ;;  %4905 = vrcp.f32 %v1444_v15  ;;  %v1460_v52 = vmul.f32 %v1438_v63, %v14466_v55  ;;  %v1456_v58 = vand.u32 2147483648, %v1444_v15  ;;  %v1454_v44 = vand.u32 2147483647, %v1444_v15  ;;  %14469 = vst [vmem:[#allocation129_spill] sm:$0xff] %v8799_v59  ;;  %v8829_v63 = vld [vmem:[%s13661_s10 + $0x588] sm:$0xff]  ;;  %v8847_v55 = vld [vmem:[%s13661_s10 + $0x370] sm:$0xff] }
 0x869   :  { %v1461_v12 = vmul.f32 %v4904_v4, %v1419_v18  ;;  %vm1450_vm12 = vweird.f32 %v1444_v15  ;;  %14472 = vst [vmem:[#allocation132_spill] sm:$0xff] %v8817_v26  ;;  %v8835_v4 = vld [vmem:[%s13661_s10 + $0x390] sm:$0xff]  ;;  %v8841_v18 = vld [vmem:[%s13661_s10 + $0x568] sm:$0xff] }
 0x86a   :  { %v1457_v54 = vor.u32 1.1754944e-38, %v1456_v58  ;;  %vm1455_vm14 = vcmp.eq.f32.partialorder %v1454_v44, 8.507059e+37  ;;  %14474 = vst [vmem:[#allocation134_spill] sm:$0xff] %v8829_v63  ;;  %v8883_v58 = vld [vmem:[%s13661_s10 + $0x310] sm:$0xff] }
 0x86b   :  { %v8783_v11 = vadd.f32 %v1461_v12, %v1460_v52  ;;  %14475 = vst [vmem:[#allocation135_spill] sm:$0xff] %v8835_v4  ;;  %v8853_v52 = vld [vmem:[%s13661_s10 + $0x548] sm:$0xff]  ;;  %v8859_v12 = vld [vmem:[%s13661_s10 + $0x350] sm:$0xff] }
 0x86c   :  { %14476 = vst [vmem:[#allocation136_spill] sm:$0xff] %v8841_v18  ;;  %v8895_v44 = vld [vmem:[%s13661_s10 + $0x2f0] sm:$0xff] }
 0x86d   :  { %14467 = vst [vmem:[#allocation44_spill] sm:$0xff] %v8783_v11  ;;  %4907 = vtanh.f32 %v8783_v11 }
 0x86e   :  { %v4906_v57 = vpop.eup %4905  ;;  %14477 = vst [vmem:[#allocation137_spill] sm:$0xff] %v8847_v55 }
 0x86f   :  { %v1446_v27 = vmul.f32 %v4906_v57, %v1444_v15  ;;  %vm1451_vm11 = vweird.f32 %v4906_v57  ;;  %v8805_v15 = vld [vmem:[%s13661_s10 + $0x5c8] sm:$0xff]  ;;  %14478 = vst [vmem:[#allocation138_spill] sm:$0xff] %v8853_v52 }
 0x870   :  { %vm1452_vm13 = vmor %vm1450_vm12, %vm1451_vm11  ;;  %14470 = vst [vmem:[#allocation130_spill] sm:$0xff] %v8805_v15 }
 0x871   :  { %v1447_v5 = vsub.f32 1.0, %v1446_v27  ;;  %14479 = vst [vmem:[#allocation139_spill] sm:$0xff] %v8859_v12  ;;  %v8871_v27 = vld [vmem:[%s13661_s10 + $0x330] sm:$0xff] }
 0x872   :  { %14481 = vst [vmem:[#allocation141_spill] sm:$0xff] %v8871_v27 }
 0x873   :  { %v1448_v20 = vmul.f32 %v4906_v57, %v1447_v5  ;;  %v4908_v50 = vpop.eup %4907  ;;  %v8877_v5 = vld [vmem:[%s13661_s10 + $0x508] sm:$0xff]  ;;  %14483 = vst [vmem:[#allocation143_spill] sm:$0xff] %v8883_v58 }
 0x874   :  { %14482 = vst [vmem:[#allocation142_spill] sm:$0xff] %v8877_v5 }
 0x875   :  { %v1449_v7 = vadd.f32 %v4906_v57, %v1448_v20  ;;  %v8889_v20 = vld [vmem:[%s13661_s10 + $0x4e8] sm:$0xff]  ;;  %14485 = vst [vmem:[#allocation145_spill] sm:$0xff] %v8895_v44 }
 0x876   :  { %14484 = vst [vmem:[#allocation144_spill] sm:$0xff] %v8889_v20 }
 0x877   :  { %v1453_v28 = vsel %vm1452_vm13, %v4906_v57, %v1449_v7  ;;  %v8865_v57 = vld [vmem:[%s13661_s10 + $0x528] sm:$0xff] }
 0x878   :  { %v1458_v34 = vsel %vm1455_vm14, %v1457_v54, %v1453_v28  ;;  %14480 = vst [vmem:[#allocation140_spill] sm:$0xff] %v8865_v57  ;;  %v8901_v7 = vld [vmem:[%s13661_s10 + $0x4c8] sm:$0xff]  ;;  %v8907_v54 = vld [vmem:[%s13661_s10 + $0x2d0] sm:$0xff] }
 0x879   :  { %v8786_v41 = vmul.f32 %v4908_v50, %v1458_v34  ;;  %14486 = vst [vmem:[#allocation146_spill] sm:$0xff] %v8901_v7  ;;  %v8913_v28 = vld [vmem:[%s13661_s10 + $0x4a8] sm:$0xff]  ;;  %v8919_v50 = vld [vmem:[%s13661_s10 + $0x2b0] sm:$0xff] }
 0x87a   :  { %14487 = vst [vmem:[#allocation147_spill] sm:$0xff] %v8907_v54  ;;  %v8925_v34 = vld [vmem:[%s13661_s10 + $0x488] sm:$0xff] }
 0x87b   :  { %1481 = vmatmul.f32.vlgmr.msrb.gmra.mxu2 %v8786_v41  ;;  %1549 = vmatmul.f32.vlgmr.msra.gmra.mxu0 %v8786_v41  ;;  %14488 = vst [vmem:[#allocation148_spill] sm:$0xff] %v8913_v28 }
 0x87c   :  { %1807 = vmatpush.msrb.mxu2 %v8793_v36  ;;  %1847 = vmatpush.msra.mxu0 %v8799_v59  ;;  %14489 = vst [vmem:[#allocation149_spill] sm:$0xff] %v8919_v50 }
 0x87d   :  { %14490 = vst [vmem:[#allocation150_spill] sm:$0xff] %v8925_v34 }
 0x87e   :  { %1808 = vmatpush.msrb.mxu2 %v8805_v15  ;;  %1848 = vmatpush.msra.mxu0 %v8811_v39 }
 0x880   :  { %1809 = vmatpush.msrb.mxu2 %v8817_v26  ;;  %1849 = vmatpush.msra.mxu0 %v8823_v31  ;;  %v14508_v31 = vld [vmem:[#allocation10_spill] sm:$0xff] }
 0x882   :  { %1810 = vmatpush.msrb.mxu2 %v8829_v63  ;;  %1850 = vmatpush.msra.mxu0 %v8835_v4 }
 0x884   :  { %1811 = vmatpush.msrb.mxu2 %v8841_v18  ;;  %1851 = vmatpush.msra.mxu0 %v8847_v55 }
 0x886   :  { %1812 = vmatpush.msrb.mxu2 %v8853_v52  ;;  %1852 = vmatpush.msra.mxu0 %v8859_v12 }
 0x888   :  { %1813 = vmatpush.msrb.mxu2 %v8865_v57  ;;  %1853 = vmatpush.msra.mxu0 %v8871_v27 }
 0x88a   :  { %1814 = vmatpush.msrb.mxu2 %v8877_v5  ;;  %1854 = vmatpush.msra.mxu0 %v8883_v58 }
 0x88c   :  { %1815 = vmatpush.msrb.mxu2 %v8889_v20  ;;  %1855 = vmatpush.msra.mxu0 %v8895_v44 }
 0x88e   :  { %1816 = vmatpush.msrb.mxu2 %v8901_v7  ;;  %1856 = vmatpush.msra.mxu0 %v8907_v54  ;;  %v8931_v54 = vld [vmem:[%s13661_s10 + $0x290] sm:$0xff]  ;;  %v8985_v7 = vld [vmem:[%s13656_s5] ss:$0 sm:$0xff] }
 0x88f   :  { %14491 = vst [vmem:[#allocation151_spill] sm:$0xff] %v8931_v54 }
 0x890   :  { %1817 = vmatpush.msrb.mxu2 %v8913_v28  ;;  %1857 = vmatpush.msra.mxu0 %v8919_v50  ;;  %v8937_v28 = vld [vmem:[%s13661_s10 + $0x468] sm:$0xff]  ;;  %v8943_v50 = vld [vmem:[%s13661_s10 + $0x270] sm:$0xff]  ;;  %14500 = vst [vmem:[#allocation160_spill] sm:$0xff] %v8985_v7 }
 0x891   :  { %14492 = vst [vmem:[#allocation152_spill] sm:$0xff] %v8937_v28 }
 0x892   :  { %1818 = vmatpush.msrb.mxu2 %v8925_v34  ;;  %1858 = vmatpush.msra.mxu0 %v8931_v54  ;;  %14493 = vst [vmem:[#allocation153_spill] sm:$0xff] %v8943_v50  ;;  %v8949_v34 = vld [vmem:[%s13661_s10 + $0x448] sm:$0xff]  ;;  %v8955_v54 = vld [vmem:[%s13661_s10 + $0x250] sm:$0xff] }
 0x893   :  { %14494 = vst [vmem:[#allocation154_spill] sm:$0xff] %v8949_v34 }
 0x894   :  { %1819 = vmatpush.msrb.mxu2 %v8937_v28  ;;  %1859 = vmatpush.msra.mxu0 %v8943_v50  ;;  %14495 = vst [vmem:[#allocation155_spill] sm:$0xff] %v8955_v54  ;;  %v8961_v28 = vld [vmem:[%s13661_s10 + $0x428] sm:$0xff]  ;;  %v8967_v50 = vld [vmem:[%s13661_s10 + $0x230] sm:$0xff] }
 0x895   :  { %14496 = vst [vmem:[#allocation156_spill] sm:$0xff] %v8961_v28 }
 0x896   :  { %1820 = vmatpush.msrb.mxu2 %v8949_v34  ;;  %1860 = vmatpush.msra.mxu0 %v8955_v54  ;;  %14497 = vst [vmem:[#allocation157_spill] sm:$0xff] %v8967_v50  ;;  %v8973_v34 = vld [vmem:[%s13661_s10 + $0x408] sm:$0xff]  ;;  %v8979_v54 = vld [vmem:[%s13661_s10 + $0x210] sm:$0xff] }
 0x897   :  { %14498 = vst [vmem:[#allocation158_spill] sm:$0xff] %v8973_v34 }
 0x898   :  { %1821 = vmatpush.msrb.mxu2 %v8961_v28  ;;  %1861 = vmatpush.msra.mxu0 %v8967_v50  ;;  %14499 = vst [vmem:[#allocation159_spill] sm:$0xff] %v8979_v54 }
 0x89a   :  { %1822 = vmatpush.msrb.mxu2 %v8973_v34  ;;  %1862 = vmatpush.msra.mxu0 %v8979_v54  ;;  %v8991_v34 = vld [vmem:[%s13652_s1 + $0x8] sm:$0xff]  ;;  %v8997_v54 = vld [vmem:[%s13652_s1] sm:$0xff] }
 0x89b   :  { %14501 = vst [vmem:[#allocation161_spill] sm:$0xff] %v8991_v34 }
 0x89c   :  { %14502 = vst [vmem:[#allocation162_spill] sm:$0xff] %v8997_v54 }
 0x8f8   :  { %v1550_v28 = vpop.f32.mrf.mxu0 }
 0x8f9   :  { %v1551_v50 = vadd.f32 %v8985_v7, %v1550_v28  ;;  %v9003_v28 = vld [vmem:[%s13664_s13] ss:$0 sm:$0xff] }
 0x8fa   :  { %14503 = vst [vmem:[#allocation163_spill] sm:$0xff] %v9003_v28 }
 0x8fb   :  { %v1554_v44 = vrot.slane %v1551_v50, 1  ;;  %v1555_v20 = vperm.slane %v1551_v50, 0 }
 0x8fd   :  { %v1556_v58 = vperm.slane %v1554_v44, 0  ;;  %v1560_v5 = vadd.f32 %v8991_v34, %v1555_v20  ;;  %v1559_v27 = vadd.f32 %v8997_v54, %v1555_v20  ;;  %v9009_v34 = vld [vmem:[%s13652_s1 + $0x10] sm:$0xff]  ;;  %v9016_v54 = vld [vmem:[%s13657_s6] ss:$0 sm:$0xff] }
 0x8fe   :  { %v1482_v57 = vpop.f32.mrf.mxu2  ;;  %14504 = vst [vmem:[#allocation164_spill] sm:$0xff] %v9009_v34 }
 0x8ff   :  { %v1483_v44 = vadd.f32 %v9003_v28, %v1482_v57  ;;  %v1564_v50 = vmax.f32 %v1560_v5, 0.0  ;;  %v1563_v7 = vmax.f32 %v1559_v27, 0.0  ;;  %v1561_v12 = vadd.f32 %v9009_v34, %v1556_v58  ;;  %14505 = vst [vmem:[#allocation165_spill] sm:$0xff] %v9016_v54  ;;  %v9024_v28 = vld [vmem:[%s13652_s1 + $0x18] sm:$0xff] }
 0x900   :  { %14506 = vst [vmem:[#allocation166_spill] sm:$0xff] %v9024_v28  ;;  %v1562_v55 = vadd.f32 %v9024_v28, %v1556_v58 }
 0x901   :  { %v1486_v52 = vrot.slane %v1483_v44, 1  ;;  %1488 = vst [vmem:[#allocation3 + $0x1] sm:$0x1] %v1483_v44  ;;  %v1490_v20 = vsel %vm944_vm7, %v1483_v44, -inf  ;;  %v1568_v57 = vmul.f32 %v9016_v54, %v1564_v50  ;;  %v1567_v27 = vmul.f32 %v9016_v54, %v1563_v7 }
 0x902   :  { %1491 = vmax.xlane.f32.xlu2 %v1490_v20  ;;  %v1565_v5 = vmax.f32 %v1561_v12, 0.0  ;;  %v1566_v18 = vmax.f32 %v1562_v55, 0.0  ;;  %v14507_v20 = vld [vmem:[#allocation9_spill] sm:$0xff] }
 0x903   :  { %1489 = vst [vmem:[#allocation3 + $0x9] sm:$0x1] %v1486_v52  ;;  %1573 = vadd.xlane.f32.xlu0 %v1568_v57  ;;  %1571 = vadd.xlane.f32.xlu1 %v1567_v27 }
 0x904   :  { %v1569_v34 = vmul.f32 %v9016_v54, %v1565_v5  ;;  %v1570_v50 = vmul.f32 %v9016_v54, %v1566_v18 }
 0x90b   :  { %1575 = vadd.xlane.f32.xlu0 %v1569_v34  ;;  %v14509_v34 = vld [vmem:[#allocation11_spill] sm:$0xff] }
 0x913   :  { %1577 = vadd.xlane.f32.xlu0 %v1570_v50 }
 0x975   :  { %v1492_v7 = vpop.xlane.xlu2 %1491 }
 0x976   :  { %vm1493_vm15 = vcmp.eq.f32.partialorder %v1483_v44, %v1492_v7  ;;  %v1574_v52 = vpop.xlane.xlu0 %1573  ;;  %v1572_v63 = vpop.xlane.xlu1 %1571 }
 0x977   :  { %v1494_v57 = vsel %vm1493_vm15, %v14507_v20, 128  ;;  %v1580_v26 = vadd.f32 %v1574_v52, %v14508_v31  ;;  %v1579_v58 = vadd.f32 %v1572_v63, %v14508_v31 }
 0x978   :  { %v1495_v12 = vsel %vm944_vm7, %v1494_v57, 2147483647 }
 0x979   :  { %v1497_v27 = vshra.s32 %v1495_v12, 16  ;;  %v1588_v50 = vperm.slane %v1580_v26, %v14509_v34  ;;  %v1587_v44 = vperm.slane %v1579_v58, %v14507_v20 }
 0x97b   :  { %v1499_v5 = vcvt.s32.f32 %v1497_v27  ;;  %v1589_v28 = vsel %vm484_vm2, %v1588_v50, %v1587_v44 }
 0x97d   :  { %1500 = vmin.xlane.f32.xlu2 %v1499_v5 }
 0x97e   :  { %v1576_v4 = vpop.xlane.xlu0 %1575 }
 0x97f   :  { %v1581_v55 = vadd.f32 %v1576_v4, %v14508_v31  ;;  %v1496_v4 = vand.u32 65535, %v1495_v12 }
 0x981   :  { %v1590_v57 = vperm.slane %v1581_v55, %v14507_v20  ;;  %v1498_v15 = vcvt.s32.f32 %v1496_v4  ;;  %v14517_v4 = vld [vmem:[#allocation18_spill] sm:$0xff] }
 0x986   :  { %v1578_v18 = vpop.xlane.xlu0 %1577 }
 0x987   :  { %v1582_v7 = vadd.f32 %v1578_v18, %v14508_v31 }
 0x989   :  { %v1591_v27 = vperm.slane %v1582_v7, %v14509_v34 }
 0x98b   :  { %v1592_v54 = vsel %vm484_vm2, %v1591_v27, %v1590_v57 }
 0x98c   :  { %v1593_v52 = vsel %vm371_vm1, %v1592_v54, %v1589_v28 }
 0x98d   :  { %v1595_v63 = vsel %vm491_vm3, %v1593_v52, -inf  ;;  %v14515_v52 = vld [vmem:[#allocation16_spill] sm:$0xff] }
 0x98e   :  { %1596 = vmax.xlane.f32.xlu1 %v1595_v63  ;;  %v14516_v63 = vld [vmem:[#allocation17_spill] sm:$0xff] }
 0x9f0   :  { %v1501_v39 = vpop.xlane.xlu2 %1500 }
 0x9f1   :  { %vm1502_vm0 = vcmp.eq.f32.partialorder %v1499_v5, %v1501_v39  ;;  %v14511_v5 = vld [vmem:[#allocation12_spill] sm:$0xff] }
 0x9f2   :  { %v1503_v59 = vsel %vm1502_vm0, %v1498_v15, inf }
 0x9f3   :  { %1504 = vmin.xlane.f32.xlu0 %v1503_v59 }
 0xa01   :  { %v1597_v18 = vpop.xlane.xlu1 %1596 }
 0xa02   :  { %v1599_v31 = vperm.slane %v1597_v18, 0  ;;  %v1600_v36 = vperm.slane %v1597_v18, 1  ;;  %v14518_v18 = vld [vmem:[#allocation19_spill] sm:$0xff] }
 0xa04   :  { %v1603_v11 = vsub.f32 %v1579_v58, %v1599_v31  ;;  %v1604_v24 = vsub.f32 %v1580_v26, %v1599_v31  ;;  %v1605_v33 = vsub.f32 %v1581_v55, %v1600_v36  ;;  %v1606_v27 = vsub.f32 %v1582_v7, %v1600_v36  ;;  %v14512_v58 = vld [vmem:[#allocation13_spill] sm:$0xff]  ;;  %v14513_v55 = vld [vmem:[#allocation14_spill] sm:$0xff]  ;;  %v14514_v7 = vld [vmem:[#allocation15_spill] sm:$0xff] }
 0xa05   :  { %v14510_v31 = vmov 1.0  }
 0xa06   :  { %v1607_v50 = vmul.f32 1.442695, %v1603_v11  ;;  %v1609_v44 = vmul.f32 1.442695, %v1604_v24  ;;  %v1611_v57 = vmul.f32 1.442695, %v1605_v33  ;;  %v1507_v33 = vcvt.f32.s32 %v1501_v39 }
 0xa07   :  { %v1613_v54 = vmul.f32 1.442695, %v1606_v27  ;;  %v14521_v27 = vld [vmem:[#allocation23_spill] sm:$0xff] }
 0xa08   :  { %4909 = vpow2.f32 %v1607_v50  ;;  %v1508_v36 = vshll.u32 %v1507_v33, 16  ;;  %v14519_v50 = vld [vmem:[#allocation20_spill] sm:$0xff] }
 0xa09   :  { %4911 = vpow2.f32 %v1609_v44  ;;  %v14520_v44 = vld [vmem:[#allocation21_spill] sm:$0xff] }
 0xa0a   :  { %4913 = vpow2.f32 %v1611_v57 }
 0xa0b   :  { %4915 = vpow2.f32 %v1613_v54 }
 0xa0e   :  { %v9042_v28 = vpop.eup %4909 }
 0xa0f   :  { %v9044_v12 = vpop.eup %4911  ;;  %1620 = vperm.xlu2 %4848, %v9042_v28  }
 0xa10   :  { %v9047_v59 = vpop.eup %4913  ;;  %1623 = vperm.xlu1 %4850, %v9044_v12  }
 0xa11   :  { %1626 = vperm.xlu0 %4849, %v9047_v59   ;;  %v9051_v24 = vpop.eup %4915 }
 0xa17   :  { %1629 = vperm.xlu2 %4848, %v9051_v24  }
 0xa66   :  { %v1505_v11 = vpop.xlane.xlu0 %1504 }
 0xa67   :  { %v1506_v15 = vcvt.f32.s32 %v1505_v11 }
 0xa69   :  { %v1509_v26 = vadd.s32 %v1508_v36, %v1506_v15  ;;  %v1621_v39 = vpop.permute.xlu2 %1620  ;;  %v14522_v15 = vld [vmem:[#allocation25_spill] sm:$0xff] }
 0xa6a   :  { %v1631_v33 = vperm.slane %v1621_v39, %v14507_v20 }
 0xa6b   :  { %vm1510_vm4 = vcmp.eq.s32.totalorder %v14507_v20, %v1509_v26 }
 0xa6c   :  { %4812 = vmatmul.msk.f32.vlgmr.msrb.gmra.mxu3 %vm1510_vm4, %v14510_v31 }
 0xa6d   :  { %1827 = vmatpush.msrb.mxu3 %v14511_v5 }
 0xa6f   :  { %1828 = vmatpush.msrb.mxu3 %v14512_v58 }
 0xa71   :  { %1829 = vmatpush.msrb.mxu3 %v14513_v55  ;;  %v1630_v57 = vpop.permute.xlu2 %1629  ;;  %v14523_v55 = vld [vmem:[#allocation27_spill] sm:$0xff] }
 0xa72   :  { %v1635_v26 = vperm.slane %v1630_v57, %v14509_v34  ;;  %v14529_v57 = vld [vmem:[#allocation53_spill] sm:$0xff] }
 0xa73   :  { %1830 = vmatpush.msrb.mxu3 %v14514_v7 }
 0xa74   :  { %1763 = vmatmul.f32.vlgmr.msra.gmra.mxu3 %v8786_v41 }
 0xa75   :  { %1831 = vmatpush.msrb.mxu3 %v14515_v52 }
 0xa77   :  { %1832 = vmatpush.msrb.mxu3 %v14516_v63  ;;  %v14524_v63 = vld [vmem:[#allocation29_spill] sm:$0xff] }
 0xa79   :  { %1833 = vmatpush.msrb.mxu3 %v14517_v4  ;;  %v14525_v4 = vld [vmem:[#allocation31_spill] sm:$0xff] }
 0xa7b   :  { %1834 = vmatpush.msrb.mxu3 %v14518_v18  ;;  %v14526_v18 = vld [vmem:[#allocation33_spill] sm:$0xff] }
 0xa7d   :  { %1835 = vmatpush.msrb.mxu3 %v14519_v50  ;;  %v14527_v50 = vld [vmem:[#allocation51_spill] sm:$0xff] }
 0xa7f   :  { %1836 = vmatpush.msrb.mxu3 %v14520_v44  ;;  %v14528_v44 = vld [vmem:[#allocation52_spill] sm:$0xff] }
 0xa81   :  { %1837 = vmatpush.msrb.mxu3 %v14521_v27  ;;  %v14530_v27 = vld [vmem:[#allocation54_spill] sm:$0xff] }
 0xa82   :  { %v1624_v54 = vpop.permute.xlu1 %1623 }
 0xa83   :  { %v1632_v11 = vperm.slane %v1624_v54, %v14509_v34  ;;  %v1627_v36 = vpop.permute.xlu0 %1626  ;;  %1838 = vmatpush.msrb.mxu3 %v14522_v15  ;;  %v14531_v54 = vld [vmem:[#allocation55_spill] sm:$0xff] }
 0xa84   :  { %v1634_v5 = vperm.slane %v1627_v36, %v14507_v20  ;;  %v14534_v36 = vld [vmem:[#allocation58_spill] sm:$0xff]  ;;  %v14535_v15 = vld [vmem:[#allocation59_spill] sm:$0xff] }
 0xa85   :  { %v1633_v58 = vsel %vm484_vm2, %v1632_v11, %v1631_v33  ;;  %1839 = vmatpush.msrb.mxu3 %v14523_v55  ;;  %v14532_v33 = vld [vmem:[#allocation56_spill] sm:$0xff]  ;;  %v14533_v11 = vld [vmem:[#allocation57_spill] sm:$0xff]  ;;  %v14539_v55 = vld [vmem:[#allocation63_spill] sm:$0xff] }
 0xa86   :  { %v1636_v7 = vsel %vm484_vm2, %v1635_v26, %v1634_v5  ;;  %v14536_v26 = vld [vmem:[#allocation60_spill] sm:$0xff]  ;;  %v14537_v5 = vld [vmem:[#allocation61_spill] sm:$0xff] }
 0xa87   :  { %v1637_v52 = vsel %vm371_vm1, %v1636_v7, %v1633_v58  ;;  %1840 = vmatpush.msrb.mxu3 %v14524_v63  ;;  %v14538_v58 = vld [vmem:[#allocation62_spill] sm:$0xff]  ;;  %v14540_v7 = vld [vmem:[#allocation64_spill] sm:$0xff] }
 0xa88   :  { %v1639_v39 = vsel %vm491_vm3, %v1637_v52, 0.0  ;;  %v14541_v52 = vld [vmem:[#allocation65_spill] sm:$0xff]  ;;  %v14542_v63 = vld [vmem:[#allocation66_spill] sm:$0xff] }
 0xa89   :  { %1640 = vadd.xlane.f32.xlu0 %v1639_v39  ;;  %1841 = vmatpush.msrb.mxu3 %v14525_v4  ;;  %v14543_v4 = vld [vmem:[#allocation67_spill] sm:$0xff] }
 0xa8b   :  { %1842 = vmatpush.msrb.mxu3 %v14526_v18  ;;  %v14544_v18 = vld [vmem:[#allocation68_spill] sm:$0xff] }
 0xa8d   :  { %1907 = vmatpush.msra.mxu3 %v14527_v50  ;;  %v14545_v50 = vld [vmem:[#allocation69_spill] sm:$0xff] }
 0xa8f   :  { %1908 = vmatpush.msra.mxu3 %v14528_v44  ;;  %v14546_v44 = vld [vmem:[#allocation70_spill] sm:$0xff] }
 0xa91   :  { %1909 = vmatpush.msra.mxu3 %v14529_v57  ;;  %v14547_v57 = vld [vmem:[#allocation71_spill] sm:$0xff] }
 0xa93   :  { %1910 = vmatpush.msra.mxu3 %v14530_v27  ;;  %v14548_v27 = vld [vmem:[#allocation72_spill] sm:$0xff] }
 0xa95   :  { %1911 = vmatpush.msra.mxu3 %v14531_v54 }
 0xa97   :  { %1912 = vmatpush.msra.mxu3 %v14532_v33  ;;  %v14549_v33 = vld [vmem:[#allocation73_spill] sm:$0xff] }
 0xa99   :  { %1913 = vmatpush.msra.mxu3 %v14533_v11  ;;  %v14550_v11 = vld [vmem:[#allocation74_spill] sm:$0xff] }
 0xa9b   :  { %1914 = vmatpush.msra.mxu3 %v14534_v36  ;;  %v14551_v36 = vld [vmem:[#allocation75_spill] sm:$0xff] }
 0xa9d   :  { %1915 = vmatpush.msra.mxu3 %v14535_v15 }
 0xa9f   :  { %1916 = vmatpush.msra.mxu3 %v14536_v26  ;;  %v14552_v26 = vld [vmem:[#allocation76_spill] sm:$0xff] }
 0xaa1   :  { %1917 = vmatpush.msra.mxu3 %v14537_v5 }
 0xaa3   :  { %1918 = vmatpush.msra.mxu3 %v14538_v58  ;;  %v14553_v58 = vld [vmem:[#allocation77_spill] sm:$0xff] }
 0xaa5   :  { %1919 = vmatpush.msra.mxu3 %v14539_v55 }
 0xaa7   :  { %1920 = vmatpush.msra.mxu3 %v14540_v7 }
 0xaa9   :  { %1921 = vmatpush.msra.mxu3 %v14541_v52  ;;  %v14554_v52 = vld [vmem:[#allocation78_spill] sm:$0xff] }
 0xaab   :  { %1922 = vmatpush.msra.mxu3 %v14542_v63 }
 0xaef   :  { %v9097_v39 = vpop.f32.mrf.mxu3 }
 0xaf0   :  { %1743 = vmatmul.f32.vlgmr.msra.gmra.mxu2 %v9097_v39 }
 0xaf1   :  { %1887 = vmatpush.msra.mxu2 %v14543_v4 }
 0xaf3   :  { %1888 = vmatpush.msra.mxu2 %v14544_v18  ;;  %v14555_v18 = vld [vmem:[#allocation79_spill] sm:$0xff] }
 0xaf5   :  { %1889 = vmatpush.msra.mxu2 %v14545_v50 }
 0xaf7   :  { %1890 = vmatpush.msra.mxu2 %v14546_v44 }
 0xaf8   :  { %1823 = vmatmul.f32.vlgmr.msrb.gmra.mxu2 %v8786_v41 }
 0xaf9   :  { %1891 = vmatpush.msra.mxu2 %v14547_v57  ;;  %v14556_v57 = vld [vmem:[#allocation80_spill] sm:$0xff] }
 0xafb   :  { %1892 = vmatpush.msra.mxu2 %v14548_v27 }
 0xafc   :  { %v1641_v54 = vpop.xlane.xlu0 %1640 }
 0xafd   :  { %4917 = vrcp.f32 %v1641_v54  ;;  %1893 = vmatpush.msra.mxu2 %v14549_v33  ;;  %v1653_v7 = vand.u32 2147483648, %v1641_v54  ;;  %v1651_v4 = vand.u32 2147483647, %v1641_v54  ;;  %vm1647_vm6 = vweird.f32 %v1641_v54 }
 0xaff   :  { %1894 = vmatpush.msra.mxu2 %v14550_v11  ;;  %v1654_v44 = vor.u32 1.1754944e-38, %v1653_v7  ;;  %vm1652_vm9 = vcmp.eq.f32.partialorder %v1651_v4, 8.507059e+37  ;;  %v9172_v7 = vld [vmem:[%s13654_s3 + $0x38] sm:$0xff]  ;;  %v9190_v4 = vld [vmem:[%s13654_s3 + $0x20] sm:$0xff] }
 0xb00   :  { %14560 = vst [vmem:[#allocation13_spill] sm:$0xff] %v9172_v7 }
 0xb01   :  { %1895 = vmatpush.msra.mxu2 %v14551_v36  ;;  %14563 = vst [vmem:[#allocation16_spill] sm:$0xff] %v9190_v4 }
 0xb03   :  { %v4918_v15 = vpop.eup %4917  ;;  %1896 = vmatpush.msra.mxu2 %v14552_v26 }
 0xb04   :  { %v1643_v5 = vmul.f32 %v4918_v15, %v1641_v54  ;;  %vm1648_vm5 = vweird.f32 %v4918_v15  ;;  %v9122_v54 = vld [vmem:[%s13654_s3 + $0x78] sm:$0xff] }
 0xb05   :  { %1897 = vmatpush.msra.mxu2 %v14553_v58  ;;  %vm1649_vm8 = vmor %vm1647_vm6, %vm1648_vm5  ;;  %v9148_v58 = vld [vmem:[%s13654_s3 + $0x58] sm:$0xff] }
 0xb06   :  { %v1644_v55 = vsub.f32 1.0, %v1643_v5 }
 0xb07   :  { %1898 = vmatpush.msra.mxu2 %v14554_v52  ;;  %v9178_v52 = vld [vmem:[%s13654_s3 + $0x30] sm:$0xff] }
 0xb08   :  { %v1645_v63 = vmul.f32 %v4918_v15, %v1644_v55  ;;  %v9154_v55 = vld [vmem:[%s13654_s3 + $0x50] sm:$0xff]  ;;  %14561 = vst [vmem:[#allocation14_spill] sm:$0xff] %v9178_v52 }
 0xb09   :  { %1899 = vmatpush.msra.mxu2 %v14555_v18  ;;  %14557 = vst [vmem:[#allocation9_spill] sm:$0xff] %v9154_v55  ;;  %v9196_v18 = vld [vmem:[%s13654_s3 + $0x18] sm:$0xff] }
 0xb0a   :  { %v1646_v50 = vadd.f32 %v4918_v15, %v1645_v63  ;;  %v9184_v63 = vld [vmem:[%s13654_s3 + $0x28] sm:$0xff]  ;;  %14564 = vst [vmem:[#allocation17_spill] sm:$0xff] %v9196_v18 }
 0xb0b   :  { %1900 = vmatpush.msra.mxu2 %v14556_v57  ;;  %14562 = vst [vmem:[#allocation15_spill] sm:$0xff] %v9184_v63  ;;  %v9214_v57 = vld [vmem:[%s13654_s3] sm:$0xff] }
 0xb0c   :  { %v1650_v27 = vsel %vm1649_vm8, %v4918_v15, %v1646_v50  ;;  %v9202_v50 = vld [vmem:[%s13654_s3 + $0x10] sm:$0xff]  ;;  %14567 = vst [vmem:[#allocation20_spill] sm:$0xff] %v9214_v57 }
 0xb0d   :  { %v1655_v33 = vsel %vm1652_vm9, %v1654_v44, %v1650_v27  ;;  %1901 = vmatpush.msra.mxu2 %v8089_v16  ;;  %v9128_v16 = vld [vmem:[%s13654_s3 + $0x70] sm:$0xff]  ;;  %14565 = vst [vmem:[#allocation18_spill] sm:$0xff] %v9202_v50  ;;  %v9208_v44 = vld [vmem:[%s13654_s3 + $0x8] sm:$0xff] }
 0xb0e   :  { %v1657_v11 = vperm.slane %v1655_v33, 0  ;;  %14566 = vst [vmem:[#allocation19_spill] sm:$0xff] %v9208_v44 }
 0xb0f   :  { %1902 = vmatpush.msra.mxu2 %v8095_v22  ;;  %v1658_v22 = vperm.slane %v1655_v33, 1 }
 0xb10   :  { %v1662_v36 = vmul.f32 %v9044_v12, %v1657_v11  ;;  %v1661_v26 = vmul.f32 %v9042_v28, %v1657_v11  ;;  %v9134_v28 = vld [vmem:[%s13654_s3 + $0x68] sm:$0xff]  ;;  %v9140_v12 = vld [vmem:[%s13654_s3 + $0x60] sm:$0xff] }
 0xb11   :  { %2058 = vmatpush.msrb.mxu2 %v9122_v54  ;;  %v1664_v15 = vmul.f32 %v9051_v24, %v1658_v22  ;;  %v1663_v5 = vmul.f32 %v9047_v59, %v1658_v22  ;;  %v9160_v59 = vld [vmem:[%s13654_s3 + $0x48] sm:$0xff]  ;;  %v9166_v24 = vld [vmem:[%s13654_s3 + $0x40] sm:$0xff] }
 0xb12   :  { %1672 = vperm.xlu2 %4848, %v1662_v36   ;;  %1667 = vperm.xlu1 %4850, %v1661_v26   ;;  %14558 = vst [vmem:[#allocation11_spill] sm:$0xff] %v9160_v59 }
 0xb13   :  { %2059 = vmatpush.msrb.mxu2 %v9128_v16  ;;  %14559 = vst [vmem:[#allocation12_spill] sm:$0xff] %v9166_v24 }
 0xb15   :  { %2060 = vmatpush.msrb.mxu2 %v9134_v28 }
 0xb17   :  { %2061 = vmatpush.msrb.mxu2 %v9140_v12 }
 0xb19   :  { %2062 = vmatpush.msrb.mxu2 %v9148_v58 }
 0xb1a   :  { %1682 = vperm.xlu2 %4848, %v1664_v15   ;;  %1677 = vperm.xlu1 %4850, %v1663_v5  }
 0xb1b   :  { %2063 = vmatpush.msrb.mxu2 %v9154_v55 }
 0xb1d   :  { %2064 = vmatpush.msrb.mxu2 %v9160_v59 }
 0xb1f   :  { %2065 = vmatpush.msrb.mxu2 %v9166_v24 }
 0xb21   :  { %2066 = vmatpush.msrb.mxu2 %v9172_v7 }
 0xb23   :  { %2067 = vmatpush.msrb.mxu2 %v9178_v52 }
 0xb25   :  { %2068 = vmatpush.msrb.mxu2 %v9184_v63 }
 0xb27   :  { %2069 = vmatpush.msrb.mxu2 %v9190_v4 }
 0xb29   :  { %2070 = vmatpush.msrb.mxu2 %v9196_v18 }
 0xb2b   :  { %2071 = vmatpush.msrb.mxu2 %v9202_v50 }
 0xb2d   :  { %2072 = vmatpush.msrb.mxu2 %v9208_v44 }
 0xb2f   :  { %2073 = vmatpush.msrb.mxu2 %v9214_v57 }
 0xb6c   :  { %v1673_v27 = vpop.permute.xlu2 %1672 }
 0xb6d   :  { %v1686_v11 = vmul.f32 %v8127_v9, %v1673_v27 }
 0xb74   :  { %v1683_v15 = vpop.permute.xlu2 %1682 }
 0xb75   :  { %v1688_v44 = vmul.f32 %v8139_v60, %v1683_v15  ;;  %v9239_v60 = vld [vmem:[%s13661_s10 + $0x5c0] sm:$0xff]  ;;  %v14595_v15 = vld [vmem:[#allocation108_spill] sm:$0xff] }
 0xb84   :  { %v1668_v33 = vpop.permute.xlu1 %1667 }
 0xb85   :  { %v1685_v36 = vmul.f32 %v8121_v2, %v1668_v33 }
 0xb87   :  { %v1689_v26 = vadd.f32 %v1686_v11, %v1685_v36  ;;  %v14592_v11 = vld [vmem:[#allocation105_spill] sm:$0xff]  ;;  %v14593_v36 = vld [vmem:[#allocation106_spill] sm:$0xff] }
 0xb89   :  { %v1690_v22 = vrot.slane %v1689_v26, 4 }
 0xb8b   :  { %v1691_v5 = vadd.f32 %v1690_v22, %v1689_v26  ;;  %v9419_v26 = vld [vmem:[%s13663_s12 + $0x48] sm:$0xff] }
 0xb8c   :  { %v1678_v50 = vpop.permute.xlu1 %1677  ;;  %v14594_v22 = vld [vmem:[#allocation107_spill] sm:$0xff] }
 0xb8d   :  { %v1687_v18 = vmul.f32 %v8133_v1, %v1678_v50  ;;  %v1692_v4 = vrot.slane %v1691_v5, 2  ;;  %v9230_v1 = vld [vmem:[%s13661_s10 + $0x5e0] sm:$0xff] }
 0xb8e   :  { %v14590_v50 = vld [vmem:[#allocation103_spill] sm:$0xff] }
 0xb8f   :  { %v1696_v63 = vadd.f32 %v1688_v44, %v1687_v18  ;;  %v1693_v7 = vadd.f32 %v1692_v4, %v1691_v5  ;;  %v14589_v4 = vld [vmem:[#allocation102_spill] sm:$0xff]  ;;  %v14591_v44 = vld [vmem:[#allocation104_spill] sm:$0xff] }
 0xb90   :  { %v9403_v18 = vld [vmem:[%s13663_s12 + $0x58] sm:$0xff]  ;;  %v9427_v5 = vld [vmem:[%s13663_s12 + $0x40] sm:$0xff] }
 0xb91   :  { %v1697_v52 = vrot.slane %v1696_v63, 4  ;;  %v1694_v59 = vrot.slane %v1693_v7, 1 }
 0xb93   :  { %v1698_v57 = vadd.f32 %v1697_v52, %v1696_v63  ;;  %v1695_v27 = vadd.f32 %v1694_v59, %v1693_v7  ;;  %v9382_v59 = vld [vmem:[%s13661_s10 + $0x420] sm:$0xff]  ;;  %v14588_v52 = vld [vmem:[#allocation101_spill] sm:$0xff] }
 0xb94   :  { %v9389_v7 = vld [vmem:[%s13663_s12 + $0x60] sm:$0xff] }
 0xb95   :  { %v1699_v24 = vrot.slane %v1698_v57, 2  ;;  %v9396_v63 = vld [vmem:[%s13661_s10 + $0x400] sm:$0xff] }
 0xb97   :  { %v1700_v55 = vadd.f32 %v1699_v24, %v1698_v57  ;;  %v14587_v24 = vld [vmem:[#allocation100_spill] sm:$0xff] }
 0xb98   :  { %v9411_v57 = vld [vmem:[%s13663_s12 + $0x50] sm:$0xff] }
 0xb99   :  { %v1701_v9 = vrot.slane %v1700_v55, 1 }
 0xb9b   :  { %v1702_v2 = vadd.f32 %v1701_v9, %v1700_v55  ;;  %v14586_v55 = vld [vmem:[#allocation99_spill] sm:$0xff]  ;;  %v14596_v9 = vld [vmem:[#allocation109_spill] sm:$0xff] }
 0xb9d   :  { %v1705_v33 = vsel %vm371_vm1, %v1702_v2, %v1695_v27  ;;  %v14597_v27 = vld [vmem:[#allocation110_spill] sm:$0xff] }
 0xb9e   :  { %1723 = vmatmul.f32.vlgmr.msra.gmra.mxu1 %v1705_v33  ;;  %1783 = vmatmul.f32.vlgmr.msrb.gmra.mxu0 %v1705_v33  ;;  %v9435_v2 = vld [vmem:[%s13663_s12 + $0x38] sm:$0xff] }
 0xb9f   :  { %1843 = vmatmul.f32.vlgmr.msrb.gmra.mxu3 %v1705_v33  ;;  %1867 = vmatpush.msra.mxu1 %v8146_v23  ;;  %v9256_v23 = vld [vmem:[%s13661_s10 + $0x5a0] sm:$0xff] }
 0xba0   :  { %1903 = vmatmul.f32.vlgmr.msra.gmra.mxu2 %v1705_v33  ;;  %1927 = vmatpush.msrb.mxu0 %v8152_v38  ;;  %v9265_v38 = vld [vmem:[%s13661_s10 + $0x580] sm:$0xff] }
 0xba1   :  { %1868 = vmatpush.msra.mxu1 %v8158_v48  ;;  %2078 = vmatpush.msrb.mxu3 %v8164_v13  ;;  %v9274_v48 = vld [vmem:[%s13661_s10 + $0x560] sm:$0xff] }
 0xba2   :  { %1928 = vmatpush.msrb.mxu0 %v8170_v45  ;;  %2292 = vmatpush.msra.mxu2 %v9230_v1  ;;  %v9283_v13 = vld [vmem:[%s13661_s10 + $0x540] sm:$0xff] }
 0xba3   :  { %1869 = vmatpush.msra.mxu1 %v8177_v8  ;;  %2079 = vmatpush.msrb.mxu3 %v8183_v56  ;;  %v9292_v45 = vld [vmem:[%s13661_s10 + $0x520] sm:$0xff]  ;;  %v14568_v56 = vld [vmem:[#allocation81_spill] sm:$0xff] }
 0xba4   :  { %1929 = vmatpush.msrb.mxu0 %v8189_v29  ;;  %2293 = vmatpush.msra.mxu2 %v9239_v60  ;;  %v9301_v8 = vld [vmem:[%s13661_s10 + $0x500] sm:$0xff] }
 0xba5   :  { %1870 = vmatpush.msra.mxu1 %v8196_v62  ;;  %2080 = vmatpush.msrb.mxu3 %v8202_v61  ;;  %v14569_v29 = vld [vmem:[#allocation82_spill] sm:$0xff]  ;;  %v14570_v62 = vld [vmem:[#allocation83_spill] sm:$0xff] }
 0xba6   :  { %1930 = vmatpush.msrb.mxu0 %v8208_v10  ;;  %1803 = vmatmul.f32.vlgmr.msrb.gmra.mxu1 %v9097_v39  ;;  %v9310_v61 = vld [vmem:[%s13661_s10 + $0x4e0] sm:$0xff]  ;;  %v14571_v10 = vld [vmem:[#allocation84_spill] sm:$0xff] }
 0xba7   :  { %1863 = vmatmul.f32.vlgmr.msra.gmra.mxu0 %v9097_v39  ;;  %1871 = vmatpush.msra.mxu1 %v8216_v37  ;;  %v14572_v37 = vld [vmem:[#allocation85_spill] sm:$0xff]  ;;  %v14598_v33 = vld [vmem:[#allocation111_spill] sm:$0xff] }
 0xba8   :  { %1923 = vmatmul.f32.vlgmr.msra.gmra.mxu3 %v9097_v39  ;;  %1931 = vmatpush.msrb.mxu0 %v8223_v32  ;;  %v14573_v32 = vld [vmem:[#allocation86_spill] sm:$0xff]  ;;  %v9375_v39 = vld [vmem:[%s13663_s12 + $0x68] sm:$0xff] }
 0xba9   :  { %1872 = vmatpush.msra.mxu1 %v8229_v47  ;;  %2081 = vmatpush.msrb.mxu3 %v8235_v35  ;;  %v9319_v47 = vld [vmem:[%s13661_s10 + $0x4c0] sm:$0xff] }
 0xbaa   :  { %1932 = vmatpush.msrb.mxu0 %v8241_v40  ;;  %2294 = vmatpush.msra.mxu2 %v9256_v23  ;;  %v14574_v35 = vld [vmem:[#allocation87_spill] sm:$0xff]  ;;  %v14575_v40 = vld [vmem:[#allocation88_spill] sm:$0xff] }
 0xbab   :  { %1873 = vmatpush.msra.mxu1 %v8248_v0  ;;  %2082 = vmatpush.msrb.mxu3 %v8254_v3  ;;  %v14576_v0 = vld [vmem:[#allocation89_spill] sm:$0xff]  ;;  %v9328_v3 = vld [vmem:[%s13661_s10 + $0x4a0] sm:$0xff] }
 0xbac   :  { %1933 = vmatpush.msrb.mxu0 %v8260_v6  ;;  %2295 = vmatpush.msra.mxu2 %v9265_v38  ;;  %v14577_v6 = vld [vmem:[#allocation90_spill] sm:$0xff] }
 0xbad   :  { %1874 = vmatpush.msra.mxu1 %v8267_v42  ;;  %2083 = vmatpush.msrb.mxu3 %v8273_v21  ;;  %v14578_v42 = vld [vmem:[#allocation91_spill] sm:$0xff]  ;;  %v14579_v21 = vld [vmem:[#allocation92_spill] sm:$0xff] }
 0xbae   :  { %1934 = vmatpush.msrb.mxu0 %v8279_v25  ;;  %2296 = vmatpush.msra.mxu2 %v9274_v48  ;;  %v9337_v25 = vld [vmem:[%s13661_s10 + $0x480] sm:$0xff] }
 0xbaf   :  { %1875 = vmatpush.msra.mxu1 %v8286_v43  ;;  %2084 = vmatpush.msrb.mxu3 %v8292_v19  ;;  %v14580_v43 = vld [vmem:[#allocation93_spill] sm:$0xff]  ;;  %v14581_v19 = vld [vmem:[#allocation94_spill] sm:$0xff] }
 0xbb0   :  { %1935 = vmatpush.msrb.mxu0 %v8298_v46  ;;  %2297 = vmatpush.msra.mxu2 %v9283_v13  ;;  %v14582_v46 = vld [vmem:[#allocation95_spill] sm:$0xff] }
 0xbb1   :  { %1876 = vmatpush.msra.mxu1 %v8305_v49  ;;  %2085 = vmatpush.msrb.mxu3 %v8311_v53  ;;  %v9348_v49 = vld [vmem:[%s13663_s12 + $0x78] sm:$0xff]  ;;  %v14583_v53 = vld [vmem:[#allocation96_spill] sm:$0xff] }
 0xbb2   :  { %1936 = vmatpush.msrb.mxu0 %v8317_v14  ;;  %2298 = vmatpush.msra.mxu2 %v9292_v45  ;;  %v9355_v14 = vld [vmem:[%s13661_s10 + $0x460] sm:$0xff] }
 0xbb3   :  { %1877 = vmatpush.msra.mxu1 %v8324_v51  ;;  %2086 = vmatpush.msrb.mxu3 %v8330_v17  ;;  %v9361_v51 = vld [vmem:[%s13663_s12 + $0x70] sm:$0xff] }
 0xbb4   :  { %1937 = vmatpush.msrb.mxu0 %v8336_v30  ;;  %2299 = vmatpush.msra.mxu2 %v9301_v8  ;;  %v14584_v17 = vld [vmem:[#allocation97_spill] sm:$0xff]  ;;  %v14585_v30 = vld [vmem:[#allocation98_spill] sm:$0xff] }
 0xbb5   :  { %1878 = vmatpush.msra.mxu1 %v14568_v56  ;;  %2087 = vmatpush.msrb.mxu3 %v14569_v29  ;;  %v14599_v56 = vld [vmem:[#allocation112_spill] sm:$0xff] }
 0xbb6   :  { %1938 = vmatpush.msrb.mxu0 %v14570_v62  ;;  %2300 = vmatpush.msra.mxu2 %v9310_v61  ;;  %v9443_v29 = vld [vmem:[%s13663_s12 + $0x30] sm:$0xff] }
 0xbb7   :  { %1879 = vmatpush.msra.mxu1 %v14571_v10  ;;  %2088 = vmatpush.msrb.mxu3 %v14572_v37  ;;  %v14600_v62 = vld [vmem:[#allocation113_spill] sm:$0xff]  ;;  %v14601_v10 = vld [vmem:[#allocation114_spill] sm:$0xff]  ;;  %v9451_v37 = vld [vmem:[%s13663_s12 + $0x28] sm:$0xff] }
 0xbb8   :  { %1939 = vmatpush.msrb.mxu0 %v14573_v32  ;;  %2301 = vmatpush.msra.mxu2 %v9319_v47  ;;  %v14602_v32 = vld [vmem:[#allocation115_spill] sm:$0xff] }
 0xbb9   :  { %1880 = vmatpush.msra.mxu1 %v14574_v35  ;;  %2089 = vmatpush.msrb.mxu3 %v14575_v40  ;;  %v14603_v35 = vld [vmem:[#allocation116_spill] sm:$0xff]  ;;  %v9459_v40 = vld [vmem:[%s13663_s12 + $0x20] sm:$0xff] }
 0xbba   :  { %1940 = vmatpush.msrb.mxu0 %v14576_v0  ;;  %2302 = vmatpush.msra.mxu2 %v9328_v3  ;;  %v14604_v0 = vld [vmem:[#allocation117_spill] sm:$0xff] }
 0xbbb   :  { %1881 = vmatpush.msra.mxu1 %v14577_v6  ;;  %2090 = vmatpush.msrb.mxu3 %v14578_v42  ;;  %v14605_v6 = vld [vmem:[#allocation118_spill] sm:$0xff] }
 0xbbc   :  { %1941 = vmatpush.msrb.mxu0 %v14579_v21  ;;  %2303 = vmatpush.msra.mxu2 %v9337_v25  ;;  %v9467_v42 = vld [vmem:[%s13663_s12 + $0x18] sm:$0xff]  ;;  %v14606_v21 = vld [vmem:[#allocation119_spill] sm:$0xff] }
 0xbbd   :  { %1882 = vmatpush.msra.mxu1 %v14580_v43  ;;  %2091 = vmatpush.msrb.mxu3 %v14581_v19  ;;  %v14607_v43 = vld [vmem:[#allocation120_spill] sm:$0xff] }
 0xbbe   :  { %1942 = vmatpush.msrb.mxu0 %v14582_v46  ;;  %1883 = vmatmul.f32.vlgmr.msra.gmra.mxu1 %v8786_v41  ;;  %v9475_v19 = vld [vmem:[%s13663_s12 + $0x10] sm:$0xff] }
 0xbbf   :  { %1943 = vmatmul.f32.vlgmr.msrb.gmra.mxu0 %v8786_v41  ;;  %2010 = vmatpush.msrb.mxu1 %v9348_v49  ;;  %v9369_v41 = vld [vmem:[%s13661_s10 + $0x440] sm:$0xff]  ;;  %14608 = vst [vmem:[#allocation21_spill] sm:$0xff] %v9475_v19  ;;  %v14609_v46 = vld [vmem:[#allocation121_spill] sm:$0xff] }
 0xbc0   :  { %2092 = vmatpush.msrb.mxu3 %v14583_v53  ;;  %2304 = vmatpush.msra.mxu2 %v9355_v14  ;;  %v14610_v53 = vld [vmem:[#allocation122_spill] sm:$0xff] }
 0xbc1   :  { %2011 = vmatpush.msrb.mxu1 %v9361_v51  ;;  %2252 = vmatpush.msra.mxu0 %v14584_v17  ;;  %v9483_v17 = vld [vmem:[%s13663_s12 + $0x8] sm:$0xff] }
 0xbc2   :  { %2093 = vmatpush.msrb.mxu3 %v14585_v30  ;;  %2305 = vmatpush.msra.mxu2 %v9369_v41  ;;  %14611 = vst [vmem:[#allocation23_spill] sm:$0xff] %v9483_v17  ;;  %v14612_v30 = vld [vmem:[#allocation30_spill] sm:$0xff] }
 0xbc3   :  { %2012 = vmatpush.msrb.mxu1 %v9375_v39  ;;  %2253 = vmatpush.msra.mxu0 %v14587_v24  ;;  %v9491_v24 = vld [vmem:[%s13663_s12] sm:$0xff] }
 0xbc4   :  { %2312 = vmatpush.msra.mxu3 %v14586_v55  ;;  %2306 = vmatpush.msra.mxu2 %v9382_v59  ;;  %v14613_v55 = vld [vmem:[#allocation123_spill] sm:$0xff]  ;;  %14614 = vst [vmem:[#allocation25_spill] sm:$0xff] %v9491_v24 }
 0xbc5   :  { %2013 = vmatpush.msrb.mxu1 %v9389_v7  ;;  %2254 = vmatpush.msra.mxu0 %v14589_v4  ;;  %v9498_v4 = vld [vmem:[%s13661_s10 + $0x3e0] sm:$0xff] }
 0xbc6   :  { %2313 = vmatpush.msra.mxu3 %v14588_v52  ;;  %2307 = vmatpush.msra.mxu2 %v9396_v63  ;;  %v14615_v52 = vld [vmem:[#allocation32_spill] sm:$0xff]  ;;  %14616 = vst [vmem:[#allocation27_spill] sm:$0xff] %v9498_v4 }
 0xbc7   :  { %2014 = vmatpush.msrb.mxu1 %v9403_v18  ;;  %2255 = vmatpush.msra.mxu0 %v14591_v44  ;;  %v14618_v44 = vld [vmem:[#allocation124_spill] sm:$0xff] }
 0xbc8   :  { %2314 = vmatpush.msra.mxu3 %v14590_v50  ;;  %v14617_v50 = vld [vmem:[#allocation34_spill] sm:$0xff] }
 0xbc9   :  { %2015 = vmatpush.msrb.mxu1 %v9411_v57  ;;  %2256 = vmatpush.msra.mxu0 %v14593_v36  ;;  %v14620_v36 = vld [vmem:[#allocation35_spill] sm:$0xff] }
 0xbca   :  { %2315 = vmatpush.msra.mxu3 %v14592_v11  ;;  %v9506_v11 = vld [vmem:[%s13661_s10 + $0x3c0] sm:$0xff] }
 0xbcb   :  { %2016 = vmatpush.msrb.mxu1 %v9419_v26  ;;  %2257 = vmatpush.msra.mxu0 %v14595_v15  ;;  %14619 = vst [vmem:[#allocation29_spill] sm:$0xff] %v9506_v11  ;;  %v14622_v15 = vld [vmem:[#allocation126_spill] sm:$0xff] }
 0xbcc   :  { %2316 = vmatpush.msra.mxu3 %v14594_v22  ;;  %v14621_v22 = vld [vmem:[#allocation125_spill] sm:$0xff] }
 0xbcd   :  { %2017 = vmatpush.msrb.mxu1 %v9427_v5  ;;  %2258 = vmatpush.msra.mxu0 %v14597_v27  ;;  %v14624_v27 = vld [vmem:[#allocation36_spill] sm:$0xff] }
 0xbce   :  { %2317 = vmatpush.msra.mxu3 %v14596_v9  ;;  %v9515_v9 = vld [vmem:[%s13661_s10 + $0x3a0] sm:$0xff] }
 0xbcf   :  { %2018 = vmatpush.msrb.mxu1 %v9435_v2  ;;  %2259 = vmatpush.msra.mxu0 %v14599_v56  ;;  %14623 = vst [vmem:[#allocation31_spill] sm:$0xff] %v9515_v9  ;;  %v14626_v56 = vld [vmem:[#allocation37_spill] sm:$0xff] }
 0xbd0   :  { %2318 = vmatpush.msra.mxu3 %v14598_v33  ;;  %v9522_v33 = vld [vmem:[%s13661_s10 + $0x380] sm:$0xff] }
 0xbd1   :  { %2019 = vmatpush.msrb.mxu1 %v9443_v29  ;;  %2260 = vmatpush.msra.mxu0 %v14601_v10  ;;  %14625 = vst [vmem:[#allocation33_spill] sm:$0xff] %v9522_v33  ;;  %v14628_v10 = vld [vmem:[#allocation38_spill] sm:$0xff] }
 0xbd2   :  { %2319 = vmatpush.msra.mxu3 %v14600_v62  ;;  %v9529_v62 = vld [vmem:[%s13661_s10 + $0x360] sm:$0xff] }
 0xbd3   :  { %2020 = vmatpush.msrb.mxu1 %v9451_v37  ;;  %2261 = vmatpush.msra.mxu0 %v14603_v35  ;;  %14627 = vst [vmem:[#allocation51_spill] sm:$0xff] %v9529_v62  ;;  %v14630_v35 = vld [vmem:[#allocation39_spill] sm:$0xff] }
 0xbd4   :  { %2320 = vmatpush.msra.mxu3 %v14602_v32  ;;  %v9536_v32 = vld [vmem:[%s13661_s10 + $0x340] sm:$0xff] }
 0xbd5   :  { %2021 = vmatpush.msrb.mxu1 %v9459_v40  ;;  %2262 = vmatpush.msra.mxu0 %v14605_v6  ;;  %14629 = vst [vmem:[#allocation52_spill] sm:$0xff] %v9536_v32  ;;  %v14632_v6 = vld [vmem:[#allocation40_spill] sm:$0xff] }
 0xbd6   :  { %2321 = vmatpush.msra.mxu3 %v14604_v0  ;;  %v9543_v0 = vld [vmem:[%s13661_s10 + $0x320] sm:$0xff] }
 0xbd7   :  { %2022 = vmatpush.msrb.mxu1 %v9467_v42  ;;  %2263 = vmatpush.msra.mxu0 %v14607_v43  ;;  %14631 = vst [vmem:[#allocation53_spill] sm:$0xff] %v9543_v0  ;;  %v14634_v43 = vld [vmem:[#allocation41_spill] sm:$0xff] }
 0xbd8   :  { %2322 = vmatpush.msra.mxu3 %v14606_v21  ;;  %v9550_v21 = vld [vmem:[%s13661_s10 + $0x300] sm:$0xff] }
 0xbd9   :  { %2023 = vmatpush.msrb.mxu1 %v9475_v19  ;;  %2264 = vmatpush.msra.mxu0 %v14610_v53  ;;  %14633 = vst [vmem:[#allocation54_spill] sm:$0xff] %v9550_v21  ;;  %v14636_v53 = vld [vmem:[#allocation42_spill] sm:$0xff] }
 0xbda   :  { %2323 = vmatpush.msra.mxu3 %v14609_v46  ;;  %v9557_v46 = vld [vmem:[%s13661_s10 + $0x2e0] sm:$0xff] }
 0xbdb   :  { %2024 = vmatpush.msrb.mxu1 %v9483_v17  ;;  %2265 = vmatpush.msra.mxu0 %v14613_v55  ;;  %14635 = vst [vmem:[#allocation55_spill] sm:$0xff] %v9557_v46  ;;  %v14638_v55 = vld [vmem:[#allocation43_spill] sm:$0xff] }
 0xbdc   :  { %2324 = vmatpush.msra.mxu3 %v14612_v30  ;;  %v9564_v30 = vld [vmem:[%s13661_s10 + $0x2c0] sm:$0xff] }
 0xbdd   :  { %2025 = vmatpush.msrb.mxu1 %v9491_v24  ;;  %2266 = vmatpush.msra.mxu0 %v14617_v50  ;;  %14637 = vst [vmem:[#allocation56_spill] sm:$0xff] %v9564_v30  ;;  %v14640_v50 = vld [vmem:[#allocation45_spill] sm:$0xff] }
 0xbde   :  { %2325 = vmatpush.msra.mxu3 %v14615_v52  ;;  %v9571_v52 = vld [vmem:[%s13661_s10 + $0x2a0] sm:$0xff] }
 0xbdf   :  { %2272 = vmatpush.msra.mxu1 %v9498_v4  ;;  %2267 = vmatpush.msra.mxu0 %v14620_v36  ;;  %14639 = vst [vmem:[#allocation57_spill] sm:$0xff] %v9571_v52  ;;  %v14642_v36 = vld [vmem:[#allocation46_spill] sm:$0xff] }
 0xbe0   :  { %2326 = vmatpush.msra.mxu3 %v14618_v44  ;;  %v9578_v44 = vld [vmem:[%s13661_s10 + $0x280] sm:$0xff] }
 0xbe1   :  { %2273 = vmatpush.msra.mxu1 %v9506_v11  ;;  %2332 = vmatpush.msrb.mxu0 %v14622_v15  ;;  %14641 = vst [vmem:[#allocation58_spill] sm:$0xff] %v9578_v44  ;;  %v14644_v15 = vld [vmem:[#allocation47_spill] sm:$0xff] }
 0xbe2   :  { %2327 = vmatpush.msra.mxu3 %v14621_v22  ;;  %v9585_v22 = vld [vmem:[%s13661_s10 + $0x260] sm:$0xff] }
 0xbe3   :  { %2274 = vmatpush.msra.mxu1 %v9515_v9  ;;  %2333 = vmatpush.msrb.mxu0 %v14624_v27  ;;  %14643 = vst [vmem:[#allocation59_spill] sm:$0xff] %v9585_v22  ;;  %v9592_v27 = vld [vmem:[%s13661_s10 + $0x240] sm:$0xff] }
 0xbe4   :  { %14645 = vst [vmem:[#allocation60_spill] sm:$0xff] %v9592_v27 }
 0xbe5   :  { %2275 = vmatpush.msra.mxu1 %v9522_v33  ;;  %2334 = vmatpush.msrb.mxu0 %v14626_v56  ;;  %v14646_v56 = vld [vmem:[#allocation48_spill] sm:$0xff] }
 0xbe7   :  { %2276 = vmatpush.msra.mxu1 %v9529_v62  ;;  %2335 = vmatpush.msrb.mxu0 %v14628_v10  ;;  %v9599_v10 = vld [vmem:[%s13661_s10 + $0x220] sm:$0xff] }
 0xbe8   :  { %14647 = vst [vmem:[#allocation61_spill] sm:$0xff] %v9599_v10 }
 0xbe9   :  { %2277 = vmatpush.msra.mxu1 %v9536_v32  ;;  %2336 = vmatpush.msrb.mxu0 %v14630_v35  ;;  %v14648_v35 = vld [vmem:[#allocation49_spill] sm:$0xff] }
 0xbeb   :  { %2278 = vmatpush.msra.mxu1 %v9543_v0  ;;  %2337 = vmatpush.msrb.mxu0 %v14632_v6  ;;  %v9606_v6 = vld [vmem:[%s13661_s10 + $0x200] sm:$0xff] }
 0xbec   :  { %14649 = vst [vmem:[#allocation62_spill] sm:$0xff] %v9606_v6 }
 0xbed   :  { %2279 = vmatpush.msra.mxu1 %v9550_v21  ;;  %2338 = vmatpush.msrb.mxu0 %v14634_v43  ;;  %v14650_v43 = vld [vmem:[#allocation50_spill] sm:$0xff] }
 0xbef   :  { %2280 = vmatpush.msra.mxu1 %v9557_v46  ;;  %2339 = vmatpush.msrb.mxu0 %v14636_v53  ;;  %v14651_v53 = vld [vmem:[#allocation127_spill] sm:$0xff] }
 0xbf1   :  { %2281 = vmatpush.msra.mxu1 %v9564_v30  ;;  %2340 = vmatpush.msrb.mxu0 %v14638_v55  ;;  %v1744_v55 = vpop.f32.mrf.mxu2 }
 0xbf3   :  { %2282 = vmatpush.msra.mxu1 %v9571_v52  ;;  %2341 = vmatpush.msrb.mxu0 %v14640_v50 }
 0xbf5   :  { %2283 = vmatpush.msra.mxu1 %v9578_v44  ;;  %2342 = vmatpush.msrb.mxu0 %v14642_v36  ;;  %v14652_v36 = vld [vmem:[#allocation22_spill] sm:$0xff]  ;;  %v14653_v44 = vld [vmem:[#allocation24_spill] sm:$0xff] }
 0xbf7   :  { %2284 = vmatpush.msra.mxu1 %v9585_v22  ;;  %2343 = vmatpush.msrb.mxu0 %v14644_v15 }
 0xbf9   :  { %2285 = vmatpush.msra.mxu1 %v9592_v27  ;;  %2344 = vmatpush.msrb.mxu0 %v14646_v56  ;;  %v1764_v27 = vpop.f32.mrf.mxu3  ;;  %v1824_v21 = vpop.f32.mrf.mxu2 }
 0xbfb   :  { %2286 = vmatpush.msra.mxu1 %v9599_v10  ;;  %2345 = vmatpush.msrb.mxu0 %v14648_v35 }
 0xbfd   :  { %2287 = vmatpush.msra.mxu1 %v9606_v6  ;;  %2346 = vmatpush.msrb.mxu0 %v14650_v43 }
 0xbff   :  { %2347 = vmatpush.msrb.mxu0 %v14651_v53 }
 0xc1b   :  { %v1724_v50 = vpop.f32.mrf.mxu1  ;;  %v1784_v10 = vpop.f32.mrf.mxu0 }
 0xc1c   :  { %v1725_v15 = vadd.f32 %v1724_v50, %v14652_v36  ;;  %v1785_v52 = vadd.f32 %v1784_v10, %v14653_v44  ;;  %v14654_v44 = vld [vmem:[#allocation28_spill] sm:$0xff] }
 0xc1e   :  { %v1745_v56 = vadd.f32 %v1744_v55, %v1725_v15 }
 0xc20   :  { %v1765_v22 = vadd.f32 %v1764_v27, %v1745_v56 }
 0xc22   :  { %v4813_v35 = vmul.f32 -1.442695, %v1765_v22  ;;  %v1844_v32 = vpop.f32.mrf.mxu3 }
 0xc23   :  { %v1804_v30 = vpop.f32.mrf.mxu1  ;;  %v1904_v27 = vpop.f32.mrf.mxu2 }
 0xc24   :  { %4919 = vpow2.f32 %v4813_v35  ;;  %v1805_v46 = vadd.f32 %v1804_v30, %v1785_v52  ;;  %v1864_v55 = vpop.f32.mrf.mxu0  ;;  %v1845_v35 = vadd.f32 %v1844_v32, %v14654_v44  ;;  %v14655_v30 = vld [vmem:[#allocation26_spill] sm:$0xff] }
 0xc25   :  { %v1905_v52 = vadd.f32 %v1904_v27, %v14655_v30 }
 0xc26   :  { %v1825_v6 = vadd.f32 %v1824_v21, %v1805_v46  ;;  %v1865_v33 = vadd.f32 %v1864_v55, %v1845_v35 }
 0xc28   :  { %v4814_v0 = vmul.f32 -1.442695, %v1825_v6 }
 0xc2a   :  { %v4920_v43 = vpop.eup %4919  ;;  %4921 = vpow2.f32 %v4814_v0 }
 0xc2b   :  { %v1950_v53 = vadd.f32 1.0, %v4920_v43  ;;  %v1924_v56 = vpop.f32.mrf.mxu3 }
 0xc2c   :  { %v1925_v46 = vadd.f32 %v1924_v56, %v1905_v52 }
 0xc2d   :  { %4923 = vrcp.f32 %v1950_v53  ;;  %v1962_v56 = vand.u32 2147483648, %v1950_v53  ;;  %vm1956_vm14 = vweird.f32 %v1950_v53 }
 0xc2f   :  { %v1963_v35 = vor.u32 1.1754944e-38, %v1962_v56 }
 0xc30   :  { %v4922_v62 = vpop.eup %4921 }
 0xc31   :  { %v1969_v50 = vadd.f32 1.0, %v4922_v62 }
 0xc33   :  { %4925 = vrcp.f32 %v1969_v50  ;;  %v4924_v15 = vpop.eup %4923  ;;  %v1981_v19 = vand.u32 2147483648, %v1969_v50  ;;  %vm1975_vm11 = vweird.f32 %v1969_v50  ;;  %v1979_v27 = vand.u32 2147483647, %v1969_v50 }
 0xc34   :  { %v1952_v22 = vmul.f32 %v4924_v15, %v1950_v53  ;;  %vm1957_vm12 = vweird.f32 %v4924_v15 }
 0xc35   :  { %vm1958_vm15 = vmor %vm1956_vm14, %vm1957_vm12  ;;  %vm1980_vm0 = vcmp.eq.f32.partialorder %v1979_v27, 8.507059e+37 }
 0xc36   :  { %v1953_v43 = vsub.f32 1.0, %v1952_v22  ;;  %v1960_v22 = vand.u32 2147483647, %v1950_v53 }
 0xc38   :  { %v1954_v24 = vmul.f32 %v4924_v15, %v1953_v43  ;;  %vm1961_vm4 = vcmp.eq.f32.partialorder %v1960_v22, 8.507059e+37 }
 0xc39   :  { %v4926_v10 = vpop.eup %4925 }
 0xc3a   :  { %v1971_v21 = vmul.f32 %v4926_v10, %v1969_v50  ;;  %vm1976_vm10 = vweird.f32 %v4926_v10  ;;  %v1955_v32 = vadd.f32 %v4924_v15, %v1954_v24  ;;  %v14656_v24 = vld [vmem:[#allocation44_spill] sm:$0xff] }
 0xc3b   :  { %v1884_v0 = vpop.f32.mrf.mxu1  ;;  %vm1977_vm13 = vmor %vm1975_vm11, %vm1976_vm10 }
 0xc3c   :  { %v1972_v6 = vsub.f32 1.0, %v1971_v21  ;;  %v1944_v36 = vpop.f32.mrf.mxu0  ;;  %v1885_v11 = vadd.f32 %v1884_v0, %v1865_v33  ;;  %v1959_v33 = vsel %vm1958_vm15, %v4924_v15, %v1955_v32 }
 0xc3d   :  { %v1945_v9 = vadd.f32 %v1944_v36, %v1925_v46  ;;  %v1982_v36 = vor.u32 1.1754944e-38, %v1981_v19 }
 0xc3e   :  { %v1973_v62 = vmul.f32 %v4926_v10, %v1972_v6 }
 0xc3f   :  { %v4815_v4 = vmul.f32 -1.442695, %v1945_v9 }
 0xc40   :  { %v1974_v17 = vadd.f32 %v4926_v10, %v1973_v62 }
 0xc41   :  { %4927 = vpow2.f32 %v4815_v4 }
 0xc42   :  { %4929 = vtanh.f32 %v1885_v11  ;;  %v1978_v52 = vsel %vm1977_vm13, %v4926_v10, %v1974_v17  ;;  %v1964_v11 = vsel %vm1961_vm4, %v1963_v35, %v1959_v33  ;;  %v14661_v33 = vld [vmem:[#allocation131_spill] sm:$0xff]  ;;  %v14664_v35 = vld [vmem:[#allocation134_spill] sm:$0xff] }
 0xc43   :  { %v1983_v21 = vsel %vm1980_vm0, %v1982_v36, %v1978_v52  ;;  %v14658_v52 = vld [vmem:[#allocation128_spill] sm:$0xff]  ;;  %v14660_v36 = vld [vmem:[#allocation130_spill] sm:$0xff] }
 0xc44   :  { %v2005_v46 = vmul.f32 %v1983_v21, %v14656_v24  ;;  %v14665_v21 = vld [vmem:[#allocation135_spill] sm:$0xff]  ;;  %v14667_v24 = vld [vmem:[#allocation137_spill] sm:$0xff] }
 0xc47   :  { %v4928_v55 = vpop.eup %4927 }
 0xc48   :  { %v1989_v9 = vadd.f32 1.0, %v4928_v55  ;;  %v4930_v4 = vpop.eup %4929  ;;  %v14659_v55 = vld [vmem:[#allocation129_spill] sm:$0xff] }
 0xc49   :  { %v2006_v50 = vmul.f32 %v4930_v4, %v1964_v11  ;;  %v14663_v4 = vld [vmem:[#allocation133_spill] sm:$0xff]  ;;  %v14666_v11 = vld [vmem:[#allocation136_spill] sm:$0xff] }
 0xc4a   :  { %4931 = vrcp.f32 %v1989_v9  ;;  %v2001_v19 = vand.u32 2147483648, %v1989_v9  ;;  %v1999_v10 = vand.u32 2147483647, %v1989_v9  ;;  %vm1995_vm6 = vweird.f32 %v1989_v9 }
 0xc4b   :  { %v9616_v0 = vadd.f32 %v2006_v50, %v2005_v46  ;;  %v14668_v46 = vld [vmem:[#allocation138_spill] sm:$0xff]  ;;  %v14669_v50 = vld [vmem:[#allocation139_spill] sm:$0xff] }
 0xc4c   :  { %v2002_v62 = vor.u32 1.1754944e-38, %v2001_v19  ;;  %vm2000_vm9 = vcmp.eq.f32.partialorder %v1999_v10, 8.507059e+37  ;;  %v14673_v19 = vld [vmem:[#allocation143_spill] sm:$0xff]  ;;  %v14675_v10 = vld [vmem:[#allocation145_spill] sm:$0xff] }
 0xc4d   :  { %14657 = vst [vmem:[#allocation63_spill] sm:$0xff] %v9616_v0  ;;  %4933 = vtanh.f32 %v9616_v0 }
 0xc50   :  { %v4932_v6 = vpop.eup %4931 }
 0xc51   :  { %v1991_v53 = vmul.f32 %v4932_v6, %v1989_v9  ;;  %vm1996_vm5 = vweird.f32 %v4932_v6  ;;  %v14662_v9 = vld [vmem:[#allocation132_spill] sm:$0xff] }
 0xc52   :  { %vm1997_vm8 = vmor %vm1995_vm6, %vm1996_vm5 }
 0xc53   :  { %v1992_v17 = vsub.f32 1.0, %v1991_v53  ;;  %v4934_v27 = vpop.eup %4933  ;;  %v14671_v53 = vld [vmem:[#allocation141_spill] sm:$0xff] }
 0xc55   :  { %v1993_v15 = vmul.f32 %v4932_v6, %v1992_v17  ;;  %v14672_v17 = vld [vmem:[#allocation142_spill] sm:$0xff] }
 0xc57   :  { %v1994_v43 = vadd.f32 %v4932_v6, %v1993_v15  ;;  %v14674_v15 = vld [vmem:[#allocation144_spill] sm:$0xff] }
 0xc59   :  { %v1998_v32 = vsel %vm1997_vm8, %v4932_v6, %v1994_v43  ;;  %v14670_v6 = vld [vmem:[#allocation140_spill] sm:$0xff]  ;;  %v14676_v43 = vld [vmem:[#allocation146_spill] sm:$0xff] }
 0xc5a   :  { %v2003_v56 = vsel %vm2000_vm9, %v2002_v62, %v1998_v32  ;;  %v14677_v62 = vld [vmem:[#allocation147_spill] sm:$0xff]  ;;  %v14678_v32 = vld [vmem:[#allocation148_spill] sm:$0xff] }
 0xc5b   :  { %v9619_v22 = vmul.f32 %v4934_v27, %v2003_v56  ;;  %v14679_v27 = vld [vmem:[#allocation149_spill] sm:$0xff]  ;;  %v14680_v56 = vld [vmem:[#allocation150_spill] sm:$0xff] }
 0xc5d   :  { %2026 = vmatmul.f32.vlgmr.msrb.gmra.mxu1 %v9619_v22  ;;  %2094 = vmatmul.f32.vlgmr.msrb.gmra.mxu3 %v9619_v22 }
 0xc5e   :  { %2352 = vmatpush.msrb.mxu1 %v14658_v52  ;;  %2392 = vmatpush.msrb.mxu3 %v14659_v55  ;;  %v14681_v52 = vld [vmem:[#allocation151_spill] sm:$0xff]  ;;  %v14682_v55 = vld [vmem:[#allocation152_spill] sm:$0xff] }
 0xc60   :  { %2353 = vmatpush.msrb.mxu1 %v14660_v36  ;;  %2393 = vmatpush.msrb.mxu3 %v14661_v33  ;;  %v14683_v36 = vld [vmem:[#allocation153_spill] sm:$0xff]  ;;  %v14684_v33 = vld [vmem:[#allocation154_spill] sm:$0xff] }
 0xc62   :  { %2354 = vmatpush.msrb.mxu1 %v14662_v9  ;;  %2394 = vmatpush.msrb.mxu3 %v14663_v4  ;;  %v14685_v9 = vld [vmem:[#allocation155_spill] sm:$0xff]  ;;  %v14686_v4 = vld [vmem:[#allocation156_spill] sm:$0xff] }
 0xc64   :  { %2355 = vmatpush.msrb.mxu1 %v14664_v35  ;;  %2395 = vmatpush.msrb.mxu3 %v14665_v21  ;;  %v14687_v35 = vld [vmem:[#allocation157_spill] sm:$0xff]  ;;  %v14688_v21 = vld [vmem:[#allocation158_spill] sm:$0xff] }
 0xc66   :  { %2356 = vmatpush.msrb.mxu1 %v14666_v11  ;;  %2396 = vmatpush.msrb.mxu3 %v14667_v24  ;;  %v14689_v11 = vld [vmem:[#allocation159_spill] sm:$0xff] }
 0xc68   :  { %2357 = vmatpush.msrb.mxu1 %v14668_v46  ;;  %2397 = vmatpush.msrb.mxu3 %v14669_v50  ;;  %v14690_v46 = vld [vmem:[#allocation163_spill] sm:$0xff] }
 0xc6a   :  { %2358 = vmatpush.msrb.mxu1 %v14670_v6  ;;  %2398 = vmatpush.msrb.mxu3 %v14671_v53 }
 0xc6c   :  { %2359 = vmatpush.msrb.mxu1 %v14672_v17  ;;  %2399 = vmatpush.msrb.mxu3 %v14673_v19  ;;  %v14691_v19 = vld [vmem:[#allocation160_spill] sm:$0xff] }
 0xc6e   :  { %2360 = vmatpush.msrb.mxu1 %v14674_v15  ;;  %2400 = vmatpush.msrb.mxu3 %v14675_v10 }
 0xc70   :  { %2361 = vmatpush.msrb.mxu1 %v14676_v43  ;;  %2401 = vmatpush.msrb.mxu3 %v14677_v62 }
 0xc72   :  { %2362 = vmatpush.msrb.mxu1 %v14678_v32  ;;  %2402 = vmatpush.msrb.mxu3 %v14679_v27  ;;  %v14692_v32 = vld [vmem:[#allocation161_spill] sm:$0xff] }
 0xc74   :  { %2363 = vmatpush.msrb.mxu1 %v14680_v56  ;;  %2403 = vmatpush.msrb.mxu3 %v14681_v52  ;;  %v14693_v56 = vld [vmem:[#allocation162_spill] sm:$0xff] }
 0xc76   :  { %2364 = vmatpush.msrb.mxu1 %v14682_v55  ;;  %2404 = vmatpush.msrb.mxu3 %v14683_v36 }
 0xc78   :  { %2365 = vmatpush.msrb.mxu1 %v14684_v33  ;;  %2405 = vmatpush.msrb.mxu3 %v14685_v9  ;;  %v14694_v33 = vld [vmem:[#allocation165_spill] sm:$0xff] }
 0xc7a   :  { %2366 = vmatpush.msrb.mxu1 %v14686_v4  ;;  %2406 = vmatpush.msrb.mxu3 %v14687_v35  ;;  %v14695_v35 = vld [vmem:[#allocation164_spill] sm:$0xff] }
 0xc7c   :  { %2367 = vmatpush.msrb.mxu1 %v14688_v21  ;;  %2407 = vmatpush.msrb.mxu3 %v14689_v11 }
 0xcda   :  { %v2027_v24 = vpop.f32.mrf.mxu1 }
 0xcdb   :  { %v2028_v50 = vadd.f32 %v14690_v46, %v2027_v24  ;;  %v14696_v46 = vld [vmem:[#allocation166_spill] sm:$0xff] }
 0xcdd   :  { %v2031_v6 = vrot.slane %v2028_v50, 1  ;;  %2033 = vst [vmem:[#allocation3 + $0x2] sm:$0x1] %v2028_v50  ;;  %v2035_v53 = vsel %vm944_vm7, %v2028_v50, -inf }
 0xcde   :  { %2036 = vmax.xlane.f32.xlu1 %v2035_v53 }
 0xcdf   :  { %2034 = vst [vmem:[#allocation3 + $0xa] sm:$0x1] %v2031_v6 }
 0xce0   :  { %v2095_v17 = vpop.f32.mrf.mxu3 }
 0xce1   :  { %v2096_v15 = vadd.f32 %v14691_v19, %v2095_v17 }
 0xce3   :  { %v2099_v10 = vrot.slane %v2096_v15, 1  ;;  %v2100_v43 = vperm.slane %v2096_v15, 0 }
 0xce5   :  { %v2101_v62 = vperm.slane %v2099_v10, 0  ;;  %v2105_v27 = vadd.f32 %v14692_v32, %v2100_v43  ;;  %v2104_v52 = vadd.f32 %v14693_v56, %v2100_v43 }
 0xce7   :  { %v2109_v55 = vmax.f32 %v2105_v27, 0.0  ;;  %v2108_v36 = vmax.f32 %v2104_v52, 0.0  ;;  %v2106_v21 = vadd.f32 %v14695_v35, %v2101_v62  ;;  %v2107_v6 = vadd.f32 %v14696_v46, %v2101_v62 }
 0xce9   :  { %v2113_v9 = vmul.f32 %v14694_v33, %v2109_v55  ;;  %v2112_v4 = vmul.f32 %v14694_v33, %v2108_v36  ;;  %v2110_v11 = vmax.f32 %v2106_v21, 0.0  ;;  %v2111_v53 = vmax.f32 %v2107_v6, 0.0  ;;  %v14697_v55 = vld [vmem:[#allocation10_spill] sm:$0xff] }
 0xceb   :  { %2118 = vadd.xlane.f32.xlu0 %v2113_v9  ;;  %2116 = vadd.xlane.f32.xlu2 %v2112_v4  ;;  %v2114_v24 = vmul.f32 %v14694_v33, %v2110_v11  ;;  %v2115_v17 = vmul.f32 %v14694_v33, %v2111_v53 }
 0xcf3   :  { %2120 = vadd.xlane.f32.xlu0 %v2114_v24 }
 0xcfb   :  { %2122 = vadd.xlane.f32.xlu0 %v2115_v17 }
 0xd51   :  { %v2037_v19 = vpop.xlane.xlu1 %2036 }
 0xd52   :  { %vm2038_vm10 = vcmp.eq.f32.partialorder %v2028_v50, %v2037_v19 }
 0xd53   :  { %v2039_v15 = vsel %vm2038_vm10, %v14507_v20, 128 }
 0xd54   :  { %v2040_v10 = vsel %vm944_vm7, %v2039_v15, 2147483647 }
 0xd55   :  { %v2042_v43 = vshra.s32 %v2040_v10, 16  ;;  %v2041_v17 = vand.u32 65535, %v2040_v10 }
 0xd57   :  { %v2044_v32 = vcvt.s32.f32 %v2042_v43  ;;  %v2043_v15 = vcvt.s32.f32 %v2041_v17  ;;  %v9709_v17 = vld [vmem:[%s13661_s10 + $0x1b0] sm:$0xff] }
 0xd59   :  { %2045 = vmin.xlane.f32.xlu1 %v2044_v32 }
 0xd5e   :  { %v2119_v27 = vpop.xlane.xlu0 %2118  ;;  %v2117_v52 = vpop.xlane.xlu2 %2116 }
 0xd5f   :  { %v2125_v36 = vadd.f32 %v2119_v27, %v14697_v55  ;;  %v2124_v62 = vadd.f32 %v2117_v52, %v14697_v55 }
 0xd61   :  { %v2133_v4 = vperm.slane %v2125_v36, %v14509_v34  ;;  %v2132_v50 = vperm.slane %v2124_v62, %v14507_v20 }
 0xd63   :  { %v2134_v24 = vsel %vm484_vm2, %v2133_v4, %v2132_v50 }
 0xd66   :  { %v2121_v56 = vpop.xlane.xlu0 %2120 }
 0xd67   :  { %v2126_v9 = vadd.f32 %v2121_v56, %v14697_v55 }
 0xd69   :  { %v2135_v21 = vperm.slane %v2126_v9, %v14507_v20 }
 0xd6e   :  { %v2123_v33 = vpop.xlane.xlu0 %2122 }
 0xd6f   :  { %v2127_v35 = vadd.f32 %v2123_v33, %v14697_v55 }
 0xd71   :  { %v2136_v11 = vperm.slane %v2127_v35, %v14509_v34 }
 0xd73   :  { %v2137_v46 = vsel %vm484_vm2, %v2136_v11, %v2135_v21 }
 0xd74   :  { %v2138_v6 = vsel %vm371_vm1, %v2137_v46, %v2134_v24 }
 0xd75   :  { %v2140_v53 = vsel %vm491_vm3, %v2138_v6, -inf  ;;  %v9697_v6 = vld [vmem:[%s13661_s10 + $0x1f0] sm:$0xff] }
 0xd76   :  { %2141 = vmax.xlane.f32.xlu2 %v2140_v53  ;;  %v9703_v53 = vld [vmem:[%s13661_s10 + $0x1d0] sm:$0xff] }
 0xdcc   :  { %v2046_v19 = vpop.xlane.xlu1 %2045 }
 0xdcd   :  { %vm2047_vm11 = vcmp.eq.f32.partialorder %v2044_v32, %v2046_v19 }
 0xdce   :  { %v2048_v43 = vsel %vm2047_vm11, %v2043_v15, inf  ;;  %v9722_v15 = vld [vmem:[%s13661_s10 + $0x170] sm:$0xff] }
 0xdcf   :  { %2049 = vmin.xlane.f32.xlu0 %v2048_v43  ;;  %v9728_v43 = vld [vmem:[%s13661_s10 + $0x150] sm:$0xff] }
 0xde9   :  { %v2142_v27 = vpop.xlane.xlu2 %2141 }
 0xdea   :  { %v2144_v56 = vperm.slane %v2142_v27, 0  ;;  %v2145_v52 = vperm.slane %v2142_v27, 1  ;;  %v9734_v27 = vld [vmem:[%s13661_s10 + $0x130] sm:$0xff] }
 0xdec   :  { %v2148_v33 = vsub.f32 %v2124_v62, %v2144_v56  ;;  %v2149_v55 = vsub.f32 %v2125_v36, %v2144_v56  ;;  %v2150_v0 = vsub.f32 %v2126_v9, %v2145_v52  ;;  %v2151_v11 = vsub.f32 %v2127_v35, %v2145_v52  ;;  %v9740_v56 = vld [vmem:[%s13661_s10 + $0x110] sm:$0xff] }
 0xded   :  { %14698 = vst [vmem:[#allocation64_spill] sm:$0xff] %v9740_v56  ;;  %v9746_v52 = vld [vmem:[%s13661_s10 + $0xf0] sm:$0xff] }
 0xdee   :  { %v2152_v4 = vmul.f32 1.442695, %v2148_v33  ;;  %v2154_v50 = vmul.f32 1.442695, %v2149_v55  ;;  %v2156_v21 = vmul.f32 1.442695, %v2150_v0  ;;  %v2052_v0 = vcvt.f32.s32 %v2046_v19 }
 0xdef   :  { %v2158_v10 = vmul.f32 1.442695, %v2151_v11  ;;  %v9715_v19 = vld [vmem:[%s13661_s10 + $0x190] sm:$0xff]  ;;  %14699 = vst [vmem:[#allocation65_spill] sm:$0xff] %v9746_v52 }
 0xdf0   :  { %4935 = vpow2.f32 %v2152_v4  ;;  %v2053_v62 = vshll.u32 %v2052_v0, 16  ;;  %v9752_v33 = vld [vmem:[%s13661_s10 + $0xd0] sm:$0xff] }
 0xdf1   :  { %4937 = vpow2.f32 %v2154_v50  ;;  %14700 = vst [vmem:[#allocation66_spill] sm:$0xff] %v9752_v33  ;;  %v9758_v4 = vld [vmem:[%s13661_s10 + $0xb0] sm:$0xff] }
 0xdf2   :  { %4939 = vpow2.f32 %v2156_v21  ;;  %14701 = vst [vmem:[#allocation67_spill] sm:$0xff] %v9758_v4  ;;  %v9764_v50 = vld [vmem:[%s13661_s10 + $0x90] sm:$0xff] }
 0xdf3   :  { %4941 = vpow2.f32 %v2158_v10  ;;  %14702 = vst [vmem:[#allocation68_spill] sm:$0xff] %v9764_v50  ;;  %v9770_v21 = vld [vmem:[%s13661_s10 + $0x70] sm:$0xff] }
 0xdf4   :  { %14703 = vst [vmem:[#allocation69_spill] sm:$0xff] %v9770_v21  ;;  %v9776_v11 = vld [vmem:[%s13661_s10 + $0x50] sm:$0xff] }
 0xdf5   :  { %14704 = vst [vmem:[#allocation70_spill] sm:$0xff] %v9776_v11  ;;  %v9782_v10 = vld [vmem:[%s13661_s10 + $0x30] sm:$0xff] }
 0xdf6   :  { %v9680_v24 = vpop.eup %4935  ;;  %14705 = vst [vmem:[#allocation71_spill] sm:$0xff] %v9782_v10  ;;  %v9788_v0 = vld [vmem:[%s13661_s10 + $0x10] sm:$0xff] }
 0xdf7   :  { %v9682_v46 = vpop.eup %4937  ;;  %2165 = vperm.xlu1 %4850, %v9680_v24   ;;  %14706 = vst [vmem:[#allocation72_spill] sm:$0xff] %v9788_v0 }
 0xdf8   :  { %v9685_v32 = vpop.eup %4939  ;;  %2168 = vperm.xlu2 %4848, %v9682_v46  }
 0xdf9   :  { %2171 = vperm.xlu0 %4849, %v9685_v32   ;;  %v9689_v55 = vpop.eup %4941 }
 0xe01   :  { %2174 = vperm.xlu0 %4849, %v9689_v55  }
 0xe42   :  { %v2050_v36 = vpop.xlane.xlu0 %2049 }
 0xe43   :  { %v2051_v9 = vcvt.f32.s32 %v2050_v36  ;;  %v9794_v36 = vld [vmem:[%s13661_s10 + $0x3f8] sm:$0xff] }
 0xe44   :  { %14707 = vst [vmem:[#allocation73_spill] sm:$0xff] %v9794_v36 }
 0xe45   :  { %v2054_v35 = vadd.s32 %v2053_v62, %v2051_v9  ;;  %v9800_v62 = vld [vmem:[%s13661_s10 + $0x3d8] sm:$0xff] }
 0xe46   :  { %14708 = vst [vmem:[#allocation74_spill] sm:$0xff] %v9800_v62 }
 0xe47   :  { %vm2055_vm12 = vcmp.eq.s32.totalorder %v14507_v20, %v2054_v35  ;;  %v9806_v35 = vld [vmem:[%s13661_s10 + $0x3b8] sm:$0xff] }
 0xe48   :  { %4817 = vmatmul.msk.f32.vlgmr.msrb.gmra.mxu2 %vm2055_vm12, %v14510_v31  ;;  %14709 = vst [vmem:[#allocation75_spill] sm:$0xff] %v9806_v35 }
 0xe49   :  { %2372 = vmatpush.msrb.mxu2 %v9697_v6 }
 0xe4b   :  { %2373 = vmatpush.msrb.mxu2 %v9703_v53 }
 0xe4d   :  { %2374 = vmatpush.msrb.mxu2 %v9709_v17 }
 0xe4f   :  { %2375 = vmatpush.msrb.mxu2 %v9715_v19 }
 0xe50   :  { %2308 = vmatmul.f32.vlgmr.msra.gmra.mxu2 %v9619_v22 }
 0xe51   :  { %2376 = vmatpush.msrb.mxu2 %v9722_v15 }
 0xe53   :  { %2377 = vmatpush.msrb.mxu2 %v9728_v43 }
 0xe55   :  { %2378 = vmatpush.msrb.mxu2 %v9734_v27 }
 0xe57   :  { %2379 = vmatpush.msrb.mxu2 %v9740_v56  ;;  %v14744_v56 = vld [vmem:[#allocation15_spill] sm:$0xff] }
 0xe59   :  { %2380 = vmatpush.msrb.mxu2 %v9746_v52  ;;  %v14743_v52 = vld [vmem:[#allocation14_spill] sm:$0xff] }
 0xe5b   :  { %2381 = vmatpush.msrb.mxu2 %v9752_v33 }
 0xe5d   :  { %2382 = vmatpush.msrb.mxu2 %v9758_v4 }
 0xe5f   :  { %2383 = vmatpush.msrb.mxu2 %v9764_v50 }
 0xe61   :  { %2384 = vmatpush.msrb.mxu2 %v9770_v21 }
 0xe63   :  { %2385 = vmatpush.msrb.mxu2 %v9776_v11 }
 0xe65   :  { %2386 = vmatpush.msrb.mxu2 %v9782_v10  ;;  %v2169_v10 = vpop.permute.xlu2 %2168 }
 0xe67   :  { %2387 = vmatpush.msrb.mxu2 %v9788_v0  ;;  %v9812_v0 = vld [vmem:[%s13661_s10 + $0x398] sm:$0xff] }
 0xe68   :  { %14710 = vst [vmem:[#allocation76_spill] sm:$0xff] %v9812_v0 }
 0xe69   :  { %2452 = vmatpush.msra.mxu2 %v9794_v36  ;;  %v2166_v36 = vpop.permute.xlu1 %2165 }
 0xe6a   :  { %v2176_v11 = vperm.slane %v2166_v36, %v14507_v20 }
 0xe6b   :  { %2453 = vmatpush.msra.mxu2 %v9800_v62  ;;  %v2172_v9 = vpop.permute.xlu0 %2171  ;;  %v9818_v62 = vld [vmem:[%s13661_s10 + $0x378] sm:$0xff] }
 0xe6c   :  { %14711 = vst [vmem:[#allocation77_spill] sm:$0xff] %v9818_v62  ;;  %v2179_v50 = vperm.slane %v2172_v9, %v14507_v20  ;;  %v9850_v9 = vld [vmem:[%s13661_s10 + $0x2f8] sm:$0xff] }
 0xe6d   :  { %2454 = vmatpush.msra.mxu2 %v9806_v35  ;;  %v9825_v35 = vld [vmem:[%s13661_s10 + $0x358] sm:$0xff]  ;;  %14715 = vst [vmem:[#allocation81_spill] sm:$0xff] %v9850_v9 }
 0xe6e   :  { %14712 = vst [vmem:[#allocation78_spill] sm:$0xff] %v9825_v35 }
 0xe6f   :  { %2455 = vmatpush.msra.mxu2 %v9812_v0  ;;  %v2177_v0 = vperm.slane %v2169_v10, %v14509_v34 }
 0xe71   :  { %2456 = vmatpush.msra.mxu2 %v9818_v62  ;;  %v9834_v62 = vld [vmem:[%s13661_s10 + $0x338] sm:$0xff]  ;;  %v2178_v36 = vsel %vm484_vm2, %v2177_v0, %v2176_v11 }
 0xe72   :  { %14713 = vst [vmem:[#allocation79_spill] sm:$0xff] %v9834_v62  ;;  %v9874_v11 = vld [vmem:[%s13661_s10 + $0x278] sm:$0xff] }
 0xe73   :  { %2457 = vmatpush.msra.mxu2 %v9825_v35  ;;  %v2175_v21 = vpop.permute.xlu0 %2174  ;;  %v9842_v35 = vld [vmem:[%s13661_s10 + $0x318] sm:$0xff]  ;;  %14719 = vst [vmem:[#allocation85_spill] sm:$0xff] %v9874_v11 }
 0xe74   :  { %v2180_v4 = vperm.slane %v2175_v21, %v14509_v34  ;;  %14714 = vst [vmem:[#allocation80_spill] sm:$0xff] %v9842_v35  ;;  %v9880_v0 = vld [vmem:[%s13661_s10 + $0x258] sm:$0xff] }
 0xe75   :  { %2458 = vmatpush.msra.mxu2 %v9834_v62  ;;  %14720 = vst [vmem:[#allocation86_spill] sm:$0xff] %v9880_v0  ;;  %v14742_v62 = vld [vmem:[#allocation13_spill] sm:$0xff] }
 0xe76   :  { %v2181_v33 = vsel %vm484_vm2, %v2180_v4, %v2179_v50  ;;  %v9856_v4 = vld [vmem:[%s13661_s10 + $0x2d8] sm:$0xff] }
 0xe77   :  { %2459 = vmatpush.msra.mxu2 %v9842_v35  ;;  %v2182_v21 = vsel %vm371_vm1, %v2181_v33, %v2178_v36  ;;  %14716 = vst [vmem:[#allocation82_spill] sm:$0xff] %v9856_v4  ;;  %v9862_v33 = vld [vmem:[%s13661_s10 + $0x2b8] sm:$0xff]  ;;  %v14740_v35 = vld [vmem:[#allocation11_spill] sm:$0xff] }
 0xe78   :  { %v2184_v10 = vsel %vm491_vm3, %v2182_v21, 0.0  ;;  %14717 = vst [vmem:[#allocation83_spill] sm:$0xff] %v9862_v33  ;;  %v9868_v50 = vld [vmem:[%s13661_s10 + $0x298] sm:$0xff] }
 0xe79   :  { %2460 = vmatpush.msra.mxu2 %v9850_v9  ;;  %2185 = vadd.xlane.f32.xlu1 %v2184_v10  ;;  %14718 = vst [vmem:[#allocation84_spill] sm:$0xff] %v9868_v50  ;;  %v9886_v36 = vld [vmem:[%s13661_s10 + $0x238] sm:$0xff] }
 0xe7a   :  { %14721 = vst [vmem:[#allocation87_spill] sm:$0xff] %v9886_v36  ;;  %v9892_v21 = vld [vmem:[%s13661_s10 + $0x218] sm:$0xff] }
 0xe7b   :  { %2461 = vmatpush.msra.mxu2 %v9856_v4  ;;  %14722 = vst [vmem:[#allocation88_spill] sm:$0xff] %v9892_v21 }
 0xe7d   :  { %2462 = vmatpush.msra.mxu2 %v9862_v33  ;;  %v14739_v33 = vld [vmem:[#allocation9_spill] sm:$0xff] }
 0xe7f   :  { %2463 = vmatpush.msra.mxu2 %v9868_v50 }
 0xe81   :  { %2464 = vmatpush.msra.mxu2 %v9874_v11  ;;  %v9919_v11 = vld [vmem:[%s13661_s10 + $0x198] sm:$0xff] }
 0xe82   :  { %14726 = vst [vmem:[#allocation92_spill] sm:$0xff] %v9919_v11 }
 0xe83   :  { %2465 = vmatpush.msra.mxu2 %v9880_v0  ;;  %v9901_v0 = vld [vmem:[%s13661_s10 + $0x1f8] sm:$0xff] }
 0xe84   :  { %14723 = vst [vmem:[#allocation89_spill] sm:$0xff] %v9901_v0 }
 0xe85   :  { %2466 = vmatpush.msra.mxu2 %v9886_v36  ;;  %v9907_v36 = vld [vmem:[%s13661_s10 + $0x1d8] sm:$0xff] }
 0xe86   :  { %14724 = vst [vmem:[#allocation90_spill] sm:$0xff] %v9907_v36 }
 0xe87   :  { %2467 = vmatpush.msra.mxu2 %v9892_v21  ;;  %v9913_v21 = vld [vmem:[%s13661_s10 + $0x1b8] sm:$0xff] }
 0xe88   :  { %14725 = vst [vmem:[#allocation91_spill] sm:$0xff] %v9913_v21 }
 0xecb   :  { %v9895_v10 = vpop.f32.mrf.mxu2 }
 0xecc   :  { %2288 = vmatmul.f32.vlgmr.msra.gmra.mxu1 %v9895_v10 }
 0xecd   :  { %2432 = vmatpush.msra.mxu1 %v9901_v0  ;;  %v9944_v0 = vld [vmem:[%s13661_s10 + $0x118] sm:$0xff] }
 0xece   :  { %14730 = vst [vmem:[#allocation96_spill] sm:$0xff] %v9944_v0 }
 0xecf   :  { %2433 = vmatpush.msra.mxu1 %v9907_v36  ;;  %v9926_v36 = vld [vmem:[%s13661_s10 + $0x178] sm:$0xff] }
 0xed0   :  { %14727 = vst [vmem:[#allocation93_spill] sm:$0xff] %v9926_v36 }
 0xed1   :  { %2434 = vmatpush.msra.mxu1 %v9913_v21  ;;  %v9932_v21 = vld [vmem:[%s13661_s10 + $0x158] sm:$0xff] }
 0xed2   :  { %14728 = vst [vmem:[#allocation94_spill] sm:$0xff] %v9932_v21 }
 0xed3   :  { %2435 = vmatpush.msra.mxu1 %v9919_v11  ;;  %v9938_v11 = vld [vmem:[%s13661_s10 + $0x138] sm:$0xff] }
 0xed4   :  { %2368 = vmatmul.f32.vlgmr.msrb.gmra.mxu1 %v9619_v22  ;;  %14729 = vst [vmem:[#allocation95_spill] sm:$0xff] %v9938_v11 }
 0xed5   :  { %2436 = vmatpush.msra.mxu1 %v9926_v36  ;;  %v9950_v36 = vld [vmem:[%s13661_s10 + $0xf8] sm:$0xff] }
 0xed6   :  { %14731 = vst [vmem:[#allocation97_spill] sm:$0xff] %v9950_v36 }
 0xed7   :  { %2437 = vmatpush.msra.mxu1 %v9932_v21  ;;  %v9956_v21 = vld [vmem:[%s13661_s10 + $0xd8] sm:$0xff] }
 0xed8   :  { %14732 = vst [vmem:[#allocation98_spill] sm:$0xff] %v9956_v21 }
 0xed9   :  { %2438 = vmatpush.msra.mxu1 %v9938_v11  ;;  %v9962_v11 = vld [vmem:[%s13661_s10 + $0xb8] sm:$0xff] }
 0xeda   :  { %14733 = vst [vmem:[#allocation99_spill] sm:$0xff] %v9962_v11 }
 0xedb   :  { %2439 = vmatpush.msra.mxu1 %v9944_v0  ;;  %v9968_v0 = vld [vmem:[%s13661_s10 + $0x98] sm:$0xff] }
 0xedc   :  { %14734 = vst [vmem:[#allocation100_spill] sm:$0xff] %v9968_v0 }
 0xedd   :  { %2440 = vmatpush.msra.mxu1 %v9950_v36  ;;  %v9974_v36 = vld [vmem:[%s13661_s10 + $0x78] sm:$0xff] }
 0xede   :  { %14735 = vst [vmem:[#allocation101_spill] sm:$0xff] %v9974_v36 }
 0xedf   :  { %2441 = vmatpush.msra.mxu1 %v9956_v21  ;;  %v9980_v21 = vld [vmem:[%s13661_s10 + $0x58] sm:$0xff] }
 0xee0   :  { %14736 = vst [vmem:[#allocation102_spill] sm:$0xff] %v9980_v21 }
 0xee1   :  { %2442 = vmatpush.msra.mxu1 %v9962_v11  ;;  %v9986_v11 = vld [vmem:[%s13661_s10 + $0x38] sm:$0xff] }
 0xee2   :  { %14737 = vst [vmem:[#allocation103_spill] sm:$0xff] %v9986_v11 }
 0xee3   :  { %2443 = vmatpush.msra.mxu1 %v9968_v0  ;;  %v9992_v0 = vld [vmem:[%s13661_s10 + $0x18] sm:$0xff] }
 0xee4   :  { %14738 = vst [vmem:[#allocation104_spill] sm:$0xff] %v9992_v0 }
 0xee5   :  { %2444 = vmatpush.msra.mxu1 %v9974_v36 }
 0xee7   :  { %2445 = vmatpush.msra.mxu1 %v9980_v21 }
 0xee9   :  { %2446 = vmatpush.msra.mxu1 %v9986_v11 }
 0xeeb   :  { %2447 = vmatpush.msra.mxu1 %v9992_v0 }
 0xeec   :  { %v2186_v36 = vpop.xlane.xlu1 %2185 }
 0xeed   :  { %2603 = vmatpush.msrb.mxu1 %v9122_v54  ;;  %4943 = vrcp.f32 %v2186_v36  ;;  %v2198_v4 = vand.u32 2147483648, %v2186_v36  ;;  %v2196_v0 = vand.u32 2147483647, %v2186_v36  ;;  %vm2192_vm14 = vweird.f32 %v2186_v36 }
 0xeef   :  { %2604 = vmatpush.msrb.mxu1 %v9128_v16  ;;  %v14741_v16 = vld [vmem:[#allocation12_spill] sm:$0xff]  ;;  %vm2197_vm0 = vcmp.eq.f32.partialorder %v2196_v0, 8.507059e+37  ;;  %v14747_v0 = vld [vmem:[#allocation18_spill] sm:$0xff] }
 0xef1   :  { %2605 = vmatpush.msrb.mxu1 %v9134_v28  ;;  %v2199_v28 = vor.u32 1.1754944e-38, %v2198_v4  ;;  %v14746_v4 = vld [vmem:[#allocation17_spill] sm:$0xff] }
 0xef3   :  { %2606 = vmatpush.msrb.mxu1 %v9140_v12  ;;  %v4944_v21 = vpop.eup %4943 }
 0xef4   :  { %v2188_v50 = vmul.f32 %v4944_v21, %v2186_v36  ;;  %vm2193_vm13 = vweird.f32 %v4944_v21 }
 0xef5   :  { %2607 = vmatpush.msrb.mxu1 %v9148_v58  ;;  %vm2194_vm15 = vmor %vm2192_vm14, %vm2193_vm13 }
 0xef6   :  { %v2189_v11 = vsub.f32 1.0, %v2188_v50 }
 0xef7   :  { %2608 = vmatpush.msrb.mxu1 %v14739_v33 }
 0xef8   :  { %v2190_v9 = vmul.f32 %v4944_v21, %v2189_v11 }
 0xef9   :  { %2609 = vmatpush.msrb.mxu1 %v14740_v35  ;;  %v14745_v35 = vld [vmem:[#allocation16_spill] sm:$0xff] }
 0xefa   :  { %v2191_v54 = vadd.f32 %v4944_v21, %v2190_v9 }
 0xefb   :  { %2610 = vmatpush.msrb.mxu1 %v14741_v16 }
 0xefc   :  { %v2195_v12 = vsel %vm2194_vm15, %v4944_v21, %v2191_v54  ;;  %v10018_v21 = vld [vmem:[%s13651_s0] sm:$0xff] }
 0xefd   :  { %2611 = vmatpush.msrb.mxu1 %v14742_v62  ;;  %v2200_v58 = vsel %vm2197_vm0, %v2199_v28, %v2195_v12 }
 0xefe   :  { %v2202_v50 = vperm.slane %v2200_v58, 0  ;;  %v2203_v9 = vperm.slane %v2200_v58, 1 }
 0xeff   :  { %2612 = vmatpush.msrb.mxu1 %v14743_v52  ;;  %v14748_v52 = vld [vmem:[#allocation19_spill] sm:$0xff] }
 0xf00   :  { %v2207_v33 = vmul.f32 %v9682_v46, %v2202_v50  ;;  %v2206_v11 = vmul.f32 %v9680_v24, %v2202_v50  ;;  %v2209_v62 = vmul.f32 %v9689_v55, %v2203_v9  ;;  %v2208_v36 = vmul.f32 %v9685_v32, %v2203_v9  ;;  %v14749_v24 = vld [vmem:[#allocation20_spill] sm:$0xff] }
 0xf01   :  { %2613 = vmatpush.msrb.mxu1 %v14744_v56  ;;  %v10024_v55 = vld [vmem:[%s13651_s0 + $0x8] sm:$0xff] }
 0xf02   :  { %2217 = vperm.xlu0 %4849, %v2207_v33   ;;  %2212 = vperm.xlu2 %4848, %v2206_v11   ;;  %v10030_v33 = vld [vmem:[%s13651_s0 + $0x10] sm:$0xff] }
 0xf03   :  { %2614 = vmatpush.msrb.mxu1 %v14745_v35  ;;  %v10036_v35 = vld [vmem:[%s13651_s0 + $0x18] sm:$0xff] }
 0xf05   :  { %2615 = vmatpush.msrb.mxu1 %v14746_v4 }
 0xf07   :  { %2616 = vmatpush.msrb.mxu1 %v14747_v0 }
 0xf09   :  { %2617 = vmatpush.msrb.mxu1 %v14748_v52 }
 0xf0a   :  { %2227 = vperm.xlu0 %4849, %v2209_v62   ;;  %2222 = vperm.xlu2 %4848, %v2208_v36  }
 0xf0b   :  { %2618 = vmatpush.msrb.mxu1 %v14749_v24 }
 0xf5c   :  { %v2213_v46 = vpop.permute.xlu2 %2212 }
 0xf5d   :  { %v2230_v54 = vmul.f32 %v10018_v21, %v2213_v46 }
 0xf64   :  { %v2223_v12 = vpop.permute.xlu2 %2222 }
 0xf65   :  { %v2232_v11 = vmul.f32 %v10030_v33, %v2223_v12  ;;  %v10043_v12 = vld [vmem:[%s13661_s10 + $0x5f0] sm:$0xff] }
 0xf74   :  { %v2218_v56 = vpop.permute.xlu0 %2217 }
 0xf75   :  { %v2231_v32 = vmul.f32 %v10024_v55, %v2218_v56 }
 0xf77   :  { %v2234_v16 = vadd.f32 %v2231_v32, %v2230_v54 }
 0xf79   :  { %v2235_v28 = vrot.slane %v2234_v16, 4 }
 0xf7b   :  { %v2236_v58 = vadd.f32 %v2235_v28, %v2234_v16 }
 0xf7c   :  { %v2228_v50 = vpop.permute.xlu0 %2227 }
 0xf7d   :  { %v2233_v9 = vmul.f32 %v10036_v35, %v2228_v50  ;;  %v2237_v4 = vrot.slane %v2236_v58, 2  ;;  %v10055_v50 = vld [vmem:[%s13661_s10 + $0x5d0] sm:$0xff] }
 0xf7f   :  { %v2241_v0 = vadd.f32 %v2233_v9, %v2232_v11  ;;  %v2238_v36 = vadd.f32 %v2237_v4, %v2236_v58  ;;  %v10049_v58 = vld [vmem:[%s13661_s10 + $0x5f8] sm:$0xff]  ;;  %v10074_v4 = vld [vmem:[%s13661_s10 + $0x5b0] sm:$0xff] }
 0xf80   :  { %v10061_v11 = vld [vmem:[%s13655_s4 + $0x78] sm:$0xff] }
 0xf81   :  { %v2242_v62 = vrot.slane %v2241_v0, 4  ;;  %v2239_v46 = vrot.slane %v2238_v36, 1  ;;  %v10067_v9 = vld [vmem:[%s13661_s10 + $0x5d8] sm:$0xff] }
 0xf83   :  { %v2243_v52 = vadd.f32 %v2242_v62, %v2241_v0  ;;  %v2240_v32 = vadd.f32 %v2239_v46, %v2238_v36  ;;  %v10080_v0 = vld [vmem:[%s13655_s4 + $0x70] sm:$0xff]  ;;  %v10086_v62 = vld [vmem:[%s13661_s10 + $0x5b8] sm:$0xff]  ;;  %v10099_v36 = vld [vmem:[%s13655_s4 + $0x68] sm:$0xff] }
 0xf84   :  { %v10126_v46 = vld [vmem:[%s13661_s10 + $0x550] sm:$0xff] }
 0xf85   :  { %v2244_v24 = vrot.slane %v2243_v52, 2 }
 0xf87   :  { %v2245_v56 = vadd.f32 %v2244_v24, %v2243_v52  ;;  %v10105_v52 = vld [vmem:[%s13661_s10 + $0x598] sm:$0xff] }
 0xf88   :  { %v10120_v24 = vld [vmem:[%s13661_s10 + $0x578] sm:$0xff] }
 0xf89   :  { %v2246_v54 = vrot.slane %v2245_v56, 1 }
 0xf8b   :  { %v2247_v16 = vadd.f32 %v2246_v54, %v2245_v56  ;;  %v10132_v56 = vld [vmem:[%s13655_s4 + $0x60] sm:$0xff]  ;;  %v10145_v54 = vld [vmem:[%s13661_s10 + $0x530] sm:$0xff] }
 0xf8d   :  { %v2250_v28 = vsel %vm371_vm1, %v2247_v16, %v2240_v32  ;;  %v10151_v32 = vld [vmem:[%s13655_s4 + $0x58] sm:$0xff] }
 0xf8e   :  { %2268 = vmatmul.f32.vlgmr.msra.gmra.mxu0 %v2250_v28  ;;  %2328 = vmatmul.f32.vlgmr.msra.gmra.mxu3 %v2250_v28  ;;  %v10157_v16 = vld [vmem:[%s13661_s10 + $0x538] sm:$0xff] }
 0xf8f   :  { %2388 = vmatmul.f32.vlgmr.msrb.gmra.mxu2 %v2250_v28  ;;  %2412 = vmatpush.msra.mxu0 %v10043_v12  ;;  %14750 = vst [vmem:[#allocation105_spill] sm:$0xff] %v10157_v16 }
 0xf90   :  { %2448 = vmatmul.f32.vlgmr.msra.gmra.mxu1 %v2250_v28  ;;  %2472 = vmatpush.msra.mxu3 %v10049_v58  ;;  %v10170_v28 = vld [vmem:[%s13655_s4 + $0x50] sm:$0xff] }
 0xf91   :  { %2413 = vmatpush.msra.mxu0 %v10055_v50  ;;  %2623 = vmatpush.msrb.mxu2 %v10061_v11  ;;  %14751 = vst [vmem:[#allocation106_spill] sm:$0xff] %v10170_v28 }
 0xf92   :  { %2473 = vmatpush.msra.mxu3 %v10067_v9  ;;  %2837 = vmatpush.msra.mxu1 %v9230_v1  ;;  %v10093_v1 = vld [vmem:[%s13661_s10 + $0x590] sm:$0xff] }
 0xf93   :  { %2414 = vmatpush.msra.mxu0 %v10074_v4  ;;  %2624 = vmatpush.msrb.mxu2 %v10080_v0 }
 0xf94   :  { %2474 = vmatpush.msra.mxu3 %v10086_v62  ;;  %2838 = vmatpush.msra.mxu1 %v9239_v60  ;;  %v10113_v60 = vld [vmem:[%s13661_s10 + $0x570] sm:$0xff] }
 0xf95   :  { %2415 = vmatpush.msra.mxu0 %v10093_v1  ;;  %2625 = vmatpush.msrb.mxu2 %v10099_v36 }
 0xf96   :  { %2475 = vmatpush.msra.mxu3 %v10105_v52  ;;  %2348 = vmatmul.f32.vlgmr.msrb.gmra.mxu0 %v9895_v10 }
 0xf97   :  { %2408 = vmatmul.f32.vlgmr.msrb.gmra.mxu3 %v9895_v10  ;;  %2416 = vmatpush.msra.mxu0 %v10113_v60 }
 0xf98   :  { %2468 = vmatmul.f32.vlgmr.msra.gmra.mxu2 %v9895_v10  ;;  %2476 = vmatpush.msra.mxu3 %v10120_v24  ;;  %v10138_v10 = vld [vmem:[%s13661_s10 + $0x558] sm:$0xff] }
 0xf99   :  { %2417 = vmatpush.msra.mxu0 %v10126_v46  ;;  %2626 = vmatpush.msrb.mxu2 %v10132_v56 }
 0xf9a   :  { %2477 = vmatpush.msra.mxu3 %v10138_v10  ;;  %2839 = vmatpush.msra.mxu1 %v9256_v23  ;;  %v10164_v23 = vld [vmem:[%s13661_s10 + $0x510] sm:$0xff] }
 0xf9b   :  { %2418 = vmatpush.msra.mxu0 %v10145_v54  ;;  %2627 = vmatpush.msrb.mxu2 %v10151_v32 }
 0xf9c   :  { %2478 = vmatpush.msra.mxu3 %v10157_v16  ;;  %2840 = vmatpush.msra.mxu1 %v9265_v38  ;;  %v10176_v16 = vld [vmem:[%s13661_s10 + $0x518] sm:$0xff]  ;;  %v10183_v38 = vld [vmem:[%s13661_s10 + $0x4f0] sm:$0xff] }
 0xf9d   :  { %2419 = vmatpush.msra.mxu0 %v10164_v23  ;;  %2628 = vmatpush.msrb.mxu2 %v10170_v28  ;;  %14752 = vst [vmem:[#allocation107_spill] sm:$0xff] %v10176_v16  ;;  %v10189_v28 = vld [vmem:[%s13655_s4 + $0x48] sm:$0xff] }
 0xf9e   :  { %2479 = vmatpush.msra.mxu3 %v10176_v16  ;;  %2841 = vmatpush.msra.mxu1 %v9274_v48  ;;  %14753 = vst [vmem:[#allocation108_spill] sm:$0xff] %v10189_v28  ;;  %v10195_v16 = vld [vmem:[%s13661_s10 + $0x4f8] sm:$0xff]  ;;  %v10202_v48 = vld [vmem:[%s13661_s10 + $0x4d0] sm:$0xff] }
 0xf9f   :  { %2420 = vmatpush.msra.mxu0 %v10183_v38  ;;  %2629 = vmatpush.msrb.mxu2 %v10189_v28  ;;  %14754 = vst [vmem:[#allocation109_spill] sm:$0xff] %v10195_v16  ;;  %v10208_v28 = vld [vmem:[%s13655_s4 + $0x40] sm:$0xff] }
 0xfa0   :  { %2480 = vmatpush.msra.mxu3 %v10195_v16  ;;  %2842 = vmatpush.msra.mxu1 %v9283_v13  ;;  %14755 = vst [vmem:[#allocation110_spill] sm:$0xff] %v10208_v28  ;;  %v10214_v16 = vld [vmem:[%s13661_s10 + $0x4d8] sm:$0xff]  ;;  %v10221_v13 = vld [vmem:[%s13661_s10 + $0x4b0] sm:$0xff] }
 0xfa1   :  { %2421 = vmatpush.msra.mxu0 %v10202_v48  ;;  %2630 = vmatpush.msrb.mxu2 %v10208_v28  ;;  %14756 = vst [vmem:[#allocation111_spill] sm:$0xff] %v10214_v16  ;;  %v10227_v28 = vld [vmem:[%s13655_s4 + $0x38] sm:$0xff] }
 0xfa2   :  { %2481 = vmatpush.msra.mxu3 %v10214_v16  ;;  %2843 = vmatpush.msra.mxu1 %v9292_v45  ;;  %14757 = vst [vmem:[#allocation112_spill] sm:$0xff] %v10227_v28  ;;  %v10233_v16 = vld [vmem:[%s13661_s10 + $0x4b8] sm:$0xff]  ;;  %v10240_v45 = vld [vmem:[%s13661_s10 + $0x490] sm:$0xff] }
 0xfa3   :  { %2422 = vmatpush.msra.mxu0 %v10221_v13  ;;  %2631 = vmatpush.msrb.mxu2 %v10227_v28  ;;  %14758 = vst [vmem:[#allocation113_spill] sm:$0xff] %v10233_v16  ;;  %v10246_v28 = vld [vmem:[%s13655_s4 + $0x30] sm:$0xff] }
 0xfa4   :  { %2482 = vmatpush.msra.mxu3 %v10233_v16  ;;  %2844 = vmatpush.msra.mxu1 %v9301_v8  ;;  %14759 = vst [vmem:[#allocation114_spill] sm:$0xff] %v10246_v28  ;;  %v10252_v16 = vld [vmem:[%s13661_s10 + $0x498] sm:$0xff]  ;;  %v10259_v8 = vld [vmem:[%s13661_s10 + $0x470] sm:$0xff] }
 0xfa5   :  { %2423 = vmatpush.msra.mxu0 %v10240_v45  ;;  %2632 = vmatpush.msrb.mxu2 %v10246_v28  ;;  %14760 = vst [vmem:[#allocation115_spill] sm:$0xff] %v10252_v16  ;;  %v10265_v28 = vld [vmem:[%s13655_s4 + $0x28] sm:$0xff] }
 0xfa6   :  { %2483 = vmatpush.msra.mxu3 %v10252_v16  ;;  %2845 = vmatpush.msra.mxu1 %v9310_v61  ;;  %14761 = vst [vmem:[#allocation116_spill] sm:$0xff] %v10259_v8  ;;  %v10271_v16 = vld [vmem:[%s13661_s10 + $0x478] sm:$0xff]  ;;  %v10278_v61 = vld [vmem:[%s13661_s10 + $0x450] sm:$0xff] }
 0xfa7   :  { %2424 = vmatpush.msra.mxu0 %v10259_v8  ;;  %14762 = vst [vmem:[#allocation117_spill] sm:$0xff] %v10265_v28  ;;  %2633 = vmatpush.msrb.mxu2 %v10265_v28  ;;  %v10284_v28 = vld [vmem:[%s13655_s4 + $0x20] sm:$0xff] }
 0xfa8   :  { %14763 = vst [vmem:[#allocation118_spill] sm:$0xff] %v10271_v16  ;;  %2484 = vmatpush.msra.mxu3 %v10271_v16  ;;  %2846 = vmatpush.msra.mxu1 %v9319_v47  ;;  %v10290_v16 = vld [vmem:[%s13661_s10 + $0x458] sm:$0xff]  ;;  %v10297_v47 = vld [vmem:[%s13661_s10 + $0x430] sm:$0xff] }
 0xfa9   :  { %14764 = vst [vmem:[#allocation119_spill] sm:$0xff] %v10278_v61  ;;  %2425 = vmatpush.msra.mxu0 %v10278_v61  ;;  %2634 = vmatpush.msrb.mxu2 %v10284_v28 }
 0xfaa   :  { %14765 = vst [vmem:[#allocation120_spill] sm:$0xff] %v10284_v28  ;;  %2485 = vmatpush.msra.mxu3 %v10290_v16  ;;  %2847 = vmatpush.msra.mxu1 %v9328_v3  ;;  %v10303_v28 = vld [vmem:[%s13655_s4 + $0x18] sm:$0xff]  ;;  %v10316_v3 = vld [vmem:[%s13661_s10 + $0x410] sm:$0xff] }
 0xfab   :  { %14766 = vst [vmem:[#allocation121_spill] sm:$0xff] %v10290_v16  ;;  %2426 = vmatpush.msra.mxu0 %v10297_v47  ;;  %2635 = vmatpush.msrb.mxu2 %v10303_v28  ;;  %v10309_v16 = vld [vmem:[%s13661_s10 + $0x438] sm:$0xff] }
 0xfac   :  { %14767 = vst [vmem:[#allocation122_spill] sm:$0xff] %v10297_v47  ;;  %2486 = vmatpush.msra.mxu3 %v10309_v16  ;;  %2848 = vmatpush.msra.mxu1 %v9337_v25  ;;  %v10337_v25 = vld [vmem:[%s13655_s4 + $0x8] sm:$0xff] }
 0xfad   :  { %14768 = vst [vmem:[#allocation30_spill] sm:$0xff] %v10303_v28  ;;  %2427 = vmatpush.msra.mxu0 %v10316_v3  ;;  %v10322_v28 = vld [vmem:[%s13655_s4 + $0x10] sm:$0xff] }
 0xfae   :  { %14769 = vst [vmem:[#allocation123_spill] sm:$0xff] %v10309_v16  ;;  %2636 = vmatpush.msrb.mxu2 %v10322_v28  ;;  %v10328_v16 = vld [vmem:[%s13661_s10 + $0x418] sm:$0xff]  ;;  %2428 = vmatmul.f32.vlgmr.msra.gmra.mxu0 %v9619_v22 }
 0xfaf   :  { %14770 = vst [vmem:[#allocation32_spill] sm:$0xff] %v10316_v3  ;;  %2487 = vmatpush.msra.mxu3 %v10328_v16  ;;  %2555 = vmatpush.msrb.mxu0 %v9348_v49  ;;  %v10351_v49 = vld [vmem:[%s13655_s4] sm:$0xff] }
 0xfb0   :  { %14771 = vst [vmem:[#allocation34_spill] sm:$0xff] %v10322_v28  ;;  %2488 = vmatmul.f32.vlgmr.msra.gmra.mxu3 %v9619_v22  ;;  %2637 = vmatpush.msrb.mxu2 %v10337_v25  ;;  %v10419_v22 = vld [vmem:[%s13661_s10 + $0x140] sm:$0xff] }
 0xfb1   :  { %14772 = vst [vmem:[#allocation124_spill] sm:$0xff] %v10328_v16  ;;  %2849 = vmatpush.msra.mxu1 %v9355_v14  ;;  %2556 = vmatpush.msrb.mxu0 %v9361_v51  ;;  %v10345_v16 = vld [vmem:[%s13661_s10 + $0x1e0] sm:$0xff]  ;;  %v10359_v14 = vld [vmem:[%s13661_s10 + $0x1e8] sm:$0xff] }
 0xfb2   :  { %14773 = vst [vmem:[#allocation35_spill] sm:$0xff] %v10337_v25  ;;  %2797 = vmatpush.msrb.mxu3 %v10345_v16  ;;  %2638 = vmatpush.msrb.mxu2 %v10351_v49  ;;  %v10366_v51 = vld [vmem:[%s13661_s10 + $0x1c0] sm:$0xff] }
 0xfb3   :  { %14774 = vst [vmem:[#allocation125_spill] sm:$0xff] %v10345_v16  ;;  %2850 = vmatpush.msra.mxu1 %v9369_v41  ;;  %2557 = vmatpush.msrb.mxu0 %v9375_v39  ;;  %v10373_v41 = vld [vmem:[%s13661_s10 + $0x1c8] sm:$0xff]  ;;  %v10380_v39 = vld [vmem:[%s13661_s10 + $0x1a0] sm:$0xff] }
 0xfb4   :  { %14775 = vst [vmem:[#allocation126_spill] sm:$0xff] %v10351_v49  ;;  %2857 = vmatpush.msra.mxu2 %v10359_v14  ;;  %2798 = vmatpush.msrb.mxu3 %v10366_v51 }
 0xfb5   :  { %14776 = vst [vmem:[#allocation36_spill] sm:$0xff] %v10359_v14  ;;  %2851 = vmatpush.msra.mxu1 %v9382_v59  ;;  %2558 = vmatpush.msrb.mxu0 %v9389_v7  ;;  %v10387_v59 = vld [vmem:[%s13661_s10 + $0x1a8] sm:$0xff]  ;;  %v10393_v7 = vld [vmem:[%s13661_s10 + $0x180] sm:$0xff] }
 0xfb6   :  { %14777 = vst [vmem:[#allocation37_spill] sm:$0xff] %v10366_v51  ;;  %2858 = vmatpush.msra.mxu2 %v10373_v41  ;;  %2799 = vmatpush.msrb.mxu3 %v10380_v39 }
 0xfb7   :  { %14778 = vst [vmem:[#allocation38_spill] sm:$0xff] %v10373_v41  ;;  %2852 = vmatpush.msra.mxu1 %v9396_v63  ;;  %2559 = vmatpush.msrb.mxu0 %v9403_v18  ;;  %v10400_v63 = vld [vmem:[%s13661_s10 + $0x188] sm:$0xff]  ;;  %v10406_v18 = vld [vmem:[%s13661_s10 + $0x160] sm:$0xff] }
 0xfb8   :  { %14779 = vst [vmem:[#allocation39_spill] sm:$0xff] %v10380_v39  ;;  %2859 = vmatpush.msra.mxu2 %v10387_v59  ;;  %2800 = vmatpush.msrb.mxu3 %v10393_v7 }
 0xfb9   :  { %14780 = vst [vmem:[#allocation40_spill] sm:$0xff] %v10387_v59  ;;  %2560 = vmatpush.msrb.mxu0 %v9411_v57  ;;  %v10413_v57 = vld [vmem:[%s13661_s10 + $0x168] sm:$0xff] }
 0xfba   :  { %14781 = vst [vmem:[#allocation41_spill] sm:$0xff] %v10393_v7  ;;  %2860 = vmatpush.msra.mxu2 %v10400_v63  ;;  %2801 = vmatpush.msrb.mxu3 %v10406_v18 }
 0xfbb   :  { %14782 = vst [vmem:[#allocation42_spill] sm:$0xff] %v10400_v63  ;;  %2561 = vmatpush.msrb.mxu0 %v9419_v26  ;;  %v10426_v26 = vld [vmem:[%s13661_s10 + $0x148] sm:$0xff] }
 0xfbc   :  { %14783 = vst [vmem:[#allocation43_spill] sm:$0xff] %v10406_v18  ;;  %2861 = vmatpush.msra.mxu2 %v10413_v57  ;;  %2802 = vmatpush.msrb.mxu3 %v10419_v22  ;;  %v14843_v63 = vld [vmem:[#allocation24_spill] sm:$0xff] }
 0xfbd   :  { %14784 = vst [vmem:[#allocation45_spill] sm:$0xff] %v10413_v57  ;;  %2562 = vmatpush.msrb.mxu0 %v9427_v5  ;;  %v10432_v57 = vld [vmem:[%s13661_s10 + $0x120] sm:$0xff]  ;;  %v10439_v5 = vld [vmem:[%s13661_s10 + $0x128] sm:$0xff] }
 0xfbe   :  { %14785 = vst [vmem:[#allocation46_spill] sm:$0xff] %v10419_v22  ;;  %2862 = vmatpush.msra.mxu2 %v10426_v26  ;;  %2803 = vmatpush.msrb.mxu3 %v10432_v57 }
 0xfbf   :  { %14786 = vst [vmem:[#allocation47_spill] sm:$0xff] %v10426_v26  ;;  %2563 = vmatpush.msrb.mxu0 %v9435_v2  ;;  %v10445_v26 = vld [vmem:[%s13661_s10 + $0x100] sm:$0xff]  ;;  %v10452_v2 = vld [vmem:[%s13661_s10 + $0x108] sm:$0xff] }
 0xfc0   :  { %14787 = vst [vmem:[#allocation48_spill] sm:$0xff] %v10432_v57  ;;  %2863 = vmatpush.msra.mxu2 %v10439_v5  ;;  %2804 = vmatpush.msrb.mxu3 %v10445_v26 }
 0xfc1   :  { %14788 = vst [vmem:[#allocation49_spill] sm:$0xff] %v10439_v5  ;;  %2564 = vmatpush.msrb.mxu0 %v9443_v29  ;;  %v10458_v5 = vld [vmem:[%s13661_s10 + $0xe0] sm:$0xff]  ;;  %v10465_v29 = vld [vmem:[%s13661_s10 + $0xe8] sm:$0xff] }
 0xfc2   :  { %14789 = vst [vmem:[#allocation50_spill] sm:$0xff] %v10445_v26  ;;  %2864 = vmatpush.msra.mxu2 %v10452_v2  ;;  %2805 = vmatpush.msrb.mxu3 %v10458_v5  ;;  %v14842_v26 = vld [vmem:[#allocation22_spill] sm:$0xff] }
 0xfc3   :  { %14790 = vst [vmem:[#allocation127_spill] sm:$0xff] %v10452_v2  ;;  %2565 = vmatpush.msrb.mxu0 %v9451_v37  ;;  %v10471_v2 = vld [vmem:[%s13661_s10 + $0xc0] sm:$0xff]  ;;  %v10478_v37 = vld [vmem:[%s13661_s10 + $0xc8] sm:$0xff] }
 0xfc4   :  { %14791 = vst [vmem:[#allocation28_spill] sm:$0xff] %v10458_v5  ;;  %2865 = vmatpush.msra.mxu2 %v10465_v29  ;;  %2806 = vmatpush.msrb.mxu3 %v10471_v2  ;;  %v14817_v5 = vld [vmem:[#allocation51_spill] sm:$0xff] }
 0xfc5   :  { %14792 = vst [vmem:[#allocation44_spill] sm:$0xff] %v10465_v29  ;;  %2566 = vmatpush.msrb.mxu0 %v9459_v40  ;;  %v10484_v29 = vld [vmem:[%s13661_s10 + $0xa0] sm:$0xff]  ;;  %v10491_v40 = vld [vmem:[%s13661_s10 + $0xa8] sm:$0xff] }
 0xfc6   :  { %14793 = vst [vmem:[#allocation128_spill] sm:$0xff] %v10471_v2  ;;  %2866 = vmatpush.msra.mxu2 %v10478_v37  ;;  %2807 = vmatpush.msrb.mxu3 %v10484_v29  ;;  %v14798_v2 = vld [vmem:[#allocation21_spill] sm:$0xff] }
 0xfc7   :  { %14794 = vst [vmem:[#allocation129_spill] sm:$0xff] %v10478_v37  ;;  %2567 = vmatpush.msrb.mxu0 %v9467_v42  ;;  %v10497_v37 = vld [vmem:[%s13661_s10 + $0x80] sm:$0xff]  ;;  %v10504_v42 = vld [vmem:[%s13661_s10 + $0x88] sm:$0xff] }
 0xfc8   :  { %14795 = vst [vmem:[#allocation130_spill] sm:$0xff] %v10484_v29  ;;  %2867 = vmatpush.msra.mxu2 %v10491_v40  ;;  %2808 = vmatpush.msrb.mxu3 %v10497_v37  ;;  %v14801_v29 = vld [vmem:[#allocation23_spill] sm:$0xff] }
 0xfc9   :  { %14796 = vst [vmem:[#allocation131_spill] sm:$0xff] %v10491_v40  ;;  %2568 = vmatpush.msrb.mxu0 %v14798_v2  ;;  %v10510_v40 = vld [vmem:[%s13661_s10 + $0x60] sm:$0xff]  ;;  %v10517_v2 = vld [vmem:[%s13661_s10 + $0x68] sm:$0xff] }
 0xfca   :  { %14797 = vst [vmem:[#allocation132_spill] sm:$0xff] %v10497_v37  ;;  %2868 = vmatpush.msra.mxu2 %v10504_v42  ;;  %2809 = vmatpush.msrb.mxu3 %v10510_v40  ;;  %v14804_v37 = vld [vmem:[#allocation25_spill] sm:$0xff] }
 0xfcb   :  { %14799 = vst [vmem:[#allocation133_spill] sm:$0xff] %v10504_v42  ;;  %2569 = vmatpush.msrb.mxu0 %v14801_v29  ;;  %v10523_v42 = vld [vmem:[%s13661_s10 + $0x40] sm:$0xff]  ;;  %v10530_v29 = vld [vmem:[%s13661_s10 + $0x48] sm:$0xff] }
 0xfcc   :  { %14800 = vst [vmem:[#allocation134_spill] sm:$0xff] %v10510_v40  ;;  %2869 = vmatpush.msra.mxu2 %v10517_v2  ;;  %2810 = vmatpush.msrb.mxu3 %v10523_v42  ;;  %v14806_v40 = vld [vmem:[#allocation27_spill] sm:$0xff] }
 0xfcd   :  { %14802 = vst [vmem:[#allocation135_spill] sm:$0xff] %v10517_v2  ;;  %2570 = vmatpush.msrb.mxu0 %v14804_v37  ;;  %v10537_v2 = vld [vmem:[%s13661_s10 + $0x20] sm:$0xff]  ;;  %v10543_v37 = vld [vmem:[%s13661_s10 + $0x28] sm:$0xff] }
 0xfce   :  { %14803 = vst [vmem:[#allocation136_spill] sm:$0xff] %v10523_v42  ;;  %2870 = vmatpush.msra.mxu2 %v10530_v29  ;;  %2811 = vmatpush.msrb.mxu3 %v10537_v2  ;;  %v14809_v42 = vld [vmem:[#allocation29_spill] sm:$0xff] }
 0xfcf   :  { %14805 = vst [vmem:[#allocation137_spill] sm:$0xff] %v10530_v29  ;;  %2817 = vmatpush.msra.mxu0 %v14806_v40  ;;  %v10550_v40 = vld [vmem:[%s13661_s10] sm:$0xff]  ;;  %v14815_v29 = vld [vmem:[#allocation33_spill] sm:$0xff] }
 0xfd0   :  { %14807 = vst [vmem:[#allocation138_spill] sm:$0xff] %v10537_v2  ;;  %2871 = vmatpush.msra.mxu2 %v10543_v37  ;;  %2812 = vmatpush.msrb.mxu3 %v10550_v40  ;;  %v10556_v2 = vld [vmem:[%s13661_s10 + $0x8] sm:$0xff] }
 0xfd1   :  { %14808 = vst [vmem:[#allocation139_spill] sm:$0xff] %v10543_v37  ;;  %2818 = vmatpush.msra.mxu0 %v14809_v42  ;;  %v10562_v37 = vld [vmem:[%s13661_s10 + $0x3e8] sm:$0xff] }
 0xfd2   :  { %14810 = vst [vmem:[#allocation140_spill] sm:$0xff] %v10550_v40  ;;  %2872 = vmatpush.msra.mxu2 %v10556_v2  ;;  %2877 = vmatpush.msra.mxu3 %v10562_v37  ;;  %v14813_v42 = vld [vmem:[#allocation31_spill] sm:$0xff] }
 0xfd3   :  { %14811 = vst [vmem:[#allocation141_spill] sm:$0xff] %v10556_v2  ;;  %2819 = vmatpush.msra.mxu0 %v14813_v42  ;;  %v10569_v40 = vld [vmem:[%s13661_s10 + $0x3c8] sm:$0xff] }
 0xfd4   :  { %14812 = vst [vmem:[#allocation142_spill] sm:$0xff] %v10562_v37  ;;  %2878 = vmatpush.msra.mxu3 %v10569_v40  ;;  %v10576_v2 = vld [vmem:[%s13661_s10 + $0x3a8] sm:$0xff] }
 0xfd5   :  { %14814 = vst [vmem:[#allocation143_spill] sm:$0xff] %v10569_v40  ;;  %2820 = vmatpush.msra.mxu0 %v14815_v29  ;;  %v10583_v42 = vld [vmem:[%s13661_s10 + $0x388] sm:$0xff]  ;;  %v14821_v40 = vld [vmem:[#allocation53_spill] sm:$0xff] }
 0xfd6   :  { %14816 = vst [vmem:[#allocation144_spill] sm:$0xff] %v10576_v2  ;;  %2879 = vmatpush.msra.mxu3 %v10576_v2  ;;  %v14819_v37 = vld [vmem:[#allocation52_spill] sm:$0xff]  ;;  %v14823_v2 = vld [vmem:[#allocation54_spill] sm:$0xff] }
 0xfd7   :  { %2821 = vmatpush.msra.mxu0 %v14817_v5  ;;  %14818 = vst [vmem:[#allocation145_spill] sm:$0xff] %v10583_v42  ;;  %v10590_v29 = vld [vmem:[%s13661_s10 + $0x368] sm:$0xff] }
 0xfd8   :  { %2880 = vmatpush.msra.mxu3 %v10583_v42  ;;  %14820 = vst [vmem:[#allocation146_spill] sm:$0xff] %v10590_v29  ;;  %v10597_v5 = vld [vmem:[%s13661_s10 + $0x348] sm:$0xff] }
 0xfd9   :  { %2822 = vmatpush.msra.mxu0 %v14819_v37  ;;  %14822 = vst [vmem:[#allocation147_spill] sm:$0xff] %v10597_v5  ;;  %v10604_v37 = vld [vmem:[%s13661_s10 + $0x328] sm:$0xff] }
 0xfda   :  { %2881 = vmatpush.msra.mxu3 %v10590_v29  ;;  %14824 = vst [vmem:[#allocation148_spill] sm:$0xff] %v10604_v37  ;;  %v14825_v42 = vld [vmem:[#allocation55_spill] sm:$0xff]  ;;  %v14827_v29 = vld [vmem:[#allocation56_spill] sm:$0xff] }
 0xfdb   :  { %2823 = vmatpush.msra.mxu0 %v14821_v40  ;;  %v10611_v40 = vld [vmem:[%s13661_s10 + $0x308] sm:$0xff] }
 0xfdc   :  { %2882 = vmatpush.msra.mxu3 %v10597_v5  ;;  %14826 = vst [vmem:[#allocation149_spill] sm:$0xff] %v10611_v40  ;;  %v14829_v5 = vld [vmem:[#allocation57_spill] sm:$0xff] }
 0xfdd   :  { %2824 = vmatpush.msra.mxu0 %v14823_v2  ;;  %v10618_v2 = vld [vmem:[%s13661_s10 + $0x2e8] sm:$0xff] }
 0xfde   :  { %2883 = vmatpush.msra.mxu3 %v10604_v37  ;;  %14828 = vst [vmem:[#allocation150_spill] sm:$0xff] %v10618_v2  ;;  %v14831_v37 = vld [vmem:[#allocation58_spill] sm:$0xff] }
 0xfdf   :  { %2825 = vmatpush.msra.mxu0 %v14825_v42  ;;  %v10625_v42 = vld [vmem:[%s13661_s10 + $0x2c8] sm:$0xff] }
 0xfe0   :  { %2884 = vmatpush.msra.mxu3 %v10611_v40  ;;  %14830 = vst [vmem:[#allocation151_spill] sm:$0xff] %v10625_v42  ;;  %v14833_v40 = vld [vmem:[#allocation59_spill] sm:$0xff] }
 0xfe1   :  { %2826 = vmatpush.msra.mxu0 %v14827_v29  ;;  %v10632_v29 = vld [vmem:[%s13661_s10 + $0x2a8] sm:$0xff] }
 0xfe2   :  { %2885 = vmatpush.msra.mxu3 %v10618_v2  ;;  %14832 = vst [vmem:[#allocation152_spill] sm:$0xff] %v10632_v29  ;;  %v14835_v2 = vld [vmem:[#allocation60_spill] sm:$0xff] }
 0xfe3   :  { %2827 = vmatpush.msra.mxu0 %v14829_v5  ;;  %v10639_v5 = vld [vmem:[%s13661_s10 + $0x288] sm:$0xff] }
 0xfe4   :  { %2886 = vmatpush.msra.mxu3 %v10625_v42  ;;  %14834 = vst [vmem:[#allocation153_spill] sm:$0xff] %v10639_v5  ;;  %v14837_v42 = vld [vmem:[#allocation61_spill] sm:$0xff] }
 0xfe5   :  { %2828 = vmatpush.msra.mxu0 %v14831_v37  ;;  %v10646_v37 = vld [vmem:[%s13661_s10 + $0x268] sm:$0xff] }
 0xfe6   :  { %2887 = vmatpush.msra.mxu3 %v10632_v29  ;;  %14836 = vst [vmem:[#allocation154_spill] sm:$0xff] %v10646_v37  ;;  %v14839_v29 = vld [vmem:[#allocation62_spill] sm:$0xff] }
 0xfe7   :  { %2829 = vmatpush.msra.mxu0 %v14833_v40  ;;  %v10653_v40 = vld [vmem:[%s13661_s10 + $0x248] sm:$0xff] }
 0xfe8   :  { %2888 = vmatpush.msra.mxu3 %v10639_v5  ;;  %14838 = vst [vmem:[#allocation155_spill] sm:$0xff] %v10653_v40 }
 0xfe9   :  { %2830 = vmatpush.msra.mxu0 %v14835_v2  ;;  %v10660_v2 = vld [vmem:[%s13661_s10 + $0x228] sm:$0xff] }
 0xfea   :  { %2889 = vmatpush.msra.mxu3 %v10646_v37  ;;  %14840 = vst [vmem:[#allocation156_spill] sm:$0xff] %v10660_v2  ;;  %v2289_v37 = vpop.f32.mrf.mxu1 }
 0xfeb   :  { %2831 = vmatpush.msra.mxu0 %v14837_v42  ;;  %v10666_v42 = vld [vmem:[%s13661_s10 + $0x208] sm:$0xff] }
 0xfec   :  { %2890 = vmatpush.msra.mxu3 %v10653_v40  ;;  %14841 = vst [vmem:[#allocation157_spill] sm:$0xff] %v10666_v42 }
 0xfed   :  { %2832 = vmatpush.msra.mxu0 %v14839_v29  ;;  %v2309_v29 = vpop.f32.mrf.mxu2 }
 0xfee   :  { %2891 = vmatpush.msra.mxu3 %v10660_v2 }
 0xff0   :  { %2892 = vmatpush.msra.mxu3 %v10666_v42 }
 0xff2   :  { %v2369_v41 = vpop.f32.mrf.mxu1 }
0x100b   :  { %v2269_v5 = vpop.f32.mrf.mxu0 }
0x100c   :  { %v2270_v40 = vadd.f32 %v2269_v5, %v14842_v26 }
0x100e   :  { %v2290_v57 = vadd.f32 %v2289_v37, %v2270_v40 }
0x1010   :  { %v2310_v22 = vadd.f32 %v2309_v29, %v2290_v57  ;;  %v2449_v29 = vpop.f32.mrf.mxu1 }
0x1011   :  { %v2329_v18 = vpop.f32.mrf.mxu3 }
0x1012   :  { %v2330_v7 = vadd.f32 %v2329_v18, %v14843_v63  ;;  %v4818_v39 = vmul.f32 -1.442695, %v2310_v22  ;;  %v2389_v5 = vpop.f32.mrf.mxu2 }
0x1013   :  { %v2349_v59 = vpop.f32.mrf.mxu0 }
0x1014   :  { %v2350_v2 = vadd.f32 %v2349_v59, %v2330_v7  ;;  %4945 = vpow2.f32 %v4818_v39  ;;  %v2450_v59 = vadd.f32 %v2449_v29, %v14655_v30 }
0x1016   :  { %v2370_v51 = vadd.f32 %v2369_v41, %v2350_v2 }
0x1018   :  { %v4819_v14 = vmul.f32 -1.442695, %v2370_v51  ;;  %v2390_v51 = vadd.f32 %v2389_v5, %v14654_v44 }
0x101a   :  { %4947 = vpow2.f32 %v4819_v14  ;;  %v4946_v49 = vpop.eup %4945  ;;  %v2409_v57 = vpop.f32.mrf.mxu3 }
0x101b   :  { %v2495_v16 = vadd.f32 1.0, %v4946_v49  ;;  %v2469_v22 = vpop.f32.mrf.mxu2  ;;  %v2410_v2 = vadd.f32 %v2409_v57, %v2390_v51 }
0x101c   :  { %v2470_v14 = vadd.f32 %v2469_v22, %v2450_v59 }
0x101d   :  { %v2507_v5 = vand.u32 2147483648, %v2495_v16  ;;  %vm2501_vm9 = vweird.f32 %v2495_v16 }
0x1020   :  { %v4948_v42 = vpop.eup %4947 }
0x1021   :  { %v2514_v25 = vadd.f32 1.0, %v4948_v42 }
0x1023   :  { %4949 = vrcp.f32 %v2514_v25  ;;  %v2526_v8 = vand.u32 2147483648, %v2514_v25  ;;  %vm2520_vm5 = vweird.f32 %v2514_v25 }
0x1024   :  { %4951 = vrcp.f32 %v2495_v16 }
0x1025   :  { %v2527_v59 = vor.u32 1.1754944e-38, %v2526_v8 }
0x1029   :  { %v4950_v37 = vpop.eup %4949 }
0x102a   :  { %v4952_v40 = vpop.eup %4951  ;;  %v2516_v18 = vmul.f32 %v4950_v37, %v2514_v25  ;;  %vm2521_vm4 = vweird.f32 %v4950_v37 }
0x102b   :  { %v2497_v63 = vmul.f32 %v4952_v40, %v2495_v16  ;;  %v2429_v39 = vpop.f32.mrf.mxu0  ;;  %vm2502_vm6 = vweird.f32 %v4952_v40  ;;  %vm2522_vm8 = vmor %vm2520_vm5, %vm2521_vm4 }
0x102c   :  { %v2517_v41 = vsub.f32 1.0, %v2516_v18  ;;  %v2430_v28 = vadd.f32 %v2429_v39, %v2410_v2  ;;  %v2524_v18 = vand.u32 2147483647, %v2514_v25  ;;  %vm2503_vm10 = vmor %vm2501_vm9, %vm2502_vm6 }
0x102d   :  { %v2498_v7 = vsub.f32 1.0, %v2497_v63  ;;  %v2505_v63 = vand.u32 2147483647, %v2495_v16 }
0x102e   :  { %v2518_v26 = vmul.f32 %v4950_v37, %v2517_v41  ;;  %vm2525_vm11 = vcmp.eq.f32.partialorder %v2524_v18, 8.507059e+37 }
0x102f   :  { %v2499_v47 = vmul.f32 %v4952_v40, %v2498_v7  ;;  %vm2506_vm12 = vcmp.eq.f32.partialorder %v2505_v63, 8.507059e+37 }
0x1030   :  { %v2519_v61 = vadd.f32 %v4950_v37, %v2518_v26  ;;  %v2508_v26 = vor.u32 1.1754944e-38, %v2507_v5 }
0x1031   :  { %v2500_v29 = vadd.f32 %v4952_v40, %v2499_v47  ;;  %v14844_v47 = vld [vmem:[#allocation63_spill] sm:$0xff] }
0x1032   :  { %v2523_v22 = vsel %vm2522_vm8, %v4950_v37, %v2519_v61 }
0x1033   :  { %v2489_v49 = vpop.f32.mrf.mxu3  ;;  %v2504_v41 = vsel %vm2503_vm10, %v4952_v40, %v2500_v29 }
0x1034   :  { %v2490_v42 = vadd.f32 %v2489_v49, %v2470_v14  ;;  %v2528_v14 = vsel %vm2525_vm11, %v2527_v59, %v2523_v22  ;;  %v10684_v22 = vld [vmem:[%s13661_s10 + $0x5e8] sm:$0xff] }
0x1035   :  { %v2550_v39 = vmul.f32 %v2528_v14, %v14844_v47  ;;  %v10696_v59 = vld [vmem:[%s13661_s10 + $0x5c8] sm:$0xff]  ;;  %v10726_v14 = vld [vmem:[%s13661_s10 + $0x390] sm:$0xff] }
0x1036   :  { %v4820_v3 = vmul.f32 -1.442695, %v2490_v42  ;;  %14845 = vst [vmem:[#allocation158_spill] sm:$0xff] %v10696_v59  ;;  %v10738_v47 = vld [vmem:[%s13661_s10 + $0x370] sm:$0xff] }
0x1037   :  { %14850 = vst [vmem:[#allocation162_spill] sm:$0xff] %v10726_v14 }
0x1038   :  { %4953 = vpow2.f32 %v4820_v3  ;;  %14852 = vst [vmem:[#allocation164_spill] sm:$0xff] %v10738_v47 }
0x1039   :  { %4955 = vtanh.f32 %v2430_v28  ;;  %v2509_v28 = vsel %vm2506_vm12, %v2508_v26, %v2504_v41  ;;  %v10702_v41 = vld [vmem:[%s13661_s10 + $0x3d0] sm:$0xff]  ;;  %v10720_v26 = vld [vmem:[%s13661_s10 + $0x588] sm:$0xff] }
0x103a   :  { %14846 = vst [vmem:[#allocation159_spill] sm:$0xff] %v10702_v41 }
0x103b   :  { %14849 = vst [vmem:[#allocation161_spill] sm:$0xff] %v10720_v26 }
0x103e   :  { %v4954_v57 = vpop.eup %4953 }
0x103f   :  { %v2534_v51 = vadd.f32 1.0, %v4954_v57  ;;  %v4956_v3 = vpop.eup %4955  ;;  %v10690_v57 = vld [vmem:[%s13661_s10 + $0x3f0] sm:$0xff] }
0x1040   :  { %v2551_v25 = vmul.f32 %v4956_v3, %v2509_v28  ;;  %v10714_v3 = vld [vmem:[%s13661_s10 + $0x3b0] sm:$0xff]  ;;  %v10732_v28 = vld [vmem:[%s13661_s10 + $0x568] sm:$0xff] }
0x1041   :  { %4957 = vrcp.f32 %v2534_v51  ;;  %v2546_v8 = vand.u32 2147483648, %v2534_v51  ;;  %v2544_v40 = vand.u32 2147483647, %v2534_v51  ;;  %vm2540_vm14 = vweird.f32 %v2534_v51  ;;  %14848 = vst [vmem:[#allocation160_spill] sm:$0xff] %v10714_v3 }
0x1042   :  { %v10674_v49 = vadd.f32 %v2551_v25, %v2550_v39  ;;  %14851 = vst [vmem:[#allocation165_spill] sm:$0xff] %v10732_v28  ;;  %v10744_v39 = vld [vmem:[%s13661_s10 + $0x548] sm:$0xff]  ;;  %v10750_v25 = vld [vmem:[%s13661_s10 + $0x350] sm:$0xff] }
0x1043   :  { %v2547_v42 = vor.u32 1.1754944e-38, %v2546_v8  ;;  %vm2545_vm0 = vcmp.eq.f32.partialorder %v2544_v40, 8.507059e+37  ;;  %14853 = vst [vmem:[#allocation166_spill] sm:$0xff] %v10744_v39  ;;  %v10774_v8 = vld [vmem:[%s13661_s10 + $0x310] sm:$0xff] }
0x1044   :  { %4959 = vtanh.f32 %v10674_v49  ;;  %14854 = vst [vmem:[#allocation9_spill] sm:$0xff] %v10750_v25  ;;  %v10786_v40 = vld [vmem:[%s13661_s10 + $0x2f0] sm:$0xff] }
0x1045   :  { %14858 = vst [vmem:[#allocation14_spill] sm:$0xff] %v10774_v8 }
0x1046   :  { %14860 = vst [vmem:[#allocation16_spill] sm:$0xff] %v10786_v40 }
0x1047   :  { %v4958_v7 = vpop.eup %4957 }
0x1048   :  { %v2536_v16 = vmul.f32 %v4958_v7, %v2534_v51  ;;  %vm2541_vm13 = vweird.f32 %v4958_v7  ;;  %v10708_v51 = vld [vmem:[%s13661_s10 + $0x5a8] sm:$0xff] }
0x1049   :  { %vm2542_vm15 = vmor %vm2540_vm14, %vm2541_vm13  ;;  %14847 = vst [vmem:[#allocation163_spill] sm:$0xff] %v10708_v51 }
0x104a   :  { %v2537_v61 = vsub.f32 1.0, %v2536_v16  ;;  %v4960_v18 = vpop.eup %4959  ;;  %v10762_v16 = vld [vmem:[%s13661_s10 + $0x330] sm:$0xff] }
0x104b   :  { %14856 = vst [vmem:[#allocation12_spill] sm:$0xff] %v10762_v16 }
0x104c   :  { %v2538_v37 = vmul.f32 %v4958_v7, %v2537_v61  ;;  %v10768_v61 = vld [vmem:[%s13661_s10 + $0x508] sm:$0xff] }
0x104d   :  { %14857 = vst [vmem:[#allocation13_spill] sm:$0xff] %v10768_v61 }
0x104e   :  { %v2539_v2 = vadd.f32 %v4958_v7, %v2538_v37  ;;  %v10780_v37 = vld [vmem:[%s13661_s10 + $0x4e8] sm:$0xff] }
0x104f   :  { %14859 = vst [vmem:[#allocation15_spill] sm:$0xff] %v10780_v37 }
0x1050   :  { %v2543_v29 = vsel %vm2542_vm15, %v4958_v7, %v2539_v2  ;;  %v10756_v7 = vld [vmem:[%s13661_s10 + $0x528] sm:$0xff] }
0x1051   :  { %v2548_v5 = vsel %vm2545_vm0, %v2547_v42, %v2543_v29  ;;  %14855 = vst [vmem:[#allocation11_spill] sm:$0xff] %v10756_v7  ;;  %v10792_v2 = vld [vmem:[%s13661_s10 + $0x4c8] sm:$0xff]  ;;  %v10798_v42 = vld [vmem:[%s13661_s10 + $0x2d0] sm:$0xff] }
0x1052   :  { %v10677_v63 = vmul.f32 %v4960_v18, %v2548_v5  ;;  %14861 = vst [vmem:[#allocation17_spill] sm:$0xff] %v10792_v2  ;;  %v10804_v29 = vld [vmem:[%s13661_s10 + $0x4a8] sm:$0xff]  ;;  %v10810_v18 = vld [vmem:[%s13661_s10 + $0x2b0] sm:$0xff] }
0x1053   :  { %14862 = vst [vmem:[#allocation18_spill] sm:$0xff] %v10798_v42  ;;  %v10816_v5 = vld [vmem:[%s13661_s10 + $0x488] sm:$0xff] }
0x1054   :  { %2571 = vmatmul.f32.vlgmr.msrb.gmra.mxu0 %v10677_v63  ;;  %2639 = vmatmul.f32.vlgmr.msrb.gmra.mxu2 %v10677_v63  ;;  %14863 = vst [vmem:[#allocation19_spill] sm:$0xff] %v10804_v29 }
0x1055   :  { %2897 = vmatpush.msrb.mxu0 %v10684_v22  ;;  %2937 = vmatpush.msrb.mxu2 %v10690_v57  ;;  %14864 = vst [vmem:[#allocation20_spill] sm:$0xff] %v10810_v18 }
0x1056   :  { %14865 = vst [vmem:[#allocation21_spill] sm:$0xff] %v10816_v5 }
0x1057   :  { %2898 = vmatpush.msrb.mxu0 %v10696_v59  ;;  %2938 = vmatpush.msrb.mxu2 %v10702_v41 }
0x1059   :  { %2899 = vmatpush.msrb.mxu0 %v10708_v51  ;;  %2939 = vmatpush.msrb.mxu2 %v10714_v3 }
0x105b   :  { %2900 = vmatpush.msrb.mxu0 %v10720_v26  ;;  %2940 = vmatpush.msrb.mxu2 %v10726_v14 }
0x105d   :  { %2901 = vmatpush.msrb.mxu0 %v10732_v28  ;;  %2941 = vmatpush.msrb.mxu2 %v10738_v47 }
0x105f   :  { %2902 = vmatpush.msrb.mxu0 %v10744_v39  ;;  %2942 = vmatpush.msrb.mxu2 %v10750_v25 }
0x1061   :  { %2903 = vmatpush.msrb.mxu0 %v10756_v7  ;;  %2943 = vmatpush.msrb.mxu2 %v10762_v16  ;;  %v10888_v7 = vld [vmem:[%s13652_s1 + $0x8] sm:$0xff] }
0x1062   :  { %14877 = vst [vmem:[#allocation56_spill] sm:$0xff] %v10888_v7 }
0x1063   :  { %2904 = vmatpush.msrb.mxu0 %v10768_v61  ;;  %2944 = vmatpush.msrb.mxu2 %v10774_v8 }
0x1065   :  { %2905 = vmatpush.msrb.mxu0 %v10780_v37  ;;  %2945 = vmatpush.msrb.mxu2 %v10786_v40 }
0x1067   :  { %2906 = vmatpush.msrb.mxu0 %v10792_v2  ;;  %2946 = vmatpush.msrb.mxu2 %v10798_v42  ;;  %v10822_v42 = vld [vmem:[%s13661_s10 + $0x290] sm:$0xff]  ;;  %v10876_v2 = vld [vmem:[%s13664_s13] ss:$0 sm:$0xff] }
0x1068   :  { %14866 = vst [vmem:[#allocation23_spill] sm:$0xff] %v10822_v42 }
0x1069   :  { %2907 = vmatpush.msrb.mxu0 %v10804_v29  ;;  %2947 = vmatpush.msrb.mxu2 %v10810_v18  ;;  %v10828_v29 = vld [vmem:[%s13661_s10 + $0x468] sm:$0xff]  ;;  %v10834_v18 = vld [vmem:[%s13661_s10 + $0x270] sm:$0xff]  ;;  %14875 = vst [vmem:[#allocation54_spill] sm:$0xff] %v10876_v2 }
0x106a   :  { %14867 = vst [vmem:[#allocation25_spill] sm:$0xff] %v10828_v29 }
0x106b   :  { %2908 = vmatpush.msrb.mxu0 %v10816_v5  ;;  %2948 = vmatpush.msrb.mxu2 %v10822_v42  ;;  %14868 = vst [vmem:[#allocation27_spill] sm:$0xff] %v10834_v18  ;;  %v10840_v5 = vld [vmem:[%s13661_s10 + $0x448] sm:$0xff]  ;;  %v10846_v42 = vld [vmem:[%s13661_s10 + $0x250] sm:$0xff] }
0x106c   :  { %14869 = vst [vmem:[#allocation29_spill] sm:$0xff] %v10840_v5 }
0x106d   :  { %2909 = vmatpush.msrb.mxu0 %v10828_v29  ;;  %2949 = vmatpush.msrb.mxu2 %v10834_v18  ;;  %14870 = vst [vmem:[#allocation31_spill] sm:$0xff] %v10846_v42  ;;  %v10852_v29 = vld [vmem:[%s13661_s10 + $0x428] sm:$0xff]  ;;  %v10858_v18 = vld [vmem:[%s13661_s10 + $0x230] sm:$0xff] }
0x106e   :  { %14871 = vst [vmem:[#allocation33_spill] sm:$0xff] %v10852_v29 }
0x106f   :  { %2910 = vmatpush.msrb.mxu0 %v10840_v5  ;;  %2950 = vmatpush.msrb.mxu2 %v10846_v42  ;;  %14872 = vst [vmem:[#allocation51_spill] sm:$0xff] %v10858_v18  ;;  %v10864_v5 = vld [vmem:[%s13661_s10 + $0x408] sm:$0xff]  ;;  %v10870_v42 = vld [vmem:[%s13661_s10 + $0x210] sm:$0xff] }
0x1070   :  { %14873 = vst [vmem:[#allocation52_spill] sm:$0xff] %v10864_v5 }
0x1071   :  { %2911 = vmatpush.msrb.mxu0 %v10852_v29  ;;  %2951 = vmatpush.msrb.mxu2 %v10858_v18  ;;  %14874 = vst [vmem:[#allocation53_spill] sm:$0xff] %v10870_v42 }
0x1073   :  { %2912 = vmatpush.msrb.mxu0 %v10864_v5  ;;  %2952 = vmatpush.msrb.mxu2 %v10870_v42  ;;  %v10882_v5 = vld [vmem:[%s13656_s5] ss:$0 sm:$0xff] }
0x1074   :  { %14876 = vst [vmem:[#allocation55_spill] sm:$0xff] %v10882_v5 }
0x10d1   :  { %v2572_v29 = vpop.f32.mrf.mxu0 }
0x10d2   :  { %v2573_v18 = vadd.f32 %v10876_v2, %v2572_v29 }
0x10d4   :  { %v2576_v40 = vrot.slane %v2573_v18, 1  ;;  %2578 = vst [vmem:[#allocation3 + $0x3] sm:$0x1] %v2573_v18 }
0x10d6   :  { %2579 = vst [vmem:[#allocation3 + $0xb] sm:$0x1] %v2576_v40  ;;  %v10894_v40 = vld [vmem:[%s13652_s1] sm:$0xff] }
0x10d7   :  { %v2640_v37 = vpop.f32.mrf.mxu2  ;;  %14878 = vst [vmem:[#allocation57_spill] sm:$0xff] %v10894_v40 }
0x10d8   :  { %v2641_v8 = vadd.f32 %v10882_v5, %v2640_v37 }
0x10da   :  { %v2644_v42 = vrot.slane %v2641_v8, 1  ;;  %v2645_v61 = vperm.slane %v2641_v8, 0  ;;  %v10900_v8 = vld [vmem:[%s13652_s1 + $0x10] sm:$0xff] }
0x10db   :  { %14879 = vst [vmem:[#allocation58_spill] sm:$0xff] %v10900_v8 }
0x10dc   :  { %v2646_v16 = vperm.slane %v2644_v42, 0  ;;  %v2650_v29 = vadd.f32 %v10888_v7, %v2645_v61  ;;  %v2649_v2 = vadd.f32 %v10894_v40, %v2645_v61  ;;  %v10906_v42 = vld [vmem:[%s13657_s6] ss:$0 sm:$0xff] }
0x10dd   :  { %14880 = vst [vmem:[#allocation59_spill] sm:$0xff] %v10906_v42 }
0x10de   :  { %v2654_v25 = vmax.f32 %v2650_v29, 0.0  ;;  %v2653_v39 = vmax.f32 %v2649_v2, 0.0  ;;  %v2651_v37 = vadd.f32 %v10900_v8, %v2646_v16  ;;  %v10914_v2 = vld [vmem:[%s13652_s1 + $0x18] sm:$0xff] }
0x10df   :  { %14881 = vst [vmem:[#allocation60_spill] sm:$0xff] %v10914_v2  ;;  %v2652_v29 = vadd.f32 %v10914_v2, %v2646_v16 }
0x10e0   :  { %v2658_v7 = vmul.f32 %v10906_v42, %v2654_v25  ;;  %v2657_v5 = vmul.f32 %v10906_v42, %v2653_v39  ;;  %v2655_v47 = vmax.f32 %v2651_v37, 0.0  ;;  %v2580_v25 = vsel %vm944_vm7, %v2573_v18, -inf  ;;  %v14882_v37 = vld [vmem:[#allocation10_spill] sm:$0xff] }
0x10e1   :  { %v2656_v8 = vmax.f32 %v2652_v29, 0.0 }
0x10e2   :  { %2663 = vadd.xlane.f32.xlu0 %v2658_v7  ;;  %2661 = vadd.xlane.f32.xlu2 %v2657_v5  ;;  %v2659_v61 = vmul.f32 %v10906_v42, %v2655_v47 }
0x10e3   :  { %v2660_v40 = vmul.f32 %v10906_v42, %v2656_v8 }
0x10e4   :  { %2665 = vadd.xlane.f32.xlu1 %v2659_v61 }
0x10ec   :  { %2667 = vadd.xlane.f32.xlu1 %v2660_v40 }
0x10f4   :  { %2581 = vmax.xlane.f32.xlu1 %v2580_v25 }
0x1155   :  { %v2664_v7 = vpop.xlane.xlu0 %2663  ;;  %v2662_v5 = vpop.xlane.xlu2 %2661 }
0x1156   :  { %v2670_v47 = vadd.f32 %v2664_v7, %v14882_v37  ;;  %v2669_v28 = vadd.f32 %v2662_v5, %v14882_v37 }
0x1157   :  { %v2666_v39 = vpop.xlane.xlu1 %2665 }
0x1158   :  { %v2671_v14 = vadd.f32 %v2666_v39, %v14882_v37  ;;  %v2678_v16 = vperm.slane %v2670_v47, %v14509_v34  ;;  %v2677_v61 = vperm.slane %v2669_v28, %v14507_v20 }
0x115a   :  { %v2680_v40 = vperm.slane %v2671_v14, %v14507_v20  ;;  %v2679_v25 = vsel %vm484_vm2, %v2678_v16, %v2677_v61 }
0x115f   :  { %v2668_v26 = vpop.xlane.xlu1 %2667 }
0x1160   :  { %v2672_v8 = vadd.f32 %v2668_v26, %v14882_v37 }
0x1162   :  { %v2681_v29 = vperm.slane %v2672_v8, %v14509_v34 }
0x1164   :  { %v2682_v2 = vsel %vm484_vm2, %v2681_v29, %v2680_v40 }
0x1165   :  { %v2683_v7 = vsel %vm371_vm1, %v2682_v2, %v2679_v25 }
0x1166   :  { %v2685_v5 = vsel %vm491_vm3, %v2683_v7, -inf }
0x1167   :  { %2686 = vmax.xlane.f32.xlu2 %v2685_v5  ;;  %v2582_v39 = vpop.xlane.xlu1 %2581 }
0x1168   :  { %vm2583_vm4 = vcmp.eq.f32.partialorder %v2573_v18, %v2582_v39 }
0x1169   :  { %v2584_v42 = vsel %vm2583_vm4, %v14507_v20, 128 }
0x116a   :  { %v2585_v3 = vsel %vm944_vm7, %v2584_v42, 2147483647 }
0x116b   :  { %v2587_v26 = vshra.s32 %v2585_v3, 16  ;;  %v2586_v40 = vand.u32 65535, %v2585_v3 }
0x116d   :  { %v2589_v37 = vcvt.s32.f32 %v2587_v26  ;;  %v2588_v18 = vcvt.s32.f32 %v2586_v40  ;;  %v14883_v40 = vld [vmem:[#allocation64_spill] sm:$0xff] }
0x116f   :  { %2590 = vmin.xlane.f32.xlu0 %v2589_v37 }
0x11da   :  { %v2687_v51 = vpop.xlane.xlu2 %2686 }
0x11db   :  { %v2689_v41 = vperm.slane %v2687_v51, 0  ;;  %v2690_v59 = vperm.slane %v2687_v51, 1 }
0x11dd   :  { %v2693_v16 = vsub.f32 %v2669_v28, %v2689_v41  ;;  %v2694_v61 = vsub.f32 %v2670_v47, %v2689_v41  ;;  %v2696_v25 = vsub.f32 %v2672_v8, %v2690_v59  ;;  %v2695_v51 = vsub.f32 %v2671_v14, %v2690_v59 }
0x11df   :  { %v2697_v29 = vmul.f32 1.442695, %v2693_v16  ;;  %v2699_v2 = vmul.f32 1.442695, %v2694_v61  ;;  %v2703_v39 = vmul.f32 1.442695, %v2696_v25 }
0x11e0   :  { %v2701_v3 = vmul.f32 1.442695, %v2695_v51  ;;  %v14888_v51 = vld [vmem:[#allocation69_spill] sm:$0xff] }
0x11e1   :  { %4961 = vpow2.f32 %v2697_v29 }
0x11e2   :  { %4963 = vpow2.f32 %v2699_v2  ;;  %v2591_v7 = vpop.xlane.xlu0 %2590 }
0x11e3   :  { %vm2592_vm5 = vcmp.eq.f32.partialorder %v2589_v37, %v2591_v7  ;;  %4965 = vpow2.f32 %v2703_v39  ;;  %v2597_v37 = vcvt.f32.s32 %v2591_v7  ;;  %v14886_v7 = vld [vmem:[#allocation67_spill] sm:$0xff]  ;;  %v14887_v39 = vld [vmem:[#allocation68_spill] sm:$0xff] }
0x11e4   :  { %v2593_v5 = vsel %vm2592_vm5, %v2588_v18, inf  ;;  %4967 = vpow2.f32 %v2701_v3  ;;  %v14889_v3 = vld [vmem:[#allocation70_spill] sm:$0xff] }
0x11e5   :  { %2594 = vmin.xlane.f32.xlu1 %v2593_v5  ;;  %v2598_v8 = vshll.u32 %v2597_v37, 16  ;;  %v14890_v37 = vld [vmem:[#allocation71_spill] sm:$0xff] }
0x11e7   :  { %v10933_v42 = vpop.eup %4961 }
0x11e8   :  { %v10935_v26 = vpop.eup %4963  ;;  %2710 = vperm.xlu2 %4848, %v10933_v42  }
0x11e9   :  { %2713 = vperm.xlu0 %4849, %v10935_v26   ;;  %v10939_v41 = vpop.eup %4965 }
0x11ea   :  { %v10942_v28 = vpop.eup %4967 }
0x11f0   :  { %2719 = vperm.xlu2 %4848, %v10939_v41  }
0x11fe   :  { %2716 = vperm.xlu1 %4850, %v10942_v28  }
0x1242   :  { %v2711_v59 = vpop.permute.xlu2 %2710 }
0x1243   :  { %v2721_v2 = vperm.slane %v2711_v59, %v14507_v20  ;;  %v14895_v59 = vld [vmem:[#allocation76_spill] sm:$0xff] }
0x124a   :  { %v2720_v29 = vpop.permute.xlu2 %2719 }
0x1258   :  { %v2595_v47 = vpop.xlane.xlu1 %2594 }
0x1259   :  { %v2596_v16 = vcvt.f32.s32 %v2595_v47  ;;  %v14891_v47 = vld [vmem:[#allocation72_spill] sm:$0xff] }
0x125b   :  { %v2599_v61 = vadd.s32 %v2598_v8, %v2596_v16  ;;  %v2714_v14 = vpop.permute.xlu0 %2713  ;;  %v14892_v8 = vld [vmem:[#allocation73_spill] sm:$0xff]  ;;  %v14893_v16 = vld [vmem:[#allocation74_spill] sm:$0xff] }
0x125d   :  { %vm2600_vm6 = vcmp.eq.s32.totalorder %v14507_v20, %v2599_v61  ;;  %v14894_v61 = vld [vmem:[#allocation75_spill] sm:$0xff] }
0x125e   :  { %4822 = vmatmul.msk.f32.vlgmr.msrb.gmra.mxu1 %vm2600_vm6, %v14510_v31 }
0x125f   :  { %2917 = vmatpush.msrb.mxu1 %v9697_v6  ;;  %v2722_v6 = vperm.slane %v2714_v14, %v14509_v34  ;;  %v14896_v14 = vld [vmem:[#allocation77_spill] sm:$0xff] }
0x1261   :  { %2918 = vmatpush.msrb.mxu1 %v9703_v53  ;;  %v14884_v53 = vld [vmem:[#allocation65_spill] sm:$0xff] }
0x1263   :  { %2919 = vmatpush.msrb.mxu1 %v9709_v17 }
0x1265   :  { %2920 = vmatpush.msrb.mxu1 %v9715_v19  ;;  %v2725_v19 = vperm.slane %v2720_v29, %v14509_v34  ;;  %v14898_v29 = vld [vmem:[#allocation79_spill] sm:$0xff] }
0x1266   :  { %2853 = vmatmul.f32.vlgmr.msra.gmra.mxu1 %v10677_v63 }
0x1267   :  { %2921 = vmatpush.msrb.mxu1 %v9722_v15  ;;  %v14885_v15 = vld [vmem:[#allocation66_spill] sm:$0xff] }
0x1269   :  { %2922 = vmatpush.msrb.mxu1 %v9728_v43  ;;  %v2723_v43 = vsel %vm484_vm2, %v2722_v6, %v2721_v2  ;;  %v14899_v6 = vld [vmem:[#allocation80_spill] sm:$0xff]  ;;  %v14902_v2 = vld [vmem:[#allocation83_spill] sm:$0xff] }
0x126b   :  { %2923 = vmatpush.msrb.mxu1 %v9734_v27 }
0x126d   :  { %2924 = vmatpush.msrb.mxu1 %v14883_v40  ;;  %v14897_v40 = vld [vmem:[#allocation78_spill] sm:$0xff] }
0x126f   :  { %2925 = vmatpush.msrb.mxu1 %v14884_v53  ;;  %v14900_v53 = vld [vmem:[#allocation81_spill] sm:$0xff] }
0x1270   :  { %v2717_v17 = vpop.permute.xlu1 %2716 }
0x1271   :  { %v2724_v25 = vperm.slane %v2717_v17, %v14507_v20  ;;  %2926 = vmatpush.msrb.mxu1 %v14885_v15  ;;  %v14901_v17 = vld [vmem:[#allocation82_spill] sm:$0xff] }
0x1272   :  { %v14905_v15 = vld [vmem:[#allocation86_spill] sm:$0xff] }
0x1273   :  { %v2726_v27 = vsel %vm484_vm2, %v2725_v19, %v2724_v25  ;;  %2927 = vmatpush.msrb.mxu1 %v14886_v7  ;;  %v14903_v19 = vld [vmem:[#allocation84_spill] sm:$0xff]  ;;  %v14904_v25 = vld [vmem:[#allocation85_spill] sm:$0xff] }
0x1274   :  { %v2727_v18 = vsel %vm371_vm1, %v2726_v27, %v2723_v43  ;;  %v14906_v43 = vld [vmem:[#allocation87_spill] sm:$0xff]  ;;  %v14907_v27 = vld [vmem:[#allocation88_spill] sm:$0xff] }
0x1275   :  { %v2729_v5 = vsel %vm491_vm3, %v2727_v18, 0.0  ;;  %2928 = vmatpush.msrb.mxu1 %v14887_v39  ;;  %v14908_v18 = vld [vmem:[#allocation89_spill] sm:$0xff]  ;;  %v14910_v39 = vld [vmem:[#allocation91_spill] sm:$0xff] }
0x1276   :  { %2730 = vadd.xlane.f32.xlu0 %v2729_v5  ;;  %v14909_v5 = vld [vmem:[#allocation90_spill] sm:$0xff] }
0x1277   :  { %2929 = vmatpush.msrb.mxu1 %v14888_v51  ;;  %v14911_v51 = vld [vmem:[#allocation92_spill] sm:$0xff] }
0x1279   :  { %2930 = vmatpush.msrb.mxu1 %v14889_v3  ;;  %v14912_v3 = vld [vmem:[#allocation93_spill] sm:$0xff] }
0x127b   :  { %2931 = vmatpush.msrb.mxu1 %v14890_v37  ;;  %v14913_v37 = vld [vmem:[#allocation94_spill] sm:$0xff] }
0x127d   :  { %2932 = vmatpush.msrb.mxu1 %v14891_v47 }
0x127f   :  { %2997 = vmatpush.msra.mxu1 %v14892_v8  ;;  %v14914_v8 = vld [vmem:[#allocation95_spill] sm:$0xff] }
0x1281   :  { %2998 = vmatpush.msra.mxu1 %v14893_v16  ;;  %v14915_v16 = vld [vmem:[#allocation96_spill] sm:$0xff] }
0x1283   :  { %2999 = vmatpush.msra.mxu1 %v14894_v61  ;;  %v14916_v61 = vld [vmem:[#allocation97_spill] sm:$0xff] }
0x1285   :  { %3000 = vmatpush.msra.mxu1 %v14895_v59  ;;  %v14917_v59 = vld [vmem:[#allocation98_spill] sm:$0xff] }
0x1287   :  { %3001 = vmatpush.msra.mxu1 %v14896_v14 }
0x1289   :  { %3002 = vmatpush.msra.mxu1 %v14897_v40 }
0x128b   :  { %3003 = vmatpush.msra.mxu1 %v14898_v29  ;;  %v14918_v29 = vld [vmem:[#allocation99_spill] sm:$0xff] }
0x128d   :  { %3004 = vmatpush.msra.mxu1 %v14899_v6 }
0x128f   :  { %3005 = vmatpush.msra.mxu1 %v14900_v53  ;;  %v14919_v53 = vld [vmem:[#allocation100_spill] sm:$0xff] }
0x1291   :  { %3006 = vmatpush.msra.mxu1 %v14901_v17 }
0x1293   :  { %3007 = vmatpush.msra.mxu1 %v14902_v2 }
0x1295   :  { %3008 = vmatpush.msra.mxu1 %v14903_v19 }
0x1297   :  { %3009 = vmatpush.msra.mxu1 %v14904_v25  ;;  %v14920_v25 = vld [vmem:[#allocation101_spill] sm:$0xff] }
0x1299   :  { %3010 = vmatpush.msra.mxu1 %v14905_v15 }
0x129b   :  { %3011 = vmatpush.msra.mxu1 %v14906_v43  ;;  %v14921_v43 = vld [vmem:[#allocation102_spill] sm:$0xff] }
0x129d   :  { %3012 = vmatpush.msra.mxu1 %v14907_v27 }
0x12db   :  { %v10988_v7 = vpop.f32.mrf.mxu1 }
0x12dc   :  { %2833 = vmatmul.f32.vlgmr.msra.gmra.mxu0 %v10988_v7 }
0x12dd   :  { %2977 = vmatpush.msra.mxu0 %v14908_v18 }
0x12df   :  { %2978 = vmatpush.msra.mxu0 %v14909_v5  ;;  %v14922_v5 = vld [vmem:[#allocation103_spill] sm:$0xff] }
0x12e1   :  { %2979 = vmatpush.msra.mxu0 %v14910_v39 }
0x12e3   :  { %2980 = vmatpush.msra.mxu0 %v14911_v51 }
0x12e4   :  { %2913 = vmatmul.f32.vlgmr.msrb.gmra.mxu0 %v10677_v63 }
0x12e5   :  { %2981 = vmatpush.msra.mxu0 %v14912_v3  ;;  %v14923_v3 = vld [vmem:[#allocation104_spill] sm:$0xff] }
0x12e7   :  { %2982 = vmatpush.msra.mxu0 %v14913_v37  ;;  %v11011_v37 = vld [vmem:[%s13654_s3 + $0x78] sm:$0xff] }
0x12e9   :  { %v2731_v47 = vpop.xlane.xlu0 %2730  ;;  %2983 = vmatpush.msra.mxu0 %v14914_v8 }
0x12ea   :  { %4969 = vrcp.f32 %v2731_v47  ;;  %v2743_v17 = vand.u32 2147483648, %v2731_v47  ;;  %v2741_v19 = vand.u32 2147483647, %v2731_v47  ;;  %vm2737_vm9 = vweird.f32 %v2731_v47 }
0x12eb   :  { %2984 = vmatpush.msra.mxu0 %v14915_v16  ;;  %v11019_v16 = vld [vmem:[%s13654_s3 + $0x70] sm:$0xff] }
0x12ec   :  { %v2744_v27 = vor.u32 1.1754944e-38, %v2743_v17  ;;  %vm2742_vm11 = vcmp.eq.f32.partialorder %v2741_v19, 8.507059e+37  ;;  %v11075_v17 = vld [vmem:[%s13654_s3 + $0x28] sm:$0xff]  ;;  %v11087_v19 = vld [vmem:[%s13654_s3 + $0x18] sm:$0xff] }
0x12ed   :  { %2985 = vmatpush.msra.mxu0 %v14916_v61  ;;  %v11025_v61 = vld [vmem:[%s13654_s3 + $0x68] sm:$0xff]  ;;  %14926 = vst [vmem:[#allocation63_spill] sm:$0xff] %v11075_v17 }
0x12ee   :  { %14928 = vst [vmem:[#allocation65_spill] sm:$0xff] %v11087_v19 }
0x12ef   :  { %2986 = vmatpush.msra.mxu0 %v14917_v59 }
0x12f0   :  { %v4970_v14 = vpop.eup %4969 }
0x12f1   :  { %v2733_v40 = vmul.f32 %v4970_v14, %v2731_v47  ;;  %2987 = vmatpush.msra.mxu0 %v14918_v29  ;;  %vm2738_vm8 = vweird.f32 %v4970_v14  ;;  %v11045_v29 = vld [vmem:[%s13654_s3 + $0x50] sm:$0xff] }
0x12f2   :  { %vm2739_vm10 = vmor %vm2737_vm9, %vm2738_vm8 }
0x12f3   :  { %v2734_v6 = vsub.f32 1.0, %v2733_v40  ;;  %2988 = vmatpush.msra.mxu0 %v14919_v53  ;;  %v11069_v53 = vld [vmem:[%s13654_s3 + $0x30] sm:$0xff] }
0x12f4   :  { %14925 = vst [vmem:[#allocation62_spill] sm:$0xff] %v11069_v53 }
0x12f5   :  { %v2735_v2 = vmul.f32 %v4970_v14, %v2734_v6  ;;  %2989 = vmatpush.msra.mxu0 %v14920_v25  ;;  %v11051_v6 = vld [vmem:[%s13654_s3 + $0x48] sm:$0xff]  ;;  %v11093_v25 = vld [vmem:[%s13654_s3 + $0x10] sm:$0xff] }
0x12f6   :  { %14929 = vst [vmem:[#allocation66_spill] sm:$0xff] %v11093_v25 }
0x12f7   :  { %v2736_v15 = vadd.f32 %v4970_v14, %v2735_v2  ;;  %2990 = vmatpush.msra.mxu0 %v14921_v43  ;;  %v11081_v2 = vld [vmem:[%s13654_s3 + $0x20] sm:$0xff] }
0x12f8   :  { %14927 = vst [vmem:[#allocation64_spill] sm:$0xff] %v11081_v2  ;;  %v11105_v43 = vld [vmem:[%s13654_s3] sm:$0xff] }
0x12f9   :  { %v2740_v18 = vsel %vm2739_vm10, %v4970_v14, %v2736_v15  ;;  %2991 = vmatpush.msra.mxu0 %v14922_v5  ;;  %v11099_v15 = vld [vmem:[%s13654_s3 + $0x8] sm:$0xff]  ;;  %14931 = vst [vmem:[#allocation68_spill] sm:$0xff] %v11105_v43 }
0x12fa   :  { %v2745_v39 = vsel %vm2742_vm11, %v2744_v27, %v2740_v18  ;;  %14930 = vst [vmem:[#allocation67_spill] sm:$0xff] %v11099_v15 }
0x12fb   :  { %v2747_v51 = vperm.slane %v2745_v39, 0  ;;  %2992 = vmatpush.msra.mxu0 %v14923_v3  ;;  %v2748_v59 = vperm.slane %v2745_v39, 1 }
0x12fd   :  { %3148 = vmatpush.msrb.mxu0 %v11011_v37  ;;  %v2752_v47 = vmul.f32 %v10935_v26, %v2747_v51  ;;  %v2751_v8 = vmul.f32 %v10933_v42, %v2747_v51  ;;  %v11031_v42 = vld [vmem:[%s13654_s3 + $0x60] sm:$0xff]  ;;  %v11037_v26 = vld [vmem:[%s13654_s3 + $0x58] sm:$0xff]  ;;  %v2754_v14 = vmul.f32 %v10939_v41, %v2748_v59  ;;  %v2753_v40 = vmul.f32 %v10942_v28, %v2748_v59 }
0x12fe   :  { %v11057_v41 = vld [vmem:[%s13654_s3 + $0x40] sm:$0xff]  ;;  %v11063_v28 = vld [vmem:[%s13654_s3 + $0x38] sm:$0xff] }
0x12ff   :  { %3149 = vmatpush.msrb.mxu0 %v11019_v16  ;;  %2762 = vperm.xlu2 %4848, %v2752_v47   ;;  %14924 = vst [vmem:[#allocation61_spill] sm:$0xff] %v11063_v28 }
0x1300   :  { %2757 = vperm.xlu1 %4850, %v2751_v8  }
0x1301   :  { %3150 = vmatpush.msrb.mxu0 %v11025_v61 }
0x1303   :  { %3151 = vmatpush.msrb.mxu0 %v11031_v42 }
0x1305   :  { %3152 = vmatpush.msrb.mxu0 %v11037_v26 }
0x1307   :  { %3153 = vmatpush.msrb.mxu0 %v11045_v29  ;;  %2772 = vperm.xlu2 %4848, %v2754_v14  }
0x1308   :  { %2767 = vperm.xlu1 %4850, %v2753_v40  }
0x1309   :  { %3154 = vmatpush.msrb.mxu0 %v11051_v6 }
0x130b   :  { %3155 = vmatpush.msrb.mxu0 %v11057_v41 }
0x130d   :  { %3156 = vmatpush.msrb.mxu0 %v11063_v28 }
0x130f   :  { %3157 = vmatpush.msrb.mxu0 %v11069_v53 }
0x1311   :  { %3158 = vmatpush.msrb.mxu0 %v11075_v17 }
0x1313   :  { %3159 = vmatpush.msrb.mxu0 %v11081_v2 }
0x1315   :  { %3160 = vmatpush.msrb.mxu0 %v11087_v19 }
0x1317   :  { %3161 = vmatpush.msrb.mxu0 %v11093_v25 }
0x1319   :  { %3162 = vmatpush.msrb.mxu0 %v11099_v15 }
0x131b   :  { %3163 = vmatpush.msrb.mxu0 %v11105_v43 }
0x1359   :  { %v2763_v27 = vpop.permute.xlu2 %2762 }
0x135a   :  { %v2776_v5 = vmul.f32 %v10024_v55, %v2763_v27 }
0x1361   :  { %v2773_v47 = vpop.permute.xlu2 %2772 }
0x1362   :  { %v2778_v14 = vmul.f32 %v10036_v35, %v2773_v47  ;;  %v11130_v35 = vld [vmem:[%s13661_s10 + $0x5c0] sm:$0xff]  ;;  %v14956_v47 = vld [vmem:[#allocation125_spill] sm:$0xff] }
0x1372   :  { %v2758_v18 = vpop.permute.xlu1 %2757 }
0x1373   :  { %v2775_v39 = vmul.f32 %v10018_v21, %v2758_v18 }
0x1375   :  { %v2779_v51 = vadd.f32 %v2776_v5, %v2775_v39  ;;  %v14954_v5 = vld [vmem:[#allocation124_spill] sm:$0xff]  ;;  %v11239_v39 = vld [vmem:[%s13663_s12 + $0x78] sm:$0xff] }
0x1377   :  { %v2780_v3 = vrot.slane %v2779_v51, 4 }
0x1379   :  { %v2781_v8 = vadd.f32 %v2780_v3, %v2779_v51  ;;  %v14955_v51 = vld [vmem:[#allocation35_spill] sm:$0xff] }
0x137a   :  { %v2768_v59 = vpop.permute.xlu1 %2767  ;;  %v11246_v3 = vld [vmem:[%s13661_s10 + $0x460] sm:$0xff] }
0x137b   :  { %v2777_v40 = vmul.f32 %v10030_v33, %v2768_v59  ;;  %v2782_v15 = vrot.slane %v2781_v8, 2  ;;  %v11121_v33 = vld [vmem:[%s13661_s10 + $0x5e0] sm:$0xff] }
0x137c   :  { %v11260_v59 = vld [vmem:[%s13661_s10 + $0x440] sm:$0xff] }
0x137d   :  { %v2786_v25 = vadd.f32 %v2778_v14, %v2777_v40  ;;  %v2783_v2 = vadd.f32 %v2782_v15, %v2781_v8  ;;  %v14952_v15 = vld [vmem:[#allocation32_spill] sm:$0xff]  ;;  %v14957_v8 = vld [vmem:[#allocation126_spill] sm:$0xff] }
0x137e   :  { %v11266_v14 = vld [vmem:[%s13663_s12 + $0x68] sm:$0xff] }
0x137f   :  { %v2787_v19 = vrot.slane %v2786_v25, 4  ;;  %v2784_v53 = vrot.slane %v2783_v2, 1  ;;  %v14958_v40 = vld [vmem:[#allocation36_spill] sm:$0xff] }
0x1381   :  { %v2788_v43 = vadd.f32 %v2787_v19, %v2786_v25  ;;  %v2785_v27 = vadd.f32 %v2784_v53, %v2783_v2  ;;  %v11219_v53 = vld [vmem:[%s13661_s10 + $0x4a0] sm:$0xff] }
0x1382   :  { %v14950_v2 = vld [vmem:[#allocation30_spill] sm:$0xff]  ;;  %v14951_v19 = vld [vmem:[#allocation123_spill] sm:$0xff] }
0x1383   :  { %v2789_v17 = vrot.slane %v2788_v43, 2  ;;  %v11228_v25 = vld [vmem:[%s13661_s10 + $0x480] sm:$0xff] }
0x1385   :  { %v2790_v28 = vadd.f32 %v2789_v17, %v2788_v43  ;;  %v14949_v17 = vld [vmem:[#allocation122_spill] sm:$0xff] }
0x1386   :  { %v14953_v43 = vld [vmem:[#allocation34_spill] sm:$0xff] }
0x1387   :  { %v2791_v55 = vrot.slane %v2790_v28, 1 }
0x1389   :  { %v2792_v21 = vadd.f32 %v2791_v55, %v2790_v28  ;;  %v14948_v28 = vld [vmem:[#allocation121_spill] sm:$0xff]  ;;  %v11273_v55 = vld [vmem:[%s13661_s10 + $0x420] sm:$0xff] }
0x138b   :  { %v2795_v18 = vsel %vm371_vm1, %v2792_v21, %v2785_v27  ;;  %v14959_v27 = vld [vmem:[#allocation37_spill] sm:$0xff]  ;;  %v11280_v21 = vld [vmem:[%s13663_s12 + $0x60] sm:$0xff] }
0x138c   :  { %2813 = vmatmul.f32.vlgmr.msrb.gmra.mxu3 %v2795_v18  ;;  %2873 = vmatmul.f32.vlgmr.msra.gmra.mxu2 %v2795_v18 }
0x138d   :  { %2933 = vmatmul.f32.vlgmr.msrb.gmra.mxu1 %v2795_v18  ;;  %2957 = vmatpush.msrb.mxu3 %v10043_v12  ;;  %v11147_v12 = vld [vmem:[%s13661_s10 + $0x5a0] sm:$0xff] }
0x138e   :  { %2993 = vmatmul.f32.vlgmr.msra.gmra.mxu0 %v2795_v18  ;;  %3017 = vmatpush.msra.mxu2 %v10049_v58  ;;  %v14932_v58 = vld [vmem:[#allocation105_spill] sm:$0xff]  ;;  %v14960_v18 = vld [vmem:[#allocation38_spill] sm:$0xff] }
0x138f   :  { %2958 = vmatpush.msrb.mxu3 %v10055_v50  ;;  %3168 = vmatpush.msrb.mxu1 %v10061_v11  ;;  %v11156_v50 = vld [vmem:[%s13661_s10 + $0x580] sm:$0xff] }
0x1390   :  { %3018 = vmatpush.msra.mxu2 %v10067_v9  ;;  %3382 = vmatpush.msra.mxu0 %v11121_v33  ;;  %v14933_v11 = vld [vmem:[#allocation106_spill] sm:$0xff]  ;;  %v14934_v9 = vld [vmem:[#allocation107_spill] sm:$0xff] }
0x1391   :  { %2959 = vmatpush.msrb.mxu3 %v10074_v4  ;;  %3169 = vmatpush.msrb.mxu1 %v10080_v0  ;;  %v11165_v4 = vld [vmem:[%s13661_s10 + $0x560] sm:$0xff]  ;;  %v14935_v0 = vld [vmem:[#allocation108_spill] sm:$0xff] }
0x1392   :  { %3019 = vmatpush.msra.mxu2 %v10086_v62  ;;  %3383 = vmatpush.msra.mxu0 %v11130_v35  ;;  %v14936_v62 = vld [vmem:[#allocation109_spill] sm:$0xff] }
0x1393   :  { %2960 = vmatpush.msrb.mxu3 %v10093_v1  ;;  %3170 = vmatpush.msrb.mxu1 %v10099_v36  ;;  %v11174_v1 = vld [vmem:[%s13661_s10 + $0x540] sm:$0xff] }
0x1394   :  { %3020 = vmatpush.msra.mxu2 %v10105_v52  ;;  %2893 = vmatmul.f32.vlgmr.msra.gmra.mxu3 %v10988_v7  ;;  %v14937_v36 = vld [vmem:[#allocation110_spill] sm:$0xff]  ;;  %v14938_v52 = vld [vmem:[#allocation111_spill] sm:$0xff] }
0x1395   :  { %2953 = vmatmul.f32.vlgmr.msrb.gmra.mxu2 %v10988_v7  ;;  %2961 = vmatpush.msrb.mxu3 %v10113_v60  ;;  %v11183_v60 = vld [vmem:[%s13661_s10 + $0x520] sm:$0xff] }
0x1396   :  { %3013 = vmatmul.f32.vlgmr.msra.gmra.mxu1 %v10988_v7  ;;  %3021 = vmatpush.msra.mxu2 %v10120_v24  ;;  %v14939_v24 = vld [vmem:[#allocation112_spill] sm:$0xff] }
0x1397   :  { %2962 = vmatpush.msrb.mxu3 %v10126_v46  ;;  %3171 = vmatpush.msrb.mxu1 %v10132_v56  ;;  %v14940_v46 = vld [vmem:[#allocation113_spill] sm:$0xff]  ;;  %v11192_v56 = vld [vmem:[%s13661_s10 + $0x500] sm:$0xff]  ;;  %v14947_v7 = vld [vmem:[#allocation120_spill] sm:$0xff] }
0x1398   :  { %3022 = vmatpush.msra.mxu2 %v10138_v10  ;;  %3384 = vmatpush.msra.mxu0 %v11147_v12  ;;  %v14941_v10 = vld [vmem:[#allocation114_spill] sm:$0xff] }
0x1399   :  { %2963 = vmatpush.msrb.mxu3 %v10145_v54  ;;  %3172 = vmatpush.msrb.mxu1 %v10151_v32  ;;  %v14942_v54 = vld [vmem:[#allocation115_spill] sm:$0xff] }
0x139a   :  { %3023 = vmatpush.msra.mxu2 %v14932_v58  ;;  %3385 = vmatpush.msra.mxu0 %v11156_v50  ;;  %v11201_v32 = vld [vmem:[%s13661_s10 + $0x4e0] sm:$0xff] }
0x139b   :  { %2964 = vmatpush.msrb.mxu3 %v10164_v23  ;;  %3173 = vmatpush.msrb.mxu1 %v14933_v11  ;;  %v14943_v23 = vld [vmem:[#allocation116_spill] sm:$0xff]  ;;  %v11287_v58 = vld [vmem:[%s13661_s10 + $0x400] sm:$0xff] }
0x139c   :  { %3024 = vmatpush.msra.mxu2 %v14934_v9  ;;  %3386 = vmatpush.msra.mxu0 %v11165_v4  ;;  %v14961_v11 = vld [vmem:[#allocation39_spill] sm:$0xff]  ;;  %v11294_v9 = vld [vmem:[%s13663_s12 + $0x58] sm:$0xff] }
0x139d   :  { %2965 = vmatpush.msrb.mxu3 %v10183_v38  ;;  %3174 = vmatpush.msrb.mxu1 %v14935_v0  ;;  %v14944_v38 = vld [vmem:[#allocation117_spill] sm:$0xff]  ;;  %v14962_v0 = vld [vmem:[#allocation40_spill] sm:$0xff] }
0x139e   :  { %3025 = vmatpush.msra.mxu2 %v14936_v62  ;;  %3387 = vmatpush.msra.mxu0 %v11174_v1  ;;  %v14963_v62 = vld [vmem:[#allocation41_spill] sm:$0xff] }
0x139f   :  { %2966 = vmatpush.msrb.mxu3 %v10202_v48  ;;  %3175 = vmatpush.msrb.mxu1 %v14937_v36  ;;  %v14945_v48 = vld [vmem:[#allocation118_spill] sm:$0xff]  ;;  %v11302_v36 = vld [vmem:[%s13663_s12 + $0x50] sm:$0xff] }
0x13a0   :  { %3026 = vmatpush.msra.mxu2 %v14938_v52  ;;  %3388 = vmatpush.msra.mxu0 %v11183_v60  ;;  %v14964_v52 = vld [vmem:[#allocation42_spill] sm:$0xff] }
0x13a1   :  { %2967 = vmatpush.msrb.mxu3 %v10221_v13  ;;  %3176 = vmatpush.msrb.mxu1 %v14939_v24  ;;  %v11210_v13 = vld [vmem:[%s13661_s10 + $0x4c0] sm:$0xff] }
0x13a2   :  { %3027 = vmatpush.msra.mxu2 %v14940_v46  ;;  %3389 = vmatpush.msra.mxu0 %v11192_v56  ;;  %v14965_v24 = vld [vmem:[#allocation43_spill] sm:$0xff] }
0x13a3   :  { %2968 = vmatpush.msrb.mxu3 %v10240_v45  ;;  %3177 = vmatpush.msrb.mxu1 %v14941_v10  ;;  %v14946_v45 = vld [vmem:[#allocation119_spill] sm:$0xff]  ;;  %v14966_v10 = vld [vmem:[#allocation45_spill] sm:$0xff] }
0x13a4   :  { %3028 = vmatpush.msra.mxu2 %v14942_v54  ;;  %3390 = vmatpush.msra.mxu0 %v11201_v32  ;;  %v11310_v46 = vld [vmem:[%s13663_s12 + $0x48] sm:$0xff]  ;;  %v14967_v54 = vld [vmem:[#allocation46_spill] sm:$0xff] }
0x13a5   :  { %2969 = vmatpush.msrb.mxu3 %v14943_v23  ;;  %3178 = vmatpush.msrb.mxu1 %v14944_v38  ;;  %v11318_v23 = vld [vmem:[%s13663_s12 + $0x40] sm:$0xff] }
0x13a6   :  { %3029 = vmatpush.msra.mxu2 %v14945_v48  ;;  %3391 = vmatpush.msra.mxu0 %v11210_v13  ;;  %14968 = vst [vmem:[#allocation69_spill] sm:$0xff] %v11318_v23  ;;  %v14969_v38 = vld [vmem:[#allocation47_spill] sm:$0xff]  ;;  %v14970_v48 = vld [vmem:[#allocation48_spill] sm:$0xff] }
0x13a7   :  { %2970 = vmatpush.msrb.mxu3 %v14946_v45  ;;  %3179 = vmatpush.msrb.mxu1 %v14947_v7  ;;  %v11326_v45 = vld [vmem:[%s13663_s12 + $0x38] sm:$0xff] }
0x13a8   :  { %3030 = vmatpush.msra.mxu2 %v14948_v28  ;;  %3392 = vmatpush.msra.mxu0 %v11219_v53  ;;  %14971 = vst [vmem:[#allocation70_spill] sm:$0xff] %v11326_v45  ;;  %v14972_v7 = vld [vmem:[#allocation49_spill] sm:$0xff]  ;;  %v14973_v28 = vld [vmem:[#allocation50_spill] sm:$0xff] }
0x13a9   :  { %2971 = vmatpush.msrb.mxu3 %v14949_v17  ;;  %3180 = vmatpush.msrb.mxu1 %v14950_v2  ;;  %v11334_v17 = vld [vmem:[%s13663_s12 + $0x30] sm:$0xff]  ;;  %v14975_v2 = vld [vmem:[#allocation127_spill] sm:$0xff] }
0x13aa   :  { %3031 = vmatpush.msra.mxu2 %v14951_v19  ;;  %3393 = vmatpush.msra.mxu0 %v11228_v25  ;;  %14974 = vst [vmem:[#allocation71_spill] sm:$0xff] %v11334_v17  ;;  %v14976_v19 = vld [vmem:[#allocation28_spill] sm:$0xff] }
0x13ab   :  { %2972 = vmatpush.msrb.mxu3 %v14952_v15  ;;  %3181 = vmatpush.msrb.mxu1 %v14953_v43  ;;  %v11342_v15 = vld [vmem:[%s13663_s12 + $0x28] sm:$0xff] }
0x13ac   :  { %3032 = vmatpush.msra.mxu2 %v14954_v5  ;;  %2973 = vmatmul.f32.vlgmr.msrb.gmra.mxu3 %v10677_v63  ;;  %14977 = vst [vmem:[#allocation72_spill] sm:$0xff] %v11342_v15  ;;  %v14978_v43 = vld [vmem:[#allocation44_spill] sm:$0xff] }
0x13ad   :  { %3033 = vmatmul.f32.vlgmr.msra.gmra.mxu2 %v10677_v63  ;;  %3100 = vmatpush.msra.mxu3 %v11239_v39  ;;  %v11252_v63 = vld [vmem:[%s13663_s12 + $0x70] sm:$0xff] }
0x13ae   :  { %3182 = vmatpush.msrb.mxu1 %v14955_v51  ;;  %3394 = vmatpush.msra.mxu0 %v11246_v3  ;;  %v14979_v5 = vld [vmem:[#allocation128_spill] sm:$0xff]  ;;  %v11350_v51 = vld [vmem:[%s13663_s12 + $0x20] sm:$0xff] }
0x13af   :  { %3101 = vmatpush.msra.mxu3 %v11252_v63  ;;  %3342 = vmatpush.msrb.mxu2 %v14956_v47  ;;  %14980 = vst [vmem:[#allocation73_spill] sm:$0xff] %v11350_v51  ;;  %v14981_v47 = vld [vmem:[#allocation129_spill] sm:$0xff] }
0x13b0   :  { %3183 = vmatpush.msrb.mxu1 %v14957_v8  ;;  %3395 = vmatpush.msra.mxu0 %v11260_v59  ;;  %v14982_v8 = vld [vmem:[#allocation130_spill] sm:$0xff] }
0x13b1   :  { %3102 = vmatpush.msra.mxu3 %v11266_v14  ;;  %3343 = vmatpush.msrb.mxu2 %v14959_v27  ;;  %v14984_v27 = vld [vmem:[#allocation131_spill] sm:$0xff] }
0x13b2   :  { %3402 = vmatpush.msra.mxu1 %v14958_v40  ;;  %3396 = vmatpush.msra.mxu0 %v11273_v55  ;;  %v11358_v40 = vld [vmem:[%s13663_s12 + $0x18] sm:$0xff] }
0x13b3   :  { %3103 = vmatpush.msra.mxu3 %v11280_v21  ;;  %3344 = vmatpush.msrb.mxu2 %v14961_v11  ;;  %14983 = vst [vmem:[#allocation74_spill] sm:$0xff] %v11358_v40  ;;  %v11366_v11 = vld [vmem:[%s13663_s12 + $0x10] sm:$0xff] }
0x13b4   :  { %3403 = vmatpush.msra.mxu1 %v14960_v18  ;;  %3397 = vmatpush.msra.mxu0 %v11287_v58  ;;  %v14985_v18 = vld [vmem:[#allocation132_spill] sm:$0xff]  ;;  %14986 = vst [vmem:[#allocation75_spill] sm:$0xff] %v11366_v11 }
0x13b5   :  { %3104 = vmatpush.msra.mxu3 %v11294_v9  ;;  %3345 = vmatpush.msrb.mxu2 %v14963_v62  ;;  %v14988_v62 = vld [vmem:[#allocation134_spill] sm:$0xff] }
0x13b6   :  { %3404 = vmatpush.msra.mxu1 %v14962_v0  ;;  %v14987_v0 = vld [vmem:[#allocation133_spill] sm:$0xff] }
0x13b7   :  { %3105 = vmatpush.msra.mxu3 %v11302_v36  ;;  %3346 = vmatpush.msrb.mxu2 %v14965_v24  ;;  %v14990_v24 = vld [vmem:[#allocation135_spill] sm:$0xff] }
0x13b8   :  { %3405 = vmatpush.msra.mxu1 %v14964_v52  ;;  %v11374_v52 = vld [vmem:[%s13663_s12 + $0x8] sm:$0xff] }
0x13b9   :  { %3106 = vmatpush.msra.mxu3 %v11310_v46  ;;  %3347 = vmatpush.msrb.mxu2 %v14967_v54  ;;  %14989 = vst [vmem:[#allocation76_spill] sm:$0xff] %v11374_v52  ;;  %v11382_v54 = vld [vmem:[%s13663_s12] sm:$0xff] }
0x13ba   :  { %3406 = vmatpush.msra.mxu1 %v14966_v10  ;;  %v14991_v10 = vld [vmem:[#allocation136_spill] sm:$0xff]  ;;  %14992 = vst [vmem:[#allocation77_spill] sm:$0xff] %v11382_v54 }
0x13bb   :  { %3107 = vmatpush.msra.mxu3 %v11318_v23  ;;  %3348 = vmatpush.msrb.mxu2 %v14970_v48  ;;  %v11389_v48 = vld [vmem:[%s13661_s10 + $0x3e0] sm:$0xff] }
0x13bc   :  { %3407 = vmatpush.msra.mxu1 %v14969_v38  ;;  %v14993_v38 = vld [vmem:[#allocation137_spill] sm:$0xff]  ;;  %14994 = vst [vmem:[#allocation78_spill] sm:$0xff] %v11389_v48 }
0x13bd   :  { %3108 = vmatpush.msra.mxu3 %v11326_v45  ;;  %3349 = vmatpush.msrb.mxu2 %v14973_v28  ;;  %v14996_v28 = vld [vmem:[#allocation139_spill] sm:$0xff] }
0x13be   :  { %3408 = vmatpush.msra.mxu1 %v14972_v7  ;;  %v14995_v7 = vld [vmem:[#allocation138_spill] sm:$0xff] }
0x13bf   :  { %3109 = vmatpush.msra.mxu3 %v11334_v17  ;;  %3350 = vmatpush.msrb.mxu2 %v14976_v19  ;;  %v14998_v19 = vld [vmem:[#allocation140_spill] sm:$0xff] }
0x13c0   :  { %3409 = vmatpush.msra.mxu1 %v14975_v2  ;;  %v11397_v2 = vld [vmem:[%s13661_s10 + $0x3c0] sm:$0xff] }
0x13c1   :  { %3110 = vmatpush.msra.mxu3 %v11342_v15  ;;  %3351 = vmatpush.msrb.mxu2 %v14979_v5  ;;  %14997 = vst [vmem:[#allocation79_spill] sm:$0xff] %v11397_v2  ;;  %v15000_v5 = vld [vmem:[#allocation142_spill] sm:$0xff] }
0x13c2   :  { %3410 = vmatpush.msra.mxu1 %v14978_v43  ;;  %v14999_v43 = vld [vmem:[#allocation141_spill] sm:$0xff] }
0x13c3   :  { %3111 = vmatpush.msra.mxu3 %v11350_v51  ;;  %3352 = vmatpush.msrb.mxu2 %v14982_v8  ;;  %v15002_v8 = vld [vmem:[#allocation143_spill] sm:$0xff] }
0x13c4   :  { %3411 = vmatpush.msra.mxu1 %v14981_v47  ;;  %v11406_v47 = vld [vmem:[%s13661_s10 + $0x3a0] sm:$0xff] }
0x13c5   :  { %3112 = vmatpush.msra.mxu3 %v11358_v40  ;;  %3353 = vmatpush.msrb.mxu2 %v14985_v18  ;;  %15001 = vst [vmem:[#allocation80_spill] sm:$0xff] %v11406_v47  ;;  %v15004_v18 = vld [vmem:[#allocation144_spill] sm:$0xff] }
0x13c6   :  { %3412 = vmatpush.msra.mxu1 %v14984_v27  ;;  %v11413_v27 = vld [vmem:[%s13661_s10 + $0x380] sm:$0xff] }
0x13c7   :  { %3113 = vmatpush.msra.mxu3 %v11366_v11  ;;  %3354 = vmatpush.msrb.mxu2 %v14988_v62  ;;  %15003 = vst [vmem:[#allocation81_spill] sm:$0xff] %v11413_v27  ;;  %v15006_v62 = vld [vmem:[#allocation145_spill] sm:$0xff] }
0x13c8   :  { %3413 = vmatpush.msra.mxu1 %v14987_v0  ;;  %v11420_v0 = vld [vmem:[%s13661_s10 + $0x360] sm:$0xff] }
0x13c9   :  { %3114 = vmatpush.msra.mxu3 %v11374_v52  ;;  %3355 = vmatpush.msrb.mxu2 %v14991_v10  ;;  %15005 = vst [vmem:[#allocation82_spill] sm:$0xff] %v11420_v0  ;;  %v15008_v10 = vld [vmem:[#allocation146_spill] sm:$0xff] }
0x13ca   :  { %3414 = vmatpush.msra.mxu1 %v14990_v24  ;;  %v11427_v24 = vld [vmem:[%s13661_s10 + $0x340] sm:$0xff] }
0x13cb   :  { %3115 = vmatpush.msra.mxu3 %v11382_v54  ;;  %3356 = vmatpush.msrb.mxu2 %v14995_v7  ;;  %15007 = vst [vmem:[#allocation83_spill] sm:$0xff] %v11427_v24  ;;  %v15010_v7 = vld [vmem:[#allocation147_spill] sm:$0xff] }
0x13cc   :  { %3415 = vmatpush.msra.mxu1 %v14993_v38  ;;  %v11434_v38 = vld [vmem:[%s13661_s10 + $0x320] sm:$0xff] }
0x13cd   :  { %3362 = vmatpush.msrb.mxu3 %v11389_v48  ;;  %3357 = vmatpush.msrb.mxu2 %v14998_v19  ;;  %15009 = vst [vmem:[#allocation84_spill] sm:$0xff] %v11434_v38  ;;  %v15012_v19 = vld [vmem:[#allocation148_spill] sm:$0xff] }
0x13ce   :  { %3416 = vmatpush.msra.mxu1 %v14996_v28  ;;  %v11441_v28 = vld [vmem:[%s13661_s10 + $0x300] sm:$0xff] }
0x13cf   :  { %3363 = vmatpush.msrb.mxu3 %v11397_v2  ;;  %3422 = vmatpush.msra.mxu2 %v15000_v5  ;;  %15011 = vst [vmem:[#allocation85_spill] sm:$0xff] %v11441_v28  ;;  %v15014_v5 = vld [vmem:[#allocation149_spill] sm:$0xff] }
0x13d0   :  { %3417 = vmatpush.msra.mxu1 %v14999_v43  ;;  %v11448_v43 = vld [vmem:[%s13661_s10 + $0x2e0] sm:$0xff] }
0x13d1   :  { %3364 = vmatpush.msrb.mxu3 %v11406_v47  ;;  %3423 = vmatpush.msra.mxu2 %v15002_v8  ;;  %15013 = vst [vmem:[#allocation86_spill] sm:$0xff] %v11448_v43  ;;  %v11455_v8 = vld [vmem:[%s13661_s10 + $0x2c0] sm:$0xff] }
0x13d2   :  { %15015 = vst [vmem:[#allocation87_spill] sm:$0xff] %v11455_v8 }
0x13d3   :  { %3365 = vmatpush.msrb.mxu3 %v11413_v27  ;;  %3424 = vmatpush.msra.mxu2 %v15004_v18  ;;  %v15016_v18 = vld [vmem:[#allocation150_spill] sm:$0xff]  ;;  %v15031_v27 = vld [vmem:[#allocation24_spill] sm:$0xff] }
0x13d5   :  { %3366 = vmatpush.msrb.mxu3 %v11420_v0  ;;  %3425 = vmatpush.msra.mxu2 %v15006_v62  ;;  %v11462_v62 = vld [vmem:[%s13661_s10 + $0x2a0] sm:$0xff] }
0x13d6   :  { %15017 = vst [vmem:[#allocation88_spill] sm:$0xff] %v11462_v62 }
0x13d7   :  { %3367 = vmatpush.msrb.mxu3 %v11427_v24  ;;  %3426 = vmatpush.msra.mxu2 %v15008_v10  ;;  %v15018_v10 = vld [vmem:[#allocation151_spill] sm:$0xff]  ;;  %v2854_v24 = vpop.f32.mrf.mxu1 }
0x13d9   :  { %3368 = vmatpush.msrb.mxu3 %v11434_v38  ;;  %3427 = vmatpush.msra.mxu2 %v15010_v7  ;;  %v11469_v7 = vld [vmem:[%s13661_s10 + $0x280] sm:$0xff] }
0x13da   :  { %15019 = vst [vmem:[#allocation89_spill] sm:$0xff] %v11469_v7 }
0x13db   :  { %3369 = vmatpush.msrb.mxu3 %v11441_v28  ;;  %3428 = vmatpush.msra.mxu2 %v15012_v19  ;;  %v15020_v19 = vld [vmem:[#allocation152_spill] sm:$0xff] }
0x13dd   :  { %3370 = vmatpush.msrb.mxu3 %v11448_v43  ;;  %3429 = vmatpush.msra.mxu2 %v15014_v5  ;;  %v11476_v5 = vld [vmem:[%s13661_s10 + $0x260] sm:$0xff] }
0x13de   :  { %15021 = vst [vmem:[#allocation90_spill] sm:$0xff] %v11476_v5  ;;  %v15030_v43 = vld [vmem:[#allocation22_spill] sm:$0xff] }
0x13df   :  { %3371 = vmatpush.msrb.mxu3 %v11455_v8  ;;  %3430 = vmatpush.msra.mxu2 %v15016_v18  ;;  %v15022_v18 = vld [vmem:[#allocation153_spill] sm:$0xff] }
0x13e1   :  { %3372 = vmatpush.msrb.mxu3 %v11462_v62  ;;  %3431 = vmatpush.msra.mxu2 %v15018_v10  ;;  %v11483_v10 = vld [vmem:[%s13661_s10 + $0x240] sm:$0xff] }
0x13e2   :  { %15023 = vst [vmem:[#allocation91_spill] sm:$0xff] %v11483_v10  ;;  %v15024_v62 = vld [vmem:[#allocation154_spill] sm:$0xff] }
0x13e3   :  { %3373 = vmatpush.msrb.mxu3 %v11469_v7  ;;  %3432 = vmatpush.msra.mxu2 %v15020_v19  ;;  %v11490_v19 = vld [vmem:[%s13661_s10 + $0x220] sm:$0xff] }
0x13e4   :  { %15025 = vst [vmem:[#allocation92_spill] sm:$0xff] %v11490_v19  ;;  %v15026_v7 = vld [vmem:[#allocation155_spill] sm:$0xff] }
0x13e5   :  { %3374 = vmatpush.msrb.mxu3 %v11476_v5  ;;  %3433 = vmatpush.msra.mxu2 %v15022_v18  ;;  %v11497_v18 = vld [vmem:[%s13661_s10 + $0x200] sm:$0xff]  ;;  %v15028_v5 = vld [vmem:[#allocation156_spill] sm:$0xff] }
0x13e6   :  { %15027 = vst [vmem:[#allocation93_spill] sm:$0xff] %v11497_v18 }
0x13e7   :  { %3375 = vmatpush.msrb.mxu3 %v11483_v10  ;;  %3434 = vmatpush.msra.mxu2 %v15024_v62  ;;  %v15029_v10 = vld [vmem:[#allocation157_spill] sm:$0xff]  ;;  %v2834_v62 = vpop.f32.mrf.mxu0 }
0x13e9   :  { %3376 = vmatpush.msrb.mxu3 %v11490_v19  ;;  %3435 = vmatpush.msra.mxu2 %v15026_v7 }
0x13eb   :  { %3377 = vmatpush.msrb.mxu3 %v11497_v18  ;;  %3436 = vmatpush.msra.mxu2 %v15028_v5 }
0x13ed   :  { %3437 = vmatpush.msra.mxu2 %v15029_v10 }
0x13ef   :  { %v2914_v54 = vpop.f32.mrf.mxu0 }
0x140a   :  { %v2934_v11 = vpop.f32.mrf.mxu1 }
0x140f   :  { %v2814_v8 = vpop.f32.mrf.mxu3  ;;  %v2874_v19 = vpop.f32.mrf.mxu2 }
0x1410   :  { %v2815_v28 = vadd.f32 %v2814_v8, %v15030_v43  ;;  %v2875_v47 = vadd.f32 %v2874_v19, %v15031_v27 }
0x1412   :  { %v2835_v38 = vadd.f32 %v2834_v62, %v2815_v28 }
0x1414   :  { %v2855_v0 = vadd.f32 %v2854_v24, %v2835_v38  ;;  %v2994_v24 = vpop.f32.mrf.mxu0  ;;  %v3014_v38 = vpop.f32.mrf.mxu1 }
0x1416   :  { %v4823_v7 = vmul.f32 -1.442695, %v2855_v0 }
0x1417   :  { %v2894_v2 = vpop.f32.mrf.mxu3 }
0x1418   :  { %4971 = vpow2.f32 %v4823_v7  ;;  %v2895_v48 = vadd.f32 %v2894_v2, %v2875_v47  ;;  %v2954_v28 = vpop.f32.mrf.mxu2  ;;  %v2995_v7 = vadd.f32 %v2994_v24, %v14655_v30 }
0x141a   :  { %v2915_v18 = vadd.f32 %v2914_v54, %v2895_v48  ;;  %v2935_v54 = vadd.f32 %v2934_v11, %v14654_v44  ;;  %v3015_v48 = vadd.f32 %v3014_v38, %v2995_v7 }
0x141c   :  { %v4824_v52 = vmul.f32 -1.442695, %v2915_v18  ;;  %v2955_v27 = vadd.f32 %v2954_v28, %v2935_v54 }
0x141e   :  { %v4972_v5 = vpop.eup %4971  ;;  %4973 = vpow2.f32 %v4824_v52 }
0x141f   :  { %v3040_v10 = vadd.f32 1.0, %v4972_v5 }
0x1421   :  { %4975 = vrcp.f32 %v3040_v10  ;;  %v3052_v38 = vand.u32 2147483648, %v3040_v10  ;;  %vm3046_vm0 = vweird.f32 %v3040_v10 }
0x1423   :  { %v3053_v54 = vor.u32 1.1754944e-38, %v3052_v38  ;;  %v15032_v38 = vld [vmem:[#allocation158_spill] sm:$0xff] }
0x1424   :  { %v4974_v40 = vpop.eup %4973 }
0x1425   :  { %v3059_v8 = vadd.f32 1.0, %v4974_v40 }
0x1427   :  { %4977 = vrcp.f32 %v3059_v8  ;;  %v4976_v62 = vpop.eup %4975  ;;  %v3071_v23 = vand.u32 2147483648, %v3059_v8  ;;  %vm3065_vm13 = vweird.f32 %v3059_v8  ;;  %v3069_v11 = vand.u32 2147483647, %v3059_v8 }
0x1428   :  { %v3042_v0 = vmul.f32 %v4976_v62, %v3040_v10  ;;  %vm3047_vm14 = vweird.f32 %v4976_v62 }
0x1429   :  { %vm3048_vm4 = vmor %vm3046_vm0, %vm3047_vm14  ;;  %vm3070_vm5 = vcmp.eq.f32.partialorder %v3069_v11, 8.507059e+37 }
0x142a   :  { %v3043_v18 = vsub.f32 1.0, %v3042_v0  ;;  %v3050_v0 = vand.u32 2147483647, %v3040_v10 }
0x142c   :  { %v3044_v17 = vmul.f32 %v4976_v62, %v3043_v18  ;;  %vm3051_vm6 = vcmp.eq.f32.partialorder %v3050_v0, 8.507059e+37  ;;  %v15033_v0 = vld [vmem:[#allocation159_spill] sm:$0xff] }
0x142d   :  { %v4978_v19 = vpop.eup %4977 }
0x142e   :  { %v3061_v2 = vmul.f32 %v4978_v19, %v3059_v8  ;;  %vm3066_vm12 = vweird.f32 %v4978_v19  ;;  %v3045_v24 = vadd.f32 %v4976_v62, %v3044_v17 }
0x142f   :  { %v2974_v52 = vpop.f32.mrf.mxu3  ;;  %vm3067_vm15 = vmor %vm3065_vm13, %vm3066_vm12 }
0x1430   :  { %v3062_v47 = vsub.f32 1.0, %v3061_v2  ;;  %v3034_v5 = vpop.f32.mrf.mxu2  ;;  %v2975_v51 = vadd.f32 %v2974_v52, %v2955_v27  ;;  %v3072_v2 = vor.u32 1.1754944e-38, %v3071_v23  ;;  %v3049_v27 = vsel %vm3048_vm4, %v4976_v62, %v3045_v24 }
0x1431   :  { %v3035_v43 = vadd.f32 %v3034_v5, %v3015_v48 }
0x1432   :  { %v3063_v40 = vmul.f32 %v4978_v19, %v3062_v47 }
0x1433   :  { %v4825_v15 = vmul.f32 -1.442695, %v3035_v43 }
0x1434   :  { %v3064_v45 = vadd.f32 %v4978_v19, %v3063_v40 }
0x1435   :  { %4979 = vpow2.f32 %v4825_v15 }
0x1436   :  { %4981 = vtanh.f32 %v2975_v51  ;;  %v3068_v7 = vsel %vm3067_vm15, %v4978_v19, %v3064_v45  ;;  %v3054_v51 = vsel %vm3051_vm6, %v3053_v54, %v3049_v27  ;;  %v15037_v27 = vld [vmem:[#allocation162_spill] sm:$0xff] }
0x1437   :  { %v3073_v48 = vsel %vm3070_vm5, %v3072_v2, %v3068_v7  ;;  %v15034_v7 = vld [vmem:[#allocation163_spill] sm:$0xff]  ;;  %v15036_v2 = vld [vmem:[#allocation161_spill] sm:$0xff]  ;;  %v15040_v54 = vld [vmem:[#allocation166_spill] sm:$0xff] }
0x1438   :  { %v3095_v17 = vmul.f32 %v3073_v48, %v10674_v49  ;;  %v15043_v48 = vld [vmem:[#allocation12_spill] sm:$0xff] }
0x143b   :  { %v4980_v28 = vpop.eup %4979 }
0x143c   :  { %v3079_v43 = vadd.f32 1.0, %v4980_v28  ;;  %v4982_v15 = vpop.eup %4981  ;;  %v15035_v28 = vld [vmem:[#allocation160_spill] sm:$0xff] }
0x143d   :  { %v3096_v8 = vmul.f32 %v4982_v15, %v3054_v51  ;;  %v15039_v15 = vld [vmem:[#allocation164_spill] sm:$0xff]  ;;  %v15044_v51 = vld [vmem:[#allocation13_spill] sm:$0xff] }
0x143e   :  { %4983 = vrcp.f32 %v3079_v43  ;;  %v3091_v23 = vand.u32 2147483648, %v3079_v43  ;;  %v3089_v19 = vand.u32 2147483647, %v3079_v43  ;;  %vm3085_vm9 = vweird.f32 %v3079_v43 }
0x143f   :  { %v11507_v52 = vadd.f32 %v3096_v8, %v3095_v17  ;;  %v15045_v17 = vld [vmem:[#allocation14_spill] sm:$0xff]  ;;  %v15046_v8 = vld [vmem:[#allocation15_spill] sm:$0xff] }
0x1440   :  { %v3092_v5 = vor.u32 1.1754944e-38, %v3091_v23  ;;  %vm3090_vm11 = vcmp.eq.f32.partialorder %v3089_v19, 8.507059e+37  ;;  %v15050_v23 = vld [vmem:[#allocation19_spill] sm:$0xff]  ;;  %v15052_v19 = vld [vmem:[#allocation21_spill] sm:$0xff] }
0x1441   :  { %4985 = vtanh.f32 %v11507_v52 }
0x1444   :  { %v4984_v47 = vpop.eup %4983 }
0x1445   :  { %v3081_v10 = vmul.f32 %v4984_v47, %v3079_v43  ;;  %vm3086_vm8 = vweird.f32 %v4984_v47  ;;  %v15038_v43 = vld [vmem:[#allocation165_spill] sm:$0xff] }
0x1446   :  { %vm3087_vm10 = vmor %vm3085_vm9, %vm3086_vm8 }
0x1447   :  { %v3082_v45 = vsub.f32 1.0, %v3081_v10  ;;  %v4986_v24 = vpop.eup %4985  ;;  %v15048_v10 = vld [vmem:[#allocation17_spill] sm:$0xff] }
0x1449   :  { %v3083_v62 = vmul.f32 %v4984_v47, %v3082_v45  ;;  %v15049_v45 = vld [vmem:[#allocation18_spill] sm:$0xff] }
0x144b   :  { %v3084_v18 = vadd.f32 %v4984_v47, %v3083_v62  ;;  %v15051_v62 = vld [vmem:[#allocation20_spill] sm:$0xff] }
0x144d   :  { %v3088_v40 = vsel %vm3087_vm10, %v4984_v47, %v3084_v18  ;;  %v15047_v47 = vld [vmem:[#allocation16_spill] sm:$0xff]  ;;  %v15053_v18 = vld [vmem:[#allocation23_spill] sm:$0xff] }
0x144e   :  { %v3093_v49 = vsel %vm3090_vm11, %v3092_v5, %v3088_v40  ;;  %v15054_v5 = vld [vmem:[#allocation25_spill] sm:$0xff]  ;;  %v15055_v40 = vld [vmem:[#allocation27_spill] sm:$0xff] }
0x144f   :  { %v11510_v11 = vmul.f32 %v4986_v24, %v3093_v49  ;;  %v15056_v24 = vld [vmem:[#allocation29_spill] sm:$0xff]  ;;  %v15057_v49 = vld [vmem:[#allocation31_spill] sm:$0xff] }
0x1451   :  { %3116 = vmatmul.f32.vlgmr.msra.gmra.mxu3 %v11510_v11  ;;  %3184 = vmatmul.f32.vlgmr.msrb.gmra.mxu1 %v11510_v11 }
0x1452   :  { %3442 = vmatpush.msra.mxu3 %v10684_v22  ;;  %3482 = vmatpush.msrb.mxu1 %v10690_v57  ;;  %v15041_v22 = vld [vmem:[#allocation9_spill] sm:$0xff]  ;;  %v15042_v57 = vld [vmem:[#allocation11_spill] sm:$0xff] }
0x1454   :  { %3443 = vmatpush.msra.mxu3 %v15032_v38  ;;  %3483 = vmatpush.msrb.mxu1 %v15033_v0  ;;  %v15058_v38 = vld [vmem:[#allocation33_spill] sm:$0xff]  ;;  %v15059_v0 = vld [vmem:[#allocation51_spill] sm:$0xff] }
0x1456   :  { %3444 = vmatpush.msra.mxu3 %v15034_v7  ;;  %3484 = vmatpush.msrb.mxu1 %v15035_v28  ;;  %v15060_v7 = vld [vmem:[#allocation52_spill] sm:$0xff]  ;;  %v15061_v28 = vld [vmem:[#allocation53_spill] sm:$0xff] }
0x1458   :  { %3445 = vmatpush.msra.mxu3 %v15036_v2  ;;  %3485 = vmatpush.msrb.mxu1 %v15037_v27  ;;  %v15062_v27 = vld [vmem:[#allocation55_spill] sm:$0xff] }
0x145a   :  { %3446 = vmatpush.msra.mxu3 %v15038_v43  ;;  %3486 = vmatpush.msrb.mxu1 %v15039_v15 }
0x145c   :  { %3447 = vmatpush.msra.mxu3 %v15040_v54  ;;  %3487 = vmatpush.msrb.mxu1 %v15041_v22 }
0x145e   :  { %3448 = vmatpush.msra.mxu3 %v15042_v57  ;;  %3488 = vmatpush.msrb.mxu1 %v15043_v48  ;;  %v15063_v57 = vld [vmem:[#allocation56_spill] sm:$0xff] }
0x1460   :  { %3449 = vmatpush.msra.mxu3 %v15044_v51  ;;  %3489 = vmatpush.msrb.mxu1 %v15045_v17  ;;  %v15064_v51 = vld [vmem:[#allocation57_spill] sm:$0xff] }
0x1462   :  { %3450 = vmatpush.msra.mxu3 %v15046_v8  ;;  %3490 = vmatpush.msrb.mxu1 %v15047_v47  ;;  %v15065_v47 = vld [vmem:[#allocation54_spill] sm:$0xff] }
0x1464   :  { %3451 = vmatpush.msra.mxu3 %v15048_v10  ;;  %3491 = vmatpush.msrb.mxu1 %v15049_v45 }
0x1466   :  { %3452 = vmatpush.msra.mxu3 %v15050_v23  ;;  %3492 = vmatpush.msrb.mxu1 %v15051_v62  ;;  %v15066_v62 = vld [vmem:[#allocation58_spill] sm:$0xff] }
0x1468   :  { %3453 = vmatpush.msra.mxu3 %v15052_v19  ;;  %3493 = vmatpush.msrb.mxu1 %v15053_v18 }
0x146a   :  { %3454 = vmatpush.msra.mxu3 %v15054_v5  ;;  %3494 = vmatpush.msrb.mxu1 %v15055_v40  ;;  %v15067_v40 = vld [vmem:[#allocation59_spill] sm:$0xff] }
0x146c   :  { %3455 = vmatpush.msra.mxu3 %v15056_v24  ;;  %3495 = vmatpush.msrb.mxu1 %v15057_v49 }
0x146e   :  { %3456 = vmatpush.msra.mxu3 %v15058_v38  ;;  %3496 = vmatpush.msrb.mxu1 %v15059_v0 }
0x1470   :  { %3457 = vmatpush.msra.mxu3 %v15060_v7  ;;  %3497 = vmatpush.msrb.mxu1 %v15061_v28  ;;  %v15068_v7 = vld [vmem:[#allocation60_spill] sm:$0xff] }
0x14ce   :  { %v3185_v2 = vpop.f32.mrf.mxu1 }
0x14cf   :  { %v3186_v43 = vadd.f32 %v15062_v27, %v3185_v2 }
0x14d1   :  { %v3189_v15 = vrot.slane %v3186_v43, 1  ;;  %v3190_v54 = vperm.slane %v3186_v43, 0 }
0x14d3   :  { %v3191_v22 = vperm.slane %v3189_v15, 0  ;;  %v3195_v48 = vadd.f32 %v15063_v57, %v3190_v54  ;;  %v3194_v17 = vadd.f32 %v15064_v51, %v3190_v54 }
0x14d4   :  { %v3117_v8 = vpop.f32.mrf.mxu3 }
0x14d5   :  { %v3118_v10 = vadd.f32 %v15065_v47, %v3117_v8  ;;  %v3199_v45 = vmax.f32 %v3195_v48, 0.0  ;;  %v3198_v23 = vmax.f32 %v3194_v17, 0.0  ;;  %v3196_v19 = vadd.f32 %v15066_v62, %v3191_v22  ;;  %v15069_v47 = vld [vmem:[#allocation10_spill] sm:$0xff] }
0x14d6   :  { %v3197_v28 = vadd.f32 %v15068_v7, %v3191_v22 }
0x14d7   :  { %v3121_v18 = vrot.slane %v3118_v10, 1  ;;  %3123 = vst [vmem:[#allocation3 + $0x4] sm:$0x1] %v3118_v10  ;;  %v3125_v5 = vsel %vm944_vm7, %v3118_v10, -inf  ;;  %v3203_v24 = vmul.f32 %v15067_v40, %v3199_v45  ;;  %v3202_v49 = vmul.f32 %v15067_v40, %v3198_v23 }
0x14d8   :  { %3126 = vmax.xlane.f32.xlu1 %v3125_v5  ;;  %v3200_v38 = vmax.f32 %v3196_v19, 0.0  ;;  %v3201_v2 = vmax.f32 %v3197_v28, 0.0 }
0x14d9   :  { %3124 = vst [vmem:[#allocation3 + $0xc] sm:$0x1] %v3121_v18  ;;  %3208 = vadd.xlane.f32.xlu0 %v3203_v24  ;;  %3206 = vadd.xlane.f32.xlu2 %v3202_v49 }
0x14da   :  { %v3204_v0 = vmul.f32 %v15067_v40, %v3200_v38  ;;  %v3205_v27 = vmul.f32 %v15067_v40, %v3201_v2 }
0x14e1   :  { %3210 = vadd.xlane.f32.xlu0 %v3204_v0 }
0x14e9   :  { %3212 = vadd.xlane.f32.xlu0 %v3205_v27 }
0x154b   :  { %v3127_v43 = vpop.xlane.xlu1 %3126 }
0x154c   :  { %vm3128_vm12 = vcmp.eq.f32.partialorder %v3118_v10, %v3127_v43  ;;  %v3209_v15 = vpop.xlane.xlu0 %3208  ;;  %v3207_v8 = vpop.xlane.xlu2 %3206 }
0x154d   :  { %v3129_v54 = vsel %vm3128_vm12, %v14507_v20, 128  ;;  %v3215_v45 = vadd.f32 %v3209_v15, %v15069_v47  ;;  %v3214_v22 = vadd.f32 %v3207_v8, %v15069_v47 }
0x154e   :  { %v3130_v57 = vsel %vm944_vm7, %v3129_v54, 2147483647 }
0x154f   :  { %v3132_v48 = vshra.s32 %v3130_v57, 16  ;;  %v3223_v19 = vperm.slane %v3215_v45, %v14509_v34  ;;  %v3222_v10 = vperm.slane %v3214_v22, %v14507_v20  ;;  %v3131_v7 = vand.u32 65535, %v3130_v57 }
0x1551   :  { %v3134_v51 = vcvt.s32.f32 %v3132_v48  ;;  %v3224_v24 = vsel %vm484_vm2, %v3223_v19, %v3222_v10  ;;  %v3133_v2 = vcvt.s32.f32 %v3131_v7  ;;  %v11594_v7 = vld [vmem:[%s13661_s10 + $0x1d0] sm:$0xff] }
0x1553   :  { %3135 = vmin.xlane.f32.xlu2 %v3134_v51 }
0x1554   :  { %v3211_v17 = vpop.xlane.xlu0 %3210 }
0x1555   :  { %v3216_v23 = vadd.f32 %v3211_v17, %v15069_v47 }
0x1557   :  { %v3225_v5 = vperm.slane %v3216_v23, %v14507_v20 }
0x155c   :  { %v3213_v62 = vpop.xlane.xlu0 %3212 }
0x155d   :  { %v3217_v18 = vadd.f32 %v3213_v62, %v15069_v47 }
0x155f   :  { %v3226_v40 = vperm.slane %v3217_v18, %v14509_v34 }
0x1561   :  { %v3227_v49 = vsel %vm484_vm2, %v3226_v40, %v3225_v5 }
0x1562   :  { %v3228_v38 = vsel %vm371_vm1, %v3227_v49, %v3224_v24 }
0x1563   :  { %v3230_v0 = vsel %vm491_vm3, %v3228_v38, -inf }
0x1564   :  { %3231 = vmax.xlane.f32.xlu1 %v3230_v0  ;;  %v11588_v0 = vld [vmem:[%s13661_s10 + $0x1f0] sm:$0xff] }
0x15c6   :  { %v3136_v28 = vpop.xlane.xlu2 %3135 }
0x15c7   :  { %vm3137_vm13 = vcmp.eq.f32.partialorder %v3134_v51, %v3136_v28 }
0x15c8   :  { %v3138_v27 = vsel %vm3137_vm13, %v3133_v2, inf  ;;  %v11606_v2 = vld [vmem:[%s13661_s10 + $0x190] sm:$0xff] }
0x15c9   :  { %3139 = vmin.xlane.f32.xlu0 %v3138_v27  ;;  %v11613_v27 = vld [vmem:[%s13661_s10 + $0x170] sm:$0xff] }
0x15d7   :  { %v3232_v43 = vpop.xlane.xlu1 %3231 }
0x15d8   :  { %v3234_v15 = vperm.slane %v3232_v43, 0  ;;  %v3235_v54 = vperm.slane %v3232_v43, 1  ;;  %v11619_v43 = vld [vmem:[%s13661_s10 + $0x150] sm:$0xff] }
0x15da   :  { %v3238_v48 = vsub.f32 %v3214_v22, %v3234_v15  ;;  %v3239_v17 = vsub.f32 %v3215_v45, %v3234_v15  ;;  %v3240_v8 = vsub.f32 %v3216_v23, %v3235_v54  ;;  %v3241_v5 = vsub.f32 %v3217_v18, %v3235_v54  ;;  %v11625_v15 = vld [vmem:[%s13661_s10 + $0x130] sm:$0xff] }
0x15db   :  { %v3142_v22 = vcvt.f32.s32 %v3136_v28  ;;  %v11600_v28 = vld [vmem:[%s13661_s10 + $0x1b0] sm:$0xff] }
0x15dc   :  { %v3242_v62 = vmul.f32 1.442695, %v3238_v48  ;;  %v3244_v19 = vmul.f32 1.442695, %v3239_v17  ;;  %v3246_v10 = vmul.f32 1.442695, %v3240_v8 }
0x15dd   :  { %v3248_v57 = vmul.f32 1.442695, %v3241_v5  ;;  %v3143_v18 = vshll.u32 %v3142_v22, 16  ;;  %v11631_v54 = vld [vmem:[%s13661_s10 + $0x110] sm:$0xff] }
0x15de   :  { %4987 = vpow2.f32 %v3242_v62  ;;  %v11637_v48 = vld [vmem:[%s13661_s10 + $0xf0] sm:$0xff] }
0x15df   :  { %4989 = vpow2.f32 %v3244_v19  ;;  %v11643_v17 = vld [vmem:[%s13661_s10 + $0xd0] sm:$0xff] }
0x15e0   :  { %4991 = vpow2.f32 %v3246_v10  ;;  %v11649_v8 = vld [vmem:[%s13661_s10 + $0xb0] sm:$0xff] }
0x15e1   :  { %4993 = vpow2.f32 %v3248_v57  ;;  %15070 = vst [vmem:[#allocation94_spill] sm:$0xff] %v11649_v8  ;;  %v11655_v19 = vld [vmem:[%s13661_s10 + $0x90] sm:$0xff] }
0x15e2   :  { %15071 = vst [vmem:[#allocation95_spill] sm:$0xff] %v11655_v19  ;;  %v11661_v10 = vld [vmem:[%s13661_s10 + $0x70] sm:$0xff] }
0x15e3   :  { %15072 = vst [vmem:[#allocation96_spill] sm:$0xff] %v11661_v10  ;;  %v11667_v57 = vld [vmem:[%s13661_s10 + $0x50] sm:$0xff] }
0x15e4   :  { %v11571_v40 = vpop.eup %4987  ;;  %15073 = vst [vmem:[#allocation97_spill] sm:$0xff] %v11667_v57 }
0x15e5   :  { %v11573_v24 = vpop.eup %4989  ;;  %3255 = vperm.xlu2 %4848, %v11571_v40  }
0x15e6   :  { %v11576_v51 = vpop.eup %4991  ;;  %3258 = vperm.xlu1 %4850, %v11573_v24  }
0x15e7   :  { %3261 = vperm.xlu0 %4849, %v11576_v51   ;;  %v11580_v45 = vpop.eup %4993 }
0x15ef   :  { %3264 = vperm.xlu0 %4849, %v11580_v45  }
0x163c   :  { %v3140_v23 = vpop.xlane.xlu0 %3139 }
0x163d   :  { %v3141_v49 = vcvt.f32.s32 %v3140_v23  ;;  %v11673_v23 = vld [vmem:[%s13661_s10 + $0x30] sm:$0xff] }
0x163e   :  { %15074 = vst [vmem:[#allocation98_spill] sm:$0xff] %v11673_v23 }
0x163f   :  { %v3144_v38 = vadd.s32 %v3143_v18, %v3141_v49  ;;  %v3256_v22 = vpop.permute.xlu2 %3255 }
0x1641   :  { %vm3145_vm14 = vcmp.eq.s32.totalorder %v14507_v20, %v3144_v38  ;;  %v11680_v38 = vld [vmem:[%s13661_s10 + $0x10] sm:$0xff] }
0x1642   :  { %4827 = vmatmul.msk.f32.vlgmr.msrb.gmra.mxu0 %vm3145_vm14, %v14510_v31  ;;  %15075 = vst [vmem:[#allocation99_spill] sm:$0xff] %v11680_v38 }
0x1643   :  { %3462 = vmatpush.msrb.mxu0 %v11588_v0 }
0x1645   :  { %3463 = vmatpush.msrb.mxu0 %v11594_v7 }
0x1647   :  { %3464 = vmatpush.msrb.mxu0 %v11600_v28 }
0x1649   :  { %3465 = vmatpush.msrb.mxu0 %v11606_v2 }
0x164a   :  { %3398 = vmatmul.f32.vlgmr.msra.gmra.mxu0 %v11510_v11 }
0x164b   :  { %3466 = vmatpush.msrb.mxu0 %v11613_v27 }
0x164d   :  { %3467 = vmatpush.msrb.mxu0 %v11619_v43 }
0x164f   :  { %3468 = vmatpush.msrb.mxu0 %v11625_v15 }
0x1651   :  { %3469 = vmatpush.msrb.mxu0 %v11631_v54 }
0x1653   :  { %3470 = vmatpush.msrb.mxu0 %v11637_v48 }
0x1655   :  { %3471 = vmatpush.msrb.mxu0 %v11643_v17 }
0x1657   :  { %3472 = vmatpush.msrb.mxu0 %v11649_v8 }
0x1658   :  { %v3259_v5 = vpop.permute.xlu1 %3258 }
0x1659   :  { %v3262_v62 = vpop.permute.xlu0 %3261  ;;  %3473 = vmatpush.msrb.mxu0 %v11655_v19  ;;  %v3267_v18 = vperm.slane %v3259_v5, %v14509_v34 }
0x165b   :  { %3474 = vmatpush.msrb.mxu0 %v11661_v10  ;;  %v3269_v10 = vperm.slane %v3262_v62, %v14507_v20 }
0x165d   :  { %3475 = vmatpush.msrb.mxu0 %v11667_v57  ;;  %v3266_v57 = vperm.slane %v3256_v22, %v14507_v20 }
0x165f   :  { %3476 = vmatpush.msrb.mxu0 %v11673_v23  ;;  %v11689_v23 = vld [vmem:[%s13661_s10 + $0x3f8] sm:$0xff]  ;;  %v3268_v5 = vsel %vm484_vm2, %v3267_v18, %v3266_v57 }
0x1660   :  { %v11729_v57 = vld [vmem:[%s13661_s10 + $0x338] sm:$0xff] }
0x1661   :  { %v3265_v49 = vpop.permute.xlu0 %3264  ;;  %3477 = vmatpush.msrb.mxu0 %v11680_v38  ;;  %v11697_v38 = vld [vmem:[%s13661_s10 + $0x3d8] sm:$0xff]  ;;  %15081 = vst [vmem:[#allocation105_spill] sm:$0xff] %v11729_v57 }
0x1662   :  { %v3270_v19 = vperm.slane %v3265_v49, %v14509_v34  ;;  %15076 = vst [vmem:[#allocation100_spill] sm:$0xff] %v11697_v38  ;;  %v11705_v49 = vld [vmem:[%s13661_s10 + $0x3b8] sm:$0xff] }
0x1663   :  { %3542 = vmatpush.msra.mxu0 %v11689_v23  ;;  %15077 = vst [vmem:[#allocation101_spill] sm:$0xff] %v11705_v49  ;;  %v11735_v18 = vld [vmem:[%s13661_s10 + $0x318] sm:$0xff] }
0x1664   :  { %v3271_v8 = vsel %vm484_vm2, %v3270_v19, %v3269_v10  ;;  %v11711_v19 = vld [vmem:[%s13661_s10 + $0x398] sm:$0xff]  ;;  %15082 = vst [vmem:[#allocation106_spill] sm:$0xff] %v11735_v18 }
0x1665   :  { %3543 = vmatpush.msra.mxu0 %v11697_v38  ;;  %v3272_v62 = vsel %vm371_vm1, %v3271_v8, %v3268_v5  ;;  %15078 = vst [vmem:[#allocation102_spill] sm:$0xff] %v11711_v19  ;;  %v11717_v8 = vld [vmem:[%s13661_s10 + $0x378] sm:$0xff] }
0x1666   :  { %v3274_v22 = vsel %vm491_vm3, %v3272_v62, 0.0  ;;  %15079 = vst [vmem:[#allocation103_spill] sm:$0xff] %v11717_v8  ;;  %v11723_v10 = vld [vmem:[%s13661_s10 + $0x358] sm:$0xff] }
0x1667   :  { %3544 = vmatpush.msra.mxu0 %v11705_v49  ;;  %3275 = vadd.xlane.f32.xlu2 %v3274_v22  ;;  %15080 = vst [vmem:[#allocation104_spill] sm:$0xff] %v11723_v10  ;;  %v11741_v5 = vld [vmem:[%s13661_s10 + $0x2f8] sm:$0xff] }
0x1668   :  { %15083 = vst [vmem:[#allocation107_spill] sm:$0xff] %v11741_v5  ;;  %v11747_v62 = vld [vmem:[%s13661_s10 + $0x2d8] sm:$0xff] }
0x1669   :  { %3545 = vmatpush.msra.mxu0 %v11711_v19  ;;  %15084 = vst [vmem:[#allocation108_spill] sm:$0xff] %v11747_v62  ;;  %v11753_v22 = vld [vmem:[%s13661_s10 + $0x2b8] sm:$0xff] }
0x166a   :  { %15085 = vst [vmem:[#allocation109_spill] sm:$0xff] %v11753_v22 }
0x166b   :  { %3546 = vmatpush.msra.mxu0 %v11717_v8 }
0x166d   :  { %3547 = vmatpush.msra.mxu0 %v11723_v10 }
0x166f   :  { %3548 = vmatpush.msra.mxu0 %v11729_v57  ;;  %v11810_v57 = vld [vmem:[%s13661_s10 + $0x198] sm:$0xff] }
0x1670   :  { %15094 = vst [vmem:[#allocation118_spill] sm:$0xff] %v11810_v57 }
0x1671   :  { %3549 = vmatpush.msra.mxu0 %v11735_v18  ;;  %v11759_v18 = vld [vmem:[%s13661_s10 + $0x298] sm:$0xff] }
0x1672   :  { %15086 = vst [vmem:[#allocation110_spill] sm:$0xff] %v11759_v18 }
0x1673   :  { %3550 = vmatpush.msra.mxu0 %v11741_v5  ;;  %v11765_v5 = vld [vmem:[%s13661_s10 + $0x278] sm:$0xff] }
0x1674   :  { %15087 = vst [vmem:[#allocation111_spill] sm:$0xff] %v11765_v5 }
0x1675   :  { %3551 = vmatpush.msra.mxu0 %v11747_v62  ;;  %v11771_v62 = vld [vmem:[%s13661_s10 + $0x258] sm:$0xff] }
0x1676   :  { %15088 = vst [vmem:[#allocation112_spill] sm:$0xff] %v11771_v62 }
0x1677   :  { %3552 = vmatpush.msra.mxu0 %v11753_v22  ;;  %v11777_v22 = vld [vmem:[%s13661_s10 + $0x238] sm:$0xff] }
0x1678   :  { %15089 = vst [vmem:[#allocation113_spill] sm:$0xff] %v11777_v22 }
0x1679   :  { %3553 = vmatpush.msra.mxu0 %v11759_v18  ;;  %v11783_v18 = vld [vmem:[%s13661_s10 + $0x218] sm:$0xff] }
0x167a   :  { %15090 = vst [vmem:[#allocation114_spill] sm:$0xff] %v11783_v18 }
0x167b   :  { %3554 = vmatpush.msra.mxu0 %v11765_v5 }
0x167d   :  { %3555 = vmatpush.msra.mxu0 %v11771_v62  ;;  %v11792_v62 = vld [vmem:[%s13661_s10 + $0x1f8] sm:$0xff] }
0x167e   :  { %15091 = vst [vmem:[#allocation115_spill] sm:$0xff] %v11792_v62 }
0x167f   :  { %3556 = vmatpush.msra.mxu0 %v11777_v22  ;;  %v11798_v22 = vld [vmem:[%s13661_s10 + $0x1d8] sm:$0xff] }
0x1680   :  { %15092 = vst [vmem:[#allocation116_spill] sm:$0xff] %v11798_v22 }
0x1681   :  { %3557 = vmatpush.msra.mxu0 %v11783_v18  ;;  %v11804_v18 = vld [vmem:[%s13661_s10 + $0x1b8] sm:$0xff] }
0x1682   :  { %15093 = vst [vmem:[#allocation117_spill] sm:$0xff] %v11804_v18 }
0x16bf   :  { %v11786_v5 = vpop.f32.mrf.mxu0 }
0x16c0   :  { %3378 = vmatmul.f32.vlgmr.msrb.gmra.mxu3 %v11786_v5 }
0x16c1   :  { %3522 = vmatpush.msrb.mxu3 %v11792_v62  ;;  %v11835_v62 = vld [vmem:[%s13661_s10 + $0x118] sm:$0xff] }
0x16c2   :  { %15098 = vst [vmem:[#allocation122_spill] sm:$0xff] %v11835_v62 }
0x16c3   :  { %3523 = vmatpush.msrb.mxu3 %v11798_v22  ;;  %v11817_v22 = vld [vmem:[%s13661_s10 + $0x178] sm:$0xff] }
0x16c4   :  { %15095 = vst [vmem:[#allocation119_spill] sm:$0xff] %v11817_v22 }
0x16c5   :  { %3524 = vmatpush.msrb.mxu3 %v11804_v18  ;;  %v11823_v18 = vld [vmem:[%s13661_s10 + $0x158] sm:$0xff] }
0x16c6   :  { %15096 = vst [vmem:[#allocation120_spill] sm:$0xff] %v11823_v18 }
0x16c7   :  { %3525 = vmatpush.msrb.mxu3 %v11810_v57  ;;  %v11829_v57 = vld [vmem:[%s13661_s10 + $0x138] sm:$0xff] }
0x16c8   :  { %3458 = vmatmul.f32.vlgmr.msra.gmra.mxu3 %v11510_v11  ;;  %15097 = vst [vmem:[#allocation121_spill] sm:$0xff] %v11829_v57 }
0x16c9   :  { %3526 = vmatpush.msrb.mxu3 %v11817_v22  ;;  %v11841_v22 = vld [vmem:[%s13661_s10 + $0xf8] sm:$0xff] }
0x16ca   :  { %15099 = vst [vmem:[#allocation30_spill] sm:$0xff] %v11841_v22 }
0x16cb   :  { %3527 = vmatpush.msrb.mxu3 %v11823_v18  ;;  %v11847_v18 = vld [vmem:[%s13661_s10 + $0xd8] sm:$0xff] }
0x16cc   :  { %15100 = vst [vmem:[#allocation123_spill] sm:$0xff] %v11847_v18 }
0x16cd   :  { %3528 = vmatpush.msrb.mxu3 %v11829_v57  ;;  %v11853_v57 = vld [vmem:[%s13661_s10 + $0xb8] sm:$0xff] }
0x16ce   :  { %15101 = vst [vmem:[#allocation32_spill] sm:$0xff] %v11853_v57 }
0x16cf   :  { %3529 = vmatpush.msrb.mxu3 %v11835_v62  ;;  %v11859_v62 = vld [vmem:[%s13661_s10 + $0x98] sm:$0xff] }
0x16d0   :  { %15102 = vst [vmem:[#allocation34_spill] sm:$0xff] %v11859_v62 }
0x16d1   :  { %3530 = vmatpush.msrb.mxu3 %v11841_v22  ;;  %v11865_v22 = vld [vmem:[%s13661_s10 + $0x78] sm:$0xff] }
0x16d2   :  { %15103 = vst [vmem:[#allocation124_spill] sm:$0xff] %v11865_v22 }
0x16d3   :  { %3531 = vmatpush.msrb.mxu3 %v11847_v18 }
0x16d5   :  { %3532 = vmatpush.msrb.mxu3 %v11853_v57  ;;  %v11871_v57 = vld [vmem:[%s13661_s10 + $0x58] sm:$0xff] }
0x16d6   :  { %15104 = vst [vmem:[#allocation35_spill] sm:$0xff] %v11871_v57 }
0x16d7   :  { %3533 = vmatpush.msrb.mxu3 %v11859_v62  ;;  %v11877_v62 = vld [vmem:[%s13661_s10 + $0x38] sm:$0xff] }
0x16d8   :  { %15105 = vst [vmem:[#allocation125_spill] sm:$0xff] %v11877_v62 }
0x16d9   :  { %3534 = vmatpush.msrb.mxu3 %v11865_v22  ;;  %v11883_v22 = vld [vmem:[%s13661_s10 + $0x18] sm:$0xff] }
0x16da   :  { %v3276_v18 = vpop.xlane.xlu2 %3275  ;;  %15106 = vst [vmem:[#allocation126_spill] sm:$0xff] %v11883_v22 }
0x16db   :  { %4995 = vrcp.f32 %v3276_v18  ;;  %3535 = vmatpush.msrb.mxu3 %v11871_v57  ;;  %v3288_v19 = vand.u32 2147483648, %v3276_v18  ;;  %vm3282_vm0 = vweird.f32 %v3276_v18 }
0x16dd   :  { %3536 = vmatpush.msrb.mxu3 %v11877_v62  ;;  %v3286_v62 = vand.u32 2147483647, %v3276_v18 }
0x16df   :  { %3537 = vmatpush.msrb.mxu3 %v11883_v22  ;;  %v3289_v22 = vor.u32 1.1754944e-38, %v3288_v19  ;;  %vm3287_vm5 = vcmp.eq.f32.partialorder %v3286_v62, 8.507059e+37 }
0x16e1   :  { %3693 = vmatpush.msra.mxu3 %v11011_v37  ;;  %v4996_v10 = vpop.eup %4995 }
0x16e2   :  { %v3278_v8 = vmul.f32 %v4996_v10, %v3276_v18  ;;  %vm3283_vm15 = vweird.f32 %v4996_v10 }
0x16e3   :  { %3694 = vmatpush.msra.mxu3 %v11019_v16  ;;  %vm3284_vm4 = vmor %vm3282_vm0, %vm3283_vm15 }
0x16e4   :  { %v3279_v57 = vsub.f32 1.0, %v3278_v8 }
0x16e5   :  { %3695 = vmatpush.msra.mxu3 %v11025_v61 }
0x16e6   :  { %v3280_v49 = vmul.f32 %v4996_v10, %v3279_v57 }
0x16e7   :  { %3696 = vmatpush.msra.mxu3 %v11031_v42  ;;  %v15107_v42 = vld [vmem:[#allocation61_spill] sm:$0xff] }
0x16e8   :  { %v3281_v38 = vadd.f32 %v4996_v10, %v3280_v49  ;;  %v15108_v49 = vld [vmem:[#allocation62_spill] sm:$0xff] }
0x16e9   :  { %3697 = vmatpush.msra.mxu3 %v11037_v26 }
0x16ea   :  { %v3285_v37 = vsel %vm3284_vm4, %v4996_v10, %v3281_v38  ;;  %v15109_v38 = vld [vmem:[#allocation63_spill] sm:$0xff]  ;;  %v15114_v10 = vld [vmem:[#allocation68_spill] sm:$0xff] }
0x16eb   :  { %3698 = vmatpush.msra.mxu3 %v11045_v29  ;;  %v3290_v16 = vsel %vm3287_vm5, %v3289_v22, %v3285_v37  ;;  %v11915_v22 = vld [vmem:[%s13651_s0] sm:$0xff] }
0x16ec   :  { %v3292_v8 = vperm.slane %v3290_v16, 0  ;;  %v3293_v26 = vperm.slane %v3290_v16, 1 }
0x16ed   :  { %3699 = vmatpush.msra.mxu3 %v11051_v6  ;;  %v15110_v6 = vld [vmem:[#allocation64_spill] sm:$0xff] }
0x16ee   :  { %v3297_v61 = vmul.f32 %v11573_v24, %v3292_v8  ;;  %v3296_v57 = vmul.f32 %v11571_v40, %v3292_v8  ;;  %v3299_v29 = vmul.f32 %v11580_v45, %v3293_v26  ;;  %v3298_v19 = vmul.f32 %v11576_v51, %v3293_v26  ;;  %v15111_v40 = vld [vmem:[#allocation65_spill] sm:$0xff]  ;;  %v15113_v24 = vld [vmem:[#allocation67_spill] sm:$0xff] }
0x16ef   :  { %3700 = vmatpush.msra.mxu3 %v11057_v41  ;;  %v15112_v41 = vld [vmem:[#allocation66_spill] sm:$0xff]  ;;  %v11909_v45 = vld [vmem:[%s13651_s0 + $0x8] sm:$0xff] }
0x16f0   :  { %3307 = vperm.xlu0 %4849, %v3297_v61   ;;  %3302 = vperm.xlu1 %4850, %v3296_v57   ;;  %v11921_v26 = vld [vmem:[%s13651_s0 + $0x18] sm:$0xff] }
0x16f1   :  { %3701 = vmatpush.msra.mxu3 %v15107_v42 }
0x16f3   :  { %3702 = vmatpush.msra.mxu3 %v15108_v49 }
0x16f5   :  { %3703 = vmatpush.msra.mxu3 %v15109_v38  ;;  %v11927_v38 = vld [vmem:[%s13651_s0 + $0x10] sm:$0xff] }
0x16f7   :  { %3704 = vmatpush.msra.mxu3 %v15110_v6 }
0x16f8   :  { %3317 = vperm.xlu0 %4849, %v3299_v29   ;;  %3312 = vperm.xlu1 %4850, %v3298_v19  }
0x16f9   :  { %3705 = vmatpush.msra.mxu3 %v15111_v40 }
0x16fb   :  { %3706 = vmatpush.msra.mxu3 %v15112_v41 }
0x16fd   :  { %3707 = vmatpush.msra.mxu3 %v15113_v24 }
0x16ff   :  { %3708 = vmatpush.msra.mxu3 %v15114_v10 }
0x1762   :  { %v3308_v18 = vpop.permute.xlu0 %3307  ;;  %v3303_v62 = vpop.permute.xlu1 %3302 }
0x1763   :  { %v3321_v51 = vmul.f32 %v11909_v45, %v3308_v18  ;;  %v3320_v37 = vmul.f32 %v11915_v22, %v3303_v62 }
0x1765   :  { %v3324_v16 = vadd.f32 %v3321_v51, %v3320_v37 }
0x1767   :  { %v3325_v8 = vrot.slane %v3324_v16, 4 }
0x1769   :  { %v3326_v61 = vadd.f32 %v3325_v8, %v3324_v16 }
0x176a   :  { %v3318_v57 = vpop.permute.xlu0 %3317  ;;  %v3313_v42 = vpop.permute.xlu1 %3312 }
0x176b   :  { %v3323_v49 = vmul.f32 %v11921_v26, %v3318_v57  ;;  %v3322_v29 = vmul.f32 %v11927_v38, %v3313_v42  ;;  %v3327_v19 = vrot.slane %v3326_v61, 2  ;;  %v11934_v57 = vld [vmem:[%s13661_s10 + $0x5f0] sm:$0xff] }
0x176c   :  { %v11946_v42 = vld [vmem:[%s13661_s10 + $0x5d0] sm:$0xff] }
0x176d   :  { %v3331_v6 = vadd.f32 %v3323_v49, %v3322_v29  ;;  %v3328_v41 = vadd.f32 %v3327_v19, %v3326_v61  ;;  %v11940_v61 = vld [vmem:[%s13661_s10 + $0x5f8] sm:$0xff]  ;;  %v11965_v19 = vld [vmem:[%s13661_s10 + $0x5b0] sm:$0xff] }
0x176e   :  { %v11952_v49 = vld [vmem:[%s13655_s4 + $0x78] sm:$0xff] }
0x176f   :  { %v3332_v40 = vrot.slane %v3331_v6, 4  ;;  %v3329_v18 = vrot.slane %v3328_v41, 1  ;;  %v11958_v29 = vld [vmem:[%s13661_s10 + $0x5d8] sm:$0xff] }
0x1771   :  { %v3333_v24 = vadd.f32 %v3332_v40, %v3331_v6  ;;  %v3330_v37 = vadd.f32 %v3329_v18, %v3328_v41  ;;  %v11971_v6 = vld [vmem:[%s13655_s4 + $0x70] sm:$0xff]  ;;  %v11977_v40 = vld [vmem:[%s13661_s10 + $0x5b8] sm:$0xff]  ;;  %v11990_v41 = vld [vmem:[%s13655_s4 + $0x68] sm:$0xff] }
0x1772   :  { %v12017_v18 = vld [vmem:[%s13661_s10 + $0x550] sm:$0xff] }
0x1773   :  { %v3334_v10 = vrot.slane %v3333_v24, 2 }
0x1775   :  { %v3335_v62 = vadd.f32 %v3334_v10, %v3333_v24  ;;  %v11996_v24 = vld [vmem:[%s13661_s10 + $0x598] sm:$0xff] }
0x1776   :  { %v12011_v10 = vld [vmem:[%s13661_s10 + $0x578] sm:$0xff] }
0x1777   :  { %v3336_v51 = vrot.slane %v3335_v62, 1 }
0x1779   :  { %v3337_v16 = vadd.f32 %v3336_v51, %v3335_v62  ;;  %v12023_v62 = vld [vmem:[%s13655_s4 + $0x60] sm:$0xff]  ;;  %v12036_v51 = vld [vmem:[%s13661_s10 + $0x530] sm:$0xff] }
0x177b   :  { %v3340_v8 = vsel %vm371_vm1, %v3337_v16, %v3330_v37  ;;  %v12042_v37 = vld [vmem:[%s13655_s4 + $0x58] sm:$0xff] }
0x177c   :  { %3358 = vmatmul.f32.vlgmr.msrb.gmra.mxu2 %v3340_v8  ;;  %3418 = vmatmul.f32.vlgmr.msra.gmra.mxu1 %v3340_v8  ;;  %v12048_v16 = vld [vmem:[%s13661_s10 + $0x538] sm:$0xff] }
0x177d   :  { %3478 = vmatmul.f32.vlgmr.msrb.gmra.mxu0 %v3340_v8  ;;  %3502 = vmatpush.msrb.mxu2 %v11934_v57  ;;  %15115 = vst [vmem:[#allocation36_spill] sm:$0xff] %v12048_v16 }
0x177e   :  { %3538 = vmatmul.f32.vlgmr.msrb.gmra.mxu3 %v3340_v8  ;;  %3562 = vmatpush.msra.mxu1 %v11940_v61  ;;  %v12061_v8 = vld [vmem:[%s13655_s4 + $0x50] sm:$0xff] }
0x177f   :  { %3503 = vmatpush.msrb.mxu2 %v11946_v42  ;;  %3713 = vmatpush.msrb.mxu0 %v11952_v49  ;;  %15117 = vst [vmem:[#allocation38_spill] sm:$0xff] %v12061_v8 }
0x1780   :  { %3563 = vmatpush.msra.mxu1 %v11958_v29  ;;  %3927 = vmatpush.msrb.mxu3 %v11121_v33  ;;  %v11984_v33 = vld [vmem:[%s13661_s10 + $0x590] sm:$0xff] }
0x1781   :  { %3504 = vmatpush.msrb.mxu2 %v11965_v19  ;;  %3714 = vmatpush.msrb.mxu0 %v11971_v6 }
0x1782   :  { %3564 = vmatpush.msra.mxu1 %v11977_v40  ;;  %3928 = vmatpush.msrb.mxu3 %v11130_v35  ;;  %v12004_v35 = vld [vmem:[%s13661_s10 + $0x570] sm:$0xff] }
0x1783   :  { %3505 = vmatpush.msrb.mxu2 %v11984_v33  ;;  %3715 = vmatpush.msrb.mxu0 %v11990_v41 }
0x1784   :  { %3565 = vmatpush.msra.mxu1 %v11996_v24  ;;  %3438 = vmatmul.f32.vlgmr.msra.gmra.mxu2 %v11786_v5 }
0x1785   :  { %3498 = vmatmul.f32.vlgmr.msrb.gmra.mxu1 %v11786_v5  ;;  %3506 = vmatpush.msrb.mxu2 %v12004_v35 }
0x1786   :  { %3558 = vmatmul.f32.vlgmr.msra.gmra.mxu0 %v11786_v5  ;;  %3566 = vmatpush.msra.mxu1 %v12011_v10  ;;  %v12029_v5 = vld [vmem:[%s13661_s10 + $0x558] sm:$0xff] }
0x1787   :  { %3507 = vmatpush.msrb.mxu2 %v12017_v18  ;;  %3716 = vmatpush.msrb.mxu0 %v12023_v62 }
0x1788   :  { %3567 = vmatpush.msra.mxu1 %v12029_v5  ;;  %3929 = vmatpush.msrb.mxu3 %v11147_v12  ;;  %v12055_v12 = vld [vmem:[%s13661_s10 + $0x510] sm:$0xff] }
0x1789   :  { %3508 = vmatpush.msrb.mxu2 %v12036_v51  ;;  %3717 = vmatpush.msrb.mxu0 %v12042_v37  ;;  %15116 = vst [vmem:[#allocation37_spill] sm:$0xff] %v12055_v12 }
0x178a   :  { %3568 = vmatpush.msra.mxu1 %v12048_v16  ;;  %3930 = vmatpush.msrb.mxu3 %v11156_v50  ;;  %v12067_v16 = vld [vmem:[%s13661_s10 + $0x518] sm:$0xff]  ;;  %v12074_v50 = vld [vmem:[%s13661_s10 + $0x4f0] sm:$0xff] }
0x178b   :  { %3509 = vmatpush.msrb.mxu2 %v12055_v12  ;;  %3718 = vmatpush.msrb.mxu0 %v12061_v8  ;;  %15118 = vst [vmem:[#allocation39_spill] sm:$0xff] %v12067_v16  ;;  %v12080_v8 = vld [vmem:[%s13655_s4 + $0x48] sm:$0xff] }
0x178c   :  { %3569 = vmatpush.msra.mxu1 %v12067_v16  ;;  %3931 = vmatpush.msrb.mxu3 %v11165_v4  ;;  %15119 = vst [vmem:[#allocation40_spill] sm:$0xff] %v12074_v50  ;;  %v12086_v16 = vld [vmem:[%s13661_s10 + $0x4f8] sm:$0xff]  ;;  %v12093_v4 = vld [vmem:[%s13661_s10 + $0x4d0] sm:$0xff] }
0x178d   :  { %3510 = vmatpush.msrb.mxu2 %v12074_v50  ;;  %15120 = vst [vmem:[#allocation41_spill] sm:$0xff] %v12080_v8  ;;  %3719 = vmatpush.msrb.mxu0 %v12080_v8  ;;  %v12099_v8 = vld [vmem:[%s13655_s4 + $0x40] sm:$0xff] }
0x178e   :  { %15121 = vst [vmem:[#allocation42_spill] sm:$0xff] %v12086_v16  ;;  %3570 = vmatpush.msra.mxu1 %v12086_v16  ;;  %3932 = vmatpush.msrb.mxu3 %v11174_v1  ;;  %v12105_v16 = vld [vmem:[%s13661_s10 + $0x4d8] sm:$0xff]  ;;  %v12112_v1 = vld [vmem:[%s13661_s10 + $0x4b0] sm:$0xff] }
0x178f   :  { %15122 = vst [vmem:[#allocation43_spill] sm:$0xff] %v12093_v4  ;;  %3511 = vmatpush.msrb.mxu2 %v12093_v4  ;;  %3720 = vmatpush.msrb.mxu0 %v12099_v8 }
0x1790   :  { %15123 = vst [vmem:[#allocation45_spill] sm:$0xff] %v12099_v8  ;;  %3571 = vmatpush.msra.mxu1 %v12105_v16  ;;  %3933 = vmatpush.msrb.mxu3 %v11183_v60  ;;  %v12118_v8 = vld [vmem:[%s13655_s4 + $0x38] sm:$0xff]  ;;  %v12131_v60 = vld [vmem:[%s13661_s10 + $0x490] sm:$0xff] }
0x1791   :  { %15124 = vst [vmem:[#allocation46_spill] sm:$0xff] %v12105_v16  ;;  %3512 = vmatpush.msrb.mxu2 %v12112_v1  ;;  %3721 = vmatpush.msrb.mxu0 %v12118_v8  ;;  %v12124_v16 = vld [vmem:[%s13661_s10 + $0x4b8] sm:$0xff] }
0x1792   :  { %15125 = vst [vmem:[#allocation47_spill] sm:$0xff] %v12112_v1  ;;  %3572 = vmatpush.msra.mxu1 %v12124_v16  ;;  %3934 = vmatpush.msrb.mxu3 %v11192_v56  ;;  %v12150_v56 = vld [vmem:[%s13661_s10 + $0x470] sm:$0xff] }
0x1793   :  { %15126 = vst [vmem:[#allocation48_spill] sm:$0xff] %v12118_v8  ;;  %3513 = vmatpush.msrb.mxu2 %v12131_v60  ;;  %v12137_v8 = vld [vmem:[%s13655_s4 + $0x30] sm:$0xff] }
0x1794   :  { %15127 = vst [vmem:[#allocation49_spill] sm:$0xff] %v12124_v16  ;;  %3722 = vmatpush.msrb.mxu0 %v12137_v8  ;;  %v12143_v16 = vld [vmem:[%s13661_s10 + $0x498] sm:$0xff]  ;;  %3935 = vmatpush.msrb.mxu3 %v11201_v32  ;;  %v12169_v32 = vld [vmem:[%s13661_s10 + $0x450] sm:$0xff] }
0x1795   :  { %15128 = vst [vmem:[#allocation50_spill] sm:$0xff] %v12131_v60  ;;  %3573 = vmatpush.msra.mxu1 %v12143_v16  ;;  %3514 = vmatpush.msrb.mxu2 %v12150_v56 }
0x1796   :  { %15129 = vst [vmem:[#allocation127_spill] sm:$0xff] %v12137_v8  ;;  %v12156_v8 = vld [vmem:[%s13655_s4 + $0x28] sm:$0xff]  ;;  %3936 = vmatpush.msrb.mxu3 %v11210_v13  ;;  %v12188_v13 = vld [vmem:[%s13661_s10 + $0x430] sm:$0xff] }
0x1797   :  { %15130 = vst [vmem:[#allocation28_spill] sm:$0xff] %v12143_v16  ;;  %3723 = vmatpush.msrb.mxu0 %v12156_v8  ;;  %v12162_v16 = vld [vmem:[%s13661_s10 + $0x478] sm:$0xff]  ;;  %3515 = vmatpush.msrb.mxu2 %v12169_v32 }
0x1798   :  { %15131 = vst [vmem:[#allocation44_spill] sm:$0xff] %v12150_v56  ;;  %3574 = vmatpush.msra.mxu1 %v12162_v16  ;;  %3937 = vmatpush.msrb.mxu3 %v11219_v53  ;;  %v12207_v53 = vld [vmem:[%s13661_s10 + $0x410] sm:$0xff] }
0x1799   :  { %15132 = vst [vmem:[#allocation128_spill] sm:$0xff] %v12156_v8  ;;  %v12175_v8 = vld [vmem:[%s13655_s4 + $0x20] sm:$0xff]  ;;  %3516 = vmatpush.msrb.mxu2 %v12188_v13 }
0x179a   :  { %15133 = vst [vmem:[#allocation129_spill] sm:$0xff] %v12162_v16  ;;  %3724 = vmatpush.msrb.mxu0 %v12175_v8  ;;  %v12181_v16 = vld [vmem:[%s13661_s10 + $0x458] sm:$0xff]  ;;  %3938 = vmatpush.msrb.mxu3 %v11228_v25  ;;  %v12228_v25 = vld [vmem:[%s13655_s4 + $0x8] sm:$0xff] }
0x179b   :  { %15134 = vst [vmem:[#allocation130_spill] sm:$0xff] %v12169_v32  ;;  %3575 = vmatpush.msra.mxu1 %v12181_v16  ;;  %3517 = vmatpush.msrb.mxu2 %v12207_v53 }
0x179c   :  { %15135 = vst [vmem:[#allocation131_spill] sm:$0xff] %v12175_v8  ;;  %v12194_v8 = vld [vmem:[%s13655_s4 + $0x18] sm:$0xff]  ;;  %3518 = vmatmul.f32.vlgmr.msrb.gmra.mxu2 %v11510_v11  ;;  %3939 = vmatpush.msrb.mxu3 %v11246_v3  ;;  %v12250_v3 = vld [vmem:[%s13661_s10 + $0x1e8] sm:$0xff] }
0x179d   :  { %15136 = vst [vmem:[#allocation132_spill] sm:$0xff] %v12181_v16  ;;  %3725 = vmatpush.msrb.mxu0 %v12194_v8  ;;  %v12200_v16 = vld [vmem:[%s13661_s10 + $0x438] sm:$0xff]  ;;  %3645 = vmatpush.msra.mxu2 %v11239_v39  ;;  %v12242_v39 = vld [vmem:[%s13655_s4] sm:$0xff] }
0x179e   :  { %15137 = vst [vmem:[#allocation133_spill] sm:$0xff] %v12188_v13  ;;  %3576 = vmatpush.msra.mxu1 %v12200_v16  ;;  %3940 = vmatpush.msrb.mxu3 %v11260_v59  ;;  %v12264_v59 = vld [vmem:[%s13661_s10 + $0x1c8] sm:$0xff] }
0x179f   :  { %15138 = vst [vmem:[#allocation134_spill] sm:$0xff] %v12194_v8  ;;  %v12213_v8 = vld [vmem:[%s13655_s4 + $0x10] sm:$0xff]  ;;  %3646 = vmatpush.msra.mxu2 %v11252_v63  ;;  %v12257_v63 = vld [vmem:[%s13661_s10 + $0x1c0] sm:$0xff] }
0x17a0   :  { %15139 = vst [vmem:[#allocation135_spill] sm:$0xff] %v12200_v16  ;;  %3726 = vmatpush.msrb.mxu0 %v12213_v8  ;;  %v12219_v16 = vld [vmem:[%s13661_s10 + $0x418] sm:$0xff]  ;;  %3941 = vmatpush.msrb.mxu3 %v11273_v55  ;;  %v12278_v55 = vld [vmem:[%s13661_s10 + $0x1a8] sm:$0xff] }
0x17a1   :  { %15140 = vst [vmem:[#allocation136_spill] sm:$0xff] %v12207_v53  ;;  %3577 = vmatpush.msra.mxu1 %v12219_v16  ;;  %3647 = vmatpush.msra.mxu2 %v11266_v14  ;;  %v12271_v14 = vld [vmem:[%s13661_s10 + $0x1a0] sm:$0xff] }
0x17a2   :  { %15141 = vst [vmem:[#allocation137_spill] sm:$0xff] %v12213_v8  ;;  %3578 = vmatmul.f32.vlgmr.msra.gmra.mxu1 %v11510_v11  ;;  %3727 = vmatpush.msrb.mxu0 %v12228_v25  ;;  %v12310_v11 = vld [vmem:[%s13661_s10 + $0x140] sm:$0xff] }
0x17a3   :  { %15142 = vst [vmem:[#allocation138_spill] sm:$0xff] %v12219_v16  ;;  %v12236_v16 = vld [vmem:[%s13661_s10 + $0x1e0] sm:$0xff]  ;;  %3648 = vmatpush.msra.mxu2 %v11280_v21  ;;  %3942 = vmatpush.msrb.mxu3 %v11287_v58  ;;  %v12291_v58 = vld [vmem:[%s13661_s10 + $0x188] sm:$0xff] }
0x17a4   :  { %15143 = vst [vmem:[#allocation139_spill] sm:$0xff] %v12228_v25  ;;  %3887 = vmatpush.msrb.mxu1 %v12236_v16  ;;  %3728 = vmatpush.msrb.mxu0 %v12242_v39  ;;  %v12284_v21 = vld [vmem:[%s13661_s10 + $0x180] sm:$0xff] }
0x17a5   :  { %15144 = vst [vmem:[#allocation140_spill] sm:$0xff] %v12236_v16  ;;  %3649 = vmatpush.msra.mxu2 %v11294_v9  ;;  %v12297_v9 = vld [vmem:[%s13661_s10 + $0x160] sm:$0xff] }
0x17a6   :  { %15145 = vst [vmem:[#allocation141_spill] sm:$0xff] %v12242_v39  ;;  %3947 = vmatpush.msra.mxu0 %v12250_v3  ;;  %3888 = vmatpush.msrb.mxu1 %v12257_v63 }
0x17a7   :  { %15146 = vst [vmem:[#allocation142_spill] sm:$0xff] %v12250_v3  ;;  %3650 = vmatpush.msra.mxu2 %v11302_v36  ;;  %v12304_v36 = vld [vmem:[%s13661_s10 + $0x168] sm:$0xff] }
0x17a8   :  { %15147 = vst [vmem:[#allocation143_spill] sm:$0xff] %v12257_v63  ;;  %3948 = vmatpush.msra.mxu0 %v12264_v59  ;;  %3889 = vmatpush.msrb.mxu1 %v12271_v14  ;;  %v15219_v3 = vld [vmem:[#allocation24_spill] sm:$0xff] }
0x17a9   :  { %15148 = vst [vmem:[#allocation144_spill] sm:$0xff] %v12264_v59  ;;  %3651 = vmatpush.msra.mxu2 %v11310_v46  ;;  %v12317_v46 = vld [vmem:[%s13661_s10 + $0x148] sm:$0xff] }
0x17aa   :  { %15149 = vst [vmem:[#allocation145_spill] sm:$0xff] %v12271_v14  ;;  %3949 = vmatpush.msra.mxu0 %v12278_v55  ;;  %3890 = vmatpush.msrb.mxu1 %v12284_v21 }
0x17ab   :  { %15150 = vst [vmem:[#allocation146_spill] sm:$0xff] %v12278_v55  ;;  %v15218_v55 = vld [vmem:[#allocation22_spill] sm:$0xff] }
0x17ac   :  { %15151 = vst [vmem:[#allocation147_spill] sm:$0xff] %v12284_v21  ;;  %3950 = vmatpush.msra.mxu0 %v12291_v58  ;;  %3891 = vmatpush.msrb.mxu1 %v12297_v9  ;;  %v15193_v21 = vld [vmem:[#allocation82_spill] sm:$0xff] }
0x17ad   :  { %15152 = vst [vmem:[#allocation148_spill] sm:$0xff] %v12291_v58  ;;  %v15156_v58 = vld [vmem:[#allocation69_spill] sm:$0xff] }
0x17ae   :  { %15153 = vst [vmem:[#allocation149_spill] sm:$0xff] %v12297_v9  ;;  %3951 = vmatpush.msra.mxu0 %v12304_v36  ;;  %3892 = vmatpush.msrb.mxu1 %v12310_v11  ;;  %v15159_v9 = vld [vmem:[#allocation70_spill] sm:$0xff] }
0x17af   :  { %15154 = vst [vmem:[#allocation150_spill] sm:$0xff] %v12304_v36  ;;  %3652 = vmatpush.msra.mxu2 %v15156_v58  ;;  %v12323_v36 = vld [vmem:[%s13661_s10 + $0x120] sm:$0xff]  ;;  %v12330_v58 = vld [vmem:[%s13661_s10 + $0x128] sm:$0xff] }
0x17b0   :  { %15155 = vst [vmem:[#allocation151_spill] sm:$0xff] %v12310_v11  ;;  %3952 = vmatpush.msra.mxu0 %v12317_v46  ;;  %3893 = vmatpush.msrb.mxu1 %v12323_v36  ;;  %v15162_v11 = vld [vmem:[#allocation71_spill] sm:$0xff] }
0x17b1   :  { %15157 = vst [vmem:[#allocation152_spill] sm:$0xff] %v12317_v46  ;;  %3653 = vmatpush.msra.mxu2 %v15159_v9  ;;  %v12336_v46 = vld [vmem:[%s13661_s10 + $0x100] sm:$0xff]  ;;  %v12343_v9 = vld [vmem:[%s13661_s10 + $0x108] sm:$0xff] }
0x17b2   :  { %15158 = vst [vmem:[#allocation153_spill] sm:$0xff] %v12323_v36  ;;  %3953 = vmatpush.msra.mxu0 %v12330_v58  ;;  %3894 = vmatpush.msrb.mxu1 %v12336_v46  ;;  %v15165_v36 = vld [vmem:[#allocation72_spill] sm:$0xff] }
0x17b3   :  { %15160 = vst [vmem:[#allocation154_spill] sm:$0xff] %v12330_v58  ;;  %3654 = vmatpush.msra.mxu2 %v15162_v11  ;;  %v12349_v58 = vld [vmem:[%s13661_s10 + $0xe0] sm:$0xff]  ;;  %v12356_v11 = vld [vmem:[%s13661_s10 + $0xe8] sm:$0xff] }
0x17b4   :  { %15161 = vst [vmem:[#allocation155_spill] sm:$0xff] %v12336_v46  ;;  %3954 = vmatpush.msra.mxu0 %v12343_v9  ;;  %3895 = vmatpush.msrb.mxu1 %v12349_v58  ;;  %v15168_v46 = vld [vmem:[#allocation73_spill] sm:$0xff] }
0x17b5   :  { %15163 = vst [vmem:[#allocation156_spill] sm:$0xff] %v12343_v9  ;;  %3655 = vmatpush.msra.mxu2 %v15165_v36  ;;  %v12362_v9 = vld [vmem:[%s13661_s10 + $0xc0] sm:$0xff]  ;;  %v12369_v36 = vld [vmem:[%s13661_s10 + $0xc8] sm:$0xff] }
0x17b6   :  { %15164 = vst [vmem:[#allocation157_spill] sm:$0xff] %v12349_v58  ;;  %3955 = vmatpush.msra.mxu0 %v12356_v11  ;;  %3896 = vmatpush.msrb.mxu1 %v12362_v9  ;;  %v15171_v58 = vld [vmem:[#allocation74_spill] sm:$0xff] }
0x17b7   :  { %15166 = vst [vmem:[#allocation158_spill] sm:$0xff] %v12356_v11  ;;  %3656 = vmatpush.msra.mxu2 %v15168_v46  ;;  %v12375_v11 = vld [vmem:[%s13661_s10 + $0xa0] sm:$0xff]  ;;  %v12382_v46 = vld [vmem:[%s13661_s10 + $0xa8] sm:$0xff] }
0x17b8   :  { %15167 = vst [vmem:[#allocation159_spill] sm:$0xff] %v12362_v9  ;;  %3956 = vmatpush.msra.mxu0 %v12369_v36  ;;  %3897 = vmatpush.msrb.mxu1 %v12375_v11  ;;  %v15174_v9 = vld [vmem:[#allocation75_spill] sm:$0xff] }
0x17b9   :  { %15169 = vst [vmem:[#allocation163_spill] sm:$0xff] %v12369_v36  ;;  %3657 = vmatpush.msra.mxu2 %v15171_v58  ;;  %v12388_v36 = vld [vmem:[%s13661_s10 + $0x80] sm:$0xff]  ;;  %v12395_v58 = vld [vmem:[%s13661_s10 + $0x88] sm:$0xff] }
0x17ba   :  { %15170 = vst [vmem:[#allocation160_spill] sm:$0xff] %v12375_v11  ;;  %3957 = vmatpush.msra.mxu0 %v12382_v46  ;;  %3898 = vmatpush.msrb.mxu1 %v12388_v36  ;;  %v15177_v11 = vld [vmem:[#allocation76_spill] sm:$0xff] }
0x17bb   :  { %15172 = vst [vmem:[#allocation161_spill] sm:$0xff] %v12382_v46  ;;  %3658 = vmatpush.msra.mxu2 %v15174_v9  ;;  %v12401_v46 = vld [vmem:[%s13661_s10 + $0x60] sm:$0xff]  ;;  %v12408_v9 = vld [vmem:[%s13661_s10 + $0x68] sm:$0xff] }
0x17bc   :  { %15173 = vst [vmem:[#allocation162_spill] sm:$0xff] %v12388_v36  ;;  %3958 = vmatpush.msra.mxu0 %v12395_v58  ;;  %3899 = vmatpush.msrb.mxu1 %v12401_v46  ;;  %v15180_v36 = vld [vmem:[#allocation77_spill] sm:$0xff] }
0x17bd   :  { %15175 = vst [vmem:[#allocation165_spill] sm:$0xff] %v12395_v58  ;;  %3659 = vmatpush.msra.mxu2 %v15177_v11  ;;  %v12414_v58 = vld [vmem:[%s13661_s10 + $0x40] sm:$0xff]  ;;  %v12421_v11 = vld [vmem:[%s13661_s10 + $0x48] sm:$0xff] }
0x17be   :  { %15176 = vst [vmem:[#allocation164_spill] sm:$0xff] %v12401_v46  ;;  %3959 = vmatpush.msra.mxu0 %v12408_v9  ;;  %3900 = vmatpush.msrb.mxu1 %v12414_v58  ;;  %v15182_v46 = vld [vmem:[#allocation78_spill] sm:$0xff] }
0x17bf   :  { %15178 = vst [vmem:[#allocation166_spill] sm:$0xff] %v12408_v9  ;;  %3660 = vmatpush.msra.mxu2 %v15180_v36  ;;  %v12428_v9 = vld [vmem:[%s13661_s10 + $0x20] sm:$0xff]  ;;  %v12434_v36 = vld [vmem:[%s13661_s10 + $0x28] sm:$0xff] }
0x17c0   :  { %15179 = vst [vmem:[#allocation9_spill] sm:$0xff] %v12414_v58  ;;  %3960 = vmatpush.msra.mxu0 %v12421_v11  ;;  %3901 = vmatpush.msrb.mxu1 %v12428_v9  ;;  %v15185_v58 = vld [vmem:[#allocation79_spill] sm:$0xff] }
0x17c1   :  { %15181 = vst [vmem:[#allocation11_spill] sm:$0xff] %v12421_v11  ;;  %3907 = vmatpush.msrb.mxu2 %v15182_v46  ;;  %v12441_v46 = vld [vmem:[%s13661_s10] sm:$0xff]  ;;  %v15191_v11 = vld [vmem:[#allocation81_spill] sm:$0xff] }
0x17c2   :  { %15183 = vst [vmem:[#allocation12_spill] sm:$0xff] %v12428_v9  ;;  %3961 = vmatpush.msra.mxu0 %v12434_v36  ;;  %3902 = vmatpush.msrb.mxu1 %v12441_v46  ;;  %v12447_v9 = vld [vmem:[%s13661_s10 + $0x8] sm:$0xff] }
0x17c3   :  { %15184 = vst [vmem:[#allocation13_spill] sm:$0xff] %v12434_v36  ;;  %3908 = vmatpush.msrb.mxu2 %v15185_v58  ;;  %v12453_v36 = vld [vmem:[%s13661_s10 + $0x3e8] sm:$0xff] }
0x17c4   :  { %15186 = vst [vmem:[#allocation14_spill] sm:$0xff] %v12441_v46  ;;  %3962 = vmatpush.msra.mxu0 %v12447_v9  ;;  %3967 = vmatpush.msra.mxu1 %v12453_v36  ;;  %v15189_v58 = vld [vmem:[#allocation80_spill] sm:$0xff] }
0x17c5   :  { %15187 = vst [vmem:[#allocation15_spill] sm:$0xff] %v12447_v9  ;;  %3909 = vmatpush.msrb.mxu2 %v15189_v58  ;;  %v12460_v46 = vld [vmem:[%s13661_s10 + $0x3c8] sm:$0xff] }
0x17c6   :  { %15188 = vst [vmem:[#allocation16_spill] sm:$0xff] %v12453_v36  ;;  %3968 = vmatpush.msra.mxu1 %v12460_v46  ;;  %v12467_v9 = vld [vmem:[%s13661_s10 + $0x3a8] sm:$0xff] }
0x17c7   :  { %15190 = vst [vmem:[#allocation17_spill] sm:$0xff] %v12460_v46  ;;  %3910 = vmatpush.msrb.mxu2 %v15191_v11  ;;  %v12474_v58 = vld [vmem:[%s13661_s10 + $0x388] sm:$0xff] }
0x17c8   :  { %15192 = vst [vmem:[#allocation18_spill] sm:$0xff] %v12467_v9  ;;  %3969 = vmatpush.msra.mxu1 %v12467_v9  ;;  %v15195_v36 = vld [vmem:[#allocation83_spill] sm:$0xff]  ;;  %v15197_v46 = vld [vmem:[#allocation84_spill] sm:$0xff]  ;;  %v15199_v9 = vld [vmem:[#allocation85_spill] sm:$0xff] }
0x17c9   :  { %3911 = vmatpush.msrb.mxu2 %v15193_v21  ;;  %15194 = vst [vmem:[#allocation19_spill] sm:$0xff] %v12474_v58  ;;  %v12481_v11 = vld [vmem:[%s13661_s10 + $0x368] sm:$0xff] }
0x17ca   :  { %3970 = vmatpush.msra.mxu1 %v12474_v58  ;;  %15196 = vst [vmem:[#allocation20_spill] sm:$0xff] %v12481_v11  ;;  %v12488_v21 = vld [vmem:[%s13661_s10 + $0x348] sm:$0xff]  ;;  %v15201_v58 = vld [vmem:[#allocation86_spill] sm:$0xff] }
0x17cb   :  { %3912 = vmatpush.msrb.mxu2 %v15195_v36  ;;  %15198 = vst [vmem:[#allocation21_spill] sm:$0xff] %v12488_v21  ;;  %v12495_v36 = vld [vmem:[%s13661_s10 + $0x328] sm:$0xff] }
0x17cc   :  { %3971 = vmatpush.msra.mxu1 %v12481_v11  ;;  %15200 = vst [vmem:[#allocation23_spill] sm:$0xff] %v12495_v36  ;;  %v15203_v11 = vld [vmem:[#allocation87_spill] sm:$0xff] }
0x17cd   :  { %3913 = vmatpush.msrb.mxu2 %v15197_v46  ;;  %v12502_v46 = vld [vmem:[%s13661_s10 + $0x308] sm:$0xff] }
0x17ce   :  { %3972 = vmatpush.msra.mxu1 %v12488_v21  ;;  %15202 = vst [vmem:[#allocation25_spill] sm:$0xff] %v12502_v46  ;;  %v15205_v21 = vld [vmem:[#allocation88_spill] sm:$0xff] }
0x17cf   :  { %3914 = vmatpush.msrb.mxu2 %v15199_v9  ;;  %v12509_v9 = vld [vmem:[%s13661_s10 + $0x2e8] sm:$0xff] }
0x17d0   :  { %3973 = vmatpush.msra.mxu1 %v12495_v36  ;;  %15204 = vst [vmem:[#allocation27_spill] sm:$0xff] %v12509_v9  ;;  %v15207_v36 = vld [vmem:[#allocation89_spill] sm:$0xff] }
0x17d1   :  { %3915 = vmatpush.msrb.mxu2 %v15201_v58  ;;  %v12516_v58 = vld [vmem:[%s13661_s10 + $0x2c8] sm:$0xff] }
0x17d2   :  { %3974 = vmatpush.msra.mxu1 %v12502_v46  ;;  %15206 = vst [vmem:[#allocation29_spill] sm:$0xff] %v12516_v58  ;;  %v15209_v46 = vld [vmem:[#allocation90_spill] sm:$0xff] }
0x17d3   :  { %3916 = vmatpush.msrb.mxu2 %v15203_v11  ;;  %v12523_v11 = vld [vmem:[%s13661_s10 + $0x2a8] sm:$0xff] }
0x17d4   :  { %3975 = vmatpush.msra.mxu1 %v12509_v9  ;;  %15208 = vst [vmem:[#allocation31_spill] sm:$0xff] %v12523_v11  ;;  %v15211_v9 = vld [vmem:[#allocation91_spill] sm:$0xff] }
0x17d5   :  { %3917 = vmatpush.msrb.mxu2 %v15205_v21  ;;  %v12530_v21 = vld [vmem:[%s13661_s10 + $0x288] sm:$0xff] }
0x17d6   :  { %3976 = vmatpush.msra.mxu1 %v12516_v58  ;;  %15210 = vst [vmem:[#allocation33_spill] sm:$0xff] %v12530_v21  ;;  %v15213_v58 = vld [vmem:[#allocation92_spill] sm:$0xff] }
0x17d7   :  { %3918 = vmatpush.msrb.mxu2 %v15207_v36  ;;  %v12537_v36 = vld [vmem:[%s13661_s10 + $0x268] sm:$0xff] }
0x17d8   :  { %3977 = vmatpush.msra.mxu1 %v12523_v11  ;;  %15212 = vst [vmem:[#allocation51_spill] sm:$0xff] %v12537_v36  ;;  %v15215_v11 = vld [vmem:[#allocation93_spill] sm:$0xff] }
0x17d9   :  { %3919 = vmatpush.msrb.mxu2 %v15209_v46  ;;  %v12544_v46 = vld [vmem:[%s13661_s10 + $0x248] sm:$0xff] }
0x17da   :  { %3978 = vmatpush.msra.mxu1 %v12530_v21  ;;  %15214 = vst [vmem:[#allocation52_spill] sm:$0xff] %v12544_v46 }
0x17db   :  { %3920 = vmatpush.msrb.mxu2 %v15211_v9  ;;  %v12551_v9 = vld [vmem:[%s13661_s10 + $0x228] sm:$0xff] }
0x17dc   :  { %3979 = vmatpush.msra.mxu1 %v12537_v36  ;;  %15216 = vst [vmem:[#allocation53_spill] sm:$0xff] %v12551_v9  ;;  %v3379_v36 = vpop.f32.mrf.mxu3 }
0x17dd   :  { %3921 = vmatpush.msrb.mxu2 %v15213_v58  ;;  %v12557_v58 = vld [vmem:[%s13661_s10 + $0x208] sm:$0xff] }
0x17de   :  { %3980 = vmatpush.msra.mxu1 %v12544_v46  ;;  %15217 = vst [vmem:[#allocation55_spill] sm:$0xff] %v12557_v58 }
0x17df   :  { %3922 = vmatpush.msrb.mxu2 %v15215_v11  ;;  %v3399_v11 = vpop.f32.mrf.mxu0 }
0x17e0   :  { %3981 = vmatpush.msra.mxu1 %v12551_v9 }
0x17e2   :  { %3982 = vmatpush.msra.mxu1 %v12557_v58 }
0x17e4   :  { %v3459_v8 = vpop.f32.mrf.mxu3 }
0x17f9   :  { %v3419_v59 = vpop.f32.mrf.mxu1 }
0x17fa   :  { %v3420_v39 = vadd.f32 %v3419_v59, %v15219_v3  ;;  %v3479_v13 = vpop.f32.mrf.mxu0 }
0x17ff   :  { %v3359_v21 = vpop.f32.mrf.mxu2 }
0x1800   :  { %v3360_v46 = vadd.f32 %v3359_v21, %v15218_v55 }
0x1801   :  { %v3539_v60 = vpop.f32.mrf.mxu3 }
0x1802   :  { %v3380_v14 = vadd.f32 %v3379_v36, %v3360_v46  ;;  %v3499_v21 = vpop.f32.mrf.mxu1  ;;  %v3540_v46 = vadd.f32 %v3539_v60, %v14655_v30 }
0x1804   :  { %v3400_v63 = vadd.f32 %v3399_v11, %v3380_v14  ;;  %v3559_v11 = vpop.f32.mrf.mxu0 }
0x1806   :  { %v4828_v16 = vmul.f32 -1.442695, %v3400_v63 }
0x1807   :  { %v3439_v25 = vpop.f32.mrf.mxu2 }
0x1808   :  { %4997 = vpow2.f32 %v4828_v16  ;;  %v3440_v9 = vadd.f32 %v3439_v25, %v3420_v39  ;;  %v3560_v16 = vadd.f32 %v3559_v11, %v3540_v46 }
0x180a   :  { %v3460_v53 = vadd.f32 %v3459_v8, %v3440_v9 }
0x180c   :  { %v4829_v32 = vmul.f32 -1.442695, %v3460_v53  ;;  %v3480_v53 = vadd.f32 %v3479_v13, %v14654_v44 }
0x180e   :  { %v4998_v56 = vpop.eup %4997  ;;  %4999 = vpow2.f32 %v4829_v32 }
0x180f   :  { %v3585_v58 = vadd.f32 1.0, %v4998_v56  ;;  %v3500_v56 = vadd.f32 %v3499_v21, %v3480_v53 }
0x1811   :  { %5001 = vrcp.f32 %v3585_v58  ;;  %vm3591_vm9 = vweird.f32 %v3585_v58  ;;  %v3597_v46 = vand.u32 2147483648, %v3585_v58  ;;  %v3595_v21 = vand.u32 2147483647, %v3585_v58 }
0x1813   :  { %vm3596_vm14 = vcmp.eq.f32.partialorder %v3595_v21, 8.507059e+37  ;;  %v12581_v21 = vld [vmem:[%s13661_s10 + $0x5e8] sm:$0xff] }
0x1814   :  { %v5000_v36 = vpop.eup %4999 }
0x1815   :  { %v3604_v14 = vadd.f32 1.0, %v5000_v36 }
0x1817   :  { %v5002_v59 = vpop.eup %5001  ;;  %5003 = vrcp.f32 %v3604_v14  ;;  %v3616_v36 = vand.u32 2147483648, %v3604_v14  ;;  %v3614_v30 = vand.u32 2147483647, %v3604_v14  ;;  %vm3610_vm10 = vweird.f32 %v3604_v14 }
0x1818   :  { %v3587_v63 = vmul.f32 %v5002_v59, %v3585_v58  ;;  %vm3592_vm6 = vweird.f32 %v5002_v59 }
0x1819   :  { %vm12564_vm11 = vmor %vm3591_vm9, %vm3592_vm6  ;;  %vm3615_vm13 = vcmp.eq.f32.partialorder %v3614_v30, 8.507059e+37 }
0x181a   :  { %v3588_v39 = vsub.f32 1.0, %v3587_v63 }
0x181c   :  { %v3589_v55 = vmul.f32 %v5002_v59, %v3588_v39 }
0x181d   :  { %v5004_v9 = vpop.eup %5003 }
0x181e   :  { %v3606_v3 = vmul.f32 %v5004_v9, %v3604_v14  ;;  %v3590_v12 = vadd.f32 %v5002_v59, %v3589_v55  ;;  %vm3611_vm8 = vweird.f32 %v5004_v9  ;;  %v3598_v55 = vor.u32 1.1754944e-38, %v3597_v46 }
0x181f   :  { %v3579_v25 = vpop.f32.mrf.mxu1  ;;  %v3519_v1 = vpop.f32.mrf.mxu2  ;;  %vm3612_vm12 = vmor %vm3610_vm10, %vm3611_vm8 }
0x1820   :  { %v3580_v8 = vadd.f32 %v3579_v25, %v3560_v16  ;;  %v3607_v4 = vsub.f32 1.0, %v3606_v3  ;;  %v3520_v60 = vadd.f32 %v3519_v1, %v3500_v56  ;;  %v3617_v3 = vor.u32 1.1754944e-38, %v3616_v36 }
0x1821   :  { %v3594_v16 = vsel %vm12564_vm11, %v5002_v59, %v3590_v12 }
0x1822   :  { %v4830_v32 = vmul.f32 -1.442695, %v3580_v8  ;;  %v3608_v50 = vmul.f32 %v5004_v9, %v3607_v4  ;;  %v3599_v14 = vsel %vm3596_vm14, %v3598_v55, %v3594_v16  ;;  %v12611_v16 = vld [vmem:[%s13661_s10 + $0x3b0] sm:$0xff] }
0x1823   :  { %15226 = vst [vmem:[#allocation59_spill] sm:$0xff] %v12611_v16  ;;  %v12623_v55 = vld [vmem:[%s13661_s10 + $0x390] sm:$0xff] }
0x1824   :  { %5005 = vpow2.f32 %v4830_v32  ;;  %v3609_v11 = vadd.f32 %v5004_v9, %v3608_v50  ;;  %15228 = vst [vmem:[#allocation61_spill] sm:$0xff] %v12623_v55 }
0x1825   :  { %5007 = vtanh.f32 %v3520_v60 }
0x1826   :  { %v3613_v4 = vsel %vm3612_vm12, %v5004_v9, %v3609_v11  ;;  %v12587_v11 = vld [vmem:[%s13661_s10 + $0x3f0] sm:$0xff] }
0x1827   :  { %v3618_v25 = vsel %vm3615_vm13, %v3617_v3, %v3613_v4  ;;  %15222 = vst [vmem:[#allocation56_spill] sm:$0xff] %v12587_v11  ;;  %v12599_v3 = vld [vmem:[%s13661_s10 + $0x3d0] sm:$0xff]  ;;  %v12617_v4 = vld [vmem:[%s13661_s10 + $0x588] sm:$0xff] }
0x1828   :  { %v3640_v8 = vmul.f32 %v3618_v25, %v11507_v52  ;;  %15224 = vst [vmem:[#allocation54_spill] sm:$0xff] %v12599_v3  ;;  %v12629_v25 = vld [vmem:[%s13661_s10 + $0x568] sm:$0xff] }
0x1829   :  { %15227 = vst [vmem:[#allocation60_spill] sm:$0xff] %v12617_v4 }
0x182a   :  { %v5006_v63 = vpop.eup %5005  ;;  %15229 = vst [vmem:[#allocation62_spill] sm:$0xff] %v12629_v25 }
0x182b   :  { %v3624_v1 = vadd.f32 1.0, %v5006_v63  ;;  %v5008_v39 = vpop.eup %5007  ;;  %v12593_v63 = vld [vmem:[%s13661_s10 + $0x5c8] sm:$0xff] }
0x182c   :  { %v3641_v53 = vmul.f32 %v5008_v39, %v3599_v14  ;;  %15223 = vst [vmem:[#allocation57_spill] sm:$0xff] %v12593_v63  ;;  %v12635_v39 = vld [vmem:[%s13661_s10 + $0x370] sm:$0xff]  ;;  %v12641_v14 = vld [vmem:[%s13661_s10 + $0x548] sm:$0xff] }
0x182d   :  { %5009 = vrcp.f32 %v3624_v1  ;;  %v3636_v60 = vand.u32 2147483648, %v3624_v1  ;;  %v3634_v30 = vand.u32 2147483647, %v3624_v1  ;;  %vm3630_vm0 = vweird.f32 %v3624_v1  ;;  %15230 = vst [vmem:[#allocation63_spill] sm:$0xff] %v12635_v39 }
0x182e   :  { %v12571_v50 = vadd.f32 %v3641_v53, %v3640_v8  ;;  %15231 = vst [vmem:[#allocation64_spill] sm:$0xff] %v12641_v14  ;;  %v12647_v8 = vld [vmem:[%s13661_s10 + $0x350] sm:$0xff]  ;;  %v12653_v53 = vld [vmem:[%s13661_s10 + $0x528] sm:$0xff] }
0x182f   :  { %v3637_v9 = vor.u32 1.1754944e-38, %v3636_v60  ;;  %vm3635_vm5 = vcmp.eq.f32.partialorder %v3634_v30, 8.507059e+37  ;;  %15232 = vst [vmem:[#allocation65_spill] sm:$0xff] %v12647_v8  ;;  %v12677_v60 = vld [vmem:[%s13661_s10 + $0x4e8] sm:$0xff] }
0x1830   :  { %5011 = vtanh.f32 %v12571_v50  ;;  %15233 = vst [vmem:[#allocation66_spill] sm:$0xff] %v12653_v53  ;;  %v12689_v30 = vld [vmem:[%s13661_s10 + $0x4c8] sm:$0xff] }
0x1831   :  { %15237 = vst [vmem:[#allocation70_spill] sm:$0xff] %v12677_v60 }
0x1832   :  { %15239 = vst [vmem:[#allocation72_spill] sm:$0xff] %v12689_v30 }
0x1833   :  { %v5010_v58 = vpop.eup %5009 }
0x1834   :  { %v3626_v32 = vmul.f32 %v5010_v58, %v3624_v1  ;;  %vm3631_vm15 = vweird.f32 %v5010_v58  ;;  %v12605_v1 = vld [vmem:[%s13661_s10 + $0x5a8] sm:$0xff] }
0x1835   :  { %vm3632_vm4 = vmor %vm3630_vm0, %vm3631_vm15  ;;  %15225 = vst [vmem:[#allocation58_spill] sm:$0xff] %v12605_v1 }
0x1836   :  { %v3627_v56 = vsub.f32 1.0, %v3626_v32  ;;  %v5012_v46 = vpop.eup %5011  ;;  %v12665_v32 = vld [vmem:[%s13661_s10 + $0x508] sm:$0xff] }
0x1837   :  { %15235 = vst [vmem:[#allocation68_spill] sm:$0xff] %v12665_v32 }
0x1838   :  { %v3628_v12 = vmul.f32 %v5010_v58, %v3627_v56  ;;  %v12671_v56 = vld [vmem:[%s13661_s10 + $0x310] sm:$0xff] }
0x1839   :  { %15236 = vst [vmem:[#allocation69_spill] sm:$0xff] %v12671_v56 }
0x183a   :  { %v3629_v59 = vadd.f32 %v5010_v58, %v3628_v12  ;;  %v12683_v12 = vld [vmem:[%s13661_s10 + $0x2f0] sm:$0xff] }
0x183b   :  { %15238 = vst [vmem:[#allocation71_spill] sm:$0xff] %v12683_v12 }
0x183c   :  { %v3633_v36 = vsel %vm3632_vm4, %v5010_v58, %v3629_v59  ;;  %v12659_v58 = vld [vmem:[%s13661_s10 + $0x330] sm:$0xff] }
0x183d   :  { %v3638_v52 = vsel %vm3635_vm5, %v3637_v9, %v3633_v36  ;;  %15234 = vst [vmem:[#allocation67_spill] sm:$0xff] %v12659_v58  ;;  %v12695_v59 = vld [vmem:[%s13661_s10 + $0x2d0] sm:$0xff]  ;;  %v12701_v9 = vld [vmem:[%s13661_s10 + $0x4a8] sm:$0xff] }
0x183e   :  { %v12574_v13 = vmul.f32 %v5012_v46, %v3638_v52  ;;  %15240 = vst [vmem:[#allocation73_spill] sm:$0xff] %v12695_v59  ;;  %v12707_v36 = vld [vmem:[%s13661_s10 + $0x2b0] sm:$0xff]  ;;  %v12713_v46 = vld [vmem:[%s13661_s10 + $0x488] sm:$0xff] }
0x183f   :  { %15241 = vst [vmem:[#allocation74_spill] sm:$0xff] %v12701_v9  ;;  %v12719_v52 = vld [vmem:[%s13661_s10 + $0x290] sm:$0xff] }
0x1840   :  { %3661 = vmatmul.f32.vlgmr.msra.gmra.mxu2 %v12574_v13  ;;  %3729 = vmatmul.f32.vlgmr.msrb.gmra.mxu0 %v12574_v13  ;;  %15242 = vst [vmem:[#allocation75_spill] sm:$0xff] %v12707_v36 }
0x1841   :  { %3987 = vmatpush.msra.mxu2 %v12581_v21  ;;  %4027 = vmatpush.msrb.mxu0 %v12587_v11  ;;  %15243 = vst [vmem:[#allocation76_spill] sm:$0xff] %v12713_v46 }
0x1842   :  { %15244 = vst [vmem:[#allocation77_spill] sm:$0xff] %v12719_v52 }
0x1843   :  { %3988 = vmatpush.msra.mxu2 %v12593_v63  ;;  %4028 = vmatpush.msrb.mxu0 %v12599_v3 }
0x1845   :  { %3989 = vmatpush.msra.mxu2 %v12605_v1  ;;  %4029 = vmatpush.msrb.mxu0 %v12611_v16 }
0x1847   :  { %3990 = vmatpush.msra.mxu2 %v12617_v4  ;;  %4030 = vmatpush.msrb.mxu0 %v12623_v55 }
0x1849   :  { %3991 = vmatpush.msra.mxu2 %v12629_v25  ;;  %4031 = vmatpush.msrb.mxu0 %v12635_v39 }
0x184b   :  { %3992 = vmatpush.msra.mxu2 %v12641_v14  ;;  %4032 = vmatpush.msrb.mxu0 %v12647_v8 }
0x184d   :  { %3993 = vmatpush.msra.mxu2 %v12653_v53  ;;  %4033 = vmatpush.msrb.mxu0 %v12659_v58 }
0x184f   :  { %3994 = vmatpush.msra.mxu2 %v12665_v32  ;;  %4034 = vmatpush.msrb.mxu0 %v12671_v56 }
0x1851   :  { %3995 = vmatpush.msra.mxu2 %v12677_v60  ;;  %4035 = vmatpush.msrb.mxu0 %v12683_v12 }
0x1853   :  { %3996 = vmatpush.msra.mxu2 %v12689_v30  ;;  %4036 = vmatpush.msrb.mxu0 %v12695_v59  ;;  %v12773_v59 = vld [vmem:[%s13656_s5] ss:$0 sm:$0xff] }
0x1854   :  { %15253 = vst [vmem:[#allocation86_spill] sm:$0xff] %v12773_v59 }
0x1855   :  { %3997 = vmatpush.msra.mxu2 %v12701_v9  ;;  %4037 = vmatpush.msrb.mxu0 %v12707_v36  ;;  %v12725_v9 = vld [vmem:[%s13661_s10 + $0x468] sm:$0xff]  ;;  %v12731_v36 = vld [vmem:[%s13661_s10 + $0x270] sm:$0xff] }
0x1856   :  { %15245 = vst [vmem:[#allocation78_spill] sm:$0xff] %v12725_v9 }
0x1857   :  { %3998 = vmatpush.msra.mxu2 %v12713_v46  ;;  %4038 = vmatpush.msrb.mxu0 %v12719_v52  ;;  %15246 = vst [vmem:[#allocation79_spill] sm:$0xff] %v12731_v36  ;;  %v12737_v46 = vld [vmem:[%s13661_s10 + $0x448] sm:$0xff]  ;;  %v12743_v52 = vld [vmem:[%s13661_s10 + $0x250] sm:$0xff] }
0x1858   :  { %15247 = vst [vmem:[#allocation80_spill] sm:$0xff] %v12737_v46 }
0x1859   :  { %3999 = vmatpush.msra.mxu2 %v12725_v9  ;;  %4039 = vmatpush.msrb.mxu0 %v12731_v36  ;;  %15248 = vst [vmem:[#allocation81_spill] sm:$0xff] %v12743_v52  ;;  %v12749_v9 = vld [vmem:[%s13661_s10 + $0x428] sm:$0xff]  ;;  %v12755_v36 = vld [vmem:[%s13661_s10 + $0x230] sm:$0xff] }
0x185a   :  { %15249 = vst [vmem:[#allocation82_spill] sm:$0xff] %v12749_v9 }
0x185b   :  { %4000 = vmatpush.msra.mxu2 %v12737_v46  ;;  %4040 = vmatpush.msrb.mxu0 %v12743_v52  ;;  %15250 = vst [vmem:[#allocation83_spill] sm:$0xff] %v12755_v36  ;;  %v12761_v46 = vld [vmem:[%s13661_s10 + $0x408] sm:$0xff]  ;;  %v12767_v52 = vld [vmem:[%s13661_s10 + $0x210] sm:$0xff] }
0x185c   :  { %15251 = vst [vmem:[#allocation84_spill] sm:$0xff] %v12761_v46 }
0x185d   :  { %4001 = vmatpush.msra.mxu2 %v12749_v9  ;;  %4041 = vmatpush.msrb.mxu0 %v12755_v36  ;;  %15252 = vst [vmem:[#allocation85_spill] sm:$0xff] %v12767_v52 }
0x185f   :  { %4002 = vmatpush.msra.mxu2 %v12761_v46  ;;  %4042 = vmatpush.msrb.mxu0 %v12767_v52  ;;  %v12779_v46 = vld [vmem:[%s13652_s1 + $0x8] sm:$0xff]  ;;  %v12785_v52 = vld [vmem:[%s13652_s1] sm:$0xff] }
0x1860   :  { %15254 = vst [vmem:[#allocation87_spill] sm:$0xff] %v12779_v46 }
0x1861   :  { %15255 = vst [vmem:[#allocation88_spill] sm:$0xff] %v12785_v52 }
0x18bd   :  { %v3730_v9 = vpop.f32.mrf.mxu0 }
0x18be   :  { %v3731_v36 = vadd.f32 %v12773_v59, %v3730_v9  ;;  %v12791_v9 = vld [vmem:[%s13664_s13] ss:$0 sm:$0xff] }
0x18bf   :  { %15256 = vst [vmem:[#allocation89_spill] sm:$0xff] %v12791_v9 }
0x18c0   :  { %v3734_v30 = vrot.slane %v3731_v36, 1  ;;  %v3735_v12 = vperm.slane %v3731_v36, 0 }
0x18c2   :  { %v3736_v60 = vperm.slane %v3734_v30, 0  ;;  %v3740_v56 = vadd.f32 %v12779_v46, %v3735_v12  ;;  %v3739_v32 = vadd.f32 %v12785_v52, %v3735_v12  ;;  %v12797_v46 = vld [vmem:[%s13652_s1 + $0x10] sm:$0xff]  ;;  %v12804_v52 = vld [vmem:[%s13657_s6] ss:$0 sm:$0xff] }
0x18c3   :  { %v3662_v58 = vpop.f32.mrf.mxu2  ;;  %15257 = vst [vmem:[#allocation90_spill] sm:$0xff] %v12797_v46 }
0x18c4   :  { %v3663_v30 = vadd.f32 %v12791_v9, %v3662_v58  ;;  %v3744_v36 = vmax.f32 %v3740_v56, 0.0  ;;  %v3743_v59 = vmax.f32 %v3739_v32, 0.0  ;;  %v3741_v53 = vadd.f32 %v12797_v46, %v3736_v60  ;;  %15258 = vst [vmem:[#allocation91_spill] sm:$0xff] %v12804_v52  ;;  %v12812_v9 = vld [vmem:[%s13652_s1 + $0x18] sm:$0xff] }
0x18c5   :  { %15259 = vst [vmem:[#allocation92_spill] sm:$0xff] %v12812_v9  ;;  %v3742_v14 = vadd.f32 %v12812_v9, %v3736_v60 }
0x18c6   :  { %v3666_v8 = vrot.slane %v3663_v30, 1  ;;  %3668 = vst [vmem:[#allocation3 + $0x5] sm:$0x1] %v3663_v30  ;;  %v3670_v12 = vsel %vm944_vm7, %v3663_v30, -inf  ;;  %v3748_v58 = vmul.f32 %v12804_v52, %v3744_v36  ;;  %v3747_v32 = vmul.f32 %v12804_v52, %v3743_v59 }
0x18c7   :  { %3671 = vmax.xlane.f32.xlu1 %v3670_v12  ;;  %v3745_v56 = vmax.f32 %v3741_v53, 0.0  ;;  %v3746_v39 = vmax.f32 %v3742_v14, 0.0 }
0x18c8   :  { %3669 = vst [vmem:[#allocation3 + $0xd] sm:$0x1] %v3666_v8  ;;  %3753 = vadd.xlane.f32.xlu2 %v3748_v58  ;;  %3751 = vadd.xlane.f32.xlu0 %v3747_v32 }
0x18c9   :  { %v3749_v46 = vmul.f32 %v12804_v52, %v3745_v56  ;;  %v3750_v36 = vmul.f32 %v12804_v52, %v3746_v39 }
0x18d0   :  { %3755 = vadd.xlane.f32.xlu2 %v3749_v46 }
0x18d8   :  { %3757 = vadd.xlane.f32.xlu2 %v3750_v36 }
0x193a   :  { %v3672_v59 = vpop.xlane.xlu1 %3671 }
0x193b   :  { %vm3673_vm6 = vcmp.eq.f32.partialorder %v3663_v30, %v3672_v59  ;;  %v3754_v8 = vpop.xlane.xlu2 %3753  ;;  %v3752_v25 = vpop.xlane.xlu0 %3751 }
0x193c   :  { %v3674_v12 = vsel %vm3673_vm6, %v14507_v20, 128  ;;  %v3760_v55 = vadd.f32 %v3754_v8, %v15069_v47  ;;  %v3759_v60 = vadd.f32 %v3752_v25, %v15069_v47 }
0x193d   :  { %v3675_v53 = vsel %vm944_vm7, %v3674_v12, 2147483647 }
0x193e   :  { %v3677_v58 = vshra.s32 %v3675_v53, 16  ;;  %v3768_v46 = vperm.slane %v3760_v55, %v14509_v34  ;;  %v3767_v30 = vperm.slane %v3759_v60, %v14507_v20 }
0x1940   :  { %v3679_v32 = vcvt.s32.f32 %v3677_v58  ;;  %v3769_v58 = vsel %vm484_vm2, %v3768_v46, %v3767_v30 }
0x1942   :  { %3680 = vmin.xlane.f32.xlu1 %v3679_v32 }
0x1943   :  { %v3756_v56 = vpop.xlane.xlu2 %3755 }
0x1944   :  { %v3761_v14 = vadd.f32 %v3756_v56, %v15069_v47  ;;  %v3676_v56 = vand.u32 65535, %v3675_v53 }
0x1946   :  { %v3770_v59 = vperm.slane %v3761_v14, %v14507_v20  ;;  %v3678_v4 = vcvt.s32.f32 %v3676_v56  ;;  %v15266_v56 = vld [vmem:[#allocation100_spill] sm:$0xff] }
0x194b   :  { %v3758_v39 = vpop.xlane.xlu2 %3757 }
0x194c   :  { %v3762_v36 = vadd.f32 %v3758_v39, %v15069_v47 }
0x194e   :  { %v3771_v12 = vperm.slane %v3762_v36, %v14509_v34 }
0x1950   :  { %v3772_v9 = vsel %vm484_vm2, %v3771_v12, %v3770_v59 }
0x1951   :  { %v3773_v8 = vsel %vm371_vm1, %v3772_v9, %v3769_v58 }
0x1952   :  { %v3775_v25 = vsel %vm491_vm3, %v3773_v8, -inf }
0x1953   :  { %3776 = vmax.xlane.f32.xlu2 %v3775_v25 }
0x19b5   :  { %v3681_v52 = vpop.xlane.xlu1 %3680 }
0x19b6   :  { %vm3682_vm8 = vcmp.eq.f32.partialorder %v3679_v32, %v3681_v52  ;;  %v15264_v32 = vld [vmem:[#allocation98_spill] sm:$0xff] }
0x19b7   :  { %v3683_v16 = vsel %vm3682_vm8, %v3678_v4, inf }
0x19b8   :  { %3684 = vmin.xlane.f32.xlu0 %v3683_v16 }
0x19c6   :  { %v3777_v39 = vpop.xlane.xlu2 %3776 }
0x19c7   :  { %v3779_v47 = vperm.slane %v3777_v39, 0  ;;  %v3780_v1 = vperm.slane %v3777_v39, 1  ;;  %v15267_v39 = vld [vmem:[#allocation101_spill] sm:$0xff] }
0x19c9   :  { %v3783_v3 = vsub.f32 %v3759_v60, %v3779_v47  ;;  %v3784_v63 = vsub.f32 %v3760_v55, %v3779_v47  ;;  %v3785_v11 = vsub.f32 %v3761_v14, %v3780_v1  ;;  %v3786_v12 = vsub.f32 %v3762_v36, %v3780_v1  ;;  %v15265_v60 = vld [vmem:[#allocation99_spill] sm:$0xff] }
0x19cb   :  { %v3787_v46 = vmul.f32 1.442695, %v3783_v3  ;;  %v3789_v30 = vmul.f32 1.442695, %v3784_v63  ;;  %v3791_v59 = vmul.f32 1.442695, %v3785_v11  ;;  %v3687_v11 = vcvt.f32.s32 %v3681_v52 }
0x19cc   :  { %v3793_v9 = vmul.f32 1.442695, %v3786_v12  ;;  %v15271_v12 = vld [vmem:[#allocation105_spill] sm:$0xff] }
0x19cd   :  { %5013 = vpow2.f32 %v3787_v46  ;;  %v3688_v3 = vshll.u32 %v3687_v11, 16  ;;  %v15268_v46 = vld [vmem:[#allocation102_spill] sm:$0xff]  ;;  %v15274_v11 = vld [vmem:[#allocation108_spill] sm:$0xff] }
0x19ce   :  { %5015 = vpow2.f32 %v3789_v30  ;;  %v15269_v30 = vld [vmem:[#allocation103_spill] sm:$0xff] }
0x19cf   :  { %5017 = vpow2.f32 %v3791_v59  ;;  %v15270_v59 = vld [vmem:[#allocation104_spill] sm:$0xff] }
0x19d0   :  { %5019 = vpow2.f32 %v3793_v9  ;;  %v15272_v9 = vld [vmem:[#allocation106_spill] sm:$0xff] }
0x19d3   :  { %v12830_v53 = vpop.eup %5013 }
0x19d4   :  { %v12832_v58 = vpop.eup %5015  ;;  %3800 = vperm.xlu1 %4850, %v12830_v53  }
0x19d5   :  { %v12835_v16 = vpop.eup %5017  ;;  %3803 = vperm.xlu2 %4848, %v12832_v58  }
0x19d6   :  { %3806 = vperm.xlu0 %4849, %v12835_v16   ;;  %v12839_v47 = vpop.eup %5019 }
0x19dc   :  { %3809 = vperm.xlu1 %4850, %v12839_v47  }
0x1a2b   :  { %v3685_v63 = vpop.xlane.xlu0 %3684 }
0x1a2c   :  { %v3686_v1 = vcvt.f32.s32 %v3685_v63  ;;  %v15275_v63 = vld [vmem:[#allocation109_spill] sm:$0xff] }
0x1a2e   :  { %v3689_v4 = vadd.s32 %v3688_v3, %v3686_v1  ;;  %v15276_v3 = vld [vmem:[#allocation110_spill] sm:$0xff]  ;;  %v15277_v1 = vld [vmem:[#allocation111_spill] sm:$0xff] }
0x1a2f   :  { %v3804_v55 = vpop.permute.xlu2 %3803 }
0x1a30   :  { %vm3690_vm9 = vcmp.eq.s32.totalorder %v14507_v20, %v3689_v4  ;;  %v15278_v4 = vld [vmem:[#allocation112_spill] sm:$0xff] }
0x1a31   :  { %4832 = vmatmul.msk.f32.vlgmr.msra.gmra.mxu3 %vm3690_vm9, %v14510_v31 }
0x1a32   :  { %4007 = vmatpush.msra.mxu3 %v11588_v0 }
0x1a34   :  { %4008 = vmatpush.msra.mxu3 %v11594_v7  ;;  %v15260_v7 = vld [vmem:[#allocation94_spill] sm:$0xff] }
0x1a36   :  { %4009 = vmatpush.msra.mxu3 %v11600_v28  ;;  %v15261_v28 = vld [vmem:[#allocation95_spill] sm:$0xff] }
0x1a38   :  { %4010 = vmatpush.msra.mxu3 %v11606_v2  ;;  %v15262_v2 = vld [vmem:[#allocation96_spill] sm:$0xff] }
0x1a39   :  { %3943 = vmatmul.f32.vlgmr.msrb.gmra.mxu3 %v12574_v13 }
0x1a3a   :  { %4011 = vmatpush.msra.mxu3 %v11613_v27  ;;  %v15263_v27 = vld [vmem:[#allocation97_spill] sm:$0xff] }
0x1a3c   :  { %4012 = vmatpush.msra.mxu3 %v11619_v43 }
0x1a3e   :  { %4013 = vmatpush.msra.mxu3 %v11625_v15 }
0x1a40   :  { %4014 = vmatpush.msra.mxu3 %v11631_v54  ;;  %v3812_v54 = vperm.slane %v3804_v55, %v14509_v34  ;;  %v15282_v55 = vld [vmem:[#allocation116_spill] sm:$0xff] }
0x1a42   :  { %4015 = vmatpush.msra.mxu3 %v11637_v48 }
0x1a44   :  { %4016 = vmatpush.msra.mxu3 %v11643_v17 }
0x1a46   :  { %v3801_v0 = vpop.permute.xlu1 %3800  ;;  %4017 = vmatpush.msra.mxu3 %v15260_v7  ;;  %v15280_v7 = vld [vmem:[#allocation114_spill] sm:$0xff] }
0x1a47   :  { %v3811_v43 = vperm.slane %v3801_v0, %v14507_v20  ;;  %v15279_v0 = vld [vmem:[#allocation113_spill] sm:$0xff] }
0x1a48   :  { %4018 = vmatpush.msra.mxu3 %v15261_v28  ;;  %v3807_v52 = vpop.permute.xlu0 %3806 }
0x1a49   :  { %v3814_v48 = vperm.slane %v3807_v52, %v14507_v20  ;;  %v3813_v14 = vsel %vm484_vm2, %v3812_v54, %v3811_v43  ;;  %v15283_v52 = vld [vmem:[#allocation117_spill] sm:$0xff]  ;;  %v15285_v43 = vld [vmem:[#allocation119_spill] sm:$0xff]  ;;  %v15288_v54 = vld [vmem:[#allocation122_spill] sm:$0xff] }
0x1a4a   :  { %4019 = vmatpush.msra.mxu3 %v15262_v2  ;;  %v15281_v2 = vld [vmem:[#allocation115_spill] sm:$0xff] }
0x1a4c   :  { %4020 = vmatpush.msra.mxu3 %v15263_v27  ;;  %v15284_v27 = vld [vmem:[#allocation118_spill] sm:$0xff] }
0x1a4e   :  { %v3810_v15 = vpop.permute.xlu1 %3809  ;;  %4021 = vmatpush.msra.mxu3 %v15264_v32  ;;  %v15287_v32 = vld [vmem:[#allocation121_spill] sm:$0xff] }
0x1a4f   :  { %v3815_v17 = vperm.slane %v3810_v15, %v14509_v34  ;;  %v15286_v15 = vld [vmem:[#allocation120_spill] sm:$0xff] }
0x1a50   :  { %4022 = vmatpush.msra.mxu3 %v15265_v60  ;;  %v15290_v60 = vld [vmem:[#allocation123_spill] sm:$0xff] }
0x1a51   :  { %v3816_v36 = vsel %vm484_vm2, %v3815_v17, %v3814_v48  ;;  %v15289_v48 = vld [vmem:[#allocation30_spill] sm:$0xff] }
0x1a52   :  { %4087 = vmatpush.msrb.mxu3 %v11689_v23  ;;  %v3817_v8 = vsel %vm371_vm1, %v3816_v36, %v3813_v14  ;;  %v15273_v23 = vld [vmem:[#allocation107_spill] sm:$0xff]  ;;  %v15291_v14 = vld [vmem:[#allocation32_spill] sm:$0xff]  ;;  %v15292_v36 = vld [vmem:[#allocation34_spill] sm:$0xff] }
0x1a53   :  { %v3819_v25 = vsel %vm491_vm3, %v3817_v8, 0.0 }
0x1a54   :  { %4088 = vmatpush.msrb.mxu3 %v15266_v56  ;;  %3820 = vadd.xlane.f32.xlu0 %v3819_v25  ;;  %v15293_v25 = vld [vmem:[#allocation124_spill] sm:$0xff] }
0x1a56   :  { %4089 = vmatpush.msrb.mxu3 %v15267_v39  ;;  %v15294_v39 = vld [vmem:[#allocation35_spill] sm:$0xff] }
0x1a58   :  { %4090 = vmatpush.msrb.mxu3 %v15268_v46 }
0x1a5a   :  { %4091 = vmatpush.msrb.mxu3 %v15269_v30 }
0x1a5c   :  { %4092 = vmatpush.msrb.mxu3 %v15270_v59  ;;  %v15295_v59 = vld [vmem:[#allocation125_spill] sm:$0xff] }
0x1a5e   :  { %4093 = vmatpush.msrb.mxu3 %v15271_v12 }
0x1a60   :  { %4094 = vmatpush.msrb.mxu3 %v15272_v9 }
0x1a62   :  { %4095 = vmatpush.msrb.mxu3 %v15273_v23  ;;  %v15296_v23 = vld [vmem:[#allocation126_spill] sm:$0xff] }
0x1a64   :  { %4096 = vmatpush.msrb.mxu3 %v15274_v11 }
0x1a66   :  { %4097 = vmatpush.msrb.mxu3 %v15275_v63  ;;  %v5827_v63 = vld [vmem:[%s13654_s3 + $0x78] sm:$0xff] }
0x1a68   :  { %4098 = vmatpush.msrb.mxu3 %v15276_v3 }
0x1a6a   :  { %4099 = vmatpush.msrb.mxu3 %v15277_v1 }
0x1a6c   :  { %4100 = vmatpush.msrb.mxu3 %v15278_v4  ;;  %v5828_v4 = vld [vmem:[%s13654_s3 + $0x70] sm:$0xff] }
0x1a6e   :  { %4101 = vmatpush.msrb.mxu3 %v15279_v0 }
0x1a70   :  { %4102 = vmatpush.msrb.mxu3 %v15280_v7 }
0x1ab4   :  { %v12885_v28 = vpop.f32.mrf.mxu3 }
0x1ab5   :  { %3923 = vmatmul.f32.vlgmr.msrb.gmra.mxu2 %v12885_v28 }
0x1ab6   :  { %4067 = vmatpush.msrb.mxu2 %v15281_v2  ;;  %v5829_v2 = vld [vmem:[%s13654_s3 + $0x68] sm:$0xff] }
0x1ab8   :  { %4068 = vmatpush.msrb.mxu2 %v15282_v55 }
0x1aba   :  { %4069 = vmatpush.msrb.mxu2 %v15283_v52 }
0x1abc   :  { %4070 = vmatpush.msrb.mxu2 %v15284_v27  ;;  %v5830_v27 = vld [vmem:[%s13654_s3 + $0x60] sm:$0xff] }
0x1abd   :  { %4003 = vmatmul.f32.vlgmr.msra.gmra.mxu2 %v12574_v13 }
0x1abe   :  { %4071 = vmatpush.msrb.mxu2 %v15285_v43  ;;  %v5831_v43 = vld [vmem:[%s13654_s3 + $0x58] sm:$0xff] }
0x1ac0   :  { %4072 = vmatpush.msrb.mxu2 %v15286_v15 }
0x1ac2   :  { %4073 = vmatpush.msrb.mxu2 %v15287_v32  ;;  %v5832_v32 = vld [vmem:[%s13654_s3 + $0x50] sm:$0xff] }
0x1ac4   :  { %4074 = vmatpush.msrb.mxu2 %v15288_v54 }
0x1ac6   :  { %4075 = vmatpush.msrb.mxu2 %v15289_v48  ;;  %v5834_v48 = vld [vmem:[%s13654_s3 + $0x40] sm:$0xff] }
0x1ac7   :  { %v3821_v17 = vpop.xlane.xlu0 %3820 }
0x1ac8   :  { %5021 = vrcp.f32 %v3821_v17  ;;  %4076 = vmatpush.msrb.mxu2 %v15290_v60  ;;  %v3833_v30 = vand.u32 2147483648, %v3821_v17  ;;  %v3831_v9 = vand.u32 2147483647, %v3821_v17  ;;  %vm3827_vm11 = vweird.f32 %v3821_v17  ;;  %v5836_v60 = vld [vmem:[%s13654_s3 + $0x30] sm:$0xff] }
0x1aca   :  { %4077 = vmatpush.msrb.mxu2 %v15291_v14  ;;  %v3834_v3 = vor.u32 1.1754944e-38, %v3833_v30  ;;  %vm3832_vm13 = vcmp.eq.f32.partialorder %v3831_v9, 8.507059e+37  ;;  %v5839_v14 = vld [vmem:[%s13654_s3 + $0x18] sm:$0xff] }
0x1acc   :  { %4078 = vmatpush.msrb.mxu2 %v15292_v36  ;;  %v5840_v36 = vld [vmem:[%s13654_s3 + $0x10] sm:$0xff] }
0x1ace   :  { %v5022_v8 = vpop.eup %5021  ;;  %4079 = vmatpush.msrb.mxu2 %v15293_v25  ;;  %v5842_v25 = vld [vmem:[%s13654_s3] sm:$0xff] }
0x1acf   :  { %v3823_v56 = vmul.f32 %v5022_v8, %v3821_v17  ;;  %vm3828_vm10 = vweird.f32 %v5022_v8  ;;  %v5835_v17 = vld [vmem:[%s13654_s3 + $0x38] sm:$0xff] }
0x1ad0   :  { %4080 = vmatpush.msrb.mxu2 %v15294_v39  ;;  %vm3829_vm12 = vmor %vm3827_vm11, %vm3828_vm10 }
0x1ad1   :  { %v3824_v46 = vsub.f32 1.0, %v3823_v56 }
0x1ad2   :  { %4081 = vmatpush.msrb.mxu2 %v15295_v59 }
0x1ad3   :  { %v3825_v12 = vmul.f32 %v5022_v8, %v3824_v46 }
0x1ad4   :  { %4082 = vmatpush.msrb.mxu2 %v15296_v23 }
0x1ad5   :  { %v3826_v11 = vadd.f32 %v5022_v8, %v3825_v12 }
0x1ad6   :  { %4238 = vmatpush.msra.mxu2 %v5827_v63 }
0x1ad7   :  { %v3830_v1 = vsel %vm3829_vm12, %v5022_v8, %v3826_v11  ;;  %v5841_v8 = vld [vmem:[%s13654_s3 + $0x8] sm:$0xff] }
0x1ad8   :  { %4239 = vmatpush.msra.mxu2 %v5828_v4  ;;  %v3835_v0 = vsel %vm3832_vm13, %v3834_v3, %v3830_v1 }
0x1ad9   :  { %v3837_v7 = vperm.slane %v3835_v0, 0  ;;  %v3838_v15 = vperm.slane %v3835_v0, 1 }
0x1ada   :  { %4240 = vmatpush.msra.mxu2 %v5829_v2 }
0x1adb   :  { %v3842_v55 = vmul.f32 %v12832_v58, %v3837_v7  ;;  %v3841_v52 = vmul.f32 %v12830_v53, %v3837_v7  ;;  %v5833_v53 = vld [vmem:[%s13654_s3 + $0x48] sm:$0xff]  ;;  %v3844_v58 = vmul.f32 %v12839_v47, %v3838_v15  ;;  %v3843_v54 = vmul.f32 %v12835_v16, %v3838_v15  ;;  %v5838_v47 = vld [vmem:[%s13654_s3 + $0x20] sm:$0xff] }
0x1adc   :  { %4241 = vmatpush.msra.mxu2 %v5830_v27  ;;  %v5837_v16 = vld [vmem:[%s13654_s3 + $0x28] sm:$0xff] }
0x1add   :  { %3852 = vperm.xlu1 %4850, %v3842_v55   ;;  %3847 = vperm.xlu2 %4848, %v3841_v52  }
0x1ade   :  { %4242 = vmatpush.msra.mxu2 %v5831_v43 }
0x1ae0   :  { %4243 = vmatpush.msra.mxu2 %v5832_v32  ;;  %v15310_v32 = vld [vmem:[#allocation50_spill] sm:$0xff] }
0x1ae2   :  { %4244 = vmatpush.msra.mxu2 %v5833_v53  ;;  %v15311_v53 = vld [vmem:[#allocation127_spill] sm:$0xff] }
0x1ae4   :  { %4245 = vmatpush.msra.mxu2 %v5834_v48  ;;  %v15313_v48 = vld [vmem:[#allocation44_spill] sm:$0xff] }
0x1ae5   :  { %3862 = vperm.xlu1 %4850, %v3844_v58   ;;  %3857 = vperm.xlu2 %4848, %v3843_v54   ;;  %v15312_v58 = vld [vmem:[#allocation28_spill] sm:$0xff]  ;;  %v5851_v54 = vld [vmem:[%s13661_s10 + $0x4e0] sm:$0xff] }
0x1ae6   :  { %4246 = vmatpush.msra.mxu2 %v5835_v17  ;;  %v15314_v17 = vld [vmem:[#allocation128_spill] sm:$0xff] }
0x1ae8   :  { %4247 = vmatpush.msra.mxu2 %v5836_v60  ;;  %v15315_v60 = vld [vmem:[#allocation129_spill] sm:$0xff] }
0x1aea   :  { %4248 = vmatpush.msra.mxu2 %v5837_v16  ;;  %v5852_v16 = vld [vmem:[%s13661_s10 + $0x4c0] sm:$0xff] }
0x1aec   :  { %4249 = vmatpush.msra.mxu2 %v5838_v47  ;;  %v15316_v47 = vld [vmem:[#allocation130_spill] sm:$0xff] }
0x1aee   :  { %4250 = vmatpush.msra.mxu2 %v5839_v14  ;;  %v15317_v14 = vld [vmem:[#allocation131_spill] sm:$0xff] }
0x1af0   :  { %4251 = vmatpush.msra.mxu2 %v5840_v36  ;;  %v15318_v36 = vld [vmem:[#allocation132_spill] sm:$0xff] }
0x1af2   :  { %4252 = vmatpush.msra.mxu2 %v5841_v8  ;;  %v5853_v8 = vld [vmem:[%s13661_s10 + $0x4a0] sm:$0xff] }
0x1af4   :  { %4253 = vmatpush.msra.mxu2 %v5842_v25  ;;  %v15319_v25 = vld [vmem:[#allocation133_spill] sm:$0xff] }
0x1b37   :  { %v3848_v56 = vpop.permute.xlu2 %3847 }
0x1b38   :  { %v3865_v46 = vmul.f32 %v11915_v22, %v3848_v56  ;;  %v15320_v56 = vld [vmem:[#allocation134_spill] sm:$0xff] }
0x1b3f   :  { %v3858_v9 = vpop.permute.xlu2 %3857 }
0x1b40   :  { %v3867_v63 = vmul.f32 %v11927_v38, %v3858_v9  ;;  %v5844_v38 = vld [vmem:[%s13661_s10 + $0x5c0] sm:$0xff]  ;;  %v13052_v9 = vld [vmem:[%s13663_s12 + $0x78] sm:$0xff] }
0x1b4f   :  { %v3853_v39 = vpop.permute.xlu1 %3852 }
0x1b50   :  { %v3866_v30 = vmul.f32 %v11909_v45, %v3853_v39  ;;  %v15321_v39 = vld [vmem:[#allocation135_spill] sm:$0xff] }
0x1b52   :  { %v3869_v59 = vadd.f32 %v3866_v30, %v3865_v46  ;;  %v5854_v46 = vld [vmem:[%s13661_s10 + $0x480] sm:$0xff]  ;;  %v15322_v30 = vld [vmem:[#allocation136_spill] sm:$0xff] }
0x1b54   :  { %v3870_v12 = vrot.slane %v3869_v59, 4 }
0x1b56   :  { %v3871_v23 = vadd.f32 %v3870_v12, %v3869_v59  ;;  %v15323_v59 = vld [vmem:[#allocation137_spill] sm:$0xff]  ;;  %v15324_v12 = vld [vmem:[#allocation138_spill] sm:$0xff] }
0x1b57   :  { %v3863_v11 = vpop.permute.xlu1 %3862 }
0x1b58   :  { %v3868_v3 = vmul.f32 %v11921_v26, %v3863_v11  ;;  %v3872_v1 = vrot.slane %v3871_v23, 2  ;;  %v5843_v26 = vld [vmem:[%s13661_s10 + $0x5e0] sm:$0xff] }
0x1b59   :  { %v5856_v11 = vld [vmem:[%s13661_s10 + $0x460] sm:$0xff] }
0x1b5a   :  { %v3876_v4 = vadd.f32 %v3868_v3, %v3867_v63  ;;  %v3873_v7 = vadd.f32 %v3872_v1, %v3871_v23  ;;  %v15325_v23 = vld [vmem:[#allocation139_spill] sm:$0xff]  ;;  %v13062_v63 = vld [vmem:[%s13663_s12 + $0x70] sm:$0xff] }
0x1b5b   :  { %v15327_v3 = vld [vmem:[#allocation141_spill] sm:$0xff]  ;;  %v5858_v1 = vld [vmem:[%s13661_s10 + $0x440] sm:$0xff] }
0x1b5c   :  { %v3877_v0 = vrot.slane %v3876_v4, 4  ;;  %v3874_v52 = vrot.slane %v3873_v7, 1 }
0x1b5e   :  { %v3878_v2 = vadd.f32 %v3877_v0, %v3876_v4  ;;  %v3875_v43 = vadd.f32 %v3874_v52, %v3873_v7  ;;  %v13073_v4 = vld [vmem:[%s13663_s12 + $0x68] sm:$0xff]  ;;  %v15328_v0 = vld [vmem:[#allocation142_spill] sm:$0xff] }
0x1b5f   :  { %v5860_v7 = vld [vmem:[%s13661_s10 + $0x420] sm:$0xff]  ;;  %v15330_v52 = vld [vmem:[#allocation144_spill] sm:$0xff] }
0x1b60   :  { %v3879_v55 = vrot.slane %v3878_v2, 2 }
0x1b62   :  { %v3880_v27 = vadd.f32 %v3879_v55, %v3878_v2  ;;  %v15329_v2 = vld [vmem:[#allocation143_spill] sm:$0xff] }
0x1b63   :  { %v13084_v55 = vld [vmem:[%s13663_s12 + $0x60] sm:$0xff] }
0x1b64   :  { %v3881_v22 = vrot.slane %v3880_v27, 1 }
0x1b66   :  { %v3882_v45 = vadd.f32 %v3881_v22, %v3880_v27  ;;  %v5862_v27 = vld [vmem:[%s13661_s10 + $0x400] sm:$0xff]  ;;  %v15331_v22 = vld [vmem:[#allocation145_spill] sm:$0xff] }
0x1b68   :  { %v3885_v15 = vsel %vm371_vm1, %v3882_v45, %v3875_v43  ;;  %v13095_v43 = vld [vmem:[%s13663_s12 + $0x58] sm:$0xff] }
0x1b69   :  { %3903 = vmatmul.f32.vlgmr.msrb.gmra.mxu1 %v3885_v15  ;;  %3963 = vmatmul.f32.vlgmr.msra.gmra.mxu0 %v3885_v15  ;;  %v15332_v45 = vld [vmem:[#allocation146_spill] sm:$0xff] }
0x1b6a   :  { %4023 = vmatmul.f32.vlgmr.msra.gmra.mxu3 %v3885_v15  ;;  %4047 = vmatpush.msrb.mxu1 %v11934_v57  ;;  %v5845_v57 = vld [vmem:[%s13661_s10 + $0x5a0] sm:$0xff] }
0x1b6b   :  { %4083 = vmatmul.f32.vlgmr.msrb.gmra.mxu2 %v3885_v15  ;;  %4107 = vmatpush.msra.mxu0 %v11940_v61  ;;  %v15297_v61 = vld [vmem:[#allocation36_spill] sm:$0xff]  ;;  %v15333_v15 = vld [vmem:[#allocation147_spill] sm:$0xff] }
0x1b6c   :  { %4048 = vmatpush.msrb.mxu1 %v11946_v42  ;;  %4258 = vmatpush.msra.mxu3 %v11952_v49  ;;  %v5846_v42 = vld [vmem:[%s13661_s10 + $0x580] sm:$0xff]  ;;  %v15298_v49 = vld [vmem:[#allocation37_spill] sm:$0xff] }
0x1b6d   :  { %4108 = vmatpush.msra.mxu0 %v11958_v29  ;;  %4472 = vmatpush.msrb.mxu2 %v5843_v26  ;;  %v15299_v29 = vld [vmem:[#allocation38_spill] sm:$0xff]  ;;  %v13103_v26 = vld [vmem:[%s13663_s12 + $0x50] sm:$0xff] }
0x1b6e   :  { %4049 = vmatpush.msrb.mxu1 %v11965_v19  ;;  %4259 = vmatpush.msra.mxu3 %v11971_v6  ;;  %v15300_v19 = vld [vmem:[#allocation39_spill] sm:$0xff] }
0x1b6f   :  { %4109 = vmatpush.msra.mxu0 %v11977_v40  ;;  %4473 = vmatpush.msrb.mxu2 %v5844_v38  ;;  %v5847_v6 = vld [vmem:[%s13661_s10 + $0x560] sm:$0xff]  ;;  %v15301_v40 = vld [vmem:[#allocation40_spill] sm:$0xff] }
0x1b70   :  { %4050 = vmatpush.msrb.mxu1 %v11984_v33  ;;  %4260 = vmatpush.msra.mxu3 %v11990_v41  ;;  %v15302_v33 = vld [vmem:[#allocation41_spill] sm:$0xff]  ;;  %v15303_v41 = vld [vmem:[#allocation42_spill] sm:$0xff]  ;;  %v15334_v38 = vld [vmem:[#allocation148_spill] sm:$0xff] }
0x1b71   :  { %4110 = vmatpush.msra.mxu0 %v11996_v24  ;;  %3983 = vmatmul.f32.vlgmr.msra.gmra.mxu1 %v12885_v28  ;;  %v5848_v24 = vld [vmem:[%s13661_s10 + $0x540] sm:$0xff] }
0x1b72   :  { %4043 = vmatmul.f32.vlgmr.msrb.gmra.mxu0 %v12885_v28  ;;  %4051 = vmatpush.msrb.mxu1 %v12004_v35  ;;  %v15304_v35 = vld [vmem:[#allocation43_spill] sm:$0xff] }
0x1b73   :  { %4103 = vmatmul.f32.vlgmr.msrb.gmra.mxu3 %v12885_v28  ;;  %4111 = vmatpush.msra.mxu0 %v12011_v10  ;;  %v15305_v10 = vld [vmem:[#allocation45_spill] sm:$0xff]  ;;  %v5850_v28 = vld [vmem:[%s13661_s10 + $0x500] sm:$0xff] }
0x1b74   :  { %4052 = vmatpush.msrb.mxu1 %v12017_v18  ;;  %4261 = vmatpush.msra.mxu3 %v12023_v62  ;;  %v15306_v18 = vld [vmem:[#allocation46_spill] sm:$0xff] }
0x1b75   :  { %4112 = vmatpush.msra.mxu0 %v12029_v5  ;;  %4474 = vmatpush.msrb.mxu2 %v5845_v57  ;;  %v5849_v62 = vld [vmem:[%s13661_s10 + $0x520] sm:$0xff]  ;;  %v15335_v57 = vld [vmem:[#allocation149_spill] sm:$0xff] }
0x1b76   :  { %4053 = vmatpush.msrb.mxu1 %v12036_v51  ;;  %4262 = vmatpush.msra.mxu3 %v12042_v37  ;;  %v15307_v5 = vld [vmem:[#allocation47_spill] sm:$0xff]  ;;  %v15308_v51 = vld [vmem:[#allocation48_spill] sm:$0xff]  ;;  %v15309_v37 = vld [vmem:[#allocation49_spill] sm:$0xff] }
0x1b77   :  { %4113 = vmatpush.msra.mxu0 %v15297_v61  ;;  %4475 = vmatpush.msrb.mxu2 %v5846_v42  ;;  %v13111_v61 = vld [vmem:[%s13663_s12 + $0x48] sm:$0xff]  ;;  %v15336_v42 = vld [vmem:[#allocation150_spill] sm:$0xff] }
0x1b78   :  { %4054 = vmatpush.msrb.mxu1 %v15298_v49  ;;  %4263 = vmatpush.msra.mxu3 %v15299_v29  ;;  %v15337_v49 = vld [vmem:[#allocation151_spill] sm:$0xff] }
0x1b79   :  { %4114 = vmatpush.msra.mxu0 %v15300_v19  ;;  %4476 = vmatpush.msrb.mxu2 %v5847_v6  ;;  %v13119_v29 = vld [vmem:[%s13663_s12 + $0x40] sm:$0xff]  ;;  %v15338_v19 = vld [vmem:[#allocation152_spill] sm:$0xff]  ;;  %v15339_v6 = vld [vmem:[#allocation153_spill] sm:$0xff] }
0x1b7a   :  { %4055 = vmatpush.msrb.mxu1 %v15301_v40  ;;  %4264 = vmatpush.msra.mxu3 %v15302_v33  ;;  %v13127_v40 = vld [vmem:[%s13663_s12 + $0x38] sm:$0xff] }
0x1b7b   :  { %4115 = vmatpush.msra.mxu0 %v15303_v41  ;;  %4477 = vmatpush.msrb.mxu2 %v5848_v24  ;;  %v15340_v33 = vld [vmem:[#allocation154_spill] sm:$0xff]  ;;  %v15341_v41 = vld [vmem:[#allocation155_spill] sm:$0xff]  ;;  %v13135_v24 = vld [vmem:[%s13663_s12 + $0x30] sm:$0xff] }
0x1b7c   :  { %4056 = vmatpush.msrb.mxu1 %v15304_v35  ;;  %4265 = vmatpush.msra.mxu3 %v15305_v10  ;;  %v15342_v35 = vld [vmem:[#allocation156_spill] sm:$0xff]  ;;  %v15343_v10 = vld [vmem:[#allocation157_spill] sm:$0xff] }
0x1b7d   :  { %4116 = vmatpush.msra.mxu0 %v15306_v18  ;;  %4478 = vmatpush.msrb.mxu2 %v5849_v62  ;;  %v13143_v18 = vld [vmem:[%s13663_s12 + $0x28] sm:$0xff]  ;;  %v15344_v62 = vld [vmem:[#allocation158_spill] sm:$0xff] }
0x1b7e   :  { %4057 = vmatpush.msrb.mxu1 %v15307_v5  ;;  %4266 = vmatpush.msra.mxu3 %v15308_v51  ;;  %v15345_v5 = vld [vmem:[#allocation159_spill] sm:$0xff] }
0x1b7f   :  { %4117 = vmatpush.msra.mxu0 %v15309_v37  ;;  %4479 = vmatpush.msrb.mxu2 %v5850_v28  ;;  %v13151_v51 = vld [vmem:[%s13663_s12 + $0x20] sm:$0xff]  ;;  %v15347_v28 = vld [vmem:[#allocation160_spill] sm:$0xff] }
0x1b80   :  { %4058 = vmatpush.msrb.mxu1 %v15310_v32  ;;  %4267 = vmatpush.msra.mxu3 %v15311_v53  ;;  %v15346_v37 = vld [vmem:[#allocation163_spill] sm:$0xff]  ;;  %v13159_v32 = vld [vmem:[%s13663_s12 + $0x18] sm:$0xff] }
0x1b81   :  { %4118 = vmatpush.msra.mxu0 %v15312_v58  ;;  %4480 = vmatpush.msrb.mxu2 %v5851_v54  ;;  %v15348_v53 = vld [vmem:[#allocation161_spill] sm:$0xff]  ;;  %v15349_v58 = vld [vmem:[#allocation162_spill] sm:$0xff] }
0x1b82   :  { %4059 = vmatpush.msrb.mxu1 %v15313_v48  ;;  %4268 = vmatpush.msra.mxu3 %v15314_v17  ;;  %v13167_v54 = vld [vmem:[%s13663_s12 + $0x10] sm:$0xff] }
0x1b83   :  { %4119 = vmatpush.msra.mxu0 %v15315_v60  ;;  %4481 = vmatpush.msrb.mxu2 %v5852_v16  ;;  %v15350_v48 = vld [vmem:[#allocation165_spill] sm:$0xff]  ;;  %v15351_v17 = vld [vmem:[#allocation164_spill] sm:$0xff]  ;;  %v15352_v16 = vld [vmem:[#allocation166_spill] sm:$0xff] }
0x1b84   :  { %4060 = vmatpush.msrb.mxu1 %v15316_v47  ;;  %4269 = vmatpush.msra.mxu3 %v15317_v14  ;;  %v13175_v60 = vld [vmem:[%s13663_s12 + $0x8] sm:$0xff]  ;;  %v15353_v47 = vld [vmem:[#allocation9_spill] sm:$0xff]  ;;  %v13183_v14 = vld [vmem:[%s13663_s12] sm:$0xff] }
0x1b85   :  { %4120 = vmatpush.msra.mxu0 %v15318_v36  ;;  %4482 = vmatpush.msrb.mxu2 %v5853_v8  ;;  %v15354_v36 = vld [vmem:[#allocation11_spill] sm:$0xff] }
0x1b86   :  { %4061 = vmatpush.msrb.mxu1 %v15319_v25  ;;  %4270 = vmatpush.msra.mxu3 %v15320_v56  ;;  %v5875_v8 = vld [vmem:[%s13661_s10 + $0x3e0] sm:$0xff]  ;;  %v15355_v25 = vld [vmem:[#allocation12_spill] sm:$0xff]  ;;  %v15356_v56 = vld [vmem:[#allocation13_spill] sm:$0xff] }
0x1b87   :  { %4121 = vmatpush.msra.mxu0 %v15321_v39  ;;  %4483 = vmatpush.msrb.mxu2 %v5854_v46  ;;  %v5876_v39 = vld [vmem:[%s13661_s10 + $0x3c0] sm:$0xff] }
0x1b88   :  { %4062 = vmatpush.msrb.mxu1 %v15322_v30  ;;  %4271 = vmatpush.msra.mxu3 %v15323_v59  ;;  %v15357_v46 = vld [vmem:[#allocation14_spill] sm:$0xff]  ;;  %v15358_v30 = vld [vmem:[#allocation15_spill] sm:$0xff]  ;;  %v15359_v59 = vld [vmem:[#allocation16_spill] sm:$0xff] }
0x1b89   :  { %4122 = vmatpush.msra.mxu0 %v15324_v12  ;;  %4063 = vmatmul.f32.vlgmr.msrb.gmra.mxu1 %v12574_v13  ;;  %v5877_v12 = vld [vmem:[%s13661_s10 + $0x3a0] sm:$0xff] }
0x1b8a   :  { %4123 = vmatmul.f32.vlgmr.msra.gmra.mxu0 %v12574_v13  ;;  %4190 = vmatpush.msra.mxu1 %v13052_v9  ;;  %v15326_v13 = vld [vmem:[#allocation140_spill] sm:$0xff] }
0x1b8b   :  { %4272 = vmatpush.msra.mxu3 %v15325_v23  ;;  %4484 = vmatpush.msrb.mxu2 %v5856_v11  ;;  %v15360_v23 = vld [vmem:[#allocation17_spill] sm:$0xff]  ;;  %v5878_v11 = vld [vmem:[%s13661_s10 + $0x380] sm:$0xff] }
0x1b8c   :  { %4191 = vmatpush.msra.mxu1 %v13062_v63  ;;  %4432 = vmatpush.msrb.mxu0 %v15326_v13  ;;  %v15361_v13 = vld [vmem:[#allocation18_spill] sm:$0xff] }
0x1b8d   :  { %4273 = vmatpush.msra.mxu3 %v15327_v3  ;;  %4485 = vmatpush.msrb.mxu2 %v5858_v1  ;;  %v5879_v3 = vld [vmem:[%s13661_s10 + $0x360] sm:$0xff] }
0x1b8e   :  { %4192 = vmatpush.msra.mxu1 %v13073_v4  ;;  %4433 = vmatpush.msrb.mxu0 %v15329_v2  ;;  %v15362_v1 = vld [vmem:[#allocation19_spill] sm:$0xff] }
0x1b8f   :  { %4492 = vmatpush.msrb.mxu3 %v15328_v0  ;;  %4486 = vmatpush.msrb.mxu2 %v5860_v7  ;;  %v5880_v0 = vld [vmem:[%s13661_s10 + $0x340] sm:$0xff]  ;;  %v15363_v7 = vld [vmem:[#allocation20_spill] sm:$0xff] }
0x1b90   :  { %4193 = vmatpush.msra.mxu1 %v13084_v55  ;;  %4434 = vmatpush.msrb.mxu0 %v15331_v22  ;;  %v5881_v2 = vld [vmem:[%s13661_s10 + $0x320] sm:$0xff] }
0x1b91   :  { %4493 = vmatpush.msrb.mxu3 %v15330_v52  ;;  %4487 = vmatpush.msrb.mxu2 %v5862_v27  ;;  %v15364_v52 = vld [vmem:[#allocation21_spill] sm:$0xff]  ;;  %v5882_v27 = vld [vmem:[%s13661_s10 + $0x300] sm:$0xff] }
0x1b92   :  { %4194 = vmatpush.msra.mxu1 %v13095_v43  ;;  %4435 = vmatpush.msrb.mxu0 %v15333_v15  ;;  %v15365_v22 = vld [vmem:[#allocation23_spill] sm:$0xff]  ;;  %v15366_v15 = vld [vmem:[#allocation25_spill] sm:$0xff] }
0x1b93   :  { %4494 = vmatpush.msrb.mxu3 %v15332_v45  ;;  %v5883_v45 = vld [vmem:[%s13661_s10 + $0x2e0] sm:$0xff] }
0x1b94   :  { %4195 = vmatpush.msra.mxu1 %v13103_v26  ;;  %4436 = vmatpush.msrb.mxu0 %v15335_v57  ;;  %v15367_v57 = vld [vmem:[#allocation27_spill] sm:$0xff] }
0x1b95   :  { %4495 = vmatpush.msrb.mxu3 %v15334_v38  ;;  %v5884_v38 = vld [vmem:[%s13661_s10 + $0x2c0] sm:$0xff] }
0x1b96   :  { %4196 = vmatpush.msra.mxu1 %v13111_v61  ;;  %4437 = vmatpush.msrb.mxu0 %v15337_v49  ;;  %v15368_v49 = vld [vmem:[#allocation29_spill] sm:$0xff] }
0x1b97   :  { %4496 = vmatpush.msrb.mxu3 %v15336_v42  ;;  %v5885_v42 = vld [vmem:[%s13661_s10 + $0x2a0] sm:$0xff] }
0x1b98   :  { %4197 = vmatpush.msra.mxu1 %v13119_v29  ;;  %4438 = vmatpush.msrb.mxu0 %v15339_v6  ;;  %v15369_v6 = vld [vmem:[#allocation31_spill] sm:$0xff] }
0x1b99   :  { %4497 = vmatpush.msrb.mxu3 %v15338_v19  ;;  %v5886_v19 = vld [vmem:[%s13661_s10 + $0x280] sm:$0xff] }
0x1b9a   :  { %4198 = vmatpush.msra.mxu1 %v13127_v40  ;;  %4439 = vmatpush.msrb.mxu0 %v15341_v41  ;;  %v15370_v41 = vld [vmem:[#allocation33_spill] sm:$0xff] }
0x1b9b   :  { %4498 = vmatpush.msrb.mxu3 %v15340_v33  ;;  %v5887_v33 = vld [vmem:[%s13661_s10 + $0x260] sm:$0xff] }
0x1b9c   :  { %4199 = vmatpush.msra.mxu1 %v13135_v24  ;;  %4440 = vmatpush.msrb.mxu0 %v15343_v10  ;;  %v15371_v10 = vld [vmem:[#allocation51_spill] sm:$0xff] }
0x1b9d   :  { %4499 = vmatpush.msrb.mxu3 %v15342_v35  ;;  %v5888_v35 = vld [vmem:[%s13661_s10 + $0x240] sm:$0xff] }
0x1b9e   :  { %4200 = vmatpush.msra.mxu1 %v13143_v18  ;;  %4441 = vmatpush.msrb.mxu0 %v15345_v5  ;;  %v15372_v5 = vld [vmem:[#allocation52_spill] sm:$0xff] }
0x1b9f   :  { %4500 = vmatpush.msrb.mxu3 %v15344_v62  ;;  %v5889_v62 = vld [vmem:[%s13661_s10 + $0x220] sm:$0xff] }
0x1ba0   :  { %4201 = vmatpush.msra.mxu1 %v13151_v51  ;;  %4442 = vmatpush.msrb.mxu0 %v15347_v28  ;;  %v15373_v28 = vld [vmem:[#allocation53_spill] sm:$0xff] }
0x1ba1   :  { %4501 = vmatpush.msrb.mxu3 %v15346_v37  ;;  %v5890_v37 = vld [vmem:[%s13661_s10 + $0x200] sm:$0xff] }
0x1ba2   :  { %4202 = vmatpush.msra.mxu1 %v13159_v32  ;;  %4443 = vmatpush.msrb.mxu0 %v15349_v58  ;;  %v3924_v58 = vpop.f32.mrf.mxu2 }
0x1ba3   :  { %4502 = vmatpush.msrb.mxu3 %v15348_v53  ;;  %v15374_v53 = vld [vmem:[#allocation55_spill] sm:$0xff] }
0x1ba4   :  { %4203 = vmatpush.msra.mxu1 %v13167_v54  ;;  %4444 = vmatpush.msrb.mxu0 %v15351_v17  ;;  %v15375_v17 = vld [vmem:[#allocation22_spill] sm:$0xff] }
0x1ba5   :  { %4503 = vmatpush.msrb.mxu3 %v15350_v48 }
0x1ba6   :  { %4204 = vmatpush.msra.mxu1 %v13175_v60  ;;  %4445 = vmatpush.msrb.mxu0 %v15353_v47 }
0x1ba7   :  { %4504 = vmatpush.msrb.mxu3 %v15352_v16 }
0x1ba8   :  { %4205 = vmatpush.msra.mxu1 %v13183_v14  ;;  %4446 = vmatpush.msrb.mxu0 %v15355_v25 }
0x1ba9   :  { %4505 = vmatpush.msrb.mxu3 %v15354_v36  ;;  %v3944_v36 = vpop.f32.mrf.mxu3 }
0x1baa   :  { %4452 = vmatpush.msrb.mxu1 %v5875_v8  ;;  %4447 = vmatpush.msrb.mxu0 %v15357_v46 }
0x1bab   :  { %4506 = vmatpush.msrb.mxu3 %v15356_v56 }
0x1bac   :  { %4453 = vmatpush.msrb.mxu1 %v5876_v39  ;;  %4512 = vmatpush.msra.mxu0 %v15359_v59  ;;  %v15376_v39 = vld [vmem:[#allocation24_spill] sm:$0xff] }
0x1bad   :  { %4507 = vmatpush.msrb.mxu3 %v15358_v30 }
0x1bae   :  { %4454 = vmatpush.msrb.mxu1 %v5877_v12  ;;  %4513 = vmatpush.msra.mxu0 %v15360_v23  ;;  %v4004_v12 = vpop.f32.mrf.mxu2 }
0x1bb0   :  { %4455 = vmatpush.msrb.mxu1 %v5878_v11  ;;  %4514 = vmatpush.msra.mxu0 %v15361_v13 }
0x1bb2   :  { %4456 = vmatpush.msrb.mxu1 %v5879_v3  ;;  %4515 = vmatpush.msra.mxu0 %v15362_v1 }
0x1bb4   :  { %4457 = vmatpush.msrb.mxu1 %v5880_v0  ;;  %4516 = vmatpush.msra.mxu0 %v15363_v7 }
0x1bb6   :  { %4458 = vmatpush.msrb.mxu1 %v5881_v2  ;;  %4517 = vmatpush.msra.mxu0 %v15364_v52 }
0x1bb8   :  { %4459 = vmatpush.msrb.mxu1 %v5882_v27  ;;  %4518 = vmatpush.msra.mxu0 %v15365_v22 }
0x1bba   :  { %4460 = vmatpush.msrb.mxu1 %v5883_v45  ;;  %4519 = vmatpush.msra.mxu0 %v15366_v15 }
0x1bbc   :  { %4461 = vmatpush.msrb.mxu1 %v5884_v38  ;;  %4520 = vmatpush.msra.mxu0 %v15367_v57  ;;  %v15377_v57 = vld [vmem:[#allocation26_spill] sm:$0xff] }
0x1bbe   :  { %4462 = vmatpush.msrb.mxu1 %v5885_v42  ;;  %4521 = vmatpush.msra.mxu0 %v15368_v49 }
0x1bc0   :  { %4463 = vmatpush.msrb.mxu1 %v5886_v19  ;;  %4522 = vmatpush.msra.mxu0 %v15369_v6 }
0x1bc2   :  { %4464 = vmatpush.msrb.mxu1 %v5887_v33  ;;  %4523 = vmatpush.msra.mxu0 %v15370_v41 }
0x1bc4   :  { %4465 = vmatpush.msrb.mxu1 %v5888_v35  ;;  %4524 = vmatpush.msra.mxu0 %v15371_v10 }
0x1bc6   :  { %4466 = vmatpush.msrb.mxu1 %v5889_v62  ;;  %4525 = vmatpush.msra.mxu0 %v15372_v5 }
0x1bc8   :  { %4467 = vmatpush.msrb.mxu1 %v5890_v37  ;;  %4526 = vmatpush.msra.mxu0 %v15373_v28 }
0x1bca   :  { %4527 = vmatpush.msra.mxu0 %v15374_v53 }
0x1be6   :  { %v3904_v48 = vpop.f32.mrf.mxu1  ;;  %v3964_v8 = vpop.f32.mrf.mxu0 }
0x1be7   :  { %v3905_v16 = vadd.f32 %v3904_v48, %v15375_v17  ;;  %v3965_v46 = vadd.f32 %v3964_v8, %v15376_v39 }
0x1be9   :  { %v3925_v47 = vadd.f32 %v3924_v58, %v3905_v16 }
0x1beb   :  { %v3945_v25 = vadd.f32 %v3944_v36, %v3925_v47 }
0x1bed   :  { %v4833_v56 = vmul.f32 -1.442695, %v3945_v25  ;;  %v4024_v1 = vpop.f32.mrf.mxu3 }
0x1bee   :  { %v3984_v30 = vpop.f32.mrf.mxu1  ;;  %v4084_v27 = vpop.f32.mrf.mxu2  ;;  %v4025_v38 = vadd.f32 %v4024_v1, %v14654_v44 }
0x1bef   :  { %5023 = vpow2.f32 %v4833_v56  ;;  %v3985_v59 = vadd.f32 %v3984_v30, %v3965_v46  ;;  %v4044_v2 = vpop.f32.mrf.mxu0  ;;  %v4085_v42 = vadd.f32 %v4084_v27, %v15377_v57 }
0x1bf0   :  { %v4045_v10 = vadd.f32 %v4044_v2, %v4025_v38 }
0x1bf1   :  { %v4005_v23 = vadd.f32 %v4004_v12, %v3985_v59 }
0x1bf3   :  { %v4834_v11 = vmul.f32 -1.442695, %v4005_v23 }
0x1bf5   :  { %v5024_v13 = vpop.eup %5023  ;;  %5025 = vpow2.f32 %v4834_v11 }
0x1bf6   :  { %v4130_v3 = vadd.f32 1.0, %v5024_v13  ;;  %v4104_v45 = vpop.f32.mrf.mxu3 }
0x1bf7   :  { %v4105_v19 = vadd.f32 %v4104_v45, %v4085_v42 }
0x1bf8   :  { %5027 = vrcp.f32 %v4130_v3  ;;  %v4142_v36 = vand.u32 2147483648, %v4130_v3  ;;  %vm4136_vm5 = vweird.f32 %v4130_v3  ;;  %v4140_v8 = vand.u32 2147483647, %v4130_v3 }
0x1bfa   :  { %v4143_v23 = vor.u32 1.1754944e-38, %v4142_v36  ;;  %vm4141_vm9 = vcmp.eq.f32.partialorder %v4140_v8, 8.507059e+37  ;;  %v15393_v36 = vld [vmem:[#allocation70_spill] sm:$0xff]  ;;  %v15394_v8 = vld [vmem:[#allocation71_spill] sm:$0xff] }
0x1bfb   :  { %v5026_v0 = vpop.eup %5025 }
0x1bfc   :  { %v4149_v7 = vadd.f32 1.0, %v5026_v0 }
0x1bfe   :  { %5029 = vrcp.f32 %v4149_v7  ;;  %v5028_v52 = vpop.eup %5027  ;;  %v4161_v48 = vand.u32 2147483648, %v4149_v7  ;;  %vm4155_vm15 = vweird.f32 %v4149_v7  ;;  %v4159_v47 = vand.u32 2147483647, %v4149_v7 }
0x1bff   :  { %v4132_v22 = vmul.f32 %v5028_v52, %v4130_v3  ;;  %vm4137_vm0 = vweird.f32 %v5028_v52 }
0x1c00   :  { %vm4138_vm6 = vmor %vm4136_vm5, %vm4137_vm0  ;;  %v4162_v46 = vor.u32 1.1754944e-38, %v4161_v48  ;;  %vm4160_vm8 = vcmp.eq.f32.partialorder %v4159_v47, 8.507059e+37  ;;  %v15390_v48 = vld [vmem:[#allocation67_spill] sm:$0xff]  ;;  %v15392_v47 = vld [vmem:[#allocation69_spill] sm:$0xff] }
0x1c01   :  { %v4133_v41 = vsub.f32 1.0, %v4132_v22 }
0x1c03   :  { %v4134_v53 = vmul.f32 %v5028_v52, %v4133_v41  ;;  %v15380_v41 = vld [vmem:[#allocation54_spill] sm:$0xff] }
0x1c04   :  { %v5030_v15 = vpop.eup %5029 }
0x1c05   :  { %v4151_v49 = vmul.f32 %v5030_v15, %v4149_v7  ;;  %vm4156_vm14 = vweird.f32 %v5030_v15  ;;  %v4135_v16 = vadd.f32 %v5028_v52, %v4134_v53  ;;  %v15387_v53 = vld [vmem:[#allocation64_spill] sm:$0xff] }
0x1c06   :  { %v4064_v33 = vpop.f32.mrf.mxu1  ;;  %vm4157_vm4 = vmor %vm4155_vm15, %vm4156_vm14 }
0x1c07   :  { %v4152_v6 = vsub.f32 1.0, %v4151_v49  ;;  %v4124_v35 = vpop.f32.mrf.mxu0  ;;  %v4065_v37 = vadd.f32 %v4064_v33, %v4045_v10  ;;  %v4139_v30 = vsel %vm4138_vm6, %v5028_v52, %v4135_v16  ;;  %v15379_v33 = vld [vmem:[#allocation57_spill] sm:$0xff]  ;;  %v15382_v10 = vld [vmem:[#allocation59_spill] sm:$0xff]  ;;  %v15391_v16 = vld [vmem:[#allocation68_spill] sm:$0xff] }
0x1c08   :  { %v4125_v62 = vadd.f32 %v4124_v35, %v4105_v19  ;;  %v4144_v13 = vsel %vm4141_vm9, %v4143_v23, %v4139_v30  ;;  %v15381_v35 = vld [vmem:[#allocation58_spill] sm:$0xff]  ;;  %v15398_v30 = vld [vmem:[#allocation75_spill] sm:$0xff] }
0x1c09   :  { %v4153_v5 = vmul.f32 %v5030_v15, %v4152_v6  ;;  %v15378_v6 = vld [vmem:[#allocation56_spill] sm:$0xff]  ;;  %v15401_v23 = vld [vmem:[#allocation78_spill] sm:$0xff] }
0x1c0a   :  { %v4835_v28 = vmul.f32 -1.442695, %v4125_v62  ;;  %v15383_v62 = vld [vmem:[#allocation60_spill] sm:$0xff] }
0x1c0b   :  { %v4154_v58 = vadd.f32 %v5030_v15, %v4153_v5  ;;  %v15384_v5 = vld [vmem:[#allocation61_spill] sm:$0xff] }
0x1c0c   :  { %5031 = vpow2.f32 %v4835_v28  ;;  %v15386_v28 = vld [vmem:[#allocation63_spill] sm:$0xff] }
0x1c0d   :  { %5033 = vtanh.f32 %v4065_v37  ;;  %v4158_v25 = vsel %vm4157_vm4, %v5030_v15, %v4154_v58  ;;  %v15385_v37 = vld [vmem:[#allocation62_spill] sm:$0xff] }
0x1c0e   :  { %v4163_v11 = vsel %vm4160_vm8, %v4162_v46, %v4158_v25  ;;  %v15389_v58 = vld [vmem:[#allocation66_spill] sm:$0xff]  ;;  %v15395_v25 = vld [vmem:[#allocation72_spill] sm:$0xff] }
0x1c0f   :  { %v4185_v1 = vmul.f32 %v4163_v11, %v12571_v50  ;;  %v15397_v46 = vld [vmem:[#allocation74_spill] sm:$0xff]  ;;  %v15402_v11 = vld [vmem:[#allocation79_spill] sm:$0xff] }
0x1c12   :  { %v5032_v56 = vpop.eup %5031 }
0x1c13   :  { %v4169_v59 = vadd.f32 1.0, %v5032_v56  ;;  %v5034_v12 = vpop.eup %5033  ;;  %v15396_v56 = vld [vmem:[#allocation73_spill] sm:$0xff] }
0x1c14   :  { %v4186_v0 = vmul.f32 %v5034_v12, %v4144_v13  ;;  %v15400_v12 = vld [vmem:[#allocation77_spill] sm:$0xff]  ;;  %v15403_v13 = vld [vmem:[#allocation80_spill] sm:$0xff] }
0x1c15   :  { %5035 = vrcp.f32 %v4169_v59  ;;  %v4181_v22 = vand.u32 2147483648, %v4169_v59  ;;  %v4179_v45 = vand.u32 2147483647, %v4169_v59  ;;  %vm4175_vm11 = vweird.f32 %v4169_v59 }
0x1c16   :  { %v13260_v2 = vadd.f32 %v4186_v0, %v4185_v1  ;;  %v15404_v1 = vld [vmem:[#allocation81_spill] sm:$0xff]  ;;  %v15405_v0 = vld [vmem:[#allocation82_spill] sm:$0xff] }
0x1c17   :  { %v4182_v38 = vor.u32 1.1754944e-38, %v4181_v22  ;;  %vm4180_vm13 = vcmp.eq.f32.partialorder %v4179_v45, 8.507059e+37 }
0x1c18   :  { %5037 = vtanh.f32 %v13260_v2 }
0x1c1b   :  { %v5036_v7 = vpop.eup %5035 }
0x1c1c   :  { %v4171_v3 = vmul.f32 %v5036_v7, %v4169_v59  ;;  %vm4176_vm10 = vweird.f32 %v5036_v7  ;;  %v15399_v59 = vld [vmem:[#allocation76_spill] sm:$0xff] }
0x1c1d   :  { %vm4177_vm12 = vmor %vm4175_vm11, %vm4176_vm10 }
0x1c1e   :  { %v4172_v27 = vsub.f32 1.0, %v4171_v3  ;;  %v5038_v49 = vpop.eup %5037  ;;  %v15407_v3 = vld [vmem:[#allocation84_spill] sm:$0xff] }
0x1c20   :  { %v4173_v52 = vmul.f32 %v5036_v7, %v4172_v27  ;;  %v15408_v27 = vld [vmem:[#allocation85_spill] sm:$0xff] }
0x1c22   :  { %v4174_v15 = vadd.f32 %v5036_v7, %v4173_v52  ;;  %v15409_v52 = vld [vmem:[#allocation89_spill] sm:$0xff] }
0x1c24   :  { %v4178_v42 = vsel %vm4177_vm12, %v5036_v7, %v4174_v15  ;;  %v15406_v7 = vld [vmem:[#allocation83_spill] sm:$0xff] }
0x1c25   :  { %v4183_v50 = vsel %vm4180_vm13, %v4182_v38, %v4178_v42 }
0x1c26   :  { %v13263_v19 = vmul.f32 %v5038_v49, %v4183_v50  ;;  %v15410_v49 = vld [vmem:[#allocation86_spill] sm:$0xff] }
0x1c28   :  { %4206 = vmatmul.f32.vlgmr.msra.gmra.mxu1 %v13263_v19  ;;  %4274 = vmatmul.f32.vlgmr.msra.gmra.mxu3 %v13263_v19 }
0x1c29   :  { %4532 = vmatpush.msra.mxu1 %v12581_v21  ;;  %4572 = vmatpush.msra.mxu3 %v15378_v6  ;;  %v15388_v21 = vld [vmem:[#allocation65_spill] sm:$0xff] }
0x1c2b   :  { %4533 = vmatpush.msra.mxu1 %v15379_v33  ;;  %4573 = vmatpush.msra.mxu3 %v15380_v41 }
0x1c2d   :  { %4534 = vmatpush.msra.mxu1 %v15381_v35  ;;  %4574 = vmatpush.msra.mxu3 %v15382_v10  ;;  %v15411_v35 = vld [vmem:[#allocation87_spill] sm:$0xff] }
0x1c2f   :  { %4535 = vmatpush.msra.mxu1 %v15383_v62  ;;  %4575 = vmatpush.msra.mxu3 %v15384_v5  ;;  %v15412_v62 = vld [vmem:[#allocation88_spill] sm:$0xff] }
0x1c31   :  { %4536 = vmatpush.msra.mxu1 %v15385_v37  ;;  %4576 = vmatpush.msra.mxu3 %v15386_v28 }
0x1c33   :  { %4537 = vmatpush.msra.mxu1 %v15387_v53  ;;  %4577 = vmatpush.msra.mxu3 %v15388_v21  ;;  %v15413_v53 = vld [vmem:[#allocation91_spill] sm:$0xff] }
0x1c35   :  { %4538 = vmatpush.msra.mxu1 %v15389_v58  ;;  %4578 = vmatpush.msra.mxu3 %v15390_v48  ;;  %v15414_v48 = vld [vmem:[#allocation90_spill] sm:$0xff] }
0x1c37   :  { %4539 = vmatpush.msra.mxu1 %v15391_v16  ;;  %4579 = vmatpush.msra.mxu3 %v15392_v47 }
0x1c39   :  { %4540 = vmatpush.msra.mxu1 %v15393_v36  ;;  %4580 = vmatpush.msra.mxu3 %v15394_v8  ;;  %v15415_v8 = vld [vmem:[#allocation92_spill] sm:$0xff] }
0x1c3b   :  { %4541 = vmatpush.msra.mxu1 %v15395_v25  ;;  %4581 = vmatpush.msra.mxu3 %v15396_v56 }
0x1c3d   :  { %4542 = vmatpush.msra.mxu1 %v15397_v46  ;;  %4582 = vmatpush.msra.mxu3 %v15398_v30 }
0x1c3f   :  { %4543 = vmatpush.msra.mxu1 %v15399_v59  ;;  %4583 = vmatpush.msra.mxu3 %v15400_v12 }
0x1c41   :  { %4544 = vmatpush.msra.mxu1 %v15401_v23  ;;  %4584 = vmatpush.msra.mxu3 %v15402_v11 }
0x1c43   :  { %4545 = vmatpush.msra.mxu1 %v15403_v13  ;;  %4585 = vmatpush.msra.mxu3 %v15404_v1 }
0x1c45   :  { %4546 = vmatpush.msra.mxu1 %v15405_v0  ;;  %4586 = vmatpush.msra.mxu3 %v15406_v7  ;;  %v15416_v7 = vld [vmem:[#allocation10_spill] sm:$0xff] }
0x1c47   :  { %4547 = vmatpush.msra.mxu1 %v15407_v3  ;;  %4587 = vmatpush.msra.mxu3 %v15408_v27 }
0x1ca5   :  { %v4207_v22 = vpop.f32.mrf.mxu1 }
0x1ca6   :  { %v4208_v45 = vadd.f32 %v15409_v52, %v4207_v22 }
0x1ca8   :  { %v4211_v15 = vrot.slane %v4208_v45, 1  ;;  %4213 = vst [vmem:[#allocation3 + $0x6] sm:$0x1] %v4208_v45  ;;  %v4215_v38 = vsel %vm944_vm7, %v4208_v45, -inf }
0x1ca9   :  { %4216 = vmax.xlane.f32.xlu2 %v4215_v38 }
0x1caa   :  { %4214 = vst [vmem:[#allocation3 + $0xe] sm:$0x1] %v4211_v15 }
0x1cab   :  { %v4275_v42 = vpop.f32.mrf.mxu3 }
0x1cac   :  { %v4276_v50 = vadd.f32 %v15410_v49, %v4275_v42 }
0x1cae   :  { %v4279_v6 = vrot.slane %v4276_v50, 1  ;;  %v4280_v33 = vperm.slane %v4276_v50, 0 }
0x1cb0   :  { %v4281_v41 = vperm.slane %v4279_v6, 0  ;;  %v4285_v10 = vadd.f32 %v15411_v35, %v4280_v33  ;;  %v4284_v5 = vadd.f32 %v15412_v62, %v4280_v33 }
0x1cb2   :  { %v4289_v37 = vmax.f32 %v4285_v10, 0.0  ;;  %v4288_v28 = vmax.f32 %v4284_v5, 0.0  ;;  %v4286_v16 = vadd.f32 %v15414_v48, %v4281_v41  ;;  %v4287_v25 = vadd.f32 %v15415_v8, %v4281_v41 }
0x1cb4   :  { %v4293_v21 = vmul.f32 %v15413_v53, %v4289_v37  ;;  %v4292_v58 = vmul.f32 %v15413_v53, %v4288_v28  ;;  %v4290_v47 = vmax.f32 %v4286_v16, 0.0  ;;  %v4291_v56 = vmax.f32 %v4287_v25, 0.0 }
0x1cb6   :  { %4298 = vadd.xlane.f32.xlu0 %v4293_v21  ;;  %4296 = vadd.xlane.f32.xlu1 %v4292_v58  ;;  %v4294_v36 = vmul.f32 %v15413_v53, %v4290_v47  ;;  %v4295_v46 = vmul.f32 %v15413_v53, %v4291_v56 }
0x1cbe   :  { %4300 = vadd.xlane.f32.xlu0 %v4294_v36 }
0x1cc6   :  { %4302 = vadd.xlane.f32.xlu0 %v4295_v46 }
0x1d1c   :  { %v4217_v30 = vpop.xlane.xlu2 %4216 }
0x1d1d   :  { %vm4218_vm14 = vcmp.eq.f32.partialorder %v4208_v45, %v4217_v30 }
0x1d1e   :  { %v4219_v59 = vsel %vm4218_vm14, %v14507_v20, 128 }
0x1d1f   :  { %v4220_v12 = vsel %vm944_vm7, %v4219_v59, 2147483647 }
0x1d20   :  { %v4222_v23 = vshra.s32 %v4220_v12, 16  ;;  %v4221_v35 = vand.u32 65535, %v4220_v12 }
0x1d22   :  { %v4224_v11 = vcvt.s32.f32 %v4222_v23  ;;  %v4223_v62 = vcvt.s32.f32 %v4221_v35  ;;  %v5906_v35 = vld [vmem:[%s13661_s10 + $0x10] sm:$0xff] }
0x1d24   :  { %4225 = vmin.xlane.f32.xlu2 %v4224_v11 }
0x1d29   :  { %v4299_v13 = vpop.xlane.xlu0 %4298  ;;  %v4297_v0 = vpop.xlane.xlu1 %4296 }
0x1d2a   :  { %v4305_v3 = vadd.f32 %v4299_v13, %v15416_v7  ;;  %v4304_v27 = vadd.f32 %v4297_v0, %v15416_v7  ;;  %v5891_v0 = vld [vmem:[%s13661_s10 + $0x1f0] sm:$0xff] }
0x1d2c   :  { %v4313_v15 = vperm.slane %v4305_v3, %v14509_v34  ;;  %v4312_v45 = vperm.slane %v4304_v27, %v14507_v20 }
0x1d2e   :  { %v4314_v50 = vsel %vm484_vm2, %v4313_v15, %v4312_v45  ;;  %v5898_v15 = vld [vmem:[%s13661_s10 + $0x110] sm:$0xff] }
0x1d2f   :  { %v5899_v45 = vld [vmem:[%s13661_s10 + $0xf0] sm:$0xff] }
0x1d31   :  { %v4301_v1 = vpop.xlane.xlu0 %4300 }
0x1d32   :  { %v4306_v22 = vadd.f32 %v4301_v1, %v15416_v7 }
0x1d34   :  { %v4315_v42 = vperm.slane %v4306_v22, %v14507_v20 }
0x1d39   :  { %v4303_v52 = vpop.xlane.xlu0 %4302 }
0x1d3a   :  { %v4307_v38 = vadd.f32 %v4303_v52, %v15416_v7  ;;  %v5892_v7 = vld [vmem:[%s13661_s10 + $0x1d0] sm:$0xff] }
0x1d3b   :  { %v5897_v52 = vld [vmem:[%s13661_s10 + $0x130] sm:$0xff] }
0x1d3c   :  { %v4316_v49 = vperm.slane %v4307_v38, %v14509_v34 }
0x1d3e   :  { %v4317_v6 = vsel %vm484_vm2, %v4316_v49, %v4315_v42  ;;  %v5901_v42 = vld [vmem:[%s13661_s10 + $0xb0] sm:$0xff] }
0x1d3f   :  { %v4318_v33 = vsel %vm371_vm1, %v4317_v6, %v4314_v50  ;;  %v5902_v50 = vld [vmem:[%s13661_s10 + $0x90] sm:$0xff] }
0x1d40   :  { %v4320_v41 = vsel %vm491_vm3, %v4318_v33, -inf  ;;  %v5903_v6 = vld [vmem:[%s13661_s10 + $0x70] sm:$0xff] }
0x1d41   :  { %4321 = vmax.xlane.f32.xlu1 %v4320_v41  ;;  %v5904_v33 = vld [vmem:[%s13661_s10 + $0x50] sm:$0xff] }
0x1d42   :  { %v5905_v41 = vld [vmem:[%s13661_s10 + $0x30] sm:$0xff] }
0x1d97   :  { %v4226_v10 = vpop.xlane.xlu2 %4225 }
0x1d98   :  { %vm4227_vm7 = vcmp.eq.f32.partialorder %v4224_v11, %v4226_v10  ;;  %v4232_v12 = vcvt.f32.s32 %v4226_v10  ;;  %v5907_v10 = vld [vmem:[%s13661_s10 + $0x3f8] sm:$0xff] }
0x1d99   :  { %v4228_v5 = vsel %vm4227_vm7, %v4223_v62, inf }
0x1d9a   :  { %4229 = vmin.xlane.f32.xlu0 %v4228_v5  ;;  %v4233_v11 = vshll.u32 %v4232_v12, 16 }
0x1db4   :  { %v4322_v37 = vpop.xlane.xlu1 %4321 }
0x1db5   :  { %v4324_v28 = vperm.slane %v4322_v37, 0  ;;  %v4325_v53 = vperm.slane %v4322_v37, 1  ;;  %v5908_v37 = vld [vmem:[%s13661_s10 + $0x3d8] sm:$0xff] }
0x1db7   :  { %v4328_v21 = vsub.f32 %v4304_v27, %v4324_v28  ;;  %v4329_v58 = vsub.f32 %v4305_v3, %v4324_v28  ;;  %v4330_v48 = vsub.f32 %v4306_v22, %v4325_v53  ;;  %v4331_v8 = vsub.f32 %v4307_v38, %v4325_v53  ;;  %v5893_v3 = vld [vmem:[%s13661_s10 + $0x1b0] sm:$0xff] }
0x1db8   :  { %v5894_v27 = vld [vmem:[%s13661_s10 + $0x190] sm:$0xff] }
0x1db9   :  { %v4332_v16 = vmul.f32 1.442695, %v4328_v21  ;;  %v4334_v47 = vmul.f32 1.442695, %v4329_v58  ;;  %v4336_v36 = vmul.f32 1.442695, %v4330_v48 }
0x1dba   :  { %v4338_v25 = vmul.f32 1.442695, %v4331_v8  ;;  %v5896_v22 = vld [vmem:[%s13661_s10 + $0x150] sm:$0xff]  ;;  %v5910_v8 = vld [vmem:[%s13661_s10 + $0x398] sm:$0xff] }
0x1dbb   :  { %5039 = vpow2.f32 %v4332_v16  ;;  %v5900_v38 = vld [vmem:[%s13661_s10 + $0xd0] sm:$0xff]  ;;  %v5909_v16 = vld [vmem:[%s13661_s10 + $0x3b8] sm:$0xff] }
0x1dbc   :  { %5041 = vpow2.f32 %v4334_v47 }
0x1dbd   :  { %5043 = vpow2.f32 %v4336_v36 }
0x1dbe   :  { %5045 = vpow2.f32 %v4338_v25 }
0x1dc1   :  { %v13324_v56 = vpop.eup %5039 }
0x1dc2   :  { %v13326_v46 = vpop.eup %5041  ;;  %4345 = vperm.xlu2 %4848, %v13324_v56  }
0x1dc3   :  { %v13329_v30 = vpop.eup %5043  ;;  %4348 = vperm.xlu1 %4850, %v13326_v46  }
0x1dc4   :  { %4351 = vperm.xlu0 %4849, %v13329_v30   ;;  %v13333_v59 = vpop.eup %5045 }
0x1dca   :  { %4354 = vperm.xlu2 %4848, %v13333_v59  }
0x1e0d   :  { %v4230_v23 = vpop.xlane.xlu0 %4229 }
0x1e0e   :  { %v4231_v13 = vcvt.f32.s32 %v4230_v23  ;;  %v5911_v23 = vld [vmem:[%s13661_s10 + $0x378] sm:$0xff] }
0x1e10   :  { %v4234_v1 = vadd.s32 %v4233_v11, %v4231_v13  ;;  %v5912_v11 = vld [vmem:[%s13661_s10 + $0x358] sm:$0xff] }
0x1e11   :  { %v5913_v13 = vld [vmem:[%s13661_s10 + $0x338] sm:$0xff] }
0x1e12   :  { %vm4235_vm15 = vcmp.eq.s32.totalorder %v14507_v20, %v4234_v1  ;;  %v5914_v1 = vld [vmem:[%s13661_s10 + $0x318] sm:$0xff] }
0x1e13   :  { %4837 = vmatmul.msk.f32.vlgmr.msra.gmra.mxu2 %vm4235_vm15, %v14510_v31  ;;  %v5895_v31 = vld [vmem:[%s13661_s10 + $0x170] sm:$0xff] }
0x1e14   :  { %4552 = vmatpush.msra.mxu2 %v5891_v0  ;;  %v5915_v0 = vld [vmem:[%s13661_s10 + $0x2f8] sm:$0xff] }
0x1e16   :  { %4553 = vmatpush.msra.mxu2 %v5892_v7  ;;  %v5916_v7 = vld [vmem:[%s13661_s10 + $0x2d8] sm:$0xff] }
0x1e18   :  { %4554 = vmatpush.msra.mxu2 %v5893_v3  ;;  %v5917_v3 = vld [vmem:[%s13661_s10 + $0x2b8] sm:$0xff] }
0x1e1a   :  { %4555 = vmatpush.msra.mxu2 %v5894_v27  ;;  %v5918_v27 = vld [vmem:[%s13661_s10 + $0x298] sm:$0xff] }
0x1e1b   :  { %4488 = vmatmul.f32.vlgmr.msrb.gmra.mxu2 %v13263_v19 }
0x1e1c   :  { %4556 = vmatpush.msra.mxu2 %v5895_v31  ;;  %v4346_v49 = vpop.permute.xlu2 %4345  ;;  %v5919_v31 = vld [vmem:[%s13661_s10 + $0x278] sm:$0xff] }
0x1e1d   :  { %v4356_v28 = vperm.slane %v4346_v49, %v14507_v20  ;;  %v5925_v49 = vld [vmem:[%s13661_s10 + $0x1b8] sm:$0xff] }
0x1e1e   :  { %4557 = vmatpush.msra.mxu2 %v5896_v22  ;;  %v5920_v22 = vld [vmem:[%s13661_s10 + $0x258] sm:$0xff] }
0x1e20   :  { %4558 = vmatpush.msra.mxu2 %v5897_v52  ;;  %v5921_v52 = vld [vmem:[%s13661_s10 + $0x238] sm:$0xff] }
0x1e22   :  { %4559 = vmatpush.msra.mxu2 %v5898_v15  ;;  %v5922_v15 = vld [vmem:[%s13661_s10 + $0x218] sm:$0xff] }
0x1e24   :  { %4560 = vmatpush.msra.mxu2 %v5899_v45  ;;  %v4355_v62 = vpop.permute.xlu2 %4354 }
0x1e25   :  { %v4360_v58 = vperm.slane %v4355_v62, %v14509_v34  ;;  %v5932_v62 = vld [vmem:[%s13661_s10 + $0xd8] sm:$0xff] }
0x1e26   :  { %4561 = vmatpush.msra.mxu2 %v5900_v38  ;;  %v5923_v38 = vld [vmem:[%s13661_s10 + $0x1f8] sm:$0xff] }
0x1e28   :  { %4562 = vmatpush.msra.mxu2 %v5901_v42  ;;  %v5924_v42 = vld [vmem:[%s13661_s10 + $0x1d8] sm:$0xff] }
0x1e2a   :  { %4563 = vmatpush.msra.mxu2 %v5902_v50  ;;  %v5926_v50 = vld [vmem:[%s13661_s10 + $0x198] sm:$0xff] }
0x1e2c   :  { %4564 = vmatpush.msra.mxu2 %v5903_v6  ;;  %v5927_v6 = vld [vmem:[%s13661_s10 + $0x178] sm:$0xff] }
0x1e2e   :  { %4565 = vmatpush.msra.mxu2 %v5904_v33  ;;  %v5928_v33 = vld [vmem:[%s13661_s10 + $0x158] sm:$0xff] }
0x1e30   :  { %4566 = vmatpush.msra.mxu2 %v5905_v41  ;;  %v5929_v41 = vld [vmem:[%s13661_s10 + $0x138] sm:$0xff] }
0x1e32   :  { %4567 = vmatpush.msra.mxu2 %v5906_v35  ;;  %v5930_v35 = vld [vmem:[%s13661_s10 + $0x118] sm:$0xff] }
0x1e34   :  { %4632 = vmatpush.msrb.mxu2 %v5907_v10  ;;  %v5931_v10 = vld [vmem:[%s13661_s10 + $0xf8] sm:$0xff] }
0x1e35   :  { %v4349_v5 = vpop.permute.xlu1 %4348 }
0x1e36   :  { %4633 = vmatpush.msrb.mxu2 %v5908_v37  ;;  %v4357_v53 = vperm.slane %v4349_v5, %v14509_v34  ;;  %v4352_v21 = vpop.permute.xlu0 %4351  ;;  %v5933_v5 = vld [vmem:[%s13661_s10 + $0xb8] sm:$0xff] }
0x1e37   :  { %v4359_v48 = vperm.slane %v4352_v21, %v14507_v20  ;;  %v5934_v37 = vld [vmem:[%s13661_s10 + $0x98] sm:$0xff] }
0x1e38   :  { %4634 = vmatpush.msrb.mxu2 %v5909_v16  ;;  %v4358_v47 = vsel %vm484_vm2, %v4357_v53, %v4356_v28  ;;  %v5935_v53 = vld [vmem:[%s13661_s10 + $0x78] sm:$0xff] }
0x1e39   :  { %v4361_v36 = vsel %vm484_vm2, %v4360_v58, %v4359_v48  ;;  %v5936_v21 = vld [vmem:[%s13661_s10 + $0x58] sm:$0xff] }
0x1e3a   :  { %4635 = vmatpush.msrb.mxu2 %v5910_v8  ;;  %v4362_v25 = vsel %vm371_vm1, %v4361_v36, %v4358_v47  ;;  %v5937_v58 = vld [vmem:[%s13661_s10 + $0x38] sm:$0xff] }
0x1e3b   :  { %v4364_v12 = vsel %vm491_vm3, %v4362_v25, 0.0  ;;  %v5938_v16 = vld [vmem:[%s13661_s10 + $0x18] sm:$0xff] }
0x1e3c   :  { %4636 = vmatpush.msrb.mxu2 %v5911_v23  ;;  %4365 = vadd.xlane.f32.xlu0 %v4364_v12 }
0x1e3e   :  { %4637 = vmatpush.msrb.mxu2 %v5912_v11 }
0x1e40   :  { %4638 = vmatpush.msrb.mxu2 %v5913_v13 }
0x1e42   :  { %4639 = vmatpush.msrb.mxu2 %v5914_v1 }
0x1e44   :  { %4640 = vmatpush.msrb.mxu2 %v5915_v0 }
0x1e46   :  { %4641 = vmatpush.msrb.mxu2 %v5916_v7 }
0x1e48   :  { %4642 = vmatpush.msrb.mxu2 %v5917_v3 }
0x1e4a   :  { %4643 = vmatpush.msrb.mxu2 %v5918_v27 }
0x1e4c   :  { %4644 = vmatpush.msrb.mxu2 %v5919_v31 }
0x1e4e   :  { %4645 = vmatpush.msrb.mxu2 %v5920_v22 }
0x1e50   :  { %4646 = vmatpush.msrb.mxu2 %v5921_v52 }
0x1e52   :  { %4647 = vmatpush.msrb.mxu2 %v5922_v15 }
0x1e96   :  { %v13443_v45 = vpop.f32.mrf.mxu2 }
0x1e97   :  { %4468 = vmatmul.f32.vlgmr.msrb.gmra.mxu1 %v13443_v45 }
0x1e98   :  { %4612 = vmatpush.msrb.mxu1 %v5923_v38  ;;  %v5939_v38 = vld [vmem:[%s13651_s0 + $0x8] sm:$0xff] }
0x1e9a   :  { %4613 = vmatpush.msrb.mxu1 %v5924_v42 }
0x1e9c   :  { %4614 = vmatpush.msrb.mxu1 %v5925_v49 }
0x1e9e   :  { %4615 = vmatpush.msrb.mxu1 %v5926_v50 }
0x1e9f   :  { %4548 = vmatmul.f32.vlgmr.msra.gmra.mxu1 %v13263_v19 }
0x1ea0   :  { %4616 = vmatpush.msrb.mxu1 %v5927_v6 }
0x1ea2   :  { %4617 = vmatpush.msrb.mxu1 %v5928_v33 }
0x1ea4   :  { %4618 = vmatpush.msrb.mxu1 %v5929_v41 }
0x1ea6   :  { %4619 = vmatpush.msrb.mxu1 %v5930_v35  ;;  %v5941_v35 = vld [vmem:[%s13651_s0 + $0x18] sm:$0xff] }
0x1ea8   :  { %4620 = vmatpush.msrb.mxu1 %v5931_v10 }
0x1eaa   :  { %4621 = vmatpush.msrb.mxu1 %v5932_v62 }
0x1eac   :  { %4622 = vmatpush.msrb.mxu1 %v5933_v5  ;;  %v5942_v5 = vld [vmem:[%s13651_s0 + $0x10] sm:$0xff] }
0x1eae   :  { %4623 = vmatpush.msrb.mxu1 %v5934_v37 }
0x1eaf   :  { %v4366_v28 = vpop.xlane.xlu0 %4365 }
0x1eb0   :  { %5047 = vrcp.f32 %v4366_v28  ;;  %4624 = vmatpush.msrb.mxu1 %v5935_v53  ;;  %v4378_v8 = vand.u32 2147483648, %v4366_v28  ;;  %v4376_v12 = vand.u32 2147483647, %v4366_v28  ;;  %vm4372_vm4 = vweird.f32 %v4366_v28 }
0x1eb2   :  { %4625 = vmatpush.msrb.mxu1 %v5936_v21  ;;  %v4379_v11 = vor.u32 1.1754944e-38, %v4378_v8  ;;  %vm4377_vm6 = vcmp.eq.f32.partialorder %v4376_v12, 8.507059e+37 }
0x1eb4   :  { %4626 = vmatpush.msrb.mxu1 %v5937_v58 }
0x1eb6   :  { %v5048_v48 = vpop.eup %5047  ;;  %4627 = vmatpush.msrb.mxu1 %v5938_v16 }
0x1eb7   :  { %v4368_v47 = vmul.f32 %v5048_v48, %v4366_v28  ;;  %vm4373_vm0 = vweird.f32 %v5048_v48 }
0x1eb8   :  { %vm4374_vm5 = vmor %vm4372_vm4, %vm4373_vm0 }
0x1eb9   :  { %v4369_v36 = vsub.f32 1.0, %v4368_v47 }
0x1ebb   :  { %v4370_v25 = vmul.f32 %v5048_v48, %v4369_v36 }
0x1ebd   :  { %v4371_v23 = vadd.f32 %v5048_v48, %v4370_v25 }
0x1ebf   :  { %v4375_v13 = vsel %vm4374_vm5, %v5048_v48, %v4371_v23 }
0x1ec0   :  { %v4380_v1 = vsel %vm4377_vm6, %v4379_v11, %v4375_v13 }
0x1ec1   :  { %v4382_v0 = vperm.slane %v4380_v1, 0  ;;  %v4383_v27 = vperm.slane %v4380_v1, 1  ;;  %v5943_v1 = vld [vmem:[%s13661_s10 + $0x5f0] sm:$0xff] }
0x1ec3   :  { %v4387_v7 = vmul.f32 %v13326_v46, %v4382_v0  ;;  %v4386_v3 = vmul.f32 %v13324_v56, %v4382_v0  ;;  %v4389_v31 = vmul.f32 %v13333_v59, %v4383_v27  ;;  %v4388_v22 = vmul.f32 %v13329_v30, %v4383_v27  ;;  %v5940_v56 = vld [vmem:[%s13651_s0] sm:$0xff]  ;;  %v5944_v0 = vld [vmem:[%s13661_s10 + $0x5f8] sm:$0xff]  ;;  %v5947_v27 = vld [vmem:[%s13661_s10 + $0x5b0] sm:$0xff] }
0x1ec5   :  { %4397 = vperm.xlu2 %4848, %v4387_v7   ;;  %4392 = vperm.xlu1 %4850, %v4386_v3   ;;  %v5945_v7 = vld [vmem:[%s13661_s10 + $0x5d0] sm:$0xff]  ;;  %v5946_v3 = vld [vmem:[%s13661_s10 + $0x5d8] sm:$0xff] }
0x1ecd   :  { %4407 = vperm.xlu2 %4848, %v4389_v31   ;;  %4402 = vperm.xlu1 %4850, %v4388_v22   ;;  %v5948_v31 = vld [vmem:[%s13661_s10 + $0x5b8] sm:$0xff]  ;;  %v5949_v22 = vld [vmem:[%s13661_s10 + $0x590] sm:$0xff] }
0x1f1f   :  { %v4398_v52 = vpop.permute.xlu2 %4397 }
0x1f20   :  { %v4411_v42 = vmul.f32 %v5939_v38, %v4398_v52  ;;  %v4761_v33 = vperm.slane %v4398_v52, %v14509_v34  ;;  %v5950_v52 = vld [vmem:[%s13661_s10 + $0x598] sm:$0xff] }
0x1f21   :  { %v5952_v38 = vld [vmem:[%s13661_s10 + $0x578] sm:$0xff] }
0x1f27   :  { %v4408_v6 = vpop.permute.xlu2 %4407 }
0x1f28   :  { %v4413_v10 = vmul.f32 %v5941_v35, %v4408_v6  ;;  %v4764_v62 = vperm.slane %v4408_v6, %v14509_v34  ;;  %v5959_v6 = vld [vmem:[%s13661_s10 + $0x4f0] sm:$0xff]  ;;  %v5964_v35 = vld [vmem:[%s13661_s10 + $0x4b8] sm:$0xff] }
0x1f37   :  { %v4393_v15 = vpop.permute.xlu1 %4392 }
0x1f38   :  { %v4410_v46 = vmul.f32 %v5940_v56, %v4393_v15  ;;  %v4760_v30 = vperm.slane %v4393_v15, %v14507_v20  ;;  %v5951_v15 = vld [vmem:[%s13661_s10 + $0x570] sm:$0xff]  ;;  %v5954_v56 = vld [vmem:[%s13661_s10 + $0x558] sm:$0xff] }
0x1f3a   :  { %v4414_v49 = vadd.f32 %v4411_v42, %v4410_v46  ;;  %v4762_v21 = vsel %vm484_vm2, %v4761_v33, %v4760_v30  ;;  %v5953_v42 = vld [vmem:[%s13661_s10 + $0x550] sm:$0xff]  ;;  %v5962_v33 = vld [vmem:[%s13661_s10 + $0x4d8] sm:$0xff] }
0x1f3b   :  { %v5955_v46 = vld [vmem:[%s13661_s10 + $0x530] sm:$0xff] }
0x1f3c   :  { %v4415_v50 = vrot.slane %v4414_v49, 4  ;;  %v5961_v30 = vld [vmem:[%s13661_s10 + $0x4d0] sm:$0xff] }
0x1f3e   :  { %v4416_v59 = vadd.f32 %v4415_v50, %v4414_v49  ;;  %v5957_v49 = vld [vmem:[%s13661_s10 + $0x510] sm:$0xff]  ;;  %v5958_v50 = vld [vmem:[%s13661_s10 + $0x518] sm:$0xff] }
0x1f3f   :  { %v4403_v41 = vpop.permute.xlu1 %4402 }
0x1f40   :  { %v4412_v37 = vmul.f32 %v5942_v5, %v4403_v41  ;;  %v4763_v28 = vperm.slane %v4403_v41, %v14507_v20  ;;  %v4417_v53 = vrot.slane %v4416_v59, 2  ;;  %v5963_v41 = vld [vmem:[%s13661_s10 + $0x4b0] sm:$0xff] }
0x1f41   :  { %v5967_v5 = vld [vmem:[%s13661_s10 + $0x470] sm:$0xff] }
0x1f42   :  { %v4421_v58 = vadd.f32 %v4413_v10, %v4412_v37  ;;  %v4765_v48 = vsel %vm484_vm2, %v4764_v62, %v4763_v28  ;;  %v4418_v36 = vadd.f32 %v4417_v53, %v4416_v59  ;;  %v5960_v59 = vld [vmem:[%s13661_s10 + $0x4f8] sm:$0xff]  ;;  %v5965_v10 = vld [vmem:[%s13661_s10 + $0x490] sm:$0xff] }
0x1f43   :  { %v4766_v16 = vsel %vm371_vm1, %v4765_v48, %v4762_v21  ;;  %v5966_v62 = vld [vmem:[%s13661_s10 + $0x498] sm:$0xff]  ;;  %v5969_v28 = vld [vmem:[%s13661_s10 + $0x450] sm:$0xff] }
0x1f44   :  { %v4422_v47 = vrot.slane %v4421_v58, 4  ;;  %4768 = vst.msk [vmem:[#allocation5] sm:$0x3] %vm491_vm3, %v4766_v16  ;;  %v4419_v25 = vrot.slane %v4418_v36, 1  ;;  %v5968_v37 = vld [vmem:[%s13661_s10 + $0x478] sm:$0xff]  ;;  %v5971_v21 = vld [vmem:[%s13661_s10 + $0x430] sm:$0xff] }
0x1f45   :  { %v5970_v53 = vld [vmem:[%s13661_s10 + $0x458] sm:$0xff]  ;;  %v5973_v48 = vld [vmem:[%s13661_s10 + $0x410] sm:$0xff] }
0x1f46   :  { %v4423_v34 = vadd.f32 %v4422_v47, %v4421_v58  ;;  %v4420_v11 = vadd.f32 %v4419_v25, %v4418_v36  ;;  %v5972_v58 = vld [vmem:[%s13661_s10 + $0x438] sm:$0xff] }
0x1f47   :  { %v5974_v16 = vld [vmem:[%s13661_s10 + $0x418] sm:$0xff] }
0x1f48   :  { %v4424_v8 = vrot.slane %v4423_v34, 2 }
0x1f4a   :  { %v4425_v12 = vadd.f32 %v4424_v8, %v4423_v34 }
0x1f4c   :  { %v4426_v23 = vrot.slane %v4425_v12, 1 }
0x1f4e   :  { %v4427_v13 = vadd.f32 %v4426_v23, %v4425_v12 }
0x1f50   :  { %v4430_v20 = vsel %vm371_vm1, %v4427_v13, %v4420_v11 }
0x1f51   :  { %4448 = vmatmul.f32.vlgmr.msrb.gmra.mxu0 %v4430_v20  ;;  %4508 = vmatmul.f32.vlgmr.msrb.gmra.mxu3 %v4430_v20 }
0x1f52   :  { %4568 = vmatmul.f32.vlgmr.msra.gmra.mxu2 %v4430_v20  ;;  %4592 = vmatpush.msrb.mxu0 %v5943_v1 }
0x1f53   :  { %4628 = vmatmul.f32.vlgmr.msrb.gmra.mxu1 %v4430_v20  ;;  %4652 = vmatpush.msrb.mxu3 %v5944_v0 }
0x1f54   :  { %4593 = vmatpush.msrb.mxu0 %v5945_v7 }
0x1f55   :  { %4653 = vmatpush.msrb.mxu3 %v5946_v3 }
0x1f56   :  { %4594 = vmatpush.msrb.mxu0 %v5947_v27 }
0x1f57   :  { %4654 = vmatpush.msrb.mxu3 %v5948_v31 }
0x1f58   :  { %4595 = vmatpush.msrb.mxu0 %v5949_v22 }
0x1f59   :  { %4655 = vmatpush.msrb.mxu3 %v5950_v52  ;;  %4528 = vmatmul.f32.vlgmr.msra.gmra.mxu0 %v13443_v45 }
0x1f5a   :  { %4588 = vmatmul.f32.vlgmr.msra.gmra.mxu3 %v13443_v45  ;;  %4596 = vmatpush.msrb.mxu0 %v5951_v15 }
0x1f5b   :  { %4648 = vmatmul.f32.vlgmr.msrb.gmra.mxu2 %v13443_v45  ;;  %4656 = vmatpush.msrb.mxu3 %v5952_v38  ;;  %v5956_v45 = vld [vmem:[%s13661_s10 + $0x538] sm:$0xff]  ;;  %s6031_s10 = smov [#allocation5]  }
0x1f5c   :  { %4597 = vmatpush.msrb.mxu0 %v5953_v42  ;;  %s4787_s8 = sshll.u32 %s6031_s10, 4  ;;  %s4788_s8 = int_to_ptr.vmem [resolvable:$true] %s4787_s8 }
0x1f5d   :  { %4657 = vmatpush.msrb.mxu3 %v5954_v56  ;;  %4792 = dma.vmem_to_hbm [thread:$0]  %s4788_s8, 32, %s4790_s16, [#allocation6]  }
0x1f5e   :  { %4598 = vmatpush.msrb.mxu0 %v5955_v46 }
0x1f5f   :  { %4658 = vmatpush.msrb.mxu3 %v5956_v45 }
0x1f60   :  { %4599 = vmatpush.msrb.mxu0 %v5957_v49 }
0x1f61   :  { %4659 = vmatpush.msrb.mxu3 %v5958_v50 }
0x1f62   :  { %4600 = vmatpush.msrb.mxu0 %v5959_v6 }
0x1f63   :  { %4660 = vmatpush.msrb.mxu3 %v5960_v59 }
0x1f64   :  { %4601 = vmatpush.msrb.mxu0 %v5961_v30 }
0x1f65   :  { %4661 = vmatpush.msrb.mxu3 %v5962_v33 }
0x1f66   :  { %4602 = vmatpush.msrb.mxu0 %v5963_v41 }
0x1f67   :  { %4662 = vmatpush.msrb.mxu3 %v5964_v35 }
0x1f68   :  { %4603 = vmatpush.msrb.mxu0 %v5965_v10 }
0x1f69   :  { %4663 = vmatpush.msrb.mxu3 %v5966_v62 }
0x1f6a   :  { %4604 = vmatpush.msrb.mxu0 %v5967_v5 }
0x1f6b   :  { %4664 = vmatpush.msrb.mxu3 %v5968_v37 }
0x1f6c   :  { %4605 = vmatpush.msrb.mxu0 %v5969_v28 }
0x1f6d   :  { %4665 = vmatpush.msrb.mxu3 %v5970_v53 }
0x1f6e   :  { %4606 = vmatpush.msrb.mxu0 %v5971_v21 }
0x1f6f   :  { %4666 = vmatpush.msrb.mxu3 %v5972_v58 }
0x1f70   :  { %4607 = vmatpush.msrb.mxu0 %v5973_v48 }
0x1f71   :  { %4667 = vmatpush.msrb.mxu3 %v5974_v16  ;;  %4608 = vmatmul.f32.vlgmr.msrb.gmra.mxu0 %v13263_v19 }
0x1f72   :  { %4668 = vmatmul.f32.vlgmr.msrb.gmra.mxu3 %v13263_v19  ;;  %4735 = vmatpush.msra.mxu0 %v13052_v9  ;;  %v4469_v9 = vpop.f32.mrf.mxu1 }
0x1f74   :  { %4736 = vmatpush.msra.mxu0 %v13062_v63 }
0x1f76   :  { %4737 = vmatpush.msra.mxu0 %v13073_v4 }
0x1f78   :  { %4738 = vmatpush.msra.mxu0 %v13084_v55 }
0x1f7a   :  { %4739 = vmatpush.msra.mxu0 %v13095_v43  ;;  %v4489_v43 = vpop.f32.mrf.mxu2 }
0x1f7c   :  { %4740 = vmatpush.msra.mxu0 %v13103_v26 }
0x1f7e   :  { %4741 = vmatpush.msra.mxu0 %v13111_v61 }
0x1f80   :  { %4742 = vmatpush.msra.mxu0 %v13119_v29 }
0x1f82   :  { %4743 = vmatpush.msra.mxu0 %v13127_v40 }
0x1f84   :  { %4744 = vmatpush.msra.mxu0 %v13135_v24 }
0x1f86   :  { %4745 = vmatpush.msra.mxu0 %v13143_v18 }
0x1f88   :  { %4746 = vmatpush.msra.mxu0 %v13151_v51  ;;  %v4549_v51 = vpop.f32.mrf.mxu1 }
0x1f8a   :  { %4747 = vmatpush.msra.mxu0 %v13159_v32 }
0x1f8c   :  { %4748 = vmatpush.msra.mxu0 %v13167_v54 }
0x1f8e   :  { %4749 = vmatpush.msra.mxu0 %v13175_v60 }
0x1f90   :  { %4750 = vmatpush.msra.mxu0 %v13183_v14 }
0x1fce   :  { %v4449_v63 = vpop.f32.mrf.mxu0 }
0x1fcf   :  { %v4450_v4 = vadd.f32 %v4449_v63, %v15375_v17 }
0x1fd0   :  { %v4629_v25 = vpop.f32.mrf.mxu1 }
0x1fd1   :  { %v4470_v55 = vadd.f32 %v4469_v9, %v4450_v4  ;;  %v4630_v11 = vadd.f32 %v4629_v25, %v15377_v57 }
0x1fd3   :  { %v4490_v26 = vadd.f32 %v4489_v43, %v4470_v55 }
0x1fd4   :  { %v4509_v61 = vpop.f32.mrf.mxu3 }
0x1fd5   :  { %v4510_v29 = vadd.f32 %v4509_v61, %v15376_v39  ;;  %v4838_v24 = vmul.f32 -1.442695, %v4490_v26  ;;  %v4569_v17 = vpop.f32.mrf.mxu2  ;;  %v5975_v61 = vld [vmem:[%s13664_s13] ss:$0 sm:$0xff] }
0x1fd6   :  { %v4529_v40 = vpop.f32.mrf.mxu0  ;;  %v4570_v20 = vadd.f32 %v4569_v17, %v14654_v44 }
0x1fd7   :  { %v4530_v18 = vadd.f32 %v4529_v40, %v4510_v29  ;;  %5049 = vpow2.f32 %v4838_v24 }
0x1fd9   :  { %v4550_v32 = vadd.f32 %v4549_v51, %v4530_v18 }
0x1fdb   :  { %v4839_v54 = vmul.f32 -1.442695, %v4550_v32 }
0x1fdd   :  { %5051 = vpow2.f32 %v4839_v54  ;;  %v5050_v60 = vpop.eup %5049  ;;  %v4589_v34 = vpop.f32.mrf.mxu3 }
0x1fde   :  { %v4675_v19 = vadd.f32 1.0, %v5050_v60  ;;  %v4649_v23 = vpop.f32.mrf.mxu2  ;;  %v4590_v27 = vadd.f32 %v4589_v34, %v4570_v20 }
0x1fdf   :  { %v4650_v1 = vadd.f32 %v4649_v23, %v4630_v11 }
0x1fe0   :  { %v4687_v44 = vand.u32 2147483648, %v4675_v19  ;;  %vm4681_vm9 = vweird.f32 %v4675_v19  ;;  %v4685_v45 = vand.u32 2147483647, %v4675_v19 }
0x1fe2   :  { %v4688_v41 = vor.u32 1.1754944e-38, %v4687_v44  ;;  %vm4686_vm12 = vcmp.eq.f32.partialorder %v4685_v45, 8.507059e+37 }
0x1fe3   :  { %v5052_v14 = vpop.eup %5051 }
0x1fe4   :  { %v4694_v47 = vadd.f32 1.0, %v5052_v14 }
0x1fe6   :  { %5053 = vrcp.f32 %v4694_v47  ;;  %v4706_v56 = vand.u32 2147483648, %v4694_v47  ;;  %vm4700_vm2 = vweird.f32 %v4694_v47  ;;  %v4704_v46 = vand.u32 2147483647, %v4694_v47 }
0x1fe7   :  { %5055 = vrcp.f32 %v4675_v19 }
0x1fe8   :  { %v4707_v6 = vor.u32 1.1754944e-38, %v4706_v56  ;;  %vm4705_vm11 = vcmp.eq.f32.partialorder %v4704_v46, 8.507059e+37 }
0x1fec   :  { %v5054_v36 = vpop.eup %5053 }
0x1fed   :  { %v5056_v8 = vpop.eup %5055  ;;  %v4696_v39 = vmul.f32 %v5054_v36, %v4694_v47  ;;  %vm4701_vm1 = vweird.f32 %v5054_v36 }
0x1fee   :  { %v4677_v12 = vmul.f32 %v5056_v8, %v4675_v19  ;;  %v4609_v0 = vpop.f32.mrf.mxu0  ;;  %vm4682_vm3 = vweird.f32 %v5056_v8  ;;  %vm4702_vm8 = vmor %vm4700_vm2, %vm4701_vm1 }
0x1fef   :  { %v4697_v13 = vsub.f32 1.0, %v4696_v39  ;;  %v4610_v52 = vadd.f32 %v4609_v0, %v4590_v27  ;;  %vm4683_vm10 = vmor %vm4681_vm9, %vm4682_vm3 }
0x1ff0   :  { %v4678_v7 = vsub.f32 1.0, %v4677_v12 }
0x1ff1   :  { %v4698_v22 = vmul.f32 %v5054_v36, %v4697_v13 }
0x1ff2   :  { %v4679_v38 = vmul.f32 %v5056_v8, %v4678_v7 }
0x1ff3   :  { %v4699_v42 = vadd.f32 %v5054_v36, %v4698_v22 }
0x1ff4   :  { %v4680_v57 = vadd.f32 %v5056_v8, %v4679_v38 }
0x1ff5   :  { %v4669_v3 = vpop.f32.mrf.mxu3  ;;  %v4703_v49 = vsel %vm4702_vm8, %v5054_v36, %v4699_v42 }
0x1ff6   :  { %v4670_v31 = vadd.f32 %v4669_v3, %v4650_v1  ;;  %v4684_v59 = vsel %vm4683_vm10, %v5056_v8, %v4680_v57  ;;  %v4708_v35 = vsel %vm4705_vm11, %v4707_v6, %v4703_v49 }
0x1ff7   :  { %v4689_v10 = vsel %vm4686_vm12, %v4688_v41, %v4684_v59  ;;  %v4730_v62 = vmul.f32 %v4708_v35, %v13260_v2 }
0x1ff8   :  { %v4840_v15 = vmul.f32 -1.442695, %v4670_v31 }
0x1ffa   :  { %5057 = vpow2.f32 %v4840_v15 }
0x1ffb   :  { %5059 = vtanh.f32 %v4610_v52 }
0x2000   :  { %v5058_v50 = vpop.eup %5057 }
0x2001   :  { %v4714_v30 = vadd.f32 1.0, %v5058_v50  ;;  %v5060_v33 = vpop.eup %5059 }
0x2002   :  { %v4731_v5 = vmul.f32 %v5060_v33, %v4689_v10 }
0x2003   :  { %5061 = vrcp.f32 %v4714_v30  ;;  %v4726_v58 = vand.u32 2147483648, %v4714_v30  ;;  %v4724_v16 = vand.u32 2147483647, %v4714_v30  ;;  %vm4720_vm14 = vweird.f32 %v4714_v30 }
0x2004   :  { %v4732_v28 = vadd.f32 %v4731_v5, %v4730_v62 }
0x2005   :  { %v4727_v63 = vor.u32 1.1754944e-38, %v4726_v58  ;;  %vm4725_vm15 = vcmp.eq.f32.partialorder %v4724_v16, 8.507059e+37 }
0x2006   :  { %5063 = vtanh.f32 %v4732_v28 }
0x2009   :  { %v5062_v37 = vpop.eup %5061 }
0x200a   :  { %v4716_v53 = vmul.f32 %v5062_v37, %v4714_v30  ;;  %vm4721_vm13 = vweird.f32 %v5062_v37 }
0x200b   :  { %vm4722_vm7 = vmor %vm4720_vm14, %vm4721_vm13 }
0x200c   :  { %v4717_v21 = vsub.f32 1.0, %v4716_v53  ;;  %v5064_v55 = vpop.eup %5063 }
0x200e   :  { %v4718_v48 = vmul.f32 %v5062_v37, %v4717_v21 }
0x2010   :  { %v4719_v9 = vadd.f32 %v5062_v37, %v4718_v48 }
0x2012   :  { %v4723_v4 = vsel %vm4722_vm7, %v5062_v37, %v4719_v9 }
0x2013   :  { %v4728_v43 = vsel %vm4725_vm15, %v4727_v63, %v4723_v4 }
0x2014   :  { %v4734_v26 = vmul.f32 %v5064_v55, %v4728_v43 }
0x2016   :  { %4751 = vmatmul.f32.vlgmr.msra.gmra.mxu0 %v4734_v26 }
0x2093   :  { %v4752_v2 = vpop.f32.mrf.mxu0 }
0x2094   :  { %v4753_v29 = vadd.f32 %v5975_v61, %v4752_v2 }
0x2096   :  { %v4756_v40 = vrot.slane %v4753_v29, 1  ;;  %4758 = vst [vmem:[#allocation3 + $0x7] sm:$0x1] %v4753_v29 }
0x2098   :  { %4759 = vst [vmem:[#allocation3 + $0xf] sm:$0x1] %v4756_v40 }
0x2099   :  { %4781 = dma.vmem_to_hbm [thread:$0]  %s4774_s18, 256, %s4776_s20, [#allocation4], %s6033_s15, %s6033_s15, %s6034_s22  }
0x209a   :  { %6024 = dma.done.wait [#allocation4], 256  }
0x209b   :  { %6025 = vsyncadd [#allocation4], 4294967040 }
0x209c   :  { %6026 = dma.done.wait [#allocation6], 32  }
0x209d   :  { %6027 = vsyncadd [#allocation6], 4294967264 }
0x209e   :  { %4801 = vsyncpa [#allocation4], 1 }
0x209f   :  { %4802 = vsyncpa [#allocation6], 1 }

</bundles_post_ra>
